<compile_context>
chip_gen: v5e
topology: v5e:2x2
jax: 0.10.0
libtpu: 0.0.40
codegen_flags: <defaults>
</compile_context>

<pallas_src>
import jax
import jax.numpy as jnp
from jax import lax
from jax.experimental import pallas as pl
from jax.experimental.pallas import tpu as pltpu


def _out_size(s):
    # Conv2d(kernel=3, stride=2, padding=1) output size.
    return (s + 2 - 3) // 2 + 1


def _fused_base_conv_kernel(*refs):
    """refs = (x_ref, w_1..w_L, b_1..b_L, o_ref); processes one image (N block = 1)."""
    num_layers = (len(refs) - 2) // 2
    x_ref = refs[0]
    w_refs = refs[1:1 + num_layers]
    b_refs = refs[1 + num_layers:1 + 2 * num_layers]
    o_ref = refs[-1]

    x = x_ref[...]                                  # (1, H, W, Cin) - one image
    _, h, w, _ = x_ref.shape

    for l in range(num_layers):
        cin = w_refs[l].shape[2]
        cout = w_refs[l].shape[3]
        ho, wo = _out_size(h), _out_size(w)

        # ---- zero-pad H (top 1 row, bottom enough for the ky=2 tap window) ----
        pad_bot = 2 * ho + 1 - h
        ztop = jnp.zeros((1, 1, w, cin), jnp.float32)
        zbot = jnp.zeros((1, pad_bot, w, cin), jnp.float32)
        xh = jnp.concatenate([ztop, x, zbot], axis=1)        # (1, 2*ho+2, w, cin)
        x3 = xh.reshape(2 * ho + 2, w, cin)                  # leading-dim merge

        w_all = w_refs[l][...]                               # (3, 3, cin, cout)
        acc = jnp.zeros((ho, wo, cout), jnp.float32)

        for kx in range(3):
            # 0/1 selection matrix: output col j reads input col 2j + kx - 1.
            # Rows with no in-range match are all zero => implicit W padding.
            rr = lax.broadcasted_iota(jnp.int32, (wo, w), 0)
            cc = lax.broadcasted_iota(jnp.int32, (wo, w), 1)
            e = (cc == 2 * rr + (kx - 1)).astype(jnp.float32)     # (wo, w)
            eb = jnp.broadcast_to(e[None], (2 * ho + 2, wo, w))
            # Exact stride-2 column gather as a batched matmul (MXU).
            xc = lax.dot_general(
                eb, x3,
                dimension_numbers=(((2,), (1,)), ((0,), (0,))),
                preferred_element_type=jnp.float32)               # (2*ho+2, wo, cin)

            for ky in range(3):
                # Stride-2 row gather: padded row 2i + ky, via leading-dim reshape.
                t = xc[ky:ky + 2 * ho]                            # (2*ho, wo, cin)
                t = t.reshape(ho, 2, wo, cin)[:, 0]               # (ho, wo, cin)
                wt = w_all[ky, kx]                                # (cin, cout)
                wb = jnp.broadcast_to(wt[None], (ho, cin, cout))
                acc = acc + lax.dot_general(
                    t, wb,
                    dimension_numbers=(((2,), (1,)), ((0,), (0,))),
                    preferred_element_type=jnp.float32)           # (ho, wo, cout)

        y = jnp.maximum(acc + b_refs[l][...], 0.0)                # bias + ReLU
        x = y.reshape(1, ho, wo, cout)                            # next layer input
        h, w = ho, wo

    o_ref[...] = x.astype(o_ref.dtype)                            # (1, Hf, Wf, Cout)


def prepare_base_conv_params(params):
    """Torch-layout (Cout,Cin,3,3)/(Cout,) params -> kernel layout, done once."""
    wts, bs = [], []
    for w, b in params:
        wts.append(jnp.transpose(w, (2, 3, 1, 0)))   # (3, 3, Cin, Cout)
        bs.append(b.reshape(1, -1))                  # (1, Cout)
    return tuple(wts), tuple(bs)


@jax.jit
def base_conv_forward(x_nchw, wts, bs):
    """Equivalent of BaseConv.forward; x in NCHW, returns NCHW."""
    x = jnp.transpose(x_nchw, (0, 2, 3, 1)).astype(jnp.float32)   # NCHW -> NHWC
    n, h, w, c = x.shape
    num_layers = len(wts)
    hf, wf = h, w
    for _ in range(num_layers):
        hf, wf = _out_size(hf), _out_size(wf)
    cout = wts[-1].shape[-1]

    in_specs = [pl.BlockSpec((1, h, w, c), lambda i: (i, 0, 0, 0))]
    for wt in wts:
        in_specs.append(pl.BlockSpec(wt.shape, lambda i: (0, 0, 0, 0)))
    for b in bs:
        in_specs.append(pl.BlockSpec(b.shape, lambda i: (0, 0)))

    out = pl.pallas_call(
        _fused_base_conv_kernel,
        out_shape=jax.ShapeDtypeStruct((n, hf, wf, cout), jnp.float32),
        grid=(n,),
        in_specs=in_specs,
        out_specs=pl.BlockSpec((1, hf, wf, cout), lambda i: (i, 0, 0, 0)),
        compiler_params=pltpu.CompilerParams(
            dimension_semantics=("parallel",)),
    )(x, *wts, *bs)
    return jnp.transpose(out, (0, 3, 1, 2))                       # NHWC -> NCHW


# ------------------------------ init / reference ------------------------------
def init_base_conv_params(key, num_inputs, num_layers=5, cout=64):
    """Deterministic Kaiming-uniform-like init matching Conv2d shapes."""
    params = []
    cin = num_inputs
    for _ in range(num_layers):
        key, kw, kb = jax.random.split(key, 3)
        fan_in = cin * 3 * 3
        bound = 1.0 / (fan_in ** 0.5)
        w = jax.random.uniform(kw, (cout, cin, 3, 3), jnp.float32, -bound, bound)
        b = jax.random.uniform(kb, (cout,), jnp.float32, -bound, bound)
        params.append((w, b))
        cin = cout
    return params


def _reference_forward(x_nchw, params):
    x = x_nchw
    for (w, b) in params:
        x = lax.conv_general_dilated(
            x, w, window_strides=(2, 2), padding=((1, 1), (1, 1)),
            dimension_numbers=("NCHW", "OIHW", "NCHW"))
        x = jnp.maximum(x + b.reshape(1, -1, 1, 1), 0.0)
    return x


if __name__ == "__main__":
    key = jax.random.PRNGKey(0)
    k_in, k_par = jax.random.split(key)

    num_inputs = 4
    x = jax.random.normal(k_in, (2, num_inputs, 32, 32), jnp.float32)  # NCHW
    params = init_base_conv_params(k_par, num_inputs)
    wts, bs = prepare_base_conv_params(params)

    out = jax.block_until_ready(base_conv_forward(x, wts, bs))

    ref = _reference_forward(x, params)
    assert out.shape == ref.shape == (2, 64, 1, 1), out.shape
    assert jnp.allclose(out, ref, atol=1e-4, rtol=1e-4), "mismatch vs XLA conv"

    print("KERNEL_OK")
</pallas_src>

<mosaic_0001>
module attributes {stable_mosaic.version = 11 : i64} {
  func.func @_fused_base_conv_kernel(%arg0: i32, %arg1: memref<1x32x32x4xf32, #tpu.memory_space<vmem>>, %arg2: memref<3x3x4x64xf32, #tpu.memory_space<vmem>>, %arg3: memref<3x3x64x64xf32, #tpu.memory_space<vmem>>, %arg4: memref<3x3x64x64xf32, #tpu.memory_space<vmem>>, %arg5: memref<3x3x64x64xf32, #tpu.memory_space<vmem>>, %arg6: memref<3x3x64x64xf32, #tpu.memory_space<vmem>>, %arg7: memref<1x64xf32, #tpu.memory_space<vmem>>, %arg8: memref<1x64xf32, #tpu.memory_space<vmem>>, %arg9: memref<1x64xf32, #tpu.memory_space<vmem>>, %arg10: memref<1x64xf32, #tpu.memory_space<vmem>>, %arg11: memref<1x64xf32, #tpu.memory_space<vmem>>, %arg12: memref<1x1x1x64xf32, #tpu.memory_space<vmem>>) attributes {dimension_semantics = [#tpu.dimension_semantics<parallel>], iteration_bounds = array<i64: 2>, scalar_prefetch = 0 : i64, scratch_operands = 0 : i64, tpu.core_type = #tpu.core_type<tc>, window_params = [{transform_indices = @transform_0, window_bounds = array<i64: 1, 32, 32, 4>}, {pipeline_mode = #tpu.pipeline_mode<synchronous>, transform_indices = @transform_1, window_bounds = array<i64: 3, 3, 4, 64>}, {pipeline_mode = #tpu.pipeline_mode<synchronous>, transform_indices = @transform_2, window_bounds = array<i64: 3, 3, 64, 64>}, {pipeline_mode = #tpu.pipeline_mode<synchronous>, transform_indices = @transform_3, window_bounds = array<i64: 3, 3, 64, 64>}, {pipeline_mode = #tpu.pipeline_mode<synchronous>, transform_indices = @transform_4, window_bounds = array<i64: 3, 3, 64, 64>}, {pipeline_mode = #tpu.pipeline_mode<synchronous>, transform_indices = @transform_5, window_bounds = array<i64: 3, 3, 64, 64>}, {pipeline_mode = #tpu.pipeline_mode<synchronous>, transform_indices = @transform_6, window_bounds = array<i64: 1, 64>}, {pipeline_mode = #tpu.pipeline_mode<synchronous>, transform_indices = @transform_7, window_bounds = array<i64: 1, 64>}, {pipeline_mode = #tpu.pipeline_mode<synchronous>, transform_indices = @transform_8, window_bounds = array<i64: 1, 64>}, {pipeline_mode = #tpu.pipeline_mode<synchronous>, transform_indices = @transform_9, window_bounds = array<i64: 1, 64>}, {pipeline_mode = #tpu.pipeline_mode<synchronous>, transform_indices = @transform_10, window_bounds = array<i64: 1, 64>}, {transform_indices = @transform_11, window_bounds = array<i64: 1, 1, 1, 64>}]} {
    %c0 = arith.constant 0 : index
    %c0_0 = arith.constant 0 : index
    %c0_1 = arith.constant 0 : index
    %c0_2 = arith.constant 0 : index
    %0 = vector.load %arg1[%c0, %c0_0, %c0_1, %c0_2] : memref<1x32x32x4xf32, #tpu.memory_space<vmem>>, vector<1x32x32x4xf32>
    %cst = arith.constant 0.000000e+00 : f32
    %1 = vector.broadcast %cst : f32 to vector<1x1x32x4xf32>
    %cst_3 = arith.constant 0.000000e+00 : f32
    %2 = vector.broadcast %cst_3 : f32 to vector<1x1x32x4xf32>
    %3 = tpu.concatenate %1, %0, %2 in 1 : vector<1x1x32x4xf32>, vector<1x32x32x4xf32>, vector<1x1x32x4xf32> -> vector<1x34x32x4xf32>
    %4 = vector.shape_cast %3 : vector<1x34x32x4xf32> to vector<34x32x4xf32>
    %c0_4 = arith.constant 0 : index
    %c0_5 = arith.constant 0 : index
    %c0_6 = arith.constant 0 : index
    %c0_7 = arith.constant 0 : index
    %5 = vector.load %arg2[%c0_4, %c0_5, %c0_6, %c0_7] : memref<3x3x4x64xf32, #tpu.memory_space<vmem>>, vector<3x3x4x64xf32>
    %cst_8 = arith.constant 0.000000e+00 : f32
    %6 = vector.broadcast %cst_8 : f32 to vector<16x16x64xf32>
    %7 = tpu.iota {dimensions = array<i32: 0>} : vector<16x32xi32>
    %8 = tpu.iota {dimensions = array<i32: 1>} : vector<16x32xi32>
    %c2_i32 = arith.constant 2 : i32
    %9 = vector.broadcast %c2_i32 : i32 to vector<16x32xi32>
    %10 = arith.muli %9, %7 : vector<16x32xi32>
    %c-1_i32 = arith.constant -1 : i32
    %11 = vector.broadcast %c-1_i32 : i32 to vector<16x32xi32>
    %12 = arith.addi %10, %11 : vector<16x32xi32>
    %13 = arith.cmpi eq, %8, %12 : vector<16x32xi32>
    %14 = arith.extui %13 : vector<16x32xi1> to vector<16x32xi32>
    %15 = arith.sitofp %14 : vector<16x32xi32> to vector<16x32xf32>
    %16 = vector.shape_cast %15 : vector<16x32xf32> to vector<1x16x32xf32>
    %17 = vector.shape_cast %16 : vector<1x16x32xf32> to vector<1x16x32xf32>
    %18 = vector.broadcast %17 : vector<1x16x32xf32> to vector<34x16x32xf32>
    %cst_9 = arith.constant dense<0.000000e+00> : vector<34x16x4xf32>
    %19 = tpu.matmul %18, %4, %cst_9 {dimension_numbers = #tpu.dot_dimension_numbers<[2], [1], [1], [2], [0, 0, 0, 1, 1, 2], [0], [0]>} : vector<34x16x32xf32>, vector<34x32x4xf32>, vector<34x16x4xf32> -> vector<34x16x4xf32>
    %20 = vector.extract_strided_slice %19 {offsets = [0, 0, 0], sizes = [32, 16, 4], strides = [1, 1, 1]} : vector<34x16x4xf32> to vector<32x16x4xf32>
    %21 = vector.shape_cast %20 : vector<32x16x4xf32> to vector<16x2x16x4xf32>
    %22 = vector.extract_strided_slice %21 {offsets = [0, 0, 0, 0], sizes = [16, 1, 16, 4], strides = [1, 1, 1, 1]} : vector<16x2x16x4xf32> to vector<16x1x16x4xf32>
    %23 = vector.shape_cast %22 : vector<16x1x16x4xf32> to vector<16x16x4xf32>
    %24 = vector.extract_strided_slice %5 {offsets = [0, 0, 0, 0], sizes = [1, 1, 4, 64], strides = [1, 1, 1, 1]} : vector<3x3x4x64xf32> to vector<1x1x4x64xf32>
    %25 = vector.shape_cast %24 : vector<1x1x4x64xf32> to vector<4x64xf32>
    %26 = vector.shape_cast %25 : vector<4x64xf32> to vector<1x4x64xf32>
    %27 = vector.shape_cast %26 : vector<1x4x64xf32> to vector<1x4x64xf32>
    %28 = vector.broadcast %27 : vector<1x4x64xf32> to vector<16x4x64xf32>
    %cst_10 = arith.constant dense<0.000000e+00> : vector<16x16x64xf32>
    %29 = tpu.matmul %23, %28, %cst_10 {dimension_numbers = #tpu.dot_dimension_numbers<[2], [1], [1], [2], [0, 0, 0, 1, 1, 2], [0], [0]>} : vector<16x16x4xf32>, vector<16x4x64xf32>, vector<16x16x64xf32> -> vector<16x16x64xf32>
    %30 = arith.addf %6, %29 : vector<16x16x64xf32>
    %31 = vector.extract_strided_slice %19 {offsets = [1, 0, 0], sizes = [32, 16, 4], strides = [1, 1, 1]} : vector<34x16x4xf32> to vector<32x16x4xf32>
    %32 = vector.shape_cast %31 : vector<32x16x4xf32> to vector<16x2x16x4xf32>
    %33 = vector.extract_strided_slice %32 {offsets = [0, 0, 0, 0], sizes = [16, 1, 16, 4], strides = [1, 1, 1, 1]} : vector<16x2x16x4xf32> to vector<16x1x16x4xf32>
    %34 = vector.shape_cast %33 : vector<16x1x16x4xf32> to vector<16x16x4xf32>
    %35 = vector.extract_strided_slice %5 {offsets = [1, 0, 0, 0], sizes = [1, 1, 4, 64], strides = [1, 1, 1, 1]} : vector<3x3x4x64xf32> to vector<1x1x4x64xf32>
    %36 = vector.shape_cast %35 : vector<1x1x4x64xf32> to vector<4x64xf32>
    %37 = vector.shape_cast %36 : vector<4x64xf32> to vector<1x4x64xf32>
    %38 = vector.shape_cast %37 : vector<1x4x64xf32> to vector<1x4x64xf32>
    %39 = vector.broadcast %38 : vector<1x4x64xf32> to vector<16x4x64xf32>
    %cst_11 = arith.constant dense<0.000000e+00> : vector<16x16x64xf32>
    %40 = tpu.matmul %34, %39, %cst_11 {dimension_numbers = #tpu.dot_dimension_numbers<[2], [1], [1], [2], [0, 0, 0, 1, 1, 2], [0], [0]>} : vector<16x16x4xf32>, vector<16x4x64xf32>, vector<16x16x64xf32> -> vector<16x16x64xf32>
    %41 = arith.addf %30, %40 : vector<16x16x64xf32>
    %42 = vector.extract_strided_slice %19 {offsets = [2, 0, 0], sizes = [32, 16, 4], strides = [1, 1, 1]} : vector<34x16x4xf32> to vector<32x16x4xf32>
    %43 = vector.shape_cast %42 : vector<32x16x4xf32> to vector<16x2x16x4xf32>
    %44 = vector.extract_strided_slice %43 {offsets = [0, 0, 0, 0], sizes = [16, 1, 16, 4], strides = [1, 1, 1, 1]} : vector<16x2x16x4xf32> to vector<16x1x16x4xf32>
    %45 = vector.shape_cast %44 : vector<16x1x16x4xf32> to vector<16x16x4xf32>
    %46 = vector.extract_strided_slice %5 {offsets = [2, 0, 0, 0], sizes = [1, 1, 4, 64], strides = [1, 1, 1, 1]} : vector<3x3x4x64xf32> to vector<1x1x4x64xf32>
    %47 = vector.shape_cast %46 : vector<1x1x4x64xf32> to vector<4x64xf32>
    %48 = vector.shape_cast %47 : vector<4x64xf32> to vector<1x4x64xf32>
    %49 = vector.shape_cast %48 : vector<1x4x64xf32> to vector<1x4x64xf32>
    %50 = vector.broadcast %49 : vector<1x4x64xf32> to vector<16x4x64xf32>
    %cst_12 = arith.constant dense<0.000000e+00> : vector<16x16x64xf32>
    %51 = tpu.matmul %45, %50, %cst_12 {dimension_numbers = #tpu.dot_dimension_numbers<[2], [1], [1], [2], [0, 0, 0, 1, 1, 2], [0], [0]>} : vector<16x16x4xf32>, vector<16x4x64xf32>, vector<16x16x64xf32> -> vector<16x16x64xf32>
    %52 = arith.addf %41, %51 : vector<16x16x64xf32>
    %53 = tpu.iota {dimensions = array<i32: 0>} : vector<16x32xi32>
    %54 = tpu.iota {dimensions = array<i32: 1>} : vector<16x32xi32>
    %c2_i32_13 = arith.constant 2 : i32
    %55 = vector.broadcast %c2_i32_13 : i32 to vector<16x32xi32>
    %56 = arith.muli %55, %53 : vector<16x32xi32>
    %c0_i32 = arith.constant 0 : i32
    %57 = vector.broadcast %c0_i32 : i32 to vector<16x32xi32>
    %58 = arith.addi %56, %57 : vector<16x32xi32>
    %59 = arith.cmpi eq, %54, %58 : vector<16x32xi32>
    %60 = arith.extui %59 : vector<16x32xi1> to vector<16x32xi32>
    %61 = arith.sitofp %60 : vector<16x32xi32> to vector<16x32xf32>
    %62 = vector.shape_cast %61 : vector<16x32xf32> to vector<1x16x32xf32>
    %63 = vector.shape_cast %62 : vector<1x16x32xf32> to vector<1x16x32xf32>
    %64 = vector.broadcast %63 : vector<1x16x32xf32> to vector<34x16x32xf32>
    %cst_14 = arith.constant dense<0.000000e+00> : vector<34x16x4xf32>
    %65 = tpu.matmul %64, %4, %cst_14 {dimension_numbers = #tpu.dot_dimension_numbers<[2], [1], [1], [2], [0, 0, 0, 1, 1, 2], [0], [0]>} : vector<34x16x32xf32>, vector<34x32x4xf32>, vector<34x16x4xf32> -> vector<34x16x4xf32>
    %66 = vector.extract_strided_slice %65 {offsets = [0, 0, 0], sizes = [32, 16, 4], strides = [1, 1, 1]} : vector<34x16x4xf32> to vector<32x16x4xf32>
    %67 = vector.shape_cast %66 : vector<32x16x4xf32> to vector<16x2x16x4xf32>
    %68 = vector.extract_strided_slice %67 {offsets = [0, 0, 0, 0], sizes = [16, 1, 16, 4], strides = [1, 1, 1, 1]} : vector<16x2x16x4xf32> to vector<16x1x16x4xf32>
    %69 = vector.shape_cast %68 : vector<16x1x16x4xf32> to vector<16x16x4xf32>
    %70 = vector.extract_strided_slice %5 {offsets = [0, 1, 0, 0], sizes = [1, 1, 4, 64], strides = [1, 1, 1, 1]} : vector<3x3x4x64xf32> to vector<1x1x4x64xf32>
    %71 = vector.shape_cast %70 : vector<1x1x4x64xf32> to vector<4x64xf32>
    %72 = vector.shape_cast %71 : vector<4x64xf32> to vector<1x4x64xf32>
    %73 = vector.shape_cast %72 : vector<1x4x64xf32> to vector<1x4x64xf32>
    %74 = vector.broadcast %73 : vector<1x4x64xf32> to vector<16x4x64xf32>
    %cst_15 = arith.constant dense<0.000000e+00> : vector<16x16x64xf32>
    %75 = tpu.matmul %69, %74, %cst_15 {dimension_numbers = #tpu.dot_dimension_numbers<[2], [1], [1], [2], [0, 0, 0, 1, 1, 2], [0], [0]>} : vector<16x16x4xf32>, vector<16x4x64xf32>, vector<16x16x64xf32> -> vector<16x16x64xf32>
    %76 = arith.addf %52, %75 : vector<16x16x64xf32>
    %77 = vector.extract_strided_slice %65 {offsets = [1, 0, 0], sizes = [32, 16, 4], strides = [1, 1, 1]} : vector<34x16x4xf32> to vector<32x16x4xf32>
    %78 = vector.shape_cast %77 : vector<32x16x4xf32> to vector<16x2x16x4xf32>
    %79 = vector.extract_strided_slice %78 {offsets = [0, 0, 0, 0], sizes = [16, 1, 16, 4], strides = [1, 1, 1, 1]} : vector<16x2x16x4xf32> to vector<16x1x16x4xf32>
    %80 = vector.shape_cast %79 : vector<16x1x16x4xf32> to vector<16x16x4xf32>
    %81 = vector.extract_strided_slice %5 {offsets = [1, 1, 0, 0], sizes = [1, 1, 4, 64], strides = [1, 1, 1, 1]} : vector<3x3x4x64xf32> to vector<1x1x4x64xf32>
    %82 = vector.shape_cast %81 : vector<1x1x4x64xf32> to vector<4x64xf32>
    %83 = vector.shape_cast %82 : vector<4x64xf32> to vector<1x4x64xf32>
    %84 = vector.shape_cast %83 : vector<1x4x64xf32> to vector<1x4x64xf32>
    %85 = vector.broadcast %84 : vector<1x4x64xf32> to vector<16x4x64xf32>
    %cst_16 = arith.constant dense<0.000000e+00> : vector<16x16x64xf32>
    %86 = tpu.matmul %80, %85, %cst_16 {dimension_numbers = #tpu.dot_dimension_numbers<[2], [1], [1], [2], [0, 0, 0, 1, 1, 2], [0], [0]>} : vector<16x16x4xf32>, vector<16x4x64xf32>, vector<16x16x64xf32> -> vector<16x16x64xf32>
    %87 = arith.addf %76, %86 : vector<16x16x64xf32>
    %88 = vector.extract_strided_slice %65 {offsets = [2, 0, 0], sizes = [32, 16, 4], strides = [1, 1, 1]} : vector<34x16x4xf32> to vector<32x16x4xf32>
    %89 = vector.shape_cast %88 : vector<32x16x4xf32> to vector<16x2x16x4xf32>
    %90 = vector.extract_strided_slice %89 {offsets = [0, 0, 0, 0], sizes = [16, 1, 16, 4], strides = [1, 1, 1, 1]} : vector<16x2x16x4xf32> to vector<16x1x16x4xf32>
    %91 = vector.shape_cast %90 : vector<16x1x16x4xf32> to vector<16x16x4xf32>
    %92 = vector.extract_strided_slice %5 {offsets = [2, 1, 0, 0], sizes = [1, 1, 4, 64], strides = [1, 1, 1, 1]} : vector<3x3x4x64xf32> to vector<1x1x4x64xf32>
    %93 = vector.shape_cast %92 : vector<1x1x4x64xf32> to vector<4x64xf32>
    %94 = vector.shape_cast %93 : vector<4x64xf32> to vector<1x4x64xf32>
    %95 = vector.shape_cast %94 : vector<1x4x64xf32> to vector<1x4x64xf32>
    %96 = vector.broadcast %95 : vector<1x4x64xf32> to vector<16x4x64xf32>
    %cst_17 = arith.constant dense<0.000000e+00> : vector<16x16x64xf32>
    %97 = tpu.matmul %91, %96, %cst_17 {dimension_numbers = #tpu.dot_dimension_numbers<[2], [1], [1], [2], [0, 0, 0, 1, 1, 2], [0], [0]>} : vector<16x16x4xf32>, vector<16x4x64xf32>, vector<16x16x64xf32> -> vector<16x16x64xf32>
    %98 = arith.addf %87, %97 : vector<16x16x64xf32>
    %99 = tpu.iota {dimensions = array<i32: 0>} : vector<16x32xi32>
    %100 = tpu.iota {dimensions = array<i32: 1>} : vector<16x32xi32>
    %c2_i32_18 = arith.constant 2 : i32
    %101 = vector.broadcast %c2_i32_18 : i32 to vector<16x32xi32>
    %102 = arith.muli %101, %99 : vector<16x32xi32>
    %c1_i32 = arith.constant 1 : i32
    %103 = vector.broadcast %c1_i32 : i32 to vector<16x32xi32>
    %104 = arith.addi %102, %103 : vector<16x32xi32>
    %105 = arith.cmpi eq, %100, %104 : vector<16x32xi32>
    %106 = arith.extui %105 : vector<16x32xi1> to vector<16x32xi32>
    %107 = arith.sitofp %106 : vector<16x32xi32> to vector<16x32xf32>
    %108 = vector.shape_cast %107 : vector<16x32xf32> to vector<1x16x32xf32>
    %109 = vector.shape_cast %108 : vector<1x16x32xf32> to vector<1x16x32xf32>
    %110 = vector.broadcast %109 : vector<1x16x32xf32> to vector<34x16x32xf32>
    %cst_19 = arith.constant dense<0.000000e+00> : vector<34x16x4xf32>
    %111 = tpu.matmul %110, %4, %cst_19 {dimension_numbers = #tpu.dot_dimension_numbers<[2], [1], [1], [2], [0, 0, 0, 1, 1, 2], [0], [0]>} : vector<34x16x32xf32>, vector<34x32x4xf32>, vector<34x16x4xf32> -> vector<34x16x4xf32>
    %112 = vector.extract_strided_slice %111 {offsets = [0, 0, 0], sizes = [32, 16, 4], strides = [1, 1, 1]} : vector<34x16x4xf32> to vector<32x16x4xf32>
    %113 = vector.shape_cast %112 : vector<32x16x4xf32> to vector<16x2x16x4xf32>
    %114 = vector.extract_strided_slice %113 {offsets = [0, 0, 0, 0], sizes = [16, 1, 16, 4], strides = [1, 1, 1, 1]} : vector<16x2x16x4xf32> to vector<16x1x16x4xf32>
    %115 = vector.shape_cast %114 : vector<16x1x16x4xf32> to vector<16x16x4xf32>
    %116 = vector.extract_strided_slice %5 {offsets = [0, 2, 0, 0], sizes = [1, 1, 4, 64], strides = [1, 1, 1, 1]} : vector<3x3x4x64xf32> to vector<1x1x4x64xf32>
    %117 = vector.shape_cast %116 : vector<1x1x4x64xf32> to vector<4x64xf32>
    %118 = vector.shape_cast %117 : vector<4x64xf32> to vector<1x4x64xf32>
    %119 = vector.shape_cast %118 : vector<1x4x64xf32> to vector<1x4x64xf32>
    %120 = vector.broadcast %119 : vector<1x4x64xf32> to vector<16x4x64xf32>
    %cst_20 = arith.constant dense<0.000000e+00> : vector<16x16x64xf32>
    %121 = tpu.matmul %115, %120, %cst_20 {dimension_numbers = #tpu.dot_dimension_numbers<[2], [1], [1], [2], [0, 0, 0, 1, 1, 2], [0], [0]>} : vector<16x16x4xf32>, vector<16x4x64xf32>, vector<16x16x64xf32> -> vector<16x16x64xf32>
    %122 = arith.addf %98, %121 : vector<16x16x64xf32>
    %123 = vector.extract_strided_slice %111 {offsets = [1, 0, 0], sizes = [32, 16, 4], strides = [1, 1, 1]} : vector<34x16x4xf32> to vector<32x16x4xf32>
    %124 = vector.shape_cast %123 : vector<32x16x4xf32> to vector<16x2x16x4xf32>
    %125 = vector.extract_strided_slice %124 {offsets = [0, 0, 0, 0], sizes = [16, 1, 16, 4], strides = [1, 1, 1, 1]} : vector<16x2x16x4xf32> to vector<16x1x16x4xf32>
    %126 = vector.shape_cast %125 : vector<16x1x16x4xf32> to vector<16x16x4xf32>
    %127 = vector.extract_strided_slice %5 {offsets = [1, 2, 0, 0], sizes = [1, 1, 4, 64], strides = [1, 1, 1, 1]} : vector<3x3x4x64xf32> to vector<1x1x4x64xf32>
    %128 = vector.shape_cast %127 : vector<1x1x4x64xf32> to vector<4x64xf32>
    %129 = vector.shape_cast %128 : vector<4x64xf32> to vector<1x4x64xf32>
    %130 = vector.shape_cast %129 : vector<1x4x64xf32> to vector<1x4x64xf32>
    %131 = vector.broadcast %130 : vector<1x4x64xf32> to vector<16x4x64xf32>
    %cst_21 = arith.constant dense<0.000000e+00> : vector<16x16x64xf32>
    %132 = tpu.matmul %126, %131, %cst_21 {dimension_numbers = #tpu.dot_dimension_numbers<[2], [1], [1], [2], [0, 0, 0, 1, 1, 2], [0], [0]>} : vector<16x16x4xf32>, vector<16x4x64xf32>, vector<16x16x64xf32> -> vector<16x16x64xf32>
    %133 = arith.addf %122, %132 : vector<16x16x64xf32>
    %134 = vector.extract_strided_slice %111 {offsets = [2, 0, 0], sizes = [32, 16, 4], strides = [1, 1, 1]} : vector<34x16x4xf32> to vector<32x16x4xf32>
    %135 = vector.shape_cast %134 : vector<32x16x4xf32> to vector<16x2x16x4xf32>
    %136 = vector.extract_strided_slice %135 {offsets = [0, 0, 0, 0], sizes = [16, 1, 16, 4], strides = [1, 1, 1, 1]} : vector<16x2x16x4xf32> to vector<16x1x16x4xf32>
    %137 = vector.shape_cast %136 : vector<16x1x16x4xf32> to vector<16x16x4xf32>
    %138 = vector.extract_strided_slice %5 {offsets = [2, 2, 0, 0], sizes = [1, 1, 4, 64], strides = [1, 1, 1, 1]} : vector<3x3x4x64xf32> to vector<1x1x4x64xf32>
    %139 = vector.shape_cast %138 : vector<1x1x4x64xf32> to vector<4x64xf32>
    %140 = vector.shape_cast %139 : vector<4x64xf32> to vector<1x4x64xf32>
    %141 = vector.shape_cast %140 : vector<1x4x64xf32> to vector<1x4x64xf32>
    %142 = vector.broadcast %141 : vector<1x4x64xf32> to vector<16x4x64xf32>
    %cst_22 = arith.constant dense<0.000000e+00> : vector<16x16x64xf32>
    %143 = tpu.matmul %137, %142, %cst_22 {dimension_numbers = #tpu.dot_dimension_numbers<[2], [1], [1], [2], [0, 0, 0, 1, 1, 2], [0], [0]>} : vector<16x16x4xf32>, vector<16x4x64xf32>, vector<16x16x64xf32> -> vector<16x16x64xf32>
    %144 = arith.addf %133, %143 : vector<16x16x64xf32>
    %c0_23 = arith.constant 0 : index
    %c0_24 = arith.constant 0 : index
    %145 = vector.load %arg7[%c0_23, %c0_24] : memref<1x64xf32, #tpu.memory_space<vmem>>, vector<1x64xf32>
    %146 = vector.shape_cast %145 : vector<1x64xf32> to vector<1x1x64xf32>
    %147 = vector.broadcast %146 : vector<1x1x64xf32> to vector<16x16x64xf32>
    %148 = arith.addf %144, %147 : vector<16x16x64xf32>
    %cst_25 = arith.constant 0.000000e+00 : f32
    %149 = vector.broadcast %cst_25 : f32 to vector<16x16x64xf32>
    %150 = arith.maximumf %148, %149 : vector<16x16x64xf32>
    %151 = vector.shape_cast %150 : vector<16x16x64xf32> to vector<1x16x16x64xf32>
    %cst_26 = arith.constant 0.000000e+00 : f32
    %152 = vector.broadcast %cst_26 : f32 to vector<1x1x16x64xf32>
    %cst_27 = arith.constant 0.000000e+00 : f32
    %153 = vector.broadcast %cst_27 : f32 to vector<1x1x16x64xf32>
    %154 = tpu.concatenate %152, %151, %153 in 1 : vector<1x1x16x64xf32>, vector<1x16x16x64xf32>, vector<1x1x16x64xf32> -> vector<1x18x16x64xf32>
    %155 = vector.shape_cast %154 : vector<1x18x16x64xf32> to vector<18x16x64xf32>
    %c0_28 = arith.constant 0 : index
    %c0_29 = arith.constant 0 : index
    %c0_30 = arith.constant 0 : index
    %c0_31 = arith.constant 0 : index
    %156 = vector.load %arg3[%c0_28, %c0_29, %c0_30, %c0_31] : memref<3x3x64x64xf32, #tpu.memory_space<vmem>>, vector<3x3x64x64xf32>
    %cst_32 = arith.constant 0.000000e+00 : f32
    %157 = vector.broadcast %cst_32 : f32 to vector<8x8x64xf32>
    %158 = tpu.iota {dimensions = array<i32: 0>} : vector<8x16xi32>
    %159 = tpu.iota {dimensions = array<i32: 1>} : vector<8x16xi32>
    %c2_i32_33 = arith.constant 2 : i32
    %160 = vector.broadcast %c2_i32_33 : i32 to vector<8x16xi32>
    %161 = arith.muli %160, %158 : vector<8x16xi32>
    %c-1_i32_34 = arith.constant -1 : i32
    %162 = vector.broadcast %c-1_i32_34 : i32 to vector<8x16xi32>
    %163 = arith.addi %161, %162 : vector<8x16xi32>
    %164 = arith.cmpi eq, %159, %163 : vector<8x16xi32>
    %165 = arith.extui %164 : vector<8x16xi1> to vector<8x16xi32>
    %166 = arith.sitofp %165 : vector<8x16xi32> to vector<8x16xf32>
    %167 = vector.shape_cast %166 : vector<8x16xf32> to vector<1x8x16xf32>
    %168 = vector.shape_cast %167 : vector<1x8x16xf32> to vector<1x8x16xf32>
    %169 = vector.broadcast %168 : vector<1x8x16xf32> to vector<18x8x16xf32>
    %cst_35 = arith.constant dense<0.000000e+00> : vector<18x8x64xf32>
    %170 = tpu.matmul %169, %155, %cst_35 {dimension_numbers = #tpu.dot_dimension_numbers<[2], [1], [1], [2], [0, 0, 0, 1, 1, 2], [0], [0]>} : vector<18x8x16xf32>, vector<18x16x64xf32>, vector<18x8x64xf32> -> vector<18x8x64xf32>
    %171 = vector.extract_strided_slice %170 {offsets = [0, 0, 0], sizes = [16, 8, 64], strides = [1, 1, 1]} : vector<18x8x64xf32> to vector<16x8x64xf32>
    %172 = vector.shape_cast %171 : vector<16x8x64xf32> to vector<8x2x8x64xf32>
    %173 = vector.extract_strided_slice %172 {offsets = [0, 0, 0, 0], sizes = [8, 1, 8, 64], strides = [1, 1, 1, 1]} : vector<8x2x8x64xf32> to vector<8x1x8x64xf32>
    %174 = vector.shape_cast %173 : vector<8x1x8x64xf32> to vector<8x8x64xf32>
    %175 = vector.extract_strided_slice %156 {offsets = [0, 0, 0, 0], sizes = [1, 1, 64, 64], strides = [1, 1, 1, 1]} : vector<3x3x64x64xf32> to vector<1x1x64x64xf32>
    %176 = vector.shape_cast %175 : vector<1x1x64x64xf32> to vector<64x64xf32>
    %177 = vector.shape_cast %176 : vector<64x64xf32> to vector<1x64x64xf32>
    %178 = vector.shape_cast %177 : vector<1x64x64xf32> to vector<1x64x64xf32>
    %179 = vector.broadcast %178 : vector<1x64x64xf32> to vector<8x64x64xf32>
    %cst_36 = arith.constant dense<0.000000e+00> : vector<8x8x64xf32>
    %180 = tpu.matmul %174, %179, %cst_36 {dimension_numbers = #tpu.dot_dimension_numbers<[2], [1], [1], [2], [0, 0, 0, 1, 1, 2], [0], [0]>} : vector<8x8x64xf32>, vector<8x64x64xf32>, vector<8x8x64xf32> -> vector<8x8x64xf32>
    %181 = arith.addf %157, %180 : vector<8x8x64xf32>
    %182 = vector.extract_strided_slice %170 {offsets = [1, 0, 0], sizes = [16, 8, 64], strides = [1, 1, 1]} : vector<18x8x64xf32> to vector<16x8x64xf32>
    %183 = vector.shape_cast %182 : vector<16x8x64xf32> to vector<8x2x8x64xf32>
    %184 = vector.extract_strided_slice %183 {offsets = [0, 0, 0, 0], sizes = [8, 1, 8, 64], strides = [1, 1, 1, 1]} : vector<8x2x8x64xf32> to vector<8x1x8x64xf32>
    %185 = vector.shape_cast %184 : vector<8x1x8x64xf32> to vector<8x8x64xf32>
    %186 = vector.extract_strided_slice %156 {offsets = [1, 0, 0, 0], sizes = [1, 1, 64, 64], strides = [1, 1, 1, 1]} : vector<3x3x64x64xf32> to vector<1x1x64x64xf32>
    %187 = vector.shape_cast %186 : vector<1x1x64x64xf32> to vector<64x64xf32>
    %188 = vector.shape_cast %187 : vector<64x64xf32> to vector<1x64x64xf32>
    %189 = vector.shape_cast %188 : vector<1x64x64xf32> to vector<1x64x64xf32>
    %190 = vector.broadcast %189 : vector<1x64x64xf32> to vector<8x64x64xf32>
    %cst_37 = arith.constant dense<0.000000e+00> : vector<8x8x64xf32>
    %191 = tpu.matmul %185, %190, %cst_37 {dimension_numbers = #tpu.dot_dimension_numbers<[2], [1], [1], [2], [0, 0, 0, 1, 1, 2], [0], [0]>} : vector<8x8x64xf32>, vector<8x64x64xf32>, vector<8x8x64xf32> -> vector<8x8x64xf32>
    %192 = arith.addf %181, %191 : vector<8x8x64xf32>
    %193 = vector.extract_strided_slice %170 {offsets = [2, 0, 0], sizes = [16, 8, 64], strides = [1, 1, 1]} : vector<18x8x64xf32> to vector<16x8x64xf32>
    %194 = vector.shape_cast %193 : vector<16x8x64xf32> to vector<8x2x8x64xf32>
    %195 = vector.extract_strided_slice %194 {offsets = [0, 0, 0, 0], sizes = [8, 1, 8, 64], strides = [1, 1, 1, 1]} : vector<8x2x8x64xf32> to vector<8x1x8x64xf32>
    %196 = vector.shape_cast %195 : vector<8x1x8x64xf32> to vector<8x8x64xf32>
    %197 = vector.extract_strided_slice %156 {offsets = [2, 0, 0, 0], sizes = [1, 1, 64, 64], strides = [1, 1, 1, 1]} : vector<3x3x64x64xf32> to vector<1x1x64x64xf32>
    %198 = vector.shape_cast %197 : vector<1x1x64x64xf32> to vector<64x64xf32>
    %199 = vector.shape_cast %198 : vector<64x64xf32> to vector<1x64x64xf32>
    %200 = vector.shape_cast %199 : vector<1x64x64xf32> to vector<1x64x64xf32>
    %201 = vector.broadcast %200 : vector<1x64x64xf32> to vector<8x64x64xf32>
    %cst_38 = arith.constant dense<0.000000e+00> : vector<8x8x64xf32>
    %202 = tpu.matmul %196, %201, %cst_38 {dimension_numbers = #tpu.dot_dimension_numbers<[2], [1], [1], [2], [0, 0, 0, 1, 1, 2], [0], [0]>} : vector<8x8x64xf32>, vector<8x64x64xf32>, vector<8x8x64xf32> -> vector<8x8x64xf32>
    %203 = arith.addf %192, %202 : vector<8x8x64xf32>
    %204 = tpu.iota {dimensions = array<i32: 0>} : vector<8x16xi32>
    %205 = tpu.iota {dimensions = array<i32: 1>} : vector<8x16xi32>
    %c2_i32_39 = arith.constant 2 : i32
    %206 = vector.broadcast %c2_i32_39 : i32 to vector<8x16xi32>
    %207 = arith.muli %206, %204 : vector<8x16xi32>
    %c0_i32_40 = arith.constant 0 : i32
    %208 = vector.broadcast %c0_i32_40 : i32 to vector<8x16xi32>
    %209 = arith.addi %207, %208 : vector<8x16xi32>
    %210 = arith.cmpi eq, %205, %209 : vector<8x16xi32>
    %211 = arith.extui %210 : vector<8x16xi1> to vector<8x16xi32>
    %212 = arith.sitofp %211 : vector<8x16xi32> to vector<8x16xf32>
    %213 = vector.shape_cast %212 : vector<8x16xf32> to vector<1x8x16xf32>
    %214 = vector.shape_cast %213 : vector<1x8x16xf32> to vector<1x8x16xf32>
    %215 = vector.broadcast %214 : vector<1x8x16xf32> to vector<18x8x16xf32>
    %cst_41 = arith.constant dense<0.000000e+00> : vector<18x8x64xf32>
    %216 = tpu.matmul %215, %155, %cst_41 {dimension_numbers = #tpu.dot_dimension_numbers<[2], [1], [1], [2], [0, 0, 0, 1, 1, 2], [0], [0]>} : vector<18x8x16xf32>, vector<18x16x64xf32>, vector<18x8x64xf32> -> vector<18x8x64xf32>
    %217 = vector.extract_strided_slice %216 {offsets = [0, 0, 0], sizes = [16, 8, 64], strides = [1, 1, 1]} : vector<18x8x64xf32> to vector<16x8x64xf32>
    %218 = vector.shape_cast %217 : vector<16x8x64xf32> to vector<8x2x8x64xf32>
    %219 = vector.extract_strided_slice %218 {offsets = [0, 0, 0, 0], sizes = [8, 1, 8, 64], strides = [1, 1, 1, 1]} : vector<8x2x8x64xf32> to vector<8x1x8x64xf32>
    %220 = vector.shape_cast %219 : vector<8x1x8x64xf32> to vector<8x8x64xf32>
    %221 = vector.extract_strided_slice %156 {offsets = [0, 1, 0, 0], sizes = [1, 1, 64, 64], strides = [1, 1, 1, 1]} : vector<3x3x64x64xf32> to vector<1x1x64x64xf32>
    %222 = vector.shape_cast %221 : vector<1x1x64x64xf32> to vector<64x64xf32>
    %223 = vector.shape_cast %222 : vector<64x64xf32> to vector<1x64x64xf32>
    %224 = vector.shape_cast %223 : vector<1x64x64xf32> to vector<1x64x64xf32>
    %225 = vector.broadcast %224 : vector<1x64x64xf32> to vector<8x64x64xf32>
    %cst_42 = arith.constant dense<0.000000e+00> : vector<8x8x64xf32>
    %226 = tpu.matmul %220, %225, %cst_42 {dimension_numbers = #tpu.dot_dimension_numbers<[2], [1], [1], [2], [0, 0, 0, 1, 1, 2], [0], [0]>} : vector<8x8x64xf32>, vector<8x64x64xf32>, vector<8x8x64xf32> -> vector<8x8x64xf32>
    %227 = arith.addf %203, %226 : vector<8x8x64xf32>
    %228 = vector.extract_strided_slice %216 {offsets = [1, 0, 0], sizes = [16, 8, 64], strides = [1, 1, 1]} : vector<18x8x64xf32> to vector<16x8x64xf32>
    %229 = vector.shape_cast %228 : vector<16x8x64xf32> to vector<8x2x8x64xf32>
    %230 = vector.extract_strided_slice %229 {offsets = [0, 0, 0, 0], sizes = [8, 1, 8, 64], strides = [1, 1, 1, 1]} : vector<8x2x8x64xf32> to vector<8x1x8x64xf32>
    %231 = vector.shape_cast %230 : vector<8x1x8x64xf32> to vector<8x8x64xf32>
    %232 = vector.extract_strided_slice %156 {offsets = [1, 1, 0, 0], sizes = [1, 1, 64, 64], strides = [1, 1, 1, 1]} : vector<3x3x64x64xf32> to vector<1x1x64x64xf32>
    %233 = vector.shape_cast %232 : vector<1x1x64x64xf32> to vector<64x64xf32>
    %234 = vector.shape_cast %233 : vector<64x64xf32> to vector<1x64x64xf32>
    %235 = vector.shape_cast %234 : vector<1x64x64xf32> to vector<1x64x64xf32>
    %236 = vector.broadcast %235 : vector<1x64x64xf32> to vector<8x64x64xf32>
    %cst_43 = arith.constant dense<0.000000e+00> : vector<8x8x64xf32>
    %237 = tpu.matmul %231, %236, %cst_43 {dimension_numbers = #tpu.dot_dimension_numbers<[2], [1], [1], [2], [0, 0, 0, 1, 1, 2], [0], [0]>} : vector<8x8x64xf32>, vector<8x64x64xf32>, vector<8x8x64xf32> -> vector<8x8x64xf32>
    %238 = arith.addf %227, %237 : vector<8x8x64xf32>
    %239 = vector.extract_strided_slice %216 {offsets = [2, 0, 0], sizes = [16, 8, 64], strides = [1, 1, 1]} : vector<18x8x64xf32> to vector<16x8x64xf32>
    %240 = vector.shape_cast %239 : vector<16x8x64xf32> to vector<8x2x8x64xf32>
    %241 = vector.extract_strided_slice %240 {offsets = [0, 0, 0, 0], sizes = [8, 1, 8, 64], strides = [1, 1, 1, 1]} : vector<8x2x8x64xf32> to vector<8x1x8x64xf32>
    %242 = vector.shape_cast %241 : vector<8x1x8x64xf32> to vector<8x8x64xf32>
    %243 = vector.extract_strided_slice %156 {offsets = [2, 1, 0, 0], sizes = [1, 1, 64, 64], strides = [1, 1, 1, 1]} : vector<3x3x64x64xf32> to vector<1x1x64x64xf32>
    %244 = vector.shape_cast %243 : vector<1x1x64x64xf32> to vector<64x64xf32>
    %245 = vector.shape_cast %244 : vector<64x64xf32> to vector<1x64x64xf32>
    %246 = vector.shape_cast %245 : vector<1x64x64xf32> to vector<1x64x64xf32>
    %247 = vector.broadcast %246 : vector<1x64x64xf32> to vector<8x64x64xf32>
    %cst_44 = arith.constant dense<0.000000e+00> : vector<8x8x64xf32>
    %248 = tpu.matmul %242, %247, %cst_44 {dimension_numbers = #tpu.dot_dimension_numbers<[2], [1], [1], [2], [0, 0, 0, 1, 1, 2], [0], [0]>} : vector<8x8x64xf32>, vector<8x64x64xf32>, vector<8x8x64xf32> -> vector<8x8x64xf32>
    %249 = arith.addf %238, %248 : vector<8x8x64xf32>
    %250 = tpu.iota {dimensions = array<i32: 0>} : vector<8x16xi32>
    %251 = tpu.iota {dimensions = array<i32: 1>} : vector<8x16xi32>
    %c2_i32_45 = arith.constant 2 : i32
    %252 = vector.broadcast %c2_i32_45 : i32 to vector<8x16xi32>
    %253 = arith.muli %252, %250 : vector<8x16xi32>
    %c1_i32_46 = arith.constant 1 : i32
    %254 = vector.broadcast %c1_i32_46 : i32 to vector<8x16xi32>
    %255 = arith.addi %253, %254 : vector<8x16xi32>
    %256 = arith.cmpi eq, %251, %255 : vector<8x16xi32>
    %257 = arith.extui %256 : vector<8x16xi1> to vector<8x16xi32>
    %258 = arith.sitofp %257 : vector<8x16xi32> to vector<8x16xf32>
    %259 = vector.shape_cast %258 : vector<8x16xf32> to vector<1x8x16xf32>
    %260 = vector.shape_cast %259 : vector<1x8x16xf32> to vector<1x8x16xf32>
    %261 = vector.broadcast %260 : vector<1x8x16xf32> to vector<18x8x16xf32>
    %cst_47 = arith.constant dense<0.000000e+00> : vector<18x8x64xf32>
    %262 = tpu.matmul %261, %155, %cst_47 {dimension_numbers = #tpu.dot_dimension_numbers<[2], [1], [1], [2], [0, 0, 0, 1, 1, 2], [0], [0]>} : vector<18x8x16xf32>, vector<18x16x64xf32>, vector<18x8x64xf32> -> vector<18x8x64xf32>
    %263 = vector.extract_strided_slice %262 {offsets = [0, 0, 0], sizes = [16, 8, 64], strides = [1, 1, 1]} : vector<18x8x64xf32> to vector<16x8x64xf32>
    %264 = vector.shape_cast %263 : vector<16x8x64xf32> to vector<8x2x8x64xf32>
    %265 = vector.extract_strided_slice %264 {offsets = [0, 0, 0, 0], sizes = [8, 1, 8, 64], strides = [1, 1, 1, 1]} : vector<8x2x8x64xf32> to vector<8x1x8x64xf32>
    %266 = vector.shape_cast %265 : vector<8x1x8x64xf32> to vector<8x8x64xf32>
    %267 = vector.extract_strided_slice %156 {offsets = [0, 2, 0, 0], sizes = [1, 1, 64, 64], strides = [1, 1, 1, 1]} : vector<3x3x64x64xf32> to vector<1x1x64x64xf32>
    %268 = vector.shape_cast %267 : vector<1x1x64x64xf32> to vector<64x64xf32>
    %269 = vector.shape_cast %268 : vector<64x64xf32> to vector<1x64x64xf32>
    %270 = vector.shape_cast %269 : vector<1x64x64xf32> to vector<1x64x64xf32>
    %271 = vector.broadcast %270 : vector<1x64x64xf32> to vector<8x64x64xf32>
    %cst_48 = arith.constant dense<0.000000e+00> : vector<8x8x64xf32>
    %272 = tpu.matmul %266, %271, %cst_48 {dimension_numbers = #tpu.dot_dimension_numbers<[2], [1], [1], [2], [0, 0, 0, 1, 1, 2], [0], [0]>} : vector<8x8x64xf32>, vector<8x64x64xf32>, vector<8x8x64xf32> -> vector<8x8x64xf32>
    %273 = arith.addf %249, %272 : vector<8x8x64xf32>
    %274 = vector.extract_strided_slice %262 {offsets = [1, 0, 0], sizes = [16, 8, 64], strides = [1, 1, 1]} : vector<18x8x64xf32> to vector<16x8x64xf32>
    %275 = vector.shape_cast %274 : vector<16x8x64xf32> to vector<8x2x8x64xf32>
    %276 = vector.extract_strided_slice %275 {offsets = [0, 0, 0, 0], sizes = [8, 1, 8, 64], strides = [1, 1, 1, 1]} : vector<8x2x8x64xf32> to vector<8x1x8x64xf32>
    %277 = vector.shape_cast %276 : vector<8x1x8x64xf32> to vector<8x8x64xf32>
    %278 = vector.extract_strided_slice %156 {offsets = [1, 2, 0, 0], sizes = [1, 1, 64, 64], strides = [1, 1, 1, 1]} : vector<3x3x64x64xf32> to vector<1x1x64x64xf32>
    %279 = vector.shape_cast %278 : vector<1x1x64x64xf32> to vector<64x64xf32>
    %280 = vector.shape_cast %279 : vector<64x64xf32> to vector<1x64x64xf32>
    %281 = vector.shape_cast %280 : vector<1x64x64xf32> to vector<1x64x64xf32>
    %282 = vector.broadcast %281 : vector<1x64x64xf32> to vector<8x64x64xf32>
    %cst_49 = arith.constant dense<0.000000e+00> : vector<8x8x64xf32>
    %283 = tpu.matmul %277, %282, %cst_49 {dimension_numbers = #tpu.dot_dimension_numbers<[2], [1], [1], [2], [0, 0, 0, 1, 1, 2], [0], [0]>} : vector<8x8x64xf32>, vector<8x64x64xf32>, vector<8x8x64xf32> -> vector<8x8x64xf32>
    %284 = arith.addf %273, %283 : vector<8x8x64xf32>
    %285 = vector.extract_strided_slice %262 {offsets = [2, 0, 0], sizes = [16, 8, 64], strides = [1, 1, 1]} : vector<18x8x64xf32> to vector<16x8x64xf32>
    %286 = vector.shape_cast %285 : vector<16x8x64xf32> to vector<8x2x8x64xf32>
    %287 = vector.extract_strided_slice %286 {offsets = [0, 0, 0, 0], sizes = [8, 1, 8, 64], strides = [1, 1, 1, 1]} : vector<8x2x8x64xf32> to vector<8x1x8x64xf32>
    %288 = vector.shape_cast %287 : vector<8x1x8x64xf32> to vector<8x8x64xf32>
    %289 = vector.extract_strided_slice %156 {offsets = [2, 2, 0, 0], sizes = [1, 1, 64, 64], strides = [1, 1, 1, 1]} : vector<3x3x64x64xf32> to vector<1x1x64x64xf32>
    %290 = vector.shape_cast %289 : vector<1x1x64x64xf32> to vector<64x64xf32>
    %291 = vector.shape_cast %290 : vector<64x64xf32> to vector<1x64x64xf32>
    %292 = vector.shape_cast %291 : vector<1x64x64xf32> to vector<1x64x64xf32>
    %293 = vector.broadcast %292 : vector<1x64x64xf32> to vector<8x64x64xf32>
    %cst_50 = arith.constant dense<0.000000e+00> : vector<8x8x64xf32>
    %294 = tpu.matmul %288, %293, %cst_50 {dimension_numbers = #tpu.dot_dimension_numbers<[2], [1], [1], [2], [0, 0, 0, 1, 1, 2], [0], [0]>} : vector<8x8x64xf32>, vector<8x64x64xf32>, vector<8x8x64xf32> -> vector<8x8x64xf32>
    %295 = arith.addf %284, %294 : vector<8x8x64xf32>
    %c0_51 = arith.constant 0 : index
    %c0_52 = arith.constant 0 : index
    %296 = vector.load %arg8[%c0_51, %c0_52] : memref<1x64xf32, #tpu.memory_space<vmem>>, vector<1x64xf32>
    %297 = vector.shape_cast %296 : vector<1x64xf32> to vector<1x1x64xf32>
    %298 = vector.broadcast %297 : vector<1x1x64xf32> to vector<8x8x64xf32>
    %299 = arith.addf %295, %298 : vector<8x8x64xf32>
    %cst_53 = arith.constant 0.000000e+00 : f32
    %300 = vector.broadcast %cst_53 : f32 to vector<8x8x64xf32>
    %301 = arith.maximumf %299, %300 : vector<8x8x64xf32>
    %302 = vector.shape_cast %301 : vector<8x8x64xf32> to vector<1x8x8x64xf32>
    %cst_54 = arith.constant 0.000000e+00 : f32
    %303 = vector.broadcast %cst_54 : f32 to vector<1x1x8x64xf32>
    %cst_55 = arith.constant 0.000000e+00 : f32
    %304 = vector.broadcast %cst_55 : f32 to vector<1x1x8x64xf32>
    %305 = tpu.concatenate %303, %302, %304 in 1 : vector<1x1x8x64xf32>, vector<1x8x8x64xf32>, vector<1x1x8x64xf32> -> vector<1x10x8x64xf32>
    %306 = vector.shape_cast %305 : vector<1x10x8x64xf32> to vector<10x8x64xf32>
    %c0_56 = arith.constant 0 : index
    %c0_57 = arith.constant 0 : index
    %c0_58 = arith.constant 0 : index
    %c0_59 = arith.constant 0 : index
    %307 = vector.load %arg4[%c0_56, %c0_57, %c0_58, %c0_59] : memref<3x3x64x64xf32, #tpu.memory_space<vmem>>, vector<3x3x64x64xf32>
    %cst_60 = arith.constant 0.000000e+00 : f32
    %308 = vector.broadcast %cst_60 : f32 to vector<4x4x64xf32>
    %309 = tpu.iota {dimensions = array<i32: 0>} : vector<4x8xi32>
    %310 = tpu.iota {dimensions = array<i32: 1>} : vector<4x8xi32>
    %c2_i32_61 = arith.constant 2 : i32
    %311 = vector.broadcast %c2_i32_61 : i32 to vector<4x8xi32>
    %312 = arith.muli %311, %309 : vector<4x8xi32>
    %c-1_i32_62 = arith.constant -1 : i32
    %313 = vector.broadcast %c-1_i32_62 : i32 to vector<4x8xi32>
    %314 = arith.addi %312, %313 : vector<4x8xi32>
    %315 = arith.cmpi eq, %310, %314 : vector<4x8xi32>
    %316 = arith.extui %315 : vector<4x8xi1> to vector<4x8xi32>
    %317 = arith.sitofp %316 : vector<4x8xi32> to vector<4x8xf32>
    %318 = vector.shape_cast %317 : vector<4x8xf32> to vector<1x4x8xf32>
    %319 = vector.shape_cast %318 : vector<1x4x8xf32> to vector<1x4x8xf32>
    %320 = vector.broadcast %319 : vector<1x4x8xf32> to vector<10x4x8xf32>
    %cst_63 = arith.constant dense<0.000000e+00> : vector<10x4x64xf32>
    %321 = tpu.matmul %320, %306, %cst_63 {dimension_numbers = #tpu.dot_dimension_numbers<[2], [1], [1], [2], [0, 0, 0, 1, 1, 2], [0], [0]>} : vector<10x4x8xf32>, vector<10x8x64xf32>, vector<10x4x64xf32> -> vector<10x4x64xf32>
    %322 = vector.extract_strided_slice %321 {offsets = [0, 0, 0], sizes = [8, 4, 64], strides = [1, 1, 1]} : vector<10x4x64xf32> to vector<8x4x64xf32>
    %323 = vector.shape_cast %322 : vector<8x4x64xf32> to vector<4x2x4x64xf32>
    %324 = vector.extract_strided_slice %323 {offsets = [0, 0, 0, 0], sizes = [4, 1, 4, 64], strides = [1, 1, 1, 1]} : vector<4x2x4x64xf32> to vector<4x1x4x64xf32>
    %325 = vector.shape_cast %324 : vector<4x1x4x64xf32> to vector<4x4x64xf32>
    %326 = vector.extract_strided_slice %307 {offsets = [0, 0, 0, 0], sizes = [1, 1, 64, 64], strides = [1, 1, 1, 1]} : vector<3x3x64x64xf32> to vector<1x1x64x64xf32>
    %327 = vector.shape_cast %326 : vector<1x1x64x64xf32> to vector<64x64xf32>
    %328 = vector.shape_cast %327 : vector<64x64xf32> to vector<1x64x64xf32>
    %329 = vector.shape_cast %328 : vector<1x64x64xf32> to vector<1x64x64xf32>
    %330 = vector.broadcast %329 : vector<1x64x64xf32> to vector<4x64x64xf32>
    %cst_64 = arith.constant dense<0.000000e+00> : vector<4x4x64xf32>
    %331 = tpu.matmul %325, %330, %cst_64 {dimension_numbers = #tpu.dot_dimension_numbers<[2], [1], [1], [2], [0, 0, 0, 1, 1, 2], [0], [0]>} : vector<4x4x64xf32>, vector<4x64x64xf32>, vector<4x4x64xf32> -> vector<4x4x64xf32>
    %332 = arith.addf %308, %331 : vector<4x4x64xf32>
    %333 = vector.extract_strided_slice %321 {offsets = [1, 0, 0], sizes = [8, 4, 64], strides = [1, 1, 1]} : vector<10x4x64xf32> to vector<8x4x64xf32>
    %334 = vector.shape_cast %333 : vector<8x4x64xf32> to vector<4x2x4x64xf32>
    %335 = vector.extract_strided_slice %334 {offsets = [0, 0, 0, 0], sizes = [4, 1, 4, 64], strides = [1, 1, 1, 1]} : vector<4x2x4x64xf32> to vector<4x1x4x64xf32>
    %336 = vector.shape_cast %335 : vector<4x1x4x64xf32> to vector<4x4x64xf32>
    %337 = vector.extract_strided_slice %307 {offsets = [1, 0, 0, 0], sizes = [1, 1, 64, 64], strides = [1, 1, 1, 1]} : vector<3x3x64x64xf32> to vector<1x1x64x64xf32>
    %338 = vector.shape_cast %337 : vector<1x1x64x64xf32> to vector<64x64xf32>
    %339 = vector.shape_cast %338 : vector<64x64xf32> to vector<1x64x64xf32>
    %340 = vector.shape_cast %339 : vector<1x64x64xf32> to vector<1x64x64xf32>
    %341 = vector.broadcast %340 : vector<1x64x64xf32> to vector<4x64x64xf32>
    %cst_65 = arith.constant dense<0.000000e+00> : vector<4x4x64xf32>
    %342 = tpu.matmul %336, %341, %cst_65 {dimension_numbers = #tpu.dot_dimension_numbers<[2], [1], [1], [2], [0, 0, 0, 1, 1, 2], [0], [0]>} : vector<4x4x64xf32>, vector<4x64x64xf32>, vector<4x4x64xf32> -> vector<4x4x64xf32>
    %343 = arith.addf %332, %342 : vector<4x4x64xf32>
    %344 = vector.extract_strided_slice %321 {offsets = [2, 0, 0], sizes = [8, 4, 64], strides = [1, 1, 1]} : vector<10x4x64xf32> to vector<8x4x64xf32>
    %345 = vector.shape_cast %344 : vector<8x4x64xf32> to vector<4x2x4x64xf32>
    %346 = vector.extract_strided_slice %345 {offsets = [0, 0, 0, 0], sizes = [4, 1, 4, 64], strides = [1, 1, 1, 1]} : vector<4x2x4x64xf32> to vector<4x1x4x64xf32>
    %347 = vector.shape_cast %346 : vector<4x1x4x64xf32> to vector<4x4x64xf32>
    %348 = vector.extract_strided_slice %307 {offsets = [2, 0, 0, 0], sizes = [1, 1, 64, 64], strides = [1, 1, 1, 1]} : vector<3x3x64x64xf32> to vector<1x1x64x64xf32>
    %349 = vector.shape_cast %348 : vector<1x1x64x64xf32> to vector<64x64xf32>
    %350 = vector.shape_cast %349 : vector<64x64xf32> to vector<1x64x64xf32>
    %351 = vector.shape_cast %350 : vector<1x64x64xf32> to vector<1x64x64xf32>
    %352 = vector.broadcast %351 : vector<1x64x64xf32> to vector<4x64x64xf32>
    %cst_66 = arith.constant dense<0.000000e+00> : vector<4x4x64xf32>
    %353 = tpu.matmul %347, %352, %cst_66 {dimension_numbers = #tpu.dot_dimension_numbers<[2], [1], [1], [2], [0, 0, 0, 1, 1, 2], [0], [0]>} : vector<4x4x64xf32>, vector<4x64x64xf32>, vector<4x4x64xf32> -> vector<4x4x64xf32>
    %354 = arith.addf %343, %353 : vector<4x4x64xf32>
    %355 = tpu.iota {dimensions = array<i32: 0>} : vector<4x8xi32>
    %356 = tpu.iota {dimensions = array<i32: 1>} : vector<4x8xi32>
    %c2_i32_67 = arith.constant 2 : i32
    %357 = vector.broadcast %c2_i32_67 : i32 to vector<4x8xi32>
    %358 = arith.muli %357, %355 : vector<4x8xi32>
    %c0_i32_68 = arith.constant 0 : i32
    %359 = vector.broadcast %c0_i32_68 : i32 to vector<4x8xi32>
    %360 = arith.addi %358, %359 : vector<4x8xi32>
    %361 = arith.cmpi eq, %356, %360 : vector<4x8xi32>
    %362 = arith.extui %361 : vector<4x8xi1> to vector<4x8xi32>
    %363 = arith.sitofp %362 : vector<4x8xi32> to vector<4x8xf32>
    %364 = vector.shape_cast %363 : vector<4x8xf32> to vector<1x4x8xf32>
    %365 = vector.shape_cast %364 : vector<1x4x8xf32> to vector<1x4x8xf32>
    %366 = vector.broadcast %365 : vector<1x4x8xf32> to vector<10x4x8xf32>
    %cst_69 = arith.constant dense<0.000000e+00> : vector<10x4x64xf32>
    %367 = tpu.matmul %366, %306, %cst_69 {dimension_numbers = #tpu.dot_dimension_numbers<[2], [1], [1], [2], [0, 0, 0, 1, 1, 2], [0], [0]>} : vector<10x4x8xf32>, vector<10x8x64xf32>, vector<10x4x64xf32> -> vector<10x4x64xf32>
    %368 = vector.extract_strided_slice %367 {offsets = [0, 0, 0], sizes = [8, 4, 64], strides = [1, 1, 1]} : vector<10x4x64xf32> to vector<8x4x64xf32>
    %369 = vector.shape_cast %368 : vector<8x4x64xf32> to vector<4x2x4x64xf32>
    %370 = vector.extract_strided_slice %369 {offsets = [0, 0, 0, 0], sizes = [4, 1, 4, 64], strides = [1, 1, 1, 1]} : vector<4x2x4x64xf32> to vector<4x1x4x64xf32>
    %371 = vector.shape_cast %370 : vector<4x1x4x64xf32> to vector<4x4x64xf32>
    %372 = vector.extract_strided_slice %307 {offsets = [0, 1, 0, 0], sizes = [1, 1, 64, 64], strides = [1, 1, 1, 1]} : vector<3x3x64x64xf32> to vector<1x1x64x64xf32>
    %373 = vector.shape_cast %372 : vector<1x1x64x64xf32> to vector<64x64xf32>
    %374 = vector.shape_cast %373 : vector<64x64xf32> to vector<1x64x64xf32>
    %375 = vector.shape_cast %374 : vector<1x64x64xf32> to vector<1x64x64xf32>
    %376 = vector.broadcast %375 : vector<1x64x64xf32> to vector<4x64x64xf32>
    %cst_70 = arith.constant dense<0.000000e+00> : vector<4x4x64xf32>
    %377 = tpu.matmul %371, %376, %cst_70 {dimension_numbers = #tpu.dot_dimension_numbers<[2], [1], [1], [2], [0, 0, 0, 1, 1, 2], [0], [0]>} : vector<4x4x64xf32>, vector<4x64x64xf32>, vector<4x4x64xf32> -> vector<4x4x64xf32>
    %378 = arith.addf %354, %377 : vector<4x4x64xf32>
    %379 = vector.extract_strided_slice %367 {offsets = [1, 0, 0], sizes = [8, 4, 64], strides = [1, 1, 1]} : vector<10x4x64xf32> to vector<8x4x64xf32>
    %380 = vector.shape_cast %379 : vector<8x4x64xf32> to vector<4x2x4x64xf32>
    %381 = vector.extract_strided_slice %380 {offsets = [0, 0, 0, 0], sizes = [4, 1, 4, 64], strides = [1, 1, 1, 1]} : vector<4x2x4x64xf32> to vector<4x1x4x64xf32>
    %382 = vector.shape_cast %381 : vector<4x1x4x64xf32> to vector<4x4x64xf32>
    %383 = vector.extract_strided_slice %307 {offsets = [1, 1, 0, 0], sizes = [1, 1, 64, 64], strides = [1, 1, 1, 1]} : vector<3x3x64x64xf32> to vector<1x1x64x64xf32>
    %384 = vector.shape_cast %383 : vector<1x1x64x64xf32> to vector<64x64xf32>
    %385 = vector.shape_cast %384 : vector<64x64xf32> to vector<1x64x64xf32>
    %386 = vector.shape_cast %385 : vector<1x64x64xf32> to vector<1x64x64xf32>
    %387 = vector.broadcast %386 : vector<1x64x64xf32> to vector<4x64x64xf32>
    %cst_71 = arith.constant dense<0.000000e+00> : vector<4x4x64xf32>
    %388 = tpu.matmul %382, %387, %cst_71 {dimension_numbers = #tpu.dot_dimension_numbers<[2], [1], [1], [2], [0, 0, 0, 1, 1, 2], [0], [0]>} : vector<4x4x64xf32>, vector<4x64x64xf32>, vector<4x4x64xf32> -> vector<4x4x64xf32>
    %389 = arith.addf %378, %388 : vector<4x4x64xf32>
    %390 = vector.extract_strided_slice %367 {offsets = [2, 0, 0], sizes = [8, 4, 64], strides = [1, 1, 1]} : vector<10x4x64xf32> to vector<8x4x64xf32>
    %391 = vector.shape_cast %390 : vector<8x4x64xf32> to vector<4x2x4x64xf32>
    %392 = vector.extract_strided_slice %391 {offsets = [0, 0, 0, 0], sizes = [4, 1, 4, 64], strides = [1, 1, 1, 1]} : vector<4x2x4x64xf32> to vector<4x1x4x64xf32>
    %393 = vector.shape_cast %392 : vector<4x1x4x64xf32> to vector<4x4x64xf32>
    %394 = vector.extract_strided_slice %307 {offsets = [2, 1, 0, 0], sizes = [1, 1, 64, 64], strides = [1, 1, 1, 1]} : vector<3x3x64x64xf32> to vector<1x1x64x64xf32>
    %395 = vector.shape_cast %394 : vector<1x1x64x64xf32> to vector<64x64xf32>
    %396 = vector.shape_cast %395 : vector<64x64xf32> to vector<1x64x64xf32>
    %397 = vector.shape_cast %396 : vector<1x64x64xf32> to vector<1x64x64xf32>
    %398 = vector.broadcast %397 : vector<1x64x64xf32> to vector<4x64x64xf32>
    %cst_72 = arith.constant dense<0.000000e+00> : vector<4x4x64xf32>
    %399 = tpu.matmul %393, %398, %cst_72 {dimension_numbers = #tpu.dot_dimension_numbers<[2], [1], [1], [2], [0, 0, 0, 1, 1, 2], [0], [0]>} : vector<4x4x64xf32>, vector<4x64x64xf32>, vector<4x4x64xf32> -> vector<4x4x64xf32>
    %400 = arith.addf %389, %399 : vector<4x4x64xf32>
    %401 = tpu.iota {dimensions = array<i32: 0>} : vector<4x8xi32>
    %402 = tpu.iota {dimensions = array<i32: 1>} : vector<4x8xi32>
    %c2_i32_73 = arith.constant 2 : i32
    %403 = vector.broadcast %c2_i32_73 : i32 to vector<4x8xi32>
    %404 = arith.muli %403, %401 : vector<4x8xi32>
    %c1_i32_74 = arith.constant 1 : i32
    %405 = vector.broadcast %c1_i32_74 : i32 to vector<4x8xi32>
    %406 = arith.addi %404, %405 : vector<4x8xi32>
    %407 = arith.cmpi eq, %402, %406 : vector<4x8xi32>
    %408 = arith.extui %407 : vector<4x8xi1> to vector<4x8xi32>
    %409 = arith.sitofp %408 : vector<4x8xi32> to vector<4x8xf32>
    %410 = vector.shape_cast %409 : vector<4x8xf32> to vector<1x4x8xf32>
    %411 = vector.shape_cast %410 : vector<1x4x8xf32> to vector<1x4x8xf32>
    %412 = vector.broadcast %411 : vector<1x4x8xf32> to vector<10x4x8xf32>
    %cst_75 = arith.constant dense<0.000000e+00> : vector<10x4x64xf32>
    %413 = tpu.matmul %412, %306, %cst_75 {dimension_numbers = #tpu.dot_dimension_numbers<[2], [1], [1], [2], [0, 0, 0, 1, 1, 2], [0], [0]>} : vector<10x4x8xf32>, vector<10x8x64xf32>, vector<10x4x64xf32> -> vector<10x4x64xf32>
    %414 = vector.extract_strided_slice %413 {offsets = [0, 0, 0], sizes = [8, 4, 64], strides = [1, 1, 1]} : vector<10x4x64xf32> to vector<8x4x64xf32>
    %415 = vector.shape_cast %414 : vector<8x4x64xf32> to vector<4x2x4x64xf32>
    %416 = vector.extract_strided_slice %415 {offsets = [0, 0, 0, 0], sizes = [4, 1, 4, 64], strides = [1, 1, 1, 1]} : vector<4x2x4x64xf32> to vector<4x1x4x64xf32>
    %417 = vector.shape_cast %416 : vector<4x1x4x64xf32> to vector<4x4x64xf32>
    %418 = vector.extract_strided_slice %307 {offsets = [0, 2, 0, 0], sizes = [1, 1, 64, 64], strides = [1, 1, 1, 1]} : vector<3x3x64x64xf32> to vector<1x1x64x64xf32>
    %419 = vector.shape_cast %418 : vector<1x1x64x64xf32> to vector<64x64xf32>
    %420 = vector.shape_cast %419 : vector<64x64xf32> to vector<1x64x64xf32>
    %421 = vector.shape_cast %420 : vector<1x64x64xf32> to vector<1x64x64xf32>
    %422 = vector.broadcast %421 : vector<1x64x64xf32> to vector<4x64x64xf32>
    %cst_76 = arith.constant dense<0.000000e+00> : vector<4x4x64xf32>
    %423 = tpu.matmul %417, %422, %cst_76 {dimension_numbers = #tpu.dot_dimension_numbers<[2], [1], [1], [2], [0, 0, 0, 1, 1, 2], [0], [0]>} : vector<4x4x64xf32>, vector<4x64x64xf32>, vector<4x4x64xf32> -> vector<4x4x64xf32>
    %424 = arith.addf %400, %423 : vector<4x4x64xf32>
    %425 = vector.extract_strided_slice %413 {offsets = [1, 0, 0], sizes = [8, 4, 64], strides = [1, 1, 1]} : vector<10x4x64xf32> to vector<8x4x64xf32>
    %426 = vector.shape_cast %425 : vector<8x4x64xf32> to vector<4x2x4x64xf32>
    %427 = vector.extract_strided_slice %426 {offsets = [0, 0, 0, 0], sizes = [4, 1, 4, 64], strides = [1, 1, 1, 1]} : vector<4x2x4x64xf32> to vector<4x1x4x64xf32>
    %428 = vector.shape_cast %427 : vector<4x1x4x64xf32> to vector<4x4x64xf32>
    %429 = vector.extract_strided_slice %307 {offsets = [1, 2, 0, 0], sizes = [1, 1, 64, 64], strides = [1, 1, 1, 1]} : vector<3x3x64x64xf32> to vector<1x1x64x64xf32>
    %430 = vector.shape_cast %429 : vector<1x1x64x64xf32> to vector<64x64xf32>
    %431 = vector.shape_cast %430 : vector<64x64xf32> to vector<1x64x64xf32>
    %432 = vector.shape_cast %431 : vector<1x64x64xf32> to vector<1x64x64xf32>
    %433 = vector.broadcast %432 : vector<1x64x64xf32> to vector<4x64x64xf32>
    %cst_77 = arith.constant dense<0.000000e+00> : vector<4x4x64xf32>
    %434 = tpu.matmul %428, %433, %cst_77 {dimension_numbers = #tpu.dot_dimension_numbers<[2], [1], [1], [2], [0, 0, 0, 1, 1, 2], [0], [0]>} : vector<4x4x64xf32>, vector<4x64x64xf32>, vector<4x4x64xf32> -> vector<4x4x64xf32>
    %435 = arith.addf %424, %434 : vector<4x4x64xf32>
    %436 = vector.extract_strided_slice %413 {offsets = [2, 0, 0], sizes = [8, 4, 64], strides = [1, 1, 1]} : vector<10x4x64xf32> to vector<8x4x64xf32>
    %437 = vector.shape_cast %436 : vector<8x4x64xf32> to vector<4x2x4x64xf32>
    %438 = vector.extract_strided_slice %437 {offsets = [0, 0, 0, 0], sizes = [4, 1, 4, 64], strides = [1, 1, 1, 1]} : vector<4x2x4x64xf32> to vector<4x1x4x64xf32>
    %439 = vector.shape_cast %438 : vector<4x1x4x64xf32> to vector<4x4x64xf32>
    %440 = vector.extract_strided_slice %307 {offsets = [2, 2, 0, 0], sizes = [1, 1, 64, 64], strides = [1, 1, 1, 1]} : vector<3x3x64x64xf32> to vector<1x1x64x64xf32>
    %441 = vector.shape_cast %440 : vector<1x1x64x64xf32> to vector<64x64xf32>
    %442 = vector.shape_cast %441 : vector<64x64xf32> to vector<1x64x64xf32>
    %443 = vector.shape_cast %442 : vector<1x64x64xf32> to vector<1x64x64xf32>
    %444 = vector.broadcast %443 : vector<1x64x64xf32> to vector<4x64x64xf32>
    %cst_78 = arith.constant dense<0.000000e+00> : vector<4x4x64xf32>
    %445 = tpu.matmul %439, %444, %cst_78 {dimension_numbers = #tpu.dot_dimension_numbers<[2], [1], [1], [2], [0, 0, 0, 1, 1, 2], [0], [0]>} : vector<4x4x64xf32>, vector<4x64x64xf32>, vector<4x4x64xf32> -> vector<4x4x64xf32>
    %446 = arith.addf %435, %445 : vector<4x4x64xf32>
    %c0_79 = arith.constant 0 : index
    %c0_80 = arith.constant 0 : index
    %447 = vector.load %arg9[%c0_79, %c0_80] : memref<1x64xf32, #tpu.memory_space<vmem>>, vector<1x64xf32>
    %448 = vector.shape_cast %447 : vector<1x64xf32> to vector<1x1x64xf32>
    %449 = vector.broadcast %448 : vector<1x1x64xf32> to vector<4x4x64xf32>
    %450 = arith.addf %446, %449 : vector<4x4x64xf32>
    %cst_81 = arith.constant 0.000000e+00 : f32
    %451 = vector.broadcast %cst_81 : f32 to vector<4x4x64xf32>
    %452 = arith.maximumf %450, %451 : vector<4x4x64xf32>
    %453 = vector.shape_cast %452 : vector<4x4x64xf32> to vector<1x4x4x64xf32>
    %cst_82 = arith.constant 0.000000e+00 : f32
    %454 = vector.broadcast %cst_82 : f32 to vector<1x1x4x64xf32>
    %cst_83 = arith.constant 0.000000e+00 : f32
    %455 = vector.broadcast %cst_83 : f32 to vector<1x1x4x64xf32>
    %456 = tpu.concatenate %454, %453, %455 in 1 : vector<1x1x4x64xf32>, vector<1x4x4x64xf32>, vector<1x1x4x64xf32> -> vector<1x6x4x64xf32>
    %457 = vector.shape_cast %456 : vector<1x6x4x64xf32> to vector<6x4x64xf32>
    %c0_84 = arith.constant 0 : index
    %c0_85 = arith.constant 0 : index
    %c0_86 = arith.constant 0 : index
    %c0_87 = arith.constant 0 : index
    %458 = vector.load %arg5[%c0_84, %c0_85, %c0_86, %c0_87] : memref<3x3x64x64xf32, #tpu.memory_space<vmem>>, vector<3x3x64x64xf32>
    %cst_88 = arith.constant 0.000000e+00 : f32
    %459 = vector.broadcast %cst_88 : f32 to vector<2x2x64xf32>
    %460 = tpu.iota {dimensions = array<i32: 0>} : vector<2x4xi32>
    %461 = tpu.iota {dimensions = array<i32: 1>} : vector<2x4xi32>
    %c2_i32_89 = arith.constant 2 : i32
    %462 = vector.broadcast %c2_i32_89 : i32 to vector<2x4xi32>
    %463 = arith.muli %462, %460 : vector<2x4xi32>
    %c-1_i32_90 = arith.constant -1 : i32
    %464 = vector.broadcast %c-1_i32_90 : i32 to vector<2x4xi32>
    %465 = arith.addi %463, %464 : vector<2x4xi32>
    %466 = arith.cmpi eq, %461, %465 : vector<2x4xi32>
    %467 = arith.extui %466 : vector<2x4xi1> to vector<2x4xi32>
    %468 = arith.sitofp %467 : vector<2x4xi32> to vector<2x4xf32>
    %469 = vector.shape_cast %468 : vector<2x4xf32> to vector<1x2x4xf32>
    %470 = vector.shape_cast %469 : vector<1x2x4xf32> to vector<1x2x4xf32>
    %471 = vector.broadcast %470 : vector<1x2x4xf32> to vector<6x2x4xf32>
    %cst_91 = arith.constant dense<0.000000e+00> : vector<6x2x64xf32>
    %472 = tpu.matmul %471, %457, %cst_91 {dimension_numbers = #tpu.dot_dimension_numbers<[2], [1], [1], [2], [0, 0, 0, 1, 1, 2], [0], [0]>} : vector<6x2x4xf32>, vector<6x4x64xf32>, vector<6x2x64xf32> -> vector<6x2x64xf32>
    %473 = vector.extract_strided_slice %472 {offsets = [0, 0, 0], sizes = [4, 2, 64], strides = [1, 1, 1]} : vector<6x2x64xf32> to vector<4x2x64xf32>
    %474 = vector.shape_cast %473 : vector<4x2x64xf32> to vector<2x2x2x64xf32>
    %475 = vector.extract_strided_slice %474 {offsets = [0, 0, 0, 0], sizes = [2, 1, 2, 64], strides = [1, 1, 1, 1]} : vector<2x2x2x64xf32> to vector<2x1x2x64xf32>
    %476 = vector.shape_cast %475 : vector<2x1x2x64xf32> to vector<2x2x64xf32>
    %477 = vector.extract_strided_slice %458 {offsets = [0, 0, 0, 0], sizes = [1, 1, 64, 64], strides = [1, 1, 1, 1]} : vector<3x3x64x64xf32> to vector<1x1x64x64xf32>
    %478 = vector.shape_cast %477 : vector<1x1x64x64xf32> to vector<64x64xf32>
    %479 = vector.shape_cast %478 : vector<64x64xf32> to vector<1x64x64xf32>
    %480 = vector.shape_cast %479 : vector<1x64x64xf32> to vector<1x64x64xf32>
    %481 = vector.broadcast %480 : vector<1x64x64xf32> to vector<2x64x64xf32>
    %cst_92 = arith.constant dense<0.000000e+00> : vector<2x2x64xf32>
    %482 = tpu.matmul %476, %481, %cst_92 {dimension_numbers = #tpu.dot_dimension_numbers<[2], [1], [1], [2], [0, 0, 0, 1, 1, 2], [0], [0]>} : vector<2x2x64xf32>, vector<2x64x64xf32>, vector<2x2x64xf32> -> vector<2x2x64xf32>
    %483 = arith.addf %459, %482 : vector<2x2x64xf32>
    %484 = vector.extract_strided_slice %472 {offsets = [1, 0, 0], sizes = [4, 2, 64], strides = [1, 1, 1]} : vector<6x2x64xf32> to vector<4x2x64xf32>
    %485 = vector.shape_cast %484 : vector<4x2x64xf32> to vector<2x2x2x64xf32>
    %486 = vector.extract_strided_slice %485 {offsets = [0, 0, 0, 0], sizes = [2, 1, 2, 64], strides = [1, 1, 1, 1]} : vector<2x2x2x64xf32> to vector<2x1x2x64xf32>
    %487 = vector.shape_cast %486 : vector<2x1x2x64xf32> to vector<2x2x64xf32>
    %488 = vector.extract_strided_slice %458 {offsets = [1, 0, 0, 0], sizes = [1, 1, 64, 64], strides = [1, 1, 1, 1]} : vector<3x3x64x64xf32> to vector<1x1x64x64xf32>
    %489 = vector.shape_cast %488 : vector<1x1x64x64xf32> to vector<64x64xf32>
    %490 = vector.shape_cast %489 : vector<64x64xf32> to vector<1x64x64xf32>
    %491 = vector.shape_cast %490 : vector<1x64x64xf32> to vector<1x64x64xf32>
    %492 = vector.broadcast %491 : vector<1x64x64xf32> to vector<2x64x64xf32>
    %cst_93 = arith.constant dense<0.000000e+00> : vector<2x2x64xf32>
    %493 = tpu.matmul %487, %492, %cst_93 {dimension_numbers = #tpu.dot_dimension_numbers<[2], [1], [1], [2], [0, 0, 0, 1, 1, 2], [0], [0]>} : vector<2x2x64xf32>, vector<2x64x64xf32>, vector<2x2x64xf32> -> vector<2x2x64xf32>
    %494 = arith.addf %483, %493 : vector<2x2x64xf32>
    %495 = vector.extract_strided_slice %472 {offsets = [2, 0, 0], sizes = [4, 2, 64], strides = [1, 1, 1]} : vector<6x2x64xf32> to vector<4x2x64xf32>
    %496 = vector.shape_cast %495 : vector<4x2x64xf32> to vector<2x2x2x64xf32>
    %497 = vector.extract_strided_slice %496 {offsets = [0, 0, 0, 0], sizes = [2, 1, 2, 64], strides = [1, 1, 1, 1]} : vector<2x2x2x64xf32> to vector<2x1x2x64xf32>
    %498 = vector.shape_cast %497 : vector<2x1x2x64xf32> to vector<2x2x64xf32>
    %499 = vector.extract_strided_slice %458 {offsets = [2, 0, 0, 0], sizes = [1, 1, 64, 64], strides = [1, 1, 1, 1]} : vector<3x3x64x64xf32> to vector<1x1x64x64xf32>
    %500 = vector.shape_cast %499 : vector<1x1x64x64xf32> to vector<64x64xf32>
    %501 = vector.shape_cast %500 : vector<64x64xf32> to vector<1x64x64xf32>
    %502 = vector.shape_cast %501 : vector<1x64x64xf32> to vector<1x64x64xf32>
    %503 = vector.broadcast %502 : vector<1x64x64xf32> to vector<2x64x64xf32>
    %cst_94 = arith.constant dense<0.000000e+00> : vector<2x2x64xf32>
    %504 = tpu.matmul %498, %503, %cst_94 {dimension_numbers = #tpu.dot_dimension_numbers<[2], [1], [1], [2], [0, 0, 0, 1, 1, 2], [0], [0]>} : vector<2x2x64xf32>, vector<2x64x64xf32>, vector<2x2x64xf32> -> vector<2x2x64xf32>
    %505 = arith.addf %494, %504 : vector<2x2x64xf32>
    %506 = tpu.iota {dimensions = array<i32: 0>} : vector<2x4xi32>
    %507 = tpu.iota {dimensions = array<i32: 1>} : vector<2x4xi32>
    %c2_i32_95 = arith.constant 2 : i32
    %508 = vector.broadcast %c2_i32_95 : i32 to vector<2x4xi32>
    %509 = arith.muli %508, %506 : vector<2x4xi32>
    %c0_i32_96 = arith.constant 0 : i32
    %510 = vector.broadcast %c0_i32_96 : i32 to vector<2x4xi32>
    %511 = arith.addi %509, %510 : vector<2x4xi32>
    %512 = arith.cmpi eq, %507, %511 : vector<2x4xi32>
    %513 = arith.extui %512 : vector<2x4xi1> to vector<2x4xi32>
    %514 = arith.sitofp %513 : vector<2x4xi32> to vector<2x4xf32>
    %515 = vector.shape_cast %514 : vector<2x4xf32> to vector<1x2x4xf32>
    %516 = vector.shape_cast %515 : vector<1x2x4xf32> to vector<1x2x4xf32>
    %517 = vector.broadcast %516 : vector<1x2x4xf32> to vector<6x2x4xf32>
    %cst_97 = arith.constant dense<0.000000e+00> : vector<6x2x64xf32>
    %518 = tpu.matmul %517, %457, %cst_97 {dimension_numbers = #tpu.dot_dimension_numbers<[2], [1], [1], [2], [0, 0, 0, 1, 1, 2], [0], [0]>} : vector<6x2x4xf32>, vector<6x4x64xf32>, vector<6x2x64xf32> -> vector<6x2x64xf32>
    %519 = vector.extract_strided_slice %518 {offsets = [0, 0, 0], sizes = [4, 2, 64], strides = [1, 1, 1]} : vector<6x2x64xf32> to vector<4x2x64xf32>
    %520 = vector.shape_cast %519 : vector<4x2x64xf32> to vector<2x2x2x64xf32>
    %521 = vector.extract_strided_slice %520 {offsets = [0, 0, 0, 0], sizes = [2, 1, 2, 64], strides = [1, 1, 1, 1]} : vector<2x2x2x64xf32> to vector<2x1x2x64xf32>
    %522 = vector.shape_cast %521 : vector<2x1x2x64xf32> to vector<2x2x64xf32>
    %523 = vector.extract_strided_slice %458 {offsets = [0, 1, 0, 0], sizes = [1, 1, 64, 64], strides = [1, 1, 1, 1]} : vector<3x3x64x64xf32> to vector<1x1x64x64xf32>
    %524 = vector.shape_cast %523 : vector<1x1x64x64xf32> to vector<64x64xf32>
    %525 = vector.shape_cast %524 : vector<64x64xf32> to vector<1x64x64xf32>
    %526 = vector.shape_cast %525 : vector<1x64x64xf32> to vector<1x64x64xf32>
    %527 = vector.broadcast %526 : vector<1x64x64xf32> to vector<2x64x64xf32>
    %cst_98 = arith.constant dense<0.000000e+00> : vector<2x2x64xf32>
    %528 = tpu.matmul %522, %527, %cst_98 {dimension_numbers = #tpu.dot_dimension_numbers<[2], [1], [1], [2], [0, 0, 0, 1, 1, 2], [0], [0]>} : vector<2x2x64xf32>, vector<2x64x64xf32>, vector<2x2x64xf32> -> vector<2x2x64xf32>
    %529 = arith.addf %505, %528 : vector<2x2x64xf32>
    %530 = vector.extract_strided_slice %518 {offsets = [1, 0, 0], sizes = [4, 2, 64], strides = [1, 1, 1]} : vector<6x2x64xf32> to vector<4x2x64xf32>
    %531 = vector.shape_cast %530 : vector<4x2x64xf32> to vector<2x2x2x64xf32>
    %532 = vector.extract_strided_slice %531 {offsets = [0, 0, 0, 0], sizes = [2, 1, 2, 64], strides = [1, 1, 1, 1]} : vector<2x2x2x64xf32> to vector<2x1x2x64xf32>
    %533 = vector.shape_cast %532 : vector<2x1x2x64xf32> to vector<2x2x64xf32>
    %534 = vector.extract_strided_slice %458 {offsets = [1, 1, 0, 0], sizes = [1, 1, 64, 64], strides = [1, 1, 1, 1]} : vector<3x3x64x64xf32> to vector<1x1x64x64xf32>
    %535 = vector.shape_cast %534 : vector<1x1x64x64xf32> to vector<64x64xf32>
    %536 = vector.shape_cast %535 : vector<64x64xf32> to vector<1x64x64xf32>
    %537 = vector.shape_cast %536 : vector<1x64x64xf32> to vector<1x64x64xf32>
    %538 = vector.broadcast %537 : vector<1x64x64xf32> to vector<2x64x64xf32>
    %cst_99 = arith.constant dense<0.000000e+00> : vector<2x2x64xf32>
    %539 = tpu.matmul %533, %538, %cst_99 {dimension_numbers = #tpu.dot_dimension_numbers<[2], [1], [1], [2], [0, 0, 0, 1, 1, 2], [0], [0]>} : vector<2x2x64xf32>, vector<2x64x64xf32>, vector<2x2x64xf32> -> vector<2x2x64xf32>
    %540 = arith.addf %529, %539 : vector<2x2x64xf32>
    %541 = vector.extract_strided_slice %518 {offsets = [2, 0, 0], sizes = [4, 2, 64], strides = [1, 1, 1]} : vector<6x2x64xf32> to vector<4x2x64xf32>
    %542 = vector.shape_cast %541 : vector<4x2x64xf32> to vector<2x2x2x64xf32>
    %543 = vector.extract_strided_slice %542 {offsets = [0, 0, 0, 0], sizes = [2, 1, 2, 64], strides = [1, 1, 1, 1]} : vector<2x2x2x64xf32> to vector<2x1x2x64xf32>
    %544 = vector.shape_cast %543 : vector<2x1x2x64xf32> to vector<2x2x64xf32>
    %545 = vector.extract_strided_slice %458 {offsets = [2, 1, 0, 0], sizes = [1, 1, 64, 64], strides = [1, 1, 1, 1]} : vector<3x3x64x64xf32> to vector<1x1x64x64xf32>
    %546 = vector.shape_cast %545 : vector<1x1x64x64xf32> to vector<64x64xf32>
    %547 = vector.shape_cast %546 : vector<64x64xf32> to vector<1x64x64xf32>
    %548 = vector.shape_cast %547 : vector<1x64x64xf32> to vector<1x64x64xf32>
    %549 = vector.broadcast %548 : vector<1x64x64xf32> to vector<2x64x64xf32>
    %cst_100 = arith.constant dense<0.000000e+00> : vector<2x2x64xf32>
    %550 = tpu.matmul %544, %549, %cst_100 {dimension_numbers = #tpu.dot_dimension_numbers<[2], [1], [1], [2], [0, 0, 0, 1, 1, 2], [0], [0]>} : vector<2x2x64xf32>, vector<2x64x64xf32>, vector<2x2x64xf32> -> vector<2x2x64xf32>
    %551 = arith.addf %540, %550 : vector<2x2x64xf32>
    %552 = tpu.iota {dimensions = array<i32: 0>} : vector<2x4xi32>
    %553 = tpu.iota {dimensions = array<i32: 1>} : vector<2x4xi32>
    %c2_i32_101 = arith.constant 2 : i32
    %554 = vector.broadcast %c2_i32_101 : i32 to vector<2x4xi32>
    %555 = arith.muli %554, %552 : vector<2x4xi32>
    %c1_i32_102 = arith.constant 1 : i32
    %556 = vector.broadcast %c1_i32_102 : i32 to vector<2x4xi32>
    %557 = arith.addi %555, %556 : vector<2x4xi32>
    %558 = arith.cmpi eq, %553, %557 : vector<2x4xi32>
    %559 = arith.extui %558 : vector<2x4xi1> to vector<2x4xi32>
    %560 = arith.sitofp %559 : vector<2x4xi32> to vector<2x4xf32>
    %561 = vector.shape_cast %560 : vector<2x4xf32> to vector<1x2x4xf32>
    %562 = vector.shape_cast %561 : vector<1x2x4xf32> to vector<1x2x4xf32>
    %563 = vector.broadcast %562 : vector<1x2x4xf32> to vector<6x2x4xf32>
    %cst_103 = arith.constant dense<0.000000e+00> : vector<6x2x64xf32>
    %564 = tpu.matmul %563, %457, %cst_103 {dimension_numbers = #tpu.dot_dimension_numbers<[2], [1], [1], [2], [0, 0, 0, 1, 1, 2], [0], [0]>} : vector<6x2x4xf32>, vector<6x4x64xf32>, vector<6x2x64xf32> -> vector<6x2x64xf32>
    %565 = vector.extract_strided_slice %564 {offsets = [0, 0, 0], sizes = [4, 2, 64], strides = [1, 1, 1]} : vector<6x2x64xf32> to vector<4x2x64xf32>
    %566 = vector.shape_cast %565 : vector<4x2x64xf32> to vector<2x2x2x64xf32>
    %567 = vector.extract_strided_slice %566 {offsets = [0, 0, 0, 0], sizes = [2, 1, 2, 64], strides = [1, 1, 1, 1]} : vector<2x2x2x64xf32> to vector<2x1x2x64xf32>
    %568 = vector.shape_cast %567 : vector<2x1x2x64xf32> to vector<2x2x64xf32>
    %569 = vector.extract_strided_slice %458 {offsets = [0, 2, 0, 0], sizes = [1, 1, 64, 64], strides = [1, 1, 1, 1]} : vector<3x3x64x64xf32> to vector<1x1x64x64xf32>
    %570 = vector.shape_cast %569 : vector<1x1x64x64xf32> to vector<64x64xf32>
    %571 = vector.shape_cast %570 : vector<64x64xf32> to vector<1x64x64xf32>
    %572 = vector.shape_cast %571 : vector<1x64x64xf32> to vector<1x64x64xf32>
    %573 = vector.broadcast %572 : vector<1x64x64xf32> to vector<2x64x64xf32>
    %cst_104 = arith.constant dense<0.000000e+00> : vector<2x2x64xf32>
    %574 = tpu.matmul %568, %573, %cst_104 {dimension_numbers = #tpu.dot_dimension_numbers<[2], [1], [1], [2], [0, 0, 0, 1, 1, 2], [0], [0]>} : vector<2x2x64xf32>, vector<2x64x64xf32>, vector<2x2x64xf32> -> vector<2x2x64xf32>
    %575 = arith.addf %551, %574 : vector<2x2x64xf32>
    %576 = vector.extract_strided_slice %564 {offsets = [1, 0, 0], sizes = [4, 2, 64], strides = [1, 1, 1]} : vector<6x2x64xf32> to vector<4x2x64xf32>
    %577 = vector.shape_cast %576 : vector<4x2x64xf32> to vector<2x2x2x64xf32>
    %578 = vector.extract_strided_slice %577 {offsets = [0, 0, 0, 0], sizes = [2, 1, 2, 64], strides = [1, 1, 1, 1]} : vector<2x2x2x64xf32> to vector<2x1x2x64xf32>
    %579 = vector.shape_cast %578 : vector<2x1x2x64xf32> to vector<2x2x64xf32>
    %580 = vector.extract_strided_slice %458 {offsets = [1, 2, 0, 0], sizes = [1, 1, 64, 64], strides = [1, 1, 1, 1]} : vector<3x3x64x64xf32> to vector<1x1x64x64xf32>
    %581 = vector.shape_cast %580 : vector<1x1x64x64xf32> to vector<64x64xf32>
    %582 = vector.shape_cast %581 : vector<64x64xf32> to vector<1x64x64xf32>
    %583 = vector.shape_cast %582 : vector<1x64x64xf32> to vector<1x64x64xf32>
    %584 = vector.broadcast %583 : vector<1x64x64xf32> to vector<2x64x64xf32>
    %cst_105 = arith.constant dense<0.000000e+00> : vector<2x2x64xf32>
    %585 = tpu.matmul %579, %584, %cst_105 {dimension_numbers = #tpu.dot_dimension_numbers<[2], [1], [1], [2], [0, 0, 0, 1, 1, 2], [0], [0]>} : vector<2x2x64xf32>, vector<2x64x64xf32>, vector<2x2x64xf32> -> vector<2x2x64xf32>
    %586 = arith.addf %575, %585 : vector<2x2x64xf32>
    %587 = vector.extract_strided_slice %564 {offsets = [2, 0, 0], sizes = [4, 2, 64], strides = [1, 1, 1]} : vector<6x2x64xf32> to vector<4x2x64xf32>
    %588 = vector.shape_cast %587 : vector<4x2x64xf32> to vector<2x2x2x64xf32>
    %589 = vector.extract_strided_slice %588 {offsets = [0, 0, 0, 0], sizes = [2, 1, 2, 64], strides = [1, 1, 1, 1]} : vector<2x2x2x64xf32> to vector<2x1x2x64xf32>
    %590 = vector.shape_cast %589 : vector<2x1x2x64xf32> to vector<2x2x64xf32>
    %591 = vector.extract_strided_slice %458 {offsets = [2, 2, 0, 0], sizes = [1, 1, 64, 64], strides = [1, 1, 1, 1]} : vector<3x3x64x64xf32> to vector<1x1x64x64xf32>
    %592 = vector.shape_cast %591 : vector<1x1x64x64xf32> to vector<64x64xf32>
    %593 = vector.shape_cast %592 : vector<64x64xf32> to vector<1x64x64xf32>
    %594 = vector.shape_cast %593 : vector<1x64x64xf32> to vector<1x64x64xf32>
    %595 = vector.broadcast %594 : vector<1x64x64xf32> to vector<2x64x64xf32>
    %cst_106 = arith.constant dense<0.000000e+00> : vector<2x2x64xf32>
    %596 = tpu.matmul %590, %595, %cst_106 {dimension_numbers = #tpu.dot_dimension_numbers<[2], [1], [1], [2], [0, 0, 0, 1, 1, 2], [0], [0]>} : vector<2x2x64xf32>, vector<2x64x64xf32>, vector<2x2x64xf32> -> vector<2x2x64xf32>
    %597 = arith.addf %586, %596 : vector<2x2x64xf32>
    %c0_107 = arith.constant 0 : index
    %c0_108 = arith.constant 0 : index
    %598 = vector.load %arg10[%c0_107, %c0_108] : memref<1x64xf32, #tpu.memory_space<vmem>>, vector<1x64xf32>
    %599 = vector.shape_cast %598 : vector<1x64xf32> to vector<1x1x64xf32>
    %600 = vector.broadcast %599 : vector<1x1x64xf32> to vector<2x2x64xf32>
    %601 = arith.addf %597, %600 : vector<2x2x64xf32>
    %cst_109 = arith.constant 0.000000e+00 : f32
    %602 = vector.broadcast %cst_109 : f32 to vector<2x2x64xf32>
    %603 = arith.maximumf %601, %602 : vector<2x2x64xf32>
    %604 = vector.shape_cast %603 : vector<2x2x64xf32> to vector<1x2x2x64xf32>
    %cst_110 = arith.constant 0.000000e+00 : f32
    %605 = vector.broadcast %cst_110 : f32 to vector<1x1x2x64xf32>
    %cst_111 = arith.constant 0.000000e+00 : f32
    %606 = vector.broadcast %cst_111 : f32 to vector<1x1x2x64xf32>
    %607 = tpu.concatenate %605, %604, %606 in 1 : vector<1x1x2x64xf32>, vector<1x2x2x64xf32>, vector<1x1x2x64xf32> -> vector<1x4x2x64xf32>
    %608 = vector.shape_cast %607 : vector<1x4x2x64xf32> to vector<4x2x64xf32>
    %c0_112 = arith.constant 0 : index
    %c0_113 = arith.constant 0 : index
    %c0_114 = arith.constant 0 : index
    %c0_115 = arith.constant 0 : index
    %609 = vector.load %arg6[%c0_112, %c0_113, %c0_114, %c0_115] : memref<3x3x64x64xf32, #tpu.memory_space<vmem>>, vector<3x3x64x64xf32>
    %cst_116 = arith.constant 0.000000e+00 : f32
    %610 = vector.broadcast %cst_116 : f32 to vector<1x1x64xf32>
    %611 = tpu.iota {dimensions = array<i32: 0>} : vector<1x2xi32>
    %612 = tpu.iota {dimensions = array<i32: 1>} : vector<1x2xi32>
    %c2_i32_117 = arith.constant 2 : i32
    %613 = vector.broadcast %c2_i32_117 : i32 to vector<1x2xi32>
    %614 = arith.muli %613, %611 : vector<1x2xi32>
    %c-1_i32_118 = arith.constant -1 : i32
    %615 = vector.broadcast %c-1_i32_118 : i32 to vector<1x2xi32>
    %616 = arith.addi %614, %615 : vector<1x2xi32>
    %617 = arith.cmpi eq, %612, %616 : vector<1x2xi32>
    %618 = arith.extui %617 : vector<1x2xi1> to vector<1x2xi32>
    %619 = arith.sitofp %618 : vector<1x2xi32> to vector<1x2xf32>
    %620 = vector.shape_cast %619 : vector<1x2xf32> to vector<1x1x2xf32>
    %621 = vector.shape_cast %620 : vector<1x1x2xf32> to vector<1x1x2xf32>
    %622 = vector.broadcast %621 : vector<1x1x2xf32> to vector<4x1x2xf32>
    %cst_119 = arith.constant dense<0.000000e+00> : vector<4x1x64xf32>
    %623 = tpu.matmul %622, %608, %cst_119 {dimension_numbers = #tpu.dot_dimension_numbers<[2], [1], [1], [2], [0, 0, 0, 1, 1, 2], [0], [0]>} : vector<4x1x2xf32>, vector<4x2x64xf32>, vector<4x1x64xf32> -> vector<4x1x64xf32>
    %624 = vector.extract_strided_slice %623 {offsets = [0, 0, 0], sizes = [2, 1, 64], strides = [1, 1, 1]} : vector<4x1x64xf32> to vector<2x1x64xf32>
    %625 = vector.shape_cast %624 : vector<2x1x64xf32> to vector<1x2x1x64xf32>
    %626 = vector.extract_strided_slice %625 {offsets = [0, 0, 0, 0], sizes = [1, 1, 1, 64], strides = [1, 1, 1, 1]} : vector<1x2x1x64xf32> to vector<1x1x1x64xf32>
    %627 = vector.shape_cast %626 : vector<1x1x1x64xf32> to vector<1x1x64xf32>
    %628 = vector.extract_strided_slice %609 {offsets = [0, 0, 0, 0], sizes = [1, 1, 64, 64], strides = [1, 1, 1, 1]} : vector<3x3x64x64xf32> to vector<1x1x64x64xf32>
    %629 = vector.shape_cast %628 : vector<1x1x64x64xf32> to vector<64x64xf32>
    %630 = vector.shape_cast %629 : vector<64x64xf32> to vector<1x64x64xf32>
    %cst_120 = arith.constant dense<0.000000e+00> : vector<1x1x64xf32>
    %631 = tpu.matmul %627, %630, %cst_120 {dimension_numbers = #tpu.dot_dimension_numbers<[2], [1], [1], [2], [0, 0, 0, 1, 1, 2], [0], [0]>} : vector<1x1x64xf32>, vector<1x64x64xf32>, vector<1x1x64xf32> -> vector<1x1x64xf32>
    %632 = arith.addf %610, %631 : vector<1x1x64xf32>
    %633 = vector.extract_strided_slice %623 {offsets = [1, 0, 0], sizes = [2, 1, 64], strides = [1, 1, 1]} : vector<4x1x64xf32> to vector<2x1x64xf32>
    %634 = vector.shape_cast %633 : vector<2x1x64xf32> to vector<1x2x1x64xf32>
    %635 = vector.extract_strided_slice %634 {offsets = [0, 0, 0, 0], sizes = [1, 1, 1, 64], strides = [1, 1, 1, 1]} : vector<1x2x1x64xf32> to vector<1x1x1x64xf32>
    %636 = vector.shape_cast %635 : vector<1x1x1x64xf32> to vector<1x1x64xf32>
    %637 = vector.extract_strided_slice %609 {offsets = [1, 0, 0, 0], sizes = [1, 1, 64, 64], strides = [1, 1, 1, 1]} : vector<3x3x64x64xf32> to vector<1x1x64x64xf32>
    %638 = vector.shape_cast %637 : vector<1x1x64x64xf32> to vector<64x64xf32>
    %639 = vector.shape_cast %638 : vector<64x64xf32> to vector<1x64x64xf32>
    %cst_121 = arith.constant dense<0.000000e+00> : vector<1x1x64xf32>
    %640 = tpu.matmul %636, %639, %cst_121 {dimension_numbers = #tpu.dot_dimension_numbers<[2], [1], [1], [2], [0, 0, 0, 1, 1, 2], [0], [0]>} : vector<1x1x64xf32>, vector<1x64x64xf32>, vector<1x1x64xf32> -> vector<1x1x64xf32>
    %641 = arith.addf %632, %640 : vector<1x1x64xf32>
    %642 = vector.extract_strided_slice %623 {offsets = [2, 0, 0], sizes = [2, 1, 64], strides = [1, 1, 1]} : vector<4x1x64xf32> to vector<2x1x64xf32>
    %643 = vector.shape_cast %642 : vector<2x1x64xf32> to vector<1x2x1x64xf32>
    %644 = vector.extract_strided_slice %643 {offsets = [0, 0, 0, 0], sizes = [1, 1, 1, 64], strides = [1, 1, 1, 1]} : vector<1x2x1x64xf32> to vector<1x1x1x64xf32>
    %645 = vector.shape_cast %644 : vector<1x1x1x64xf32> to vector<1x1x64xf32>
    %646 = vector.extract_strided_slice %609 {offsets = [2, 0, 0, 0], sizes = [1, 1, 64, 64], strides = [1, 1, 1, 1]} : vector<3x3x64x64xf32> to vector<1x1x64x64xf32>
    %647 = vector.shape_cast %646 : vector<1x1x64x64xf32> to vector<64x64xf32>
    %648 = vector.shape_cast %647 : vector<64x64xf32> to vector<1x64x64xf32>
    %cst_122 = arith.constant dense<0.000000e+00> : vector<1x1x64xf32>
    %649 = tpu.matmul %645, %648, %cst_122 {dimension_numbers = #tpu.dot_dimension_numbers<[2], [1], [1], [2], [0, 0, 0, 1, 1, 2], [0], [0]>} : vector<1x1x64xf32>, vector<1x64x64xf32>, vector<1x1x64xf32> -> vector<1x1x64xf32>
    %650 = arith.addf %641, %649 : vector<1x1x64xf32>
    %651 = tpu.iota {dimensions = array<i32: 0>} : vector<1x2xi32>
    %652 = tpu.iota {dimensions = array<i32: 1>} : vector<1x2xi32>
    %c2_i32_123 = arith.constant 2 : i32
    %653 = vector.broadcast %c2_i32_123 : i32 to vector<1x2xi32>
    %654 = arith.muli %653, %651 : vector<1x2xi32>
    %c0_i32_124 = arith.constant 0 : i32
    %655 = vector.broadcast %c0_i32_124 : i32 to vector<1x2xi32>
    %656 = arith.addi %654, %655 : vector<1x2xi32>
    %657 = arith.cmpi eq, %652, %656 : vector<1x2xi32>
    %658 = arith.extui %657 : vector<1x2xi1> to vector<1x2xi32>
    %659 = arith.sitofp %658 : vector<1x2xi32> to vector<1x2xf32>
    %660 = vector.shape_cast %659 : vector<1x2xf32> to vector<1x1x2xf32>
    %661 = vector.shape_cast %660 : vector<1x1x2xf32> to vector<1x1x2xf32>
    %662 = vector.broadcast %661 : vector<1x1x2xf32> to vector<4x1x2xf32>
    %cst_125 = arith.constant dense<0.000000e+00> : vector<4x1x64xf32>
    %663 = tpu.matmul %662, %608, %cst_125 {dimension_numbers = #tpu.dot_dimension_numbers<[2], [1], [1], [2], [0, 0, 0, 1, 1, 2], [0], [0]>} : vector<4x1x2xf32>, vector<4x2x64xf32>, vector<4x1x64xf32> -> vector<4x1x64xf32>
    %664 = vector.extract_strided_slice %663 {offsets = [0, 0, 0], sizes = [2, 1, 64], strides = [1, 1, 1]} : vector<4x1x64xf32> to vector<2x1x64xf32>
    %665 = vector.shape_cast %664 : vector<2x1x64xf32> to vector<1x2x1x64xf32>
    %666 = vector.extract_strided_slice %665 {offsets = [0, 0, 0, 0], sizes = [1, 1, 1, 64], strides = [1, 1, 1, 1]} : vector<1x2x1x64xf32> to vector<1x1x1x64xf32>
    %667 = vector.shape_cast %666 : vector<1x1x1x64xf32> to vector<1x1x64xf32>
    %668 = vector.extract_strided_slice %609 {offsets = [0, 1, 0, 0], sizes = [1, 1, 64, 64], strides = [1, 1, 1, 1]} : vector<3x3x64x64xf32> to vector<1x1x64x64xf32>
    %669 = vector.shape_cast %668 : vector<1x1x64x64xf32> to vector<64x64xf32>
    %670 = vector.shape_cast %669 : vector<64x64xf32> to vector<1x64x64xf32>
    %cst_126 = arith.constant dense<0.000000e+00> : vector<1x1x64xf32>
    %671 = tpu.matmul %667, %670, %cst_126 {dimension_numbers = #tpu.dot_dimension_numbers<[2], [1], [1], [2], [0, 0, 0, 1, 1, 2], [0], [0]>} : vector<1x1x64xf32>, vector<1x64x64xf32>, vector<1x1x64xf32> -> vector<1x1x64xf32>
    %672 = arith.addf %650, %671 : vector<1x1x64xf32>
    %673 = vector.extract_strided_slice %663 {offsets = [1, 0, 0], sizes = [2, 1, 64], strides = [1, 1, 1]} : vector<4x1x64xf32> to vector<2x1x64xf32>
    %674 = vector.shape_cast %673 : vector<2x1x64xf32> to vector<1x2x1x64xf32>
    %675 = vector.extract_strided_slice %674 {offsets = [0, 0, 0, 0], sizes = [1, 1, 1, 64], strides = [1, 1, 1, 1]} : vector<1x2x1x64xf32> to vector<1x1x1x64xf32>
    %676 = vector.shape_cast %675 : vector<1x1x1x64xf32> to vector<1x1x64xf32>
    %677 = vector.extract_strided_slice %609 {offsets = [1, 1, 0, 0], sizes = [1, 1, 64, 64], strides = [1, 1, 1, 1]} : vector<3x3x64x64xf32> to vector<1x1x64x64xf32>
    %678 = vector.shape_cast %677 : vector<1x1x64x64xf32> to vector<64x64xf32>
    %679 = vector.shape_cast %678 : vector<64x64xf32> to vector<1x64x64xf32>
    %cst_127 = arith.constant dense<0.000000e+00> : vector<1x1x64xf32>
    %680 = tpu.matmul %676, %679, %cst_127 {dimension_numbers = #tpu.dot_dimension_numbers<[2], [1], [1], [2], [0, 0, 0, 1, 1, 2], [0], [0]>} : vector<1x1x64xf32>, vector<1x64x64xf32>, vector<1x1x64xf32> -> vector<1x1x64xf32>
    %681 = arith.addf %672, %680 : vector<1x1x64xf32>
    %682 = vector.extract_strided_slice %663 {offsets = [2, 0, 0], sizes = [2, 1, 64], strides = [1, 1, 1]} : vector<4x1x64xf32> to vector<2x1x64xf32>
    %683 = vector.shape_cast %682 : vector<2x1x64xf32> to vector<1x2x1x64xf32>
    %684 = vector.extract_strided_slice %683 {offsets = [0, 0, 0, 0], sizes = [1, 1, 1, 64], strides = [1, 1, 1, 1]} : vector<1x2x1x64xf32> to vector<1x1x1x64xf32>
    %685 = vector.shape_cast %684 : vector<1x1x1x64xf32> to vector<1x1x64xf32>
    %686 = vector.extract_strided_slice %609 {offsets = [2, 1, 0, 0], sizes = [1, 1, 64, 64], strides = [1, 1, 1, 1]} : vector<3x3x64x64xf32> to vector<1x1x64x64xf32>
    %687 = vector.shape_cast %686 : vector<1x1x64x64xf32> to vector<64x64xf32>
    %688 = vector.shape_cast %687 : vector<64x64xf32> to vector<1x64x64xf32>
    %cst_128 = arith.constant dense<0.000000e+00> : vector<1x1x64xf32>
    %689 = tpu.matmul %685, %688, %cst_128 {dimension_numbers = #tpu.dot_dimension_numbers<[2], [1], [1], [2], [0, 0, 0, 1, 1, 2], [0], [0]>} : vector<1x1x64xf32>, vector<1x64x64xf32>, vector<1x1x64xf32> -> vector<1x1x64xf32>
    %690 = arith.addf %681, %689 : vector<1x1x64xf32>
    %691 = tpu.iota {dimensions = array<i32: 0>} : vector<1x2xi32>
    %692 = tpu.iota {dimensions = array<i32: 1>} : vector<1x2xi32>
    %c2_i32_129 = arith.constant 2 : i32
    %693 = vector.broadcast %c2_i32_129 : i32 to vector<1x2xi32>
    %694 = arith.muli %693, %691 : vector<1x2xi32>
    %c1_i32_130 = arith.constant 1 : i32
    %695 = vector.broadcast %c1_i32_130 : i32 to vector<1x2xi32>
    %696 = arith.addi %694, %695 : vector<1x2xi32>
    %697 = arith.cmpi eq, %692, %696 : vector<1x2xi32>
    %698 = arith.extui %697 : vector<1x2xi1> to vector<1x2xi32>
    %699 = arith.sitofp %698 : vector<1x2xi32> to vector<1x2xf32>
    %700 = vector.shape_cast %699 : vector<1x2xf32> to vector<1x1x2xf32>
    %701 = vector.shape_cast %700 : vector<1x1x2xf32> to vector<1x1x2xf32>
    %702 = vector.broadcast %701 : vector<1x1x2xf32> to vector<4x1x2xf32>
    %cst_131 = arith.constant dense<0.000000e+00> : vector<4x1x64xf32>
    %703 = tpu.matmul %702, %608, %cst_131 {dimension_numbers = #tpu.dot_dimension_numbers<[2], [1], [1], [2], [0, 0, 0, 1, 1, 2], [0], [0]>} : vector<4x1x2xf32>, vector<4x2x64xf32>, vector<4x1x64xf32> -> vector<4x1x64xf32>
    %704 = vector.extract_strided_slice %703 {offsets = [0, 0, 0], sizes = [2, 1, 64], strides = [1, 1, 1]} : vector<4x1x64xf32> to vector<2x1x64xf32>
    %705 = vector.shape_cast %704 : vector<2x1x64xf32> to vector<1x2x1x64xf32>
    %706 = vector.extract_strided_slice %705 {offsets = [0, 0, 0, 0], sizes = [1, 1, 1, 64], strides = [1, 1, 1, 1]} : vector<1x2x1x64xf32> to vector<1x1x1x64xf32>
    %707 = vector.shape_cast %706 : vector<1x1x1x64xf32> to vector<1x1x64xf32>
    %708 = vector.extract_strided_slice %609 {offsets = [0, 2, 0, 0], sizes = [1, 1, 64, 64], strides = [1, 1, 1, 1]} : vector<3x3x64x64xf32> to vector<1x1x64x64xf32>
    %709 = vector.shape_cast %708 : vector<1x1x64x64xf32> to vector<64x64xf32>
    %710 = vector.shape_cast %709 : vector<64x64xf32> to vector<1x64x64xf32>
    %cst_132 = arith.constant dense<0.000000e+00> : vector<1x1x64xf32>
    %711 = tpu.matmul %707, %710, %cst_132 {dimension_numbers = #tpu.dot_dimension_numbers<[2], [1], [1], [2], [0, 0, 0, 1, 1, 2], [0], [0]>} : vector<1x1x64xf32>, vector<1x64x64xf32>, vector<1x1x64xf32> -> vector<1x1x64xf32>
    %712 = arith.addf %690, %711 : vector<1x1x64xf32>
    %713 = vector.extract_strided_slice %703 {offsets = [1, 0, 0], sizes = [2, 1, 64], strides = [1, 1, 1]} : vector<4x1x64xf32> to vector<2x1x64xf32>
    %714 = vector.shape_cast %713 : vector<2x1x64xf32> to vector<1x2x1x64xf32>
    %715 = vector.extract_strided_slice %714 {offsets = [0, 0, 0, 0], sizes = [1, 1, 1, 64], strides = [1, 1, 1, 1]} : vector<1x2x1x64xf32> to vector<1x1x1x64xf32>
    %716 = vector.shape_cast %715 : vector<1x1x1x64xf32> to vector<1x1x64xf32>
    %717 = vector.extract_strided_slice %609 {offsets = [1, 2, 0, 0], sizes = [1, 1, 64, 64], strides = [1, 1, 1, 1]} : vector<3x3x64x64xf32> to vector<1x1x64x64xf32>
    %718 = vector.shape_cast %717 : vector<1x1x64x64xf32> to vector<64x64xf32>
    %719 = vector.shape_cast %718 : vector<64x64xf32> to vector<1x64x64xf32>
    %cst_133 = arith.constant dense<0.000000e+00> : vector<1x1x64xf32>
    %720 = tpu.matmul %716, %719, %cst_133 {dimension_numbers = #tpu.dot_dimension_numbers<[2], [1], [1], [2], [0, 0, 0, 1, 1, 2], [0], [0]>} : vector<1x1x64xf32>, vector<1x64x64xf32>, vector<1x1x64xf32> -> vector<1x1x64xf32>
    %721 = arith.addf %712, %720 : vector<1x1x64xf32>
    %722 = vector.extract_strided_slice %703 {offsets = [2, 0, 0], sizes = [2, 1, 64], strides = [1, 1, 1]} : vector<4x1x64xf32> to vector<2x1x64xf32>
    %723 = vector.shape_cast %722 : vector<2x1x64xf32> to vector<1x2x1x64xf32>
    %724 = vector.extract_strided_slice %723 {offsets = [0, 0, 0, 0], sizes = [1, 1, 1, 64], strides = [1, 1, 1, 1]} : vector<1x2x1x64xf32> to vector<1x1x1x64xf32>
    %725 = vector.shape_cast %724 : vector<1x1x1x64xf32> to vector<1x1x64xf32>
    %726 = vector.extract_strided_slice %609 {offsets = [2, 2, 0, 0], sizes = [1, 1, 64, 64], strides = [1, 1, 1, 1]} : vector<3x3x64x64xf32> to vector<1x1x64x64xf32>
    %727 = vector.shape_cast %726 : vector<1x1x64x64xf32> to vector<64x64xf32>
    %728 = vector.shape_cast %727 : vector<64x64xf32> to vector<1x64x64xf32>
    %cst_134 = arith.constant dense<0.000000e+00> : vector<1x1x64xf32>
    %729 = tpu.matmul %725, %728, %cst_134 {dimension_numbers = #tpu.dot_dimension_numbers<[2], [1], [1], [2], [0, 0, 0, 1, 1, 2], [0], [0]>} : vector<1x1x64xf32>, vector<1x64x64xf32>, vector<1x1x64xf32> -> vector<1x1x64xf32>
    %730 = arith.addf %721, %729 : vector<1x1x64xf32>
    %c0_135 = arith.constant 0 : index
    %c0_136 = arith.constant 0 : index
    %731 = vector.load %arg11[%c0_135, %c0_136] : memref<1x64xf32, #tpu.memory_space<vmem>>, vector<1x64xf32>
    %732 = vector.shape_cast %731 : vector<1x64xf32> to vector<1x1x64xf32>
    %733 = arith.addf %730, %732 : vector<1x1x64xf32>
    %cst_137 = arith.constant 0.000000e+00 : f32
    %734 = vector.broadcast %cst_137 : f32 to vector<1x1x64xf32>
    %735 = arith.maximumf %733, %734 : vector<1x1x64xf32>
    %736 = vector.shape_cast %735 : vector<1x1x64xf32> to vector<1x1x1x64xf32>
    %c0_138 = arith.constant 0 : index
    %c0_139 = arith.constant 0 : index
    %c0_140 = arith.constant 0 : index
    %c0_141 = arith.constant 0 : index
    %737 = vector.load %arg12[%c0_138, %c0_139, %c0_140, %c0_141] : memref<1x1x1x64xf32, #tpu.memory_space<vmem>>, vector<1x1x1x64xf32>
    tpu.vector_store %arg12[%c0_138, %c0_139, %c0_140, %c0_141], %736 {strides = array<i32>} : memref<1x1x1x64xf32, #tpu.memory_space<vmem>>, vector<1x1x1x64xf32>,
    return
  }
  func.func @transform_0(%arg0: i32) -> (i32, i32, i32, i32) {
    %c0_i32 = arith.constant 0 : i32
    %c0_i32_0 = arith.constant 0 : i32
    %c0_i32_1 = arith.constant 0 : i32
    %c0_i32_2 = arith.constant 0 : i32
    return %arg0, %c0_i32, %c0_i32_0, %c0_i32_1 : i32, i32, i32, i32
  }
  func.func @transform_1(%arg0: i32) -> (i32, i32, i32, i32) {
    %c0_i32 = arith.constant 0 : i32
    %c0_i32_0 = arith.constant 0 : i32
    %c0_i32_1 = arith.constant 0 : i32
    %c0_i32_2 = arith.constant 0 : i32
    %c0_i32_3 = arith.constant 0 : i32
    return %c0_i32, %c0_i32_0, %c0_i32_1, %c0_i32_2 : i32, i32, i32, i32
  }
  func.func @transform_2(%arg0: i32) -> (i32, i32, i32, i32) {
    %c0_i32 = arith.constant 0 : i32
    %c0_i32_0 = arith.constant 0 : i32
    %c0_i32_1 = arith.constant 0 : i32
    %c0_i32_2 = arith.constant 0 : i32
    %c0_i32_3 = arith.constant 0 : i32
    return %c0_i32, %c0_i32_0, %c0_i32_1, %c0_i32_2 : i32, i32, i32, i32
  }
  func.func @transform_3(%arg0: i32) -> (i32, i32, i32, i32) {
    %c0_i32 = arith.constant 0 : i32
    %c0_i32_0 = arith.constant 0 : i32
    %c0_i32_1 = arith.constant 0 : i32
    %c0_i32_2 = arith.constant 0 : i32
    %c0_i32_3 = arith.constant 0 : i32
    return %c0_i32, %c0_i32_0, %c0_i32_1, %c0_i32_2 : i32, i32, i32, i32
  }
  func.func @transform_4(%arg0: i32) -> (i32, i32, i32, i32) {
    %c0_i32 = arith.constant 0 : i32
    %c0_i32_0 = arith.constant 0 : i32
    %c0_i32_1 = arith.constant 0 : i32
    %c0_i32_2 = arith.constant 0 : i32
    %c0_i32_3 = arith.constant 0 : i32
    return %c0_i32, %c0_i32_0, %c0_i32_1, %c0_i32_2 : i32, i32, i32, i32
  }
  func.func @transform_5(%arg0: i32) -> (i32, i32, i32, i32) {
    %c0_i32 = arith.constant 0 : i32
    %c0_i32_0 = arith.constant 0 : i32
    %c0_i32_1 = arith.constant 0 : i32
    %c0_i32_2 = arith.constant 0 : i32
    %c0_i32_3 = arith.constant 0 : i32
    return %c0_i32, %c0_i32_0, %c0_i32_1, %c0_i32_2 : i32, i32, i32, i32
  }
  func.func @transform_6(%arg0: i32) -> (i32, i32) {
    %c0_i32 = arith.constant 0 : i32
    %c0_i32_0 = arith.constant 0 : i32
    %c0_i32_1 = arith.constant 0 : i32
    return %c0_i32, %c0_i32_0 : i32, i32
  }
  func.func @transform_7(%arg0: i32) -> (i32, i32) {
    %c0_i32 = arith.constant 0 : i32
    %c0_i32_0 = arith.constant 0 : i32
    %c0_i32_1 = arith.constant 0 : i32
    return %c0_i32, %c0_i32_0 : i32, i32
  }
  func.func @transform_8(%arg0: i32) -> (i32, i32) {
    %c0_i32 = arith.constant 0 : i32
    %c0_i32_0 = arith.constant 0 : i32
    %c0_i32_1 = arith.constant 0 : i32
    return %c0_i32, %c0_i32_0 : i32, i32
  }
  func.func @transform_9(%arg0: i32) -> (i32, i32) {
    %c0_i32 = arith.constant 0 : i32
    %c0_i32_0 = arith.constant 0 : i32
    %c0_i32_1 = arith.constant 0 : i32
    return %c0_i32, %c0_i32_0 : i32, i32
  }
  func.func @transform_10(%arg0: i32) -> (i32, i32) {
    %c0_i32 = arith.constant 0 : i32
    %c0_i32_0 = arith.constant 0 : i32
    %c0_i32_1 = arith.constant 0 : i32
    return %c0_i32, %c0_i32_0 : i32, i32
  }
  func.func @transform_11(%arg0: i32) -> (i32, i32, i32, i32) {
    %c0_i32 = arith.constant 0 : i32
    %c0_i32_0 = arith.constant 0 : i32
    %c0_i32_1 = arith.constant 0 : i32
    %c0_i32_2 = arith.constant 0 : i32
    return %arg0, %c0_i32, %c0_i32_0, %c0_i32_1 : i32, i32, i32, i32
  }
}

</mosaic_0001>

<bundles_post_ra>
// kernel: base_conv_forward.1
= control target key start
LH: loop header
LB: loop body
LE: loop exit
PB: predicated region body
PF: predicated region fallthrough
CT: control target
= control target key end

     0   :  { %s19727_s0 = inlined_call_operand.vmem [shape: f32[2,32,32,4], index: 0, kind: input, shape index: {}]   ;;  %s19728_s1 = inlined_call_operand.hbm [shape: f32[3,3,4,64], index: 1, kind: input, shape index: {}]   ;;  %s19729_s2 = inlined_call_operand.vmem [shape: f32[3,3,64,64], index: 2, kind: input, shape index: {}]   ;;  %s19730_s3 = inlined_call_operand.vmem [shape: f32[3,3,64,64], index: 3, kind: input, shape index: {}]   ;;  %s19731_s4 = inlined_call_operand.vmem [shape: f32[3,3,64,64], index: 4, kind: input, shape index: {}]   ;;  %s19732_s5 = inlined_call_operand.vmem [shape: f32[3,3,64,64], index: 5, kind: input, shape index: {}]   ;;  %s19733_s6 = inlined_call_operand.hbm [shape: f32[1,64], index: 6, kind: input, shape index: {}]   ;;  %s19734_s7 = inlined_call_operand.hbm [shape: f32[1,64], index: 7, kind: input, shape index: {}]   ;;  %s19735_s8 = inlined_call_operand.hbm [shape: f32[1,64], index: 8, kind: input, shape index: {}]   ;;  %s19736_s9 = inlined_call_operand.hbm [shape: f32[1,64], index: 9, kind: input, shape index: {}]   ;;  %s19737_s10 = inlined_call_operand.hbm [shape: f32[1,64], index: 10, kind: input, shape index: {}]   ;;  %s19738_s11 = inlined_call_operand.hbm [shape: f32[2,1,1,64], index: 11, kind: output, shape index: {}]  }
   0x1   :  { %19787 = sst [smem:[#allocation166_spill]] %s19728_s1 }
   0x2   :  { %19788 = sst [smem:[#allocation167_spill]] %s19733_s6 }
   0x3   :  { %19789 = sst [smem:[#allocation168_spill]] %s19735_s8 }
   0x4   :  { %16 = vsyncpa [#allocation3], 0 }
   0x5   :  { %17 = vsyncpa [#allocation6], 0 }
   0x6   :  { %18 = vsyncpa [#allocation9], 0 }
   0x7   :  { %19 = vsyncpa [#allocation12], 0 }
   0x8   :  { %20 = vsyncpa [#allocation4], 0 }
   0x9   :  { %22 = vsyncpa [#allocation4 + $0x1], 0  ;;  %s14377_s17 = smov 0   ;;  %s14379_s18 = smov 0  }
   0xa   :  { %s14381_s19 = smov 0   ;;  %s14383_s20 = smov 0  }
   0xb LB: > { %19790 = sst [smem:[#allocation19_spill]] %s14302_s19  ;;  %s14398_s21 = sadd.s32 4294967295, %s14306_s20   ;;  %s14306_s20 = sphi %s14383_s20, %s20233_s20   ;;  %s14302_s19 = sphi %s14381_s19, %s20235_s19   ;;  %s14298_s18 = sphi %s14379_s18, %s20237_s18   ;;  %s14294_s17 = sphi %s14377_s17, %s20236_s17  }
   0xc   : > { %s12827_s22 = sadd.s32 4294967294, %s14306_s20   ;;  %s14402_s23 = sadd.s32 1, %s14306_s20  }
   0xd   : > { %19791 = sst [smem:[#allocation20_spill]] %s14402_s23  ;;  %s271_s24 = sadd.s32 1, %s14302_s19 }
   0xe   : > { %s268_s25 = ssub.s32 %s14306_s20, %s14402_s23  ;;  %p281_p0 = scmp.ne.s32.totalorder %s14302_s19, %s14298_s18 }
   0xf   : > { %p269_p1 = scmp.eq.s32.totalorder %s268_s25, 0  ;;  %p282_p2 = scmp.eq.s32.totalorder %s14398_s21, 1 }
  0x10   : > { %p287_p3 = scmp.ne.s32.totalorder %s14298_s18, %s14294_s17  ;;  %p288_p4 = scmp.eq.s32.totalorder %s12827_s22, 1 }
  0x11   : > { %s14413_s26 = scalar_select %p269_p1, %s14302_s19, %s271_s24  }
  0x12   : > { %p14415_p5 = por %p282_p2, %p281_p0  ;;  %p14419_p6 = por %p288_p4, %p287_p3 }
  0x13   : > { %19792 = sst [smem:[#allocation21_spill]] %s14413_s26  ;;  %p12828_p7 = scmp.ge.s32.totalorder %s14306_s20, 1 }
  0x14   : > { %s19794_s28 = scalar_select %p14419_p6, 1, 0 }
  0x15   : > { %p295_p8 = scmp.lt.s32.totalorder %s14306_s20, 3  ;;  %p13792_p9 = scmp.eq.s32.totalorder %s14398_s21, 0 }
  0x16   : > { %19795 = sst [smem:[#allocation22_spill]] %s19794_s28  ;;  %s14308_s14 = smov [#allocation5]  }
  0x17   : > { %p14426_p10 = pnand %p12828_p7, %p295_p8  ;;  %s19797_s6 = sld [smem:[#allocation167_spill]] }
  0x18   : > { %s335_s15 = sshll.u32 %s14308_s14, 4  ;;  %s19798_s8 = sld [smem:[#allocation168_spill]]  ;;  %s336_s15 = int_to_ptr.vmem [resolvable:$true] %s335_s15 }
  0x19   : > { %p13769_p11 = pneg %p14426_p10  ;;  %s19800_s1 = sld [smem:[#allocation166_spill]] }
  0x1a   : > { %s14309_s26 = smov [#allocation8]   ;;  %s14310_s16 = smov [#allocation2]  }
  0x1b   : > { %p14440_p12 = pnand %p13792_p9, %p13769_p11  ;;  %s359_s14 = sshll.u32 %s14309_s26, 4  ;;  %s360_s14 = int_to_ptr.vmem [resolvable:$true] %s359_s14 }
  0x1c   : > { %s308_s22 = sshll.u32 %s14310_s16, 4  ;;  %s345_s23 = sshll.u32 %s19734_s7, 4  ;;  %s309_s22 = int_to_ptr.vmem [resolvable:$true] %s308_s22  ;;  %s346_s23 = int_to_ptr.hbm [resolvable:$true] %s345_s23 }
  0x1d   : > { %s333_s13 = sshll.u32 %s19797_s6, 4  ;;  %s14311_s28 = smov 64   ;;  %s334_s13 = int_to_ptr.hbm [resolvable:$true] %s333_s13 }
  0x1e   : > { %s357_s24 = sshll.u32 %s19798_s8, 4  ;;  %s14312_s30 = smov 4   ;;  %s358_s24 = int_to_ptr.hbm [resolvable:$true] %s357_s24 }
  0x1f   : > { %s306_s6 = sshll.u32 %s19800_s1, 4  ;;  %s14313_s26 = smov [#allocation7]   ;;  %s307_s6 = int_to_ptr.hbm [resolvable:$true] %s306_s6 }
  0x20   : > { %13775 = dma.hbm_to_vmem [thread:$0]  (!%p14440_p12), %s334_s13, 16, %s336_s15, [#allocation6]  }
  0x21   : > { %13781 = dma.hbm_to_vmem [thread:$0]  (!%p14440_p12), %s358_s24, 16, %s360_s14, [#allocation9]  }
  0x22   : > { %13772 = dma.hbm_to_vmem [thread:$0]  (!%p14440_p12), %s307_s6, 576, %s309_s22, [#allocation3], %s14311_s28, %s14311_s28, %s14312_s30  }
  0x23   : > { %s347_s13 = sshll.u32 %s14313_s26, 4  ;;  %s369_s24 = sshll.u32 %s19736_s9, 4  ;;  %s348_s13 = int_to_ptr.vmem [resolvable:$true] %s347_s13  ;;  %s370_s24 = int_to_ptr.hbm [resolvable:$true] %s369_s24 }
  0x24   : > { %13778 = dma.hbm_to_vmem [thread:$0]  (!%p14440_p12), %s346_s23, 16, %s348_s13, [#allocation6]  }
  0x25   : > { %s381_s19 = sshll.u32 %s19737_s10, 4  ;;  %s14314_s16 = smov [#allocation10]   ;;  %s382_s19 = int_to_ptr.hbm [resolvable:$true] %s381_s19 }
  0x26   : > { %s371_s1 = sshll.u32 %s14314_s16, 4  ;;  %s14315_s6 = smov [#allocation11]   ;;  %s372_s1 = int_to_ptr.vmem [resolvable:$true] %s371_s1 }
  0x27   : > { %13784 = dma.hbm_to_vmem [thread:$0]  (!%p14440_p12), %s370_s24, 16, %s372_s1, [#allocation9]  }
  0x28   : > { %s383_s28 = sshll.u32 %s14315_s6, 4  ;;  %404 = sbr.rel (%p14426_p10) target bundleno = 3587 (0xe03), region = 64  ;;  %s384_s28 = int_to_ptr.vmem [resolvable:$true] %s383_s28 }
  0x29   : > { %13787 = dma.hbm_to_vmem [thread:$0]  (!%p14440_p12), %s382_s19, 16, %s384_s28, [#allocation12]  }
  0x2d   : > { %14273 = dma.done.wait (%p13792_p9), [#allocation3], 576  }
  0x2e   : > { %14275 = vsyncadd (%p13792_p9), [#allocation3], 4294966720 }
  0x2f   : > { %14277 = dma.done.wait (%p13792_p9), [#allocation6], 32  }
  0x30   : > { %14279 = vsyncadd (%p13792_p9), [#allocation6], 4294967264 }
  0x31   : > { %14281 = dma.done.wait (%p13792_p9), [#allocation9], 32  }
  0x32   : > { %14283 = vsyncadd (%p13792_p9), [#allocation9], 4294967264 }
  0x33   : > { %14285 = dma.done.wait (%p13792_p9), [#allocation12], 16  }
  0x34   : > { %14287 = vsyncadd (%p13792_p9), [#allocation12], 4294967280  ;;  %p469_p13 = scmp.lt.s32.totalorder %s14398_s21, 1  ;;  %v611_v0 = vlaneseq  ;;  %v19743_v1 = vmov 0.0   ;;  %vm626_vm1 = vcmask 261120   ;;  %vm1399_vm3 = vcmask 1043456   ;;  %s12708_s26 = scalar_lea.hbm %s19738_s11, %s14398_s21 }
  0x35   : > { %648 = vmatpush.msra.mxu0 %v19743_v1  ;;  %vm1392_vm4 = vcmask 31744   ;;  %vm7235_vm9 = vcmask 130048   ;;  %vm7578_vm10 = vcmask 523264   ;;  %vm10004_vm11 = vcmask 64512   ;;  %s467_s25 = sand.u32 1, %s14298_s18   ;;  %s12712_s12 = sshll.u32 %s12708_s26, 4  ;;  %s12713_s12 = int_to_ptr.hbm [resolvable:$true] %s12712_s12 }
  0x36   : > { %s470_s1 = scalar_select %p469_p13, %s14398_s21, 1  ;;  %v612_v2 = vshrl.u32 %v611_v0, 7  ;;  %v14489_v3 = vand.u32 127, %v611_v0  ;;  %vm12284_vm12 = vcmask 15360   ;;  %vm12287_vm13 = vcmask 1041408  }
  0x37   : > { %s468_s13 = scalar_lea.vmem [#allocation13], %s467_s25  ;;  %vm12697_vm14 = vcmask 516096   ;;  %s12700_s24 = scalar_lea.sflag [#allocation4], %s467_s25 }
  0x38   : > { %s13738_s23 = sshll.u32 %s470_s1, 10  ;;  %v14491_v4 = vmul.u32 2, %v612_v2  ;;  %v613_v5 = vadd.s32 8, %v612_v2  ;;  %s12710_s15 = sshll.u32 %s468_s13, 4  ;;  %s12711_s15 = int_to_ptr.vmem [resolvable:$true] %s12710_s15 }
  0x39   : > { %s14496_s22 = scalar_lea.vmem %s19727_s0, %s13738_s23  ;;  %s14242_s14 = sshra.s32 %s12713_s12, 4  ;;  %s14243_s14 = int_to_ptr.hbm [resolvable:$true] %s14242_s14 }
  0x3a   : > { %v618_v6 = vadd.s32 4294967295, %v14491_v4  ;;  %v14499_v7 = vmul.u32 2, %v613_v5  ;;  %v477_v8 = vld [vmem:[%s14496_s22 + $0x18] sm:$0xff]  ;;  %v476_v9 = vld [vmem:[%s14496_s22 + $0x10] sm:$0xff]  ;;  %v475_v11 = vld [vmem:[%s14496_s22 + $0x8] sm:$0xff]  ;;  %vm2737_vm5 = vcmp.eq.s32.totalorder %v14489_v3, %v14491_v4  ;;  %s14244_s8 = scalar_lea.hbm %s14243_s14, 1  ;;  %p14249_p3 = scmp.lt.s32.totalorder %s14243_s14, %s19738_s11 }
  0x3b   : > { %668 = vmatpush.msra.mxu1 %v477_v8  ;;  %13739 = vmatpush.msra.mxu3 %v477_v8  ;;  %v474_v13 = vld [vmem:[%s14496_s22] sm:$0xff]  ;;  %v485_v15 = vld [vmem:[%s14496_s22 + $0x58] sm:$0xff]  ;;  %v484_v18 = vld [vmem:[%s14496_s22 + $0x50] sm:$0xff]  ;;  %p14245_p0 = scmp.ne.s32.totalorder %s14243_s14, %s14244_s8  ;;  %s14248_s16 = scalar_lea.hbm %s19738_s11, 2 }
  0x3c   : > { %vm620_vm0 = vcmp.eq.s32.totalorder %v14489_v3, %v618_v6  ;;  %v619_v10 = vadd.s32 4294967295, %v14499_v7  ;;  %v493_v16 = vld [vmem:[%s14496_s22 + $0x98] sm:$0xff]  ;;  %v492_v19 = vld [vmem:[%s14496_s22 + $0x90] sm:$0xff]  ;;  %v483_v21 = vld [vmem:[%s14496_s22 + $0x48] sm:$0xff]  ;;  %vm2738_vm6 = vcmp.eq.s32.totalorder %v14489_v3, %v14499_v7  ;;  %p14250_p4 = scmp.lt.s32.totalorder %s14248_s16, %s14244_s8 }
  0x3d   : > { %669 = vmatpush.msra.mxu1 %v476_v9  ;;  %13740 = vmatpush.msra.mxu3 %v476_v9  ;;  %v14507_v12 = vsel %vm620_vm0, 1.0, %v19743_v1  ;;  %v481_v17 = vld [vmem:[%s14496_s22 + $0x38] sm:$0xff]  ;;  %v480_v20 = vld [vmem:[%s14496_s22 + $0x30] sm:$0xff]  ;;  %v491_v22 = vld [vmem:[%s14496_s22 + $0x88] sm:$0xff]  ;;  %p14246_p1 = pnand %p14245_p0, %p14415_p5 }
  0x3e   : > { %19801 = vst [vmem:[#allocation23_spill] sm:$0xff] %v14507_v12  ;;  %vm621_vm2 = vcmp.eq.s32.totalorder %v14489_v3, %v619_v10  ;;  %12847 = vmatmul.msk.f32.vlgmr.msra.gmra.mxu0 %vm626_vm1, %v14507_v12  ;;  %691 = vmatpush.msra.mxu2 %v481_v17  ;;  %v479_v23 = vld [vmem:[%s14496_s22 + $0x28] sm:$0xff]  ;;  %v482_v24 = vld [vmem:[%s14496_s22 + $0x40] sm:$0xff]  ;;  %v501_v26 = vld [vmem:[%s14496_s22 + $0xd8] sm:$0xff]  ;;  %p14251_p7 = por %p14250_p4, %p14249_p3 }
  0x3f   : > { %670 = vmatpush.msra.mxu1 %v475_v11  ;;  %13741 = vmatpush.msra.mxu3 %v475_v11  ;;  %v14514_v14 = vsel %vm621_vm2, 1.0, %v19743_v1  ;;  %v490_v25 = vld [vmem:[%s14496_s22 + $0x80] sm:$0xff]  ;;  %v509_v27 = vld [vmem:[%s14496_s22 + $0x118] sm:$0xff]  ;;  %v500_v29 = vld [vmem:[%s14496_s22 + $0xd0] sm:$0xff]  ;;  %p14247_p2 = pneg %p14246_p1 }
  0x40   : > { %692 = vmatpush.msra.mxu2 %v480_v20  ;;  %v478_v28 = vld [vmem:[%s14496_s22 + $0x20] sm:$0xff]  ;;  %v508_v30 = vld [vmem:[%s14496_s22 + $0x110] sm:$0xff]  ;;  %v14543_v31 = vld [vmem:[%s14496_s22 + $0x78] sm:$0xff] }
  0x41   : > { %671 = vmatpush.msra.mxu1 %v474_v13  ;;  %13742 = vmatpush.msra.mxu3 %v474_v13  ;;  %v14546_v32 = vld [vmem:[%s14496_s22 + $0x70] sm:$0xff]  ;;  %v499_v33 = vld [vmem:[%s14496_s22 + $0xc8] sm:$0xff]  ;;  %v497_v35 = vld [vmem:[%s14496_s22 + $0xb8] sm:$0xff]  ;;  %p14252_p8 = pnand %p14251_p7, %p14247_p2 }
  0x42   : > { %12849 = vmatmul.msk.f32.vlgmr.msra.gmra.mxu1 %vm626_vm1, %v14507_v12  ;;  %12850 = vmatmul.msk.f32.vlgmr.msra.gmra.mxu3 %vm626_vm1, %v14514_v14  ;;  %v507_v34 = vld [vmem:[%s14496_s22 + $0x108] sm:$0xff]  ;;  %v498_v36 = vld [vmem:[%s14496_s22 + $0xc0] sm:$0xff]  ;;  %v517_v38 = vld [vmem:[%s14496_s22 + $0x158] sm:$0xff] }
  0x43   : > { %714 = vmatpush.msrb.mxu3 %v485_v15  ;;  %760 = vmatpush.msrb.mxu1 %v493_v16  ;;  %v506_v37 = vld [vmem:[%s14496_s22 + $0x100] sm:$0xff]  ;;  %v525_v39 = vld [vmem:[%s14496_s22 + $0x198] sm:$0xff]  ;;  %v496_v40 = vld [vmem:[%s14496_s22 + $0xb0] sm:$0xff] }
  0x44   : > { %693 = vmatpush.msra.mxu2 %v479_v23  ;;  %737 = vmatpush.msrb.mxu0 %v14543_v31  ;;  %v516_v41 = vld [vmem:[%s14496_s22 + $0x150] sm:$0xff]  ;;  %v14567_v43 = vld [vmem:[%s14496_s22 + $0x68] sm:$0xff]  ;;  %v14570_v44 = vld [vmem:[%s14496_s22 + $0x60] sm:$0xff] }
  0x45   : > { %715 = vmatpush.msrb.mxu3 %v484_v18  ;;  %761 = vmatpush.msrb.mxu1 %v492_v19  ;;  %v524_v42 = vld [vmem:[%s14496_s22 + $0x190] sm:$0xff]  ;;  %v515_v45 = vld [vmem:[%s14496_s22 + $0x148] sm:$0xff]  ;;  %v514_v48 = vld [vmem:[%s14496_s22 + $0x140] sm:$0xff] }
  0x46   : > { %12848 = vmatmul.msk.f32.gmra.mxu0 %vm626_vm1, %v14514_v14  ;;  %694 = vmatpush.msra.mxu2 %v478_v28  ;;  %v523_v46 = vld [vmem:[%s14496_s22 + $0x188] sm:$0xff]  ;;  %v522_v49 = vld [vmem:[%s14496_s22 + $0x180] sm:$0xff]  ;;  %v533_v50 = vld [vmem:[%s14496_s22 + $0x1d8] sm:$0xff] }
  0x47   : > { %716 = vmatpush.msrb.mxu3 %v483_v21  ;;  %762 = vmatpush.msrb.mxu1 %v491_v22  ;;  %v14576_v47 = vld [vmem:[%s14496_s22 + $0xa8] sm:$0xff]  ;;  %v541_v51 = vld [vmem:[%s14496_s22 + $0x218] sm:$0xff]  ;;  %v14589_v52 = vld [vmem:[%s14496_s22 + $0xa0] sm:$0xff] }
  0x48   : > { %12851 = vmatmul.msk.f32.vlgmr.msra.gmra.mxu2 %vm626_vm1, %v14507_v12  ;;  %738 = vmatpush.msrb.mxu0 %v14546_v32  ;;  %v532_v53 = vld [vmem:[%s14496_s22 + $0x1d0] sm:$0xff]  ;;  %v14598_v55 = vld [vmem:[%s14496_s22 + $0xf8] sm:$0xff]  ;;  %v531_v57 = vld [vmem:[%s14496_s22 + $0x1c8] sm:$0xff] }
  0x49   : > { %717 = vmatpush.msrb.mxu3 %v482_v24  ;;  %763 = vmatpush.msrb.mxu1 %v490_v25  ;;  %v540_v54 = vld [vmem:[%s14496_s22 + $0x210] sm:$0xff]  ;;  %v539_v58 = vld [vmem:[%s14496_s22 + $0x208] sm:$0xff]  ;;  %v14608_v59 = vld [vmem:[%s14496_s22 + $0x138] sm:$0xff] }
  0x4a   : > { %12853 = vmatmul.msk.f32.vlgmr.msrb.gmra.mxu3 %vm626_vm1, %v14507_v12  ;;  %12857 = vmatmul.msk.f32.vlgmr.msrb.gmra.mxu1 %vm626_vm1, %v14507_v12  ;;  %v14601_v56 = vld [vmem:[%s14496_s22 + $0xf0] sm:$0xff]  ;;  %v530_v60 = vld [vmem:[%s14496_s22 + $0x1c0] sm:$0xff]  ;;  %v14626_v63 = vld [vmem:[%s14496_s22 + $0xe8] sm:$0xff] }
  0x4b   : > { %806 = vmatpush.msra.mxu3 %v501_v26  ;;  %852 = vmatpush.msra.mxu1 %v509_v27  ;;  %v538_v61 = vld [vmem:[%s14496_s22 + $0x200] sm:$0xff]  ;;  %v14619_v62 = vld [vmem:[%s14496_s22 + $0x130] sm:$0xff]  ;;  %v14629_v0 = vld [vmem:[%s14496_s22 + $0x128] sm:$0xff] }
  0x4c   : > { %783 = vmatpush.msrb.mxu2 %v497_v35  ;;  %739 = vmatpush.msrb.mxu0 %v14567_v43  ;;  %v14634_v2 = vld [vmem:[%s14496_s22 + $0xe0] sm:$0xff]  ;;  %v549_v6 = vld [vmem:[%s14496_s22 + $0x258] sm:$0xff]  ;;  %v548_v9 = vld [vmem:[%s14496_s22 + $0x250] sm:$0xff] }
  0x4d   : > { %807 = vmatpush.msra.mxu3 %v500_v29  ;;  %853 = vmatpush.msra.mxu1 %v508_v30  ;;  %v14637_v5 = vld [vmem:[%s14496_s22 + $0x120] sm:$0xff]  ;;  %v557_v8 = vld [vmem:[%s14496_s22 + $0x298] sm:$0xff]  ;;  %v556_v10 = vld [vmem:[%s14496_s22 + $0x290] sm:$0xff] }
  0x4e   : > { %784 = vmatpush.msrb.mxu2 %v496_v40  ;;  %740 = vmatpush.msrb.mxu0 %v14570_v44  ;;  %v14655_v11 = vld [vmem:[%s14496_s22 + $0x178] sm:$0xff]  ;;  %v14661_v15 = vld [vmem:[%s14496_s22 + $0x170] sm:$0xff]  ;;  %v547_v16 = vld [vmem:[%s14496_s22 + $0x248] sm:$0xff] }
  0x4f   : > { %808 = vmatpush.msra.mxu3 %v499_v33  ;;  %854 = vmatpush.msra.mxu1 %v507_v34  ;;  %v14658_v13 = vld [vmem:[%s14496_s22 + $0x1b8] sm:$0xff]  ;;  %v555_v17 = vld [vmem:[%s14496_s22 + $0x288] sm:$0xff]  ;;  %v14668_v18 = vld [vmem:[%s14496_s22 + $0x1b0] sm:$0xff] }
  0x50   : > { %12852 = vmatmul.msk.f32.gmra.mxu2 %vm626_vm1, %v14514_v14  ;;  %12855 = vmatmul.msk.f32.vlgmr.msrb.gmra.mxu0 %vm626_vm1, %v14507_v12  ;;  %v546_v19 = vld [vmem:[%s14496_s22 + $0x240] sm:$0xff]  ;;  %v14683_v21 = vld [vmem:[%s14496_s22 + $0x168] sm:$0xff]  ;;  %v565_v25 = vld [vmem:[%s14496_s22 + $0x2d8] sm:$0xff] }
  0x51   : > { %809 = vmatpush.msra.mxu3 %v498_v36  ;;  %855 = vmatpush.msra.mxu1 %v506_v37  ;;  %v554_v20 = vld [vmem:[%s14496_s22 + $0x280] sm:$0xff]  ;;  %v14686_v22 = vld [vmem:[%s14496_s22 + $0x1a8] sm:$0xff]  ;;  %v573_v26 = vld [vmem:[%s14496_s22 + $0x318] sm:$0xff] }
  0x52   : > { %12854 = vmatmul.msk.f32.gmra.mxu3 %vm626_vm1, %v14514_v14  ;;  %12858 = vmatmul.msk.f32.gmra.mxu1 %vm626_vm1, %v14514_v14  ;;  %v14691_v23 = vld [vmem:[%s14496_s22 + $0x160] sm:$0xff]  ;;  %v564_v27 = vld [vmem:[%s14496_s22 + $0x2d0] sm:$0xff]  ;;  %v14711_v29 = vld [vmem:[%s14496_s22 + $0x1f8] sm:$0xff] }
  0x53   : > { %898 = vmatpush.msrb.mxu3 %v517_v38  ;;  %944 = vmatpush.msrb.mxu1 %v525_v39  ;;  %v14694_v24 = vld [vmem:[%s14496_s22 + $0x1a0] sm:$0xff]  ;;  %v572_v28 = vld [vmem:[%s14496_s22 + $0x310] sm:$0xff]  ;;  %v14714_v30 = vld [vmem:[%s14496_s22 + $0x238] sm:$0xff] }
  0x54   : > { %785 = vmatpush.msrb.mxu2 %v14576_v47  ;;  %829 = vmatpush.msra.mxu0 %v14598_v55  ;;  %19802 = vst [vmem:[#allocation24_spill] sm:$0xff] %v14714_v30  ;;  %v14717_v33 = vld [vmem:[%s14496_s22 + $0x1f0] sm:$0xff]  ;;  %v563_v34 = vld [vmem:[%s14496_s22 + $0x2c8] sm:$0xff]  ;;  %v562_v37 = vld [vmem:[%s14496_s22 + $0x2c0] sm:$0xff] }
  0x55   : > { %899 = vmatpush.msrb.mxu3 %v516_v41  ;;  %945 = vmatpush.msrb.mxu1 %v524_v42  ;;  %v571_v35 = vld [vmem:[%s14496_s22 + $0x308] sm:$0xff]  ;;  %v14724_v36 = vld [vmem:[%s14496_s22 + $0x230] sm:$0xff]  ;;  %v570_v38 = vld [vmem:[%s14496_s22 + $0x300] sm:$0xff] }
  0x56   : > { %786 = vmatpush.msrb.mxu2 %v14589_v52  ;;  %830 = vmatpush.msra.mxu0 %v14601_v56  ;;  %19803 = vst [vmem:[#allocation25_spill] sm:$0xff] %v14724_v36  ;;  %v14739_v39 = vld [vmem:[%s14496_s22 + $0x1e8] sm:$0xff]  ;;  %v14747_v41 = vld [vmem:[%s14496_s22 + $0x1e0] sm:$0xff] }
  0x57   : > { %900 = vmatpush.msrb.mxu3 %v515_v45  ;;  %946 = vmatpush.msrb.mxu1 %v523_v46  ;;  %v14742_v40 = vld [vmem:[%s14496_s22 + $0x228] sm:$0xff]  ;;  %v14750_v42 = vld [vmem:[%s14496_s22 + $0x220] sm:$0xff]  ;;  %v581_v45 = vld [vmem:[%s14496_s22 + $0x358] sm:$0xff] }
  0x58   : > { %12859 = vmatmul.msk.f32.vlgmr.msrb.gmra.mxu2 %vm626_vm1, %v14507_v12  ;;  %12856 = vmatmul.msk.f32.gmra.mxu0 %vm626_vm1, %v14514_v14  ;;  %19804 = vst [vmem:[#allocation26_spill] sm:$0xff] %v14742_v40  ;;  %v589_v46 = vld [vmem:[%s14496_s22 + $0x398] sm:$0xff]  ;;  %v14943_v1 = vld [vmem:[%s14496_s22 + $0x3e8] sm:$0xff] }
  0x59   : > { %901 = vmatpush.msrb.mxu3 %v514_v48  ;;  %947 = vmatpush.msrb.mxu1 %v522_v49  ;;  %19805 = vst [vmem:[#allocation27_spill] sm:$0xff] %v14750_v42  ;;  %v580_v48 = vld [vmem:[%s14496_s22 + $0x350] sm:$0xff] }
  0x5a   : > { %12861 = vmatmul.msk.f32.vlgmr.msra.gmra.mxu3 %vm626_vm1, %v14507_v12  ;;  %12865 = vmatmul.msk.f32.vlgmr.msra.gmra.mxu1 %vm626_vm1, %v14507_v12  ;;  %v588_v49 = vld [vmem:[%s14496_s22 + $0x390] sm:$0xff]  ;;  %19832 = vst [vmem:[#allocation54_spill] sm:$0xff] %v14943_v1 }
  0x5b   : > { %990 = vmatpush.msra.mxu3 %v533_v50  ;;  %1036 = vmatpush.msra.mxu1 %v541_v51  ;;  %v14767_v50 = vld [vmem:[%s14496_s22 + $0x278] sm:$0xff] }
  0x5c   : > { %875 = vmatpush.msra.mxu2 %v14608_v59  ;;  %831 = vmatpush.msra.mxu0 %v14626_v63  ;;  %19806 = vst [vmem:[#allocation28_spill] sm:$0xff] %v14767_v50  ;;  %v14770_v51 = vld [vmem:[%s14496_s22 + $0x2b8] sm:$0xff] }
  0x5d   : > { %991 = vmatpush.msra.mxu3 %v532_v53  ;;  %1037 = vmatpush.msra.mxu1 %v540_v54  ;;  %19807 = vst [vmem:[#allocation29_spill] sm:$0xff] %v14770_v51  ;;  %v14773_v53 = vld [vmem:[%s14496_s22 + $0x270] sm:$0xff]  ;;  %v579_v54 = vld [vmem:[%s14496_s22 + $0x348] sm:$0xff] }
  0x5e   : > { %876 = vmatpush.msra.mxu2 %v14619_v62  ;;  %832 = vmatpush.msra.mxu0 %v14634_v2  ;;  %19808 = vst [vmem:[#allocation30_spill] sm:$0xff] %v14773_v53 }
  0x5f   : > { %992 = vmatpush.msra.mxu3 %v531_v57  ;;  %1038 = vmatpush.msra.mxu1 %v539_v58  ;;  %v587_v57 = vld [vmem:[%s14496_s22 + $0x388] sm:$0xff]  ;;  %v14780_v58 = vld [vmem:[%s14496_s22 + $0x2b0] sm:$0xff] }
  0x60   : > { %877 = vmatpush.msra.mxu2 %v14629_v0  ;;  %12863 = vmatmul.msk.f32.vlgmr.msra.gmra.mxu0 %vm626_vm1, %v14507_v12  ;;  %19809 = vst [vmem:[#allocation31_spill] sm:$0xff] %v14780_v58 }
  0x61   : > { %993 = vmatpush.msra.mxu3 %v530_v60  ;;  %1039 = vmatpush.msra.mxu1 %v538_v61  ;;  %v578_v60 = vld [vmem:[%s14496_s22 + $0x340] sm:$0xff] }
  0x62   : > { %12862 = vmatmul.msk.f32.gmra.mxu3 %vm626_vm1, %v14514_v14  ;;  %12866 = vmatmul.msk.f32.gmra.mxu1 %vm626_vm1, %v14514_v14  ;;  %v586_v61 = vld [vmem:[%s14496_s22 + $0x380] sm:$0xff] }
  0x63   : > { %12860 = vmatmul.msk.f32.gmra.mxu2 %vm626_vm1, %v14514_v14  ;;  %921 = vmatpush.msrb.mxu0 %v14655_v11 }
  0x64   : > { %878 = vmatpush.msra.mxu2 %v14637_v5 }
  0x65   : > { %922 = vmatpush.msrb.mxu0 %v14661_v15 }
  0x66   : > { %967 = vmatpush.msrb.mxu2 %v14658_v13 }
  0x67   : > { %923 = vmatpush.msrb.mxu0 %v14683_v21 }
  0x68   : > { %12864 = vmatmul.msk.f32.gmra.mxu0 %vm626_vm1, %v14514_v14  ;;  %968 = vmatpush.msrb.mxu2 %v14668_v18 }
  0x69   : > { %924 = vmatpush.msrb.mxu0 %v14691_v23 }
  0x6a   : > { %12869 = vmatmul.msk.f32.vlgmr.msrb.gmra.mxu3 %vm626_vm1, %v14507_v12  ;;  %12873 = vmatmul.msk.f32.vlgmr.msrb.gmra.mxu1 %vm626_vm1, %v14507_v12 }
  0x6b   : > { %1082 = vmatpush.msrb.mxu3 %v549_v6  ;;  %1128 = vmatpush.msrb.mxu1 %v557_v8  ;;  %v14795_v6 = vld [vmem:[%s14496_s22 + $0x268] sm:$0xff] }
  0x6c   : > { %12867 = vmatmul.msk.f32.vlgmr.msra.gmra.mxu2 %vm626_vm1, %v14507_v12  ;;  %1013 = vmatpush.msra.mxu0 %v14711_v29  ;;  %19810 = vst [vmem:[#allocation32_spill] sm:$0xff] %v14795_v6  ;;  %v14798_v8 = vld [vmem:[%s14496_s22 + $0x2a8] sm:$0xff] }
  0x6d   : > { %1083 = vmatpush.msrb.mxu3 %v548_v9  ;;  %1129 = vmatpush.msrb.mxu1 %v556_v10  ;;  %19811 = vst [vmem:[#allocation33_spill] sm:$0xff] %v14798_v8  ;;  %v14803_v9 = vld [vmem:[%s14496_s22 + $0x260] sm:$0xff] }
  0x6e   : > { %969 = vmatpush.msrb.mxu2 %v14686_v22  ;;  %1014 = vmatpush.msra.mxu0 %v14717_v33  ;;  %19812 = vst [vmem:[#allocation34_spill] sm:$0xff] %v14803_v9  ;;  %v14806_v10 = vld [vmem:[%s14496_s22 + $0x2a0] sm:$0xff] }
  0x6f   : > { %1084 = vmatpush.msrb.mxu3 %v547_v16  ;;  %1130 = vmatpush.msrb.mxu1 %v555_v17  ;;  %19813 = vst [vmem:[#allocation35_spill] sm:$0xff] %v14806_v10  ;;  %v597_v16 = vld [vmem:[%s14496_s22 + $0x3d8] sm:$0xff]  ;;  %v596_v17 = vld [vmem:[%s14496_s22 + $0x3d0] sm:$0xff] }
  0x70   : > { %970 = vmatpush.msrb.mxu2 %v14694_v24  ;;  %12871 = vmatmul.msk.f32.vlgmr.msrb.gmra.mxu0 %vm626_vm1, %v14507_v12 }
  0x71   : > { %1085 = vmatpush.msrb.mxu3 %v546_v19  ;;  %1131 = vmatpush.msrb.mxu1 %v554_v20  ;;  %v595_v19 = vld [vmem:[%s14496_s22 + $0x3c8] sm:$0xff]  ;;  %v594_v20 = vld [vmem:[%s14496_s22 + $0x3c0] sm:$0xff] }
  0x72   : > { %12870 = vmatmul.msk.f32.gmra.mxu3 %vm626_vm1, %v14514_v14  ;;  %12874 = vmatmul.msk.f32.gmra.mxu1 %vm626_vm1, %v14514_v14 }
  0x73   : > { %1059 = vmatpush.msra.mxu2 %v14714_v30  ;;  %1015 = vmatpush.msra.mxu0 %v14739_v39 }
  0x74   : > { %12868 = vmatmul.msk.f32.gmra.mxu2 %vm626_vm1, %v14514_v14 }
  0x75   : > { %1060 = vmatpush.msra.mxu2 %v14724_v36  ;;  %1016 = vmatpush.msra.mxu0 %v14747_v41 }
  0x77   : > { %1061 = vmatpush.msra.mxu2 %v14742_v40  ;;  %1105 = vmatpush.msrb.mxu0 %v14767_v50 }
  0x78   : > { %12872 = vmatmul.msk.f32.gmra.mxu0 %vm626_vm1, %v14514_v14 }
  0x79   : > { %1062 = vmatpush.msra.mxu2 %v14750_v42  ;;  %1106 = vmatpush.msrb.mxu0 %v14773_v53 }
  0x7a   : > { %12877 = vmatmul.msk.f32.vlgmr.msra.gmra.mxu3 %vm626_vm1, %v14507_v12  ;;  %12881 = vmatmul.msk.f32.vlgmr.msra.gmra.mxu1 %vm626_vm1, %v14507_v12 }
  0x7b   : > { %1174 = vmatpush.msra.mxu3 %v565_v25  ;;  %1220 = vmatpush.msra.mxu1 %v573_v26  ;;  %v14825_v25 = vld [vmem:[%s14496_s22 + $0x2f8] sm:$0xff] }
  0x7c   : > { %12875 = vmatmul.msk.f32.vlgmr.msrb.gmra.mxu2 %vm626_vm1, %v14507_v12  ;;  %1107 = vmatpush.msrb.mxu0 %v14795_v6  ;;  %19814 = vst [vmem:[#allocation36_spill] sm:$0xff] %v14825_v25  ;;  %v14828_v26 = vld [vmem:[%s14496_s22 + $0x338] sm:$0xff] }
  0x7d   : > { %1175 = vmatpush.msra.mxu3 %v564_v27  ;;  %1221 = vmatpush.msra.mxu1 %v572_v28  ;;  %19815 = vst [vmem:[#allocation37_spill] sm:$0xff] %v14828_v26  ;;  %v14830_v27 = vld [vmem:[#allocation2 + $0xc] sm:$0xf]  ;;  %v14837_v28 = vld [vmem:[%s14496_s22 + $0x2f0] sm:$0xff] }
  0x7e   : > { %1151 = vmatpush.msrb.mxu2 %v14770_v51  ;;  %1108 = vmatpush.msrb.mxu0 %v14803_v9  ;;  %19816 = vst [vmem:[#allocation38_spill] sm:$0xff] %v14837_v28 }
  0x7f   : > { %1176 = vmatpush.msra.mxu3 %v563_v34  ;;  %1222 = vmatpush.msra.mxu1 %v571_v35  ;;  %v14840_v34 = vld [vmem:[%s14496_s22 + $0x330] sm:$0xff]  ;;  %v14849_v35 = vld [vmem:[%s14496_s22 + $0x2e8] sm:$0xff] }
  0x80   : > { %12879 = vmatmul.msk.f32.vlgmr.msra.gmra.mxu0 %vm626_vm1, %v14507_v12  ;;  %1152 = vmatpush.msrb.mxu2 %v14780_v58  ;;  %19817 = vst [vmem:[#allocation39_spill] sm:$0xff] %v14840_v34 }
  0x81   : > { %1177 = vmatpush.msra.mxu3 %v562_v37  ;;  %1223 = vmatpush.msra.mxu1 %v570_v38  ;;  %19818 = vst [vmem:[#allocation40_spill] sm:$0xff] %v14849_v35  ;;  %v14852_v37 = vld [vmem:[%s14496_s22 + $0x328] sm:$0xff]  ;;  %v14857_v38 = vld [vmem:[%s14496_s22 + $0x2e0] sm:$0xff] }
  0x82   : > { %12878 = vmatmul.msk.f32.gmra.mxu3 %vm626_vm1, %v14514_v14  ;;  %12882 = vmatmul.msk.f32.gmra.mxu1 %vm626_vm1, %v14514_v14  ;;  %19819 = vst [vmem:[#allocation41_spill] sm:$0xff] %v14852_v37 }
  0x83   : > { %1153 = vmatpush.msrb.mxu2 %v14798_v8  ;;  %1197 = vmatpush.msra.mxu0 %v14825_v25  ;;  %19820 = vst [vmem:[#allocation42_spill] sm:$0xff] %v14857_v38 }
  0x84   : > { %12876 = vmatmul.msk.f32.gmra.mxu2 %vm626_vm1, %v14514_v14 }
  0x85   : > { %1154 = vmatpush.msrb.mxu2 %v14806_v10  ;;  %1198 = vmatpush.msra.mxu0 %v14837_v28 }
  0x87   : > { %1199 = vmatpush.msra.mxu0 %v14849_v35 }
  0x88   : > { %12880 = vmatmul.msk.f32.gmra.mxu0 %vm626_vm1, %v14514_v14 }
  0x89   : > { %1200 = vmatpush.msra.mxu0 %v14857_v38 }
  0x8a   : > { %12885 = vmatmul.msk.f32.vlgmr.msrb.gmra.mxu3 %vm626_vm1, %v14507_v12  ;;  %12889 = vmatmul.msk.f32.vlgmr.msrb.gmra.mxu1 %vm626_vm1, %v14507_v12 }
  0x8b   : > { %1266 = vmatpush.msrb.mxu3 %v581_v45  ;;  %1312 = vmatpush.msrb.mxu1 %v589_v46  ;;  %v14860_v45 = vld [vmem:[%s14496_s22 + $0x320] sm:$0xff]  ;;  %v14881_v46 = vld [vmem:[%s14496_s22 + $0x378] sm:$0xff] }
  0x8c   : > { %12883 = vmatmul.msk.f32.vlgmr.msra.gmra.mxu2 %vm626_vm1, %v14507_v12  ;;  %19821 = vst [vmem:[#allocation43_spill] sm:$0xff] %v14860_v45 }
  0x8d   : > { %1267 = vmatpush.msrb.mxu3 %v580_v48  ;;  %1313 = vmatpush.msrb.mxu1 %v588_v49  ;;  %19822 = vst [vmem:[#allocation44_spill] sm:$0xff] %v14881_v46  ;;  %v14884_v48 = vld [vmem:[%s14496_s22 + $0x3b8] sm:$0xff]  ;;  %v14889_v49 = vld [vmem:[%s14496_s22 + $0x370] sm:$0xff] }
  0x8e   : > { %1243 = vmatpush.msra.mxu2 %v14828_v26  ;;  %19823 = vst [vmem:[#allocation45_spill] sm:$0xff] %v14884_v48 }
  0x8f   : > { %1268 = vmatpush.msrb.mxu3 %v579_v54  ;;  %1314 = vmatpush.msrb.mxu1 %v587_v57  ;;  %19824 = vst [vmem:[#allocation46_spill] sm:$0xff] %v14889_v49  ;;  %v14892_v54 = vld [vmem:[%s14496_s22 + $0x3b0] sm:$0xff]  ;;  %v14903_v57 = vld [vmem:[%s14496_s22 + $0x368] sm:$0xff] }
  0x90   : > { %12887 = vmatmul.msk.f32.vlgmr.msrb.gmra.mxu0 %vm626_vm1, %v14507_v12  ;;  %1244 = vmatpush.msra.mxu2 %v14840_v34  ;;  %19825 = vst [vmem:[#allocation47_spill] sm:$0xff] %v14892_v54 }
  0x91   : > { %1269 = vmatpush.msrb.mxu3 %v578_v60  ;;  %1315 = vmatpush.msrb.mxu1 %v586_v61  ;;  %19826 = vst [vmem:[#allocation48_spill] sm:$0xff] %v14903_v57  ;;  %v14906_v60 = vld [vmem:[%s14496_s22 + $0x3a8] sm:$0xff]  ;;  %v14911_v61 = vld [vmem:[%s14496_s22 + $0x360] sm:$0xff] }
  0x92   : > { %12886 = vmatmul.msk.f32.gmra.mxu3 %vm626_vm1, %v14514_v14  ;;  %12890 = vmatmul.msk.f32.gmra.mxu1 %vm626_vm1, %v14514_v14  ;;  %19827 = vst [vmem:[#allocation49_spill] sm:$0xff] %v14906_v60 }
  0x93   : > { %1245 = vmatpush.msra.mxu2 %v14852_v37  ;;  %1289 = vmatpush.msrb.mxu0 %v14881_v46  ;;  %19828 = vst [vmem:[#allocation50_spill] sm:$0xff] %v14911_v61 }
  0x94   : > { %12884 = vmatmul.msk.f32.gmra.mxu2 %vm626_vm1, %v14514_v14 }
  0x95   : > { %1246 = vmatpush.msra.mxu2 %v14860_v45  ;;  %1290 = vmatpush.msrb.mxu0 %v14889_v49 }
  0x97   : > { %1291 = vmatpush.msrb.mxu0 %v14903_v57 }
  0x98   : > { %12888 = vmatmul.msk.f32.gmra.mxu0 %vm626_vm1, %v14514_v14 }
  0x99   : > { %1292 = vmatpush.msrb.mxu0 %v14911_v61 }
  0x9a   : > { %12893 = vmatmul.msk.f32.vlgmr.msra.gmra.mxu3 %vm626_vm1, %v14507_v12  ;;  %12897 = vmatmul.msk.f32.vlgmr.msra.gmra.mxu1 %vm626_vm1, %v14507_v12 }
  0x9b   : > { %1358 = vmatpush.msra.mxu3 %v597_v16  ;;  %12913 = vmatpush.msk.msra.mxu1 %vm1399_vm3, %v14830_v27  ;;  %v14914_v16 = vld [vmem:[%s14496_s22 + $0x3a0] sm:$0xff] }
  0x9c   : > { %12891 = vmatmul.msk.f32.vlgmr.msrb.gmra.mxu2 %vm626_vm1, %v14507_v12  ;;  %19829 = vst [vmem:[#allocation51_spill] sm:$0xff] %v14914_v16 }
  0x9d   : > { %1359 = vmatpush.msra.mxu3 %v596_v17  ;;  %1335 = vmatpush.msrb.mxu2 %v14884_v48  ;;  %v14931_v17 = vld [vmem:[%s14496_s22 + $0x3f8] sm:$0xff] }
  0x9e   : > { %19830 = vst [vmem:[#allocation52_spill] sm:$0xff] %v14931_v17 }
  0x9f   : > { %1360 = vmatpush.msra.mxu3 %v595_v19  ;;  %1336 = vmatpush.msrb.mxu2 %v14892_v54 }
  0xa0   : > { %12895 = vmatmul.msk.f32.vlgmr.msra.gmra.mxu0 %vm626_vm1, %v14507_v12 }
  0xa1   : > { %1361 = vmatpush.msra.mxu3 %v594_v20  ;;  %1337 = vmatpush.msrb.mxu2 %v14906_v60  ;;  %v14940_v20 = vld [vmem:[%s14496_s22 + $0x3f0] sm:$0xff] }
  0xa2   : > { %12894 = vmatmul.msk.f32.gmra.mxu3 %vm626_vm1, %v14514_v14  ;;  %12898 = vmatmul.msk.f32.gmra.mxu1 %vm626_vm1, %v14514_v14  ;;  %19831 = vst [vmem:[#allocation53_spill] sm:$0xff] %v14940_v20 }
  0xa3   : > { %1338 = vmatpush.msrb.mxu2 %v14914_v16  ;;  %1381 = vmatpush.msra.mxu0 %v14931_v17  ;;  %v14952_v16 = vld [vmem:[%s14496_s22 + $0x3e0] sm:$0xff] }
  0xa4   : > { %12892 = vmatmul.msk.f32.gmra.mxu2 %vm626_vm1, %v14514_v14  ;;  %19833 = vst [vmem:[#allocation55_spill] sm:$0xff] %v14952_v16 }
  0xa5   : > { %1382 = vmatpush.msra.mxu0 %v14940_v20 }
  0xa7   : > { %1383 = vmatpush.msra.mxu0 %v14943_v1 }
  0xa8   : > { %12896 = vmatmul.msk.f32.gmra.mxu0 %vm626_vm1, %v14514_v14 }
  0xa9   : > { %1384 = vmatpush.msra.mxu0 %v14952_v16 }
  0xaa   : > { %12901 = vmatmul.msk.f32.vlgmr.msrb.gmra.mxu3 %vm626_vm1, %v14507_v12  ;;  %12905 = vmatmul.msk.f32.vlgmr.msrb.gmra.mxu1 %vm626_vm1, %v14507_v12 }
  0xab   : > { %12919 = vmatpush.msk.msrb.mxu3 %vm1399_vm3, %v14830_v27  ;;  %12925 = vmatpush.msk.msrb.mxu1 %vm1399_vm3, %v14830_v27 }
  0xac   : > { %12899 = vmatmul.msk.f32.vlgmr.msra.gmra.mxu2 %vm626_vm1, %v14507_v12 }
  0xad   : > { %12916 = vmatpush.msk.msra.mxu2 %vm1399_vm3, %v14830_v27 }
  0xb0   : > { %12903 = vmatmul.msk.f32.vlgmr.msrb.gmra.mxu0 %vm626_vm1, %v14507_v12 }
  0xb1   : > { %12922 = vmatpush.msk.msrb.mxu0 %vm1399_vm3, %v14830_v27 }
  0xb2   : > { %12902 = vmatmul.msk.f32.gmra.mxu3 %vm626_vm1, %v14514_v14  ;;  %12906 = vmatmul.msk.f32.gmra.mxu1 %vm626_vm1, %v14514_v14 }
  0xb4   : > { %12900 = vmatmul.msk.f32.gmra.mxu2 %vm626_vm1, %v14514_v14 }
  0xb8   : > { %12904 = vmatmul.msk.f32.gmra.mxu0 %vm626_vm1, %v14514_v14 }
  0xba   : > { %12909 = vmatmul.msk.f32.vlgmr.msra.gmra.mxu3 %vm626_vm1, %v14507_v12 }
  0xbb   : > { %12931 = vmatpush.msk.msra.mxu3 %vm1399_vm3, %v14830_v27  ;;  %v14968_v20 = vpop.f32.mrf.mxu0 }
  0xbc   : > { %12907 = vmatmul.msk.f32.vlgmr.msrb.gmra.mxu2 %vm626_vm1, %v14507_v12 }
  0xbd   : > { %12928 = vmatpush.msk.msrb.mxu2 %vm1399_vm3, %v14830_v27 }
  0xbf   : > { %v673_v19 = vpop.f32.mrf.mxu1 }
  0xc0   : > { %12914 = vmatmul.msk.f32.vlgmr.msra.gmra.mxu1 %vm1392_vm4, %v673_v19  ;;  %12911 = vmatmul.msk.f32.vlgmr.msra.gmra.mxu0 %vm626_vm1, %v14507_v12 }
  0xc1   : > { %12937 = vmatpush.msk.msra.mxu1 %vm1399_vm3, %v14830_v27  ;;  %12934 = vmatpush.msk.msra.mxu0 %vm1399_vm3, %v14830_v27 }
  0xc2   : > { %12910 = vmatmul.msk.f32.gmra.mxu3 %vm626_vm1, %v14514_v14 }
  0xc4   : > { %12908 = vmatmul.msk.f32.gmra.mxu2 %vm626_vm1, %v14514_v14 }
  0xc5   : > { %v676_v19 = vpop.f32.mrf.mxu3 }
  0xc7   : > { %v765_v60 = vpop.f32.mrf.mxu1 }
  0xc8   : > { %12915 = vmatmul.msk.f32.gmra.mxu1 %vm1392_vm4, %v676_v19  ;;  %12912 = vmatmul.msk.f32.gmra.mxu0 %vm626_vm1, %v14514_v14 }
  0xca   : > { %12920 = vmatmul.msk.f32.vlgmr.msrb.gmra.mxu3 %vm1392_vm4, %v765_v60 }
  0xcb   : > { %12943 = vmatpush.msk.msrb.mxu3 %vm1399_vm3, %v14830_v27  ;;  %v14977_v12 = vpop.f32.mrf.mxu2 }
  0xcd   : > { %v719_v16 = vpop.f32.mrf.mxu3 }
  0xce   : > { %12917 = vmatmul.msk.f32.vlgmr.msra.gmra.mxu2 %vm1392_vm4, %v719_v16  ;;  %v14979_v16 = vpop.f32.mrf.mxu0 }
  0xcf   : > { %v768_v1 = vpop.f32.mrf.mxu1  ;;  %12940 = vmatpush.msk.msra.mxu2 %vm1399_vm3, %v14830_v27 }
  0xd2   : > { %12921 = vmatmul.msk.f32.gmra.mxu3 %vm1392_vm4, %v768_v1 }
  0xd3   : > { %v14987_v1 = vpop.f32.mrf.mxu2 }
  0xd5   : > { %v722_v19 = vpop.f32.mrf.mxu3 }
  0xd6   : > { %12918 = vmatmul.msk.f32.gmra.mxu2 %vm1392_vm4, %v722_v19  ;;  %v14989_v14 = vpop.f32.mrf.mxu0 }
  0xd7   : > { %v857_v60 = vpop.f32.mrf.mxu1 }
  0xd8   : > { %12926 = vmatmul.msk.f32.vlgmr.msrb.gmra.mxu1 %vm1392_vm4, %v857_v60 }
  0xd9   : > { %12949 = vmatpush.msk.msrb.mxu1 %vm1399_vm3, %v14830_v27 }
  0xdd   : > { %v811_v54 = vpop.f32.mrf.mxu3 }
  0xde   : > { %12923 = vmatmul.msk.f32.vlgmr.msrb.gmra.mxu0 %vm1392_vm4, %v811_v54  ;;  %v14995_v54 = vpop.f32.mrf.mxu2  ;;  %v14997_v61 = vpop.f32.mrf.mxu0 }
  0xdf   : > { %v860_v17 = vpop.f32.mrf.mxu1  ;;  %12946 = vmatpush.msk.msrb.mxu0 %vm1399_vm3, %v14830_v27 }
  0xe0   : > { %12927 = vmatmul.msk.f32.gmra.mxu1 %vm1392_vm4, %v860_v17 }
  0xe5   : > { %v814_v19 = vpop.f32.mrf.mxu3 }
  0xe6   : > { %12924 = vmatmul.msk.f32.gmra.mxu0 %vm1392_vm4, %v814_v19  ;;  %v15003_v45 = vpop.f32.mrf.mxu2  ;;  %v15006_v57 = vpop.f32.mrf.mxu0 }
  0xe7   : > { %v949_v60 = vpop.f32.mrf.mxu1 }
  0xe8   : > { %12932 = vmatmul.msk.f32.vlgmr.msra.gmra.mxu3 %vm1392_vm4, %v949_v60 }
  0xe9   : > { %12955 = vmatpush.msk.msra.mxu3 %vm1399_vm3, %v14830_v27 }
  0xed   : > { %v903_v48 = vpop.f32.mrf.mxu3 }
  0xee   : > { %12929 = vmatmul.msk.f32.vlgmr.msrb.gmra.mxu2 %vm1392_vm4, %v903_v48  ;;  %v15015_v49 = vpop.f32.mrf.mxu0 }
  0xef   : > { %v952_v17 = vpop.f32.mrf.mxu1  ;;  %12952 = vmatpush.msk.msrb.mxu2 %vm1399_vm3, %v14830_v27 }
  0xf0   : > { %12933 = vmatmul.msk.f32.gmra.mxu3 %vm1392_vm4, %v952_v17  ;;  %v15013_v17 = vpop.f32.mrf.mxu2 }
  0xf5   : > { %v906_v19 = vpop.f32.mrf.mxu3 }
  0xf6   : > { %12930 = vmatmul.msk.f32.gmra.mxu2 %vm1392_vm4, %v906_v19  ;;  %v15018_v19 = vld [vmem:[#allocation2] sm:$0xf] }
  0xf7   : > { %v1041_v60 = vpop.f32.mrf.mxu1 }
  0xf8   : > { %12938 = vmatmul.msk.f32.vlgmr.msra.gmra.mxu1 %vm1392_vm4, %v1041_v60 }
  0xf9   : > { %12961 = vmatpush.msk.msra.mxu1 %vm1399_vm3, %v15018_v19 }
  0xfd   : > { %v995_v37 = vpop.f32.mrf.mxu3 }
  0xfe   : > { %12935 = vmatmul.msk.f32.vlgmr.msra.gmra.mxu0 %vm1392_vm4, %v995_v37  ;;  %v15027_v37 = vpop.f32.mrf.mxu0 }
  0xff   : > { %v1044_v48 = vpop.f32.mrf.mxu1  ;;  %12958 = vmatpush.msk.msra.mxu0 %vm1399_vm3, %v14830_v27  ;;  %v15025_v27 = vpop.f32.mrf.mxu2 }
 0x100   : > { %12939 = vmatmul.msk.f32.gmra.mxu1 %vm1392_vm4, %v1044_v48 }
 0x105   : > { %v998_v34 = vpop.f32.mrf.mxu3 }
 0x106   : > { %12936 = vmatmul.msk.f32.gmra.mxu0 %vm1392_vm4, %v998_v34 }
 0x107   : > { %v1133_v46 = vpop.f32.mrf.mxu1  ;;  %v15033_v34 = vpop.f32.mrf.mxu2 }
 0x108   : > { %12944 = vmatmul.msk.f32.vlgmr.msrb.gmra.mxu3 %vm1392_vm4, %v1133_v46  ;;  %v15035_v46 = vpop.f32.mrf.mxu0 }
 0x109   : > { %12967 = vmatpush.msk.msrb.mxu3 %vm1399_vm3, %v15018_v19 }
 0x10d   : > { %v1087_v60 = vpop.f32.mrf.mxu3 }
 0x10e   : > { %12941 = vmatmul.msk.f32.vlgmr.msra.gmra.mxu2 %vm1392_vm4, %v1087_v60 }
 0x10f   : > { %v1136_v48 = vpop.f32.mrf.mxu1  ;;  %12964 = vmatpush.msk.msra.mxu2 %vm1399_vm3, %v15018_v19  ;;  %v15041_v10 = vpop.f32.mrf.mxu2 }
 0x110   : > { %12945 = vmatmul.msk.f32.gmra.mxu3 %vm1392_vm4, %v1136_v48  ;;  %v15044_v48 = vpop.f32.mrf.mxu0 }
 0x115   : > { %v1090_v26 = vpop.f32.mrf.mxu3 }
 0x116   : > { %12942 = vmatmul.msk.f32.gmra.mxu2 %vm1392_vm4, %v1090_v26 }
 0x117   : > { %v1225_v38 = vpop.f32.mrf.mxu1  ;;  %v15053_v8 = vpop.f32.mrf.mxu2 }
 0x118   : > { %12950 = vmatmul.msk.f32.vlgmr.msrb.gmra.mxu1 %vm1392_vm4, %v1225_v38 }
 0x119   : > { %12973 = vmatpush.msk.msrb.mxu1 %vm1399_vm3, %v15018_v19 }
 0x11d   : > { %v1179_v60 = vpop.f32.mrf.mxu3 }
 0x11e   : > { %12947 = vmatmul.msk.f32.vlgmr.msrb.gmra.mxu0 %vm1392_vm4, %v1179_v60  ;;  %v15055_v60 = vpop.f32.mrf.mxu0 }
 0x11f   : > { %v1228_v35 = vpop.f32.mrf.mxu1  ;;  %12970 = vmatpush.msk.msrb.mxu0 %vm1399_vm3, %v15018_v19 }
 0x120   : > { %12951 = vmatmul.msk.f32.gmra.mxu1 %vm1392_vm4, %v1228_v35 }
 0x125   : > { %v1182_v26 = vpop.f32.mrf.mxu3 }
 0x126   : > { %12948 = vmatmul.msk.f32.gmra.mxu0 %vm1392_vm4, %v1182_v26 }
 0x127   : > { %v1317_v38 = vpop.f32.mrf.mxu1 }
 0x128   : > { %12956 = vmatmul.msk.f32.vlgmr.msra.gmra.mxu3 %vm1392_vm4, %v1317_v38  ;;  %12962 = vmatmul.msk.f32.vlgmr.msra.gmra.mxu1 %vm1392_vm4, %v14968_v20  ;;  %v15067_v20 = vpop.f32.mrf.mxu2  ;;  %v15069_v38 = vpop.f32.mrf.mxu0 }
 0x129   : > { %12979 = vmatpush.msk.msra.mxu3 %vm1399_vm3, %v15018_v19  ;;  %12985 = vmatpush.msk.msra.mxu1 %vm1399_vm3, %v15018_v19 }
 0x12d   : > { %v1271_v35 = vpop.f32.mrf.mxu3 }
 0x12e   : > { %12953 = vmatmul.msk.f32.vlgmr.msrb.gmra.mxu2 %vm1392_vm4, %v1271_v35 }
 0x12f   : > { %v1320_v26 = vpop.f32.mrf.mxu1  ;;  %12976 = vmatpush.msk.msrb.mxu2 %vm1399_vm3, %v15018_v19 }
 0x130   : > { %12957 = vmatmul.msk.f32.gmra.mxu3 %vm1392_vm4, %v1320_v26  ;;  %12963 = vmatmul.msk.f32.gmra.mxu1 %vm1392_vm4, %v14979_v16  ;;  %v15080_v16 = vpop.f32.mrf.mxu2  ;;  %v15082_v35 = vpop.f32.mrf.mxu0 }
 0x135   : > { %v1274_v28 = vpop.f32.mrf.mxu3 }
 0x136   : > { %12954 = vmatmul.msk.f32.gmra.mxu2 %vm1392_vm4, %v1274_v28 }
 0x138   : > { %12968 = vmatmul.msk.f32.vlgmr.msrb.gmra.mxu3 %vm1392_vm4, %v14989_v14  ;;  %12974 = vmatmul.msk.f32.vlgmr.msrb.gmra.mxu1 %vm1392_vm4, %v15006_v57  ;;  %v15095_v58 = vpop.f32.mrf.mxu2  ;;  %v15102_v25 = vpop.f32.mrf.mxu0 }
 0x139   : > { %12991 = vmatpush.msk.msrb.mxu3 %vm1399_vm3, %v15018_v19  ;;  %12997 = vmatpush.msk.msrb.mxu1 %vm1399_vm3, %v15018_v19 }
 0x13d   : > { %v1363_v26 = vpop.f32.mrf.mxu3  ;;  %v15148_v6 = vpop.f32.mrf.mxu1 }
 0x13e   : > { %12959 = vmatmul.msk.f32.vlgmr.msra.gmra.mxu0 %vm1392_vm4, %v1363_v26  ;;  %12965 = vmatmul.msk.f32.vlgmr.msra.gmra.mxu2 %vm1392_vm4, %v14977_v12  ;;  %v15100_v26 = vld [vmem:[#allocation2 + $0x18] sm:$0xf]  ;;  %19834 = vst [vmem:[#allocation56_spill] sm:$0xff] %v15148_v6 }
 0x13f   : > { %12982 = vmatpush.msk.msra.mxu0 %vm1399_vm3, %v15018_v19  ;;  %12988 = vmatpush.msk.msra.mxu2 %vm1399_vm3, %v15018_v19 }
 0x140   : > { %12969 = vmatmul.msk.f32.gmra.mxu3 %vm1392_vm4, %v14997_v61  ;;  %12975 = vmatmul.msk.f32.gmra.mxu1 %vm1392_vm4, %v15015_v49  ;;  %v15126_v51 = vpop.f32.mrf.mxu0 }
 0x145   : > { %v1366_v28 = vpop.f32.mrf.mxu3 }
 0x146   : > { %12960 = vmatmul.msk.f32.gmra.mxu0 %vm1392_vm4, %v1366_v28  ;;  %12966 = vmatmul.msk.f32.gmra.mxu2 %vm1392_vm4, %v14987_v1  ;;  %v15120_v28 = vpop.f32.mrf.mxu2 }
 0x148   : > { %12980 = vmatmul.msk.f32.vlgmr.msra.gmra.mxu3 %vm1392_vm4, %v15027_v37  ;;  %12986 = vmatmul.msk.f32.vlgmr.msra.gmra.mxu1 %vm1392_vm4, %v15044_v48  ;;  %v15142_v42 = vpop.f32.mrf.mxu0 }
 0x149   : > { %13003 = vmatpush.msk.msra.mxu3 %vm1399_vm3, %v15018_v19  ;;  %13009 = vmatpush.msk.msra.mxu1 %vm1399_vm3, %v15100_v26 }
 0x14d   : > { %v15194_v36 = vpop.f32.mrf.mxu3 }
 0x14e   : > { %12971 = vmatmul.msk.f32.vlgmr.msrb.gmra.mxu0 %vm1392_vm4, %v14995_v54  ;;  %12977 = vmatmul.msk.f32.vlgmr.msrb.gmra.mxu2 %vm1392_vm4, %v15013_v17  ;;  %v15140_v9 = vpop.f32.mrf.mxu2 }
 0x14f   : > { %12994 = vmatpush.msk.msrb.mxu0 %vm1399_vm3, %v15018_v19  ;;  %13000 = vmatpush.msk.msrb.mxu2 %vm1399_vm3, %v15018_v19 }
 0x150   : > { %12981 = vmatmul.msk.f32.gmra.mxu3 %vm1392_vm4, %v15035_v46  ;;  %12987 = vmatmul.msk.f32.gmra.mxu1 %vm1392_vm4, %v15055_v60  ;;  %v15160_v53 = vpop.f32.mrf.mxu0 }
 0x156   : > { %12972 = vmatmul.msk.f32.gmra.mxu0 %vm1392_vm4, %v15003_v45  ;;  %12978 = vmatmul.msk.f32.gmra.mxu2 %vm1392_vm4, %v15025_v27  ;;  %v15158_v40 = vpop.f32.mrf.mxu2 }
 0x158   : > { %12992 = vmatmul.msk.f32.vlgmr.msrb.gmra.mxu3 %vm1392_vm4, %v15069_v38  ;;  %12998 = vmatmul.msk.f32.vlgmr.msrb.gmra.mxu1 %vm1392_vm4, %v15102_v25 }
 0x159   : > { %13015 = vmatpush.msk.msrb.mxu3 %vm1399_vm3, %v15100_v26  ;;  %13021 = vmatpush.msk.msrb.mxu1 %vm1399_vm3, %v15100_v26 }
 0x15e   : > { %12983 = vmatmul.msk.f32.vlgmr.msra.gmra.mxu0 %vm1392_vm4, %v15033_v34  ;;  %12989 = vmatmul.msk.f32.vlgmr.msra.gmra.mxu2 %vm1392_vm4, %v15053_v8  ;;  %v15176_v6 = vpop.f32.mrf.mxu2 }
 0x15f   : > { %13006 = vmatpush.msk.msra.mxu0 %vm1399_vm3, %v15018_v19  ;;  %13012 = vmatpush.msk.msra.mxu2 %vm1399_vm3, %v15100_v26  ;;  %v15166_v19 = vpop.f32.mrf.mxu1 }
 0x160   : > { %12993 = vmatmul.msk.f32.gmra.mxu3 %vm1392_vm4, %v15082_v35  ;;  %12999 = vmatmul.msk.f32.gmra.mxu1 %vm1392_vm4, %v15126_v51  ;;  %19835 = vst [vmem:[#allocation57_spill] sm:$0xff] %v15166_v19  ;;  %v15182_v19 = vpop.f32.mrf.mxu0 }
 0x166   : > { %12984 = vmatmul.msk.f32.gmra.mxu0 %vm1392_vm4, %v15041_v10  ;;  %12990 = vmatmul.msk.f32.gmra.mxu2 %vm1392_vm4, %v15067_v20  ;;  %v15200_v50 = vpop.f32.mrf.mxu2 }
 0x168   : > { %13004 = vmatmul.msk.f32.vlgmr.msra.gmra.mxu3 %vm1392_vm4, %v15142_v42  ;;  %13010 = vmatmul.msk.f32.vlgmr.msra.gmra.mxu1 %vm1392_vm4, %v14977_v12  ;;  %v15192_v12 = vpop.f32.mrf.mxu1  ;;  %v15206_v30 = vpop.f32.mrf.mxu0 }
 0x169   : > { %13027 = vmatpush.msk.msra.mxu3 %vm1399_vm3, %v15100_v26  ;;  %13033 = vmatpush.msk.msra.mxu1 %vm1399_vm3, %v15100_v26  ;;  %19836 = vst [vmem:[#allocation58_spill] sm:$0xff] %v15192_v12 }
 0x16e   : > { %12995 = vmatmul.msk.f32.vlgmr.msrb.gmra.mxu0 %vm1392_vm4, %v15080_v16  ;;  %13001 = vmatmul.msk.f32.vlgmr.msrb.gmra.mxu2 %vm1392_vm4, %v15120_v28 }
 0x16f   : > { %13018 = vmatpush.msk.msrb.mxu0 %vm1399_vm3, %v15100_v26  ;;  %13024 = vmatpush.msk.msrb.mxu2 %vm1399_vm3, %v15100_v26 }
 0x170   : > { %13005 = vmatmul.msk.f32.gmra.mxu3 %vm1392_vm4, %v15160_v53  ;;  %13011 = vmatmul.msk.f32.gmra.mxu1 %vm1392_vm4, %v14987_v1  ;;  %v15212_v1 = vpop.f32.mrf.mxu1 }
 0x171   : > { %19837 = vst [vmem:[#allocation59_spill] sm:$0xff] %v15212_v1  ;;  %v15230_v1 = vpop.f32.mrf.mxu0 }
 0x172   : > { %19838 = vst [vmem:[#allocation60_spill] sm:$0xff] %v15230_v1 }
 0x176   : > { %12996 = vmatmul.msk.f32.gmra.mxu0 %vm1392_vm4, %v15095_v58  ;;  %13002 = vmatmul.msk.f32.gmra.mxu2 %vm1392_vm4, %v15140_v9 }
 0x178   : > { %13016 = vmatmul.msk.f32.vlgmr.msrb.gmra.mxu3 %vm1392_vm4, %v14995_v54  ;;  %13022 = vmatmul.msk.f32.vlgmr.msrb.gmra.mxu1 %vm1392_vm4, %v15013_v17  ;;  %v15218_v54 = vpop.f32.mrf.mxu3  ;;  %v15228_v17 = vpop.f32.mrf.mxu2 }
 0x179   : > { %13039 = vmatpush.msk.msrb.mxu3 %vm1399_vm3, %v15100_v26  ;;  %13045 = vmatpush.msk.msrb.mxu1 %vm1399_vm3, %v15100_v26  ;;  %v15232_v12 = vpop.f32.mrf.mxu1  ;;  %v15249_v1 = vpop.f32.mrf.mxu0 }
 0x17a   : > { %19839 = vst [vmem:[#allocation61_spill] sm:$0xff] %v15232_v12 }
 0x17b   : > { %19842 = vst [vmem:[#allocation63_spill] sm:$0xff] %v15249_v1 }
 0x17e   : > { %13007 = vmatmul.msk.f32.vlgmr.msra.gmra.mxu0 %vm1392_vm4, %v15158_v40  ;;  %13013 = vmatmul.msk.f32.vlgmr.msra.gmra.mxu2 %vm1392_vm4, %v14989_v14 }
 0x17f   : > { %13030 = vmatpush.msk.msra.mxu0 %vm1399_vm3, %v15100_v26  ;;  %13036 = vmatpush.msk.msra.mxu2 %vm1399_vm3, %v15100_v26 }
 0x180   : > { %13017 = vmatmul.msk.f32.gmra.mxu3 %vm1392_vm4, %v15003_v45  ;;  %13023 = vmatmul.msk.f32.gmra.mxu1 %vm1392_vm4, %v15025_v27  ;;  %v15238_v14 = vpop.f32.mrf.mxu3  ;;  %v19841_v45 = vmov 0.0   ;;  %v15247_v27 = vpop.f32.mrf.mxu2 }
 0x181   : > { %19840 = vst [vmem:[#allocation62_spill] sm:$0xff] %v15238_v14  ;;  %v15251_v12 = vpop.f32.mrf.mxu1 }
 0x182   : > { %19843 = vst [vmem:[#allocation64_spill] sm:$0xff] %v15251_v12 }
 0x186   : > { %13008 = vmatmul.msk.f32.gmra.mxu0 %vm1392_vm4, %v15176_v6  ;;  %13014 = vmatmul.msk.f32.gmra.mxu2 %vm1392_vm4, %v14997_v61 }
 0x188   : > { %13028 = vmatmul.msk.f32.vlgmr.msra.gmra.mxu3 %vm1392_vm4, %v15033_v34  ;;  %13034 = vmatmul.msk.f32.vlgmr.msra.gmra.mxu1 %vm1392_vm4, %v15053_v8  ;;  %v15265_v8 = vpop.f32.mrf.mxu3  ;;  %v15267_v61 = vpop.f32.mrf.mxu2  ;;  %v13850_v34 = vld [vmem:[%s14496_s22 + $0x38] sm:$0xff] }
 0x189   : > { %13051 = vmatpush.msk.msra.mxu3 %vm1399_vm3, %v15100_v26  ;;  %2764 = vmatpush.msra.mxu1 %v19841_v45  ;;  %19844 = vst [vmem:[#allocation65_spill] sm:$0xff] %v15265_v8 }
 0x18e   : > { %13019 = vmatmul.msk.f32.vlgmr.msrb.gmra.mxu0 %vm1392_vm4, %v15006_v57  ;;  %13025 = vmatmul.msk.f32.vlgmr.msrb.gmra.mxu2 %vm1392_vm4, %v15027_v37  ;;  %v15269_v57 = vpop.f32.mrf.mxu0 }
 0x18f   : > { %13042 = vmatpush.msk.msrb.mxu0 %vm1399_vm3, %v15100_v26  ;;  %13048 = vmatpush.msk.msrb.mxu2 %vm1399_vm3, %v15100_v26  ;;  %19845 = vst [vmem:[#allocation66_spill] sm:$0xff] %v15269_v57 }
 0x190   : > { %13029 = vmatmul.msk.f32.gmra.mxu3 %vm1392_vm4, %v15041_v10  ;;  %13035 = vmatmul.msk.f32.gmra.mxu1 %vm1392_vm4, %v15067_v20  ;;  %v15281_v10 = vpop.f32.mrf.mxu3  ;;  %v13851_v20 = vld [vmem:[%s14496_s22 + $0x30] sm:$0xff] }
 0x191   : > { %19846 = vst [vmem:[#allocation67_spill] sm:$0xff] %v15281_v10 }
 0x195   : > { %v15271_v37 = vpop.f32.mrf.mxu1 }
 0x196   : > { %13020 = vmatmul.msk.f32.gmra.mxu0 %vm1392_vm4, %v15015_v49  ;;  %13026 = vmatmul.msk.f32.gmra.mxu2 %vm1392_vm4, %v15035_v46  ;;  %v15289_v46 = vpop.f32.mrf.mxu2 }
 0x197   : > { %19847 = vst [vmem:[#allocation68_spill] sm:$0xff] %v15289_v46 }
 0x198   : > { %13040 = vmatmul.msk.f32.vlgmr.msrb.gmra.mxu3 %vm1392_vm4, %v15080_v16  ;;  %13046 = vmatmul.msk.f32.vlgmr.msrb.gmra.mxu1 %vm1392_vm4, %v15120_v28  ;;  %v13852_v16 = vld [vmem:[%s14496_s22 + $0x28] sm:$0xff]  ;;  %v13853_v28 = vld [vmem:[%s14496_s22 + $0x18] sm:$0xff] }
 0x199   : > { %2807 = vmatpush.msrb.mxu3 %v13850_v34  ;;  %2853 = vmatpush.msrb.mxu1 %v14543_v31  ;;  %v15297_v31 = vpop.f32.mrf.mxu0 }
 0x19a   : > { %19848 = vst [vmem:[#allocation69_spill] sm:$0xff] %v15297_v31 }
 0x19b   : > { %2808 = vmatpush.msrb.mxu3 %v13851_v20  ;;  %2854 = vmatpush.msrb.mxu1 %v14546_v32  ;;  %v13854_v32 = vld [vmem:[%s14496_s22 + $0x20] sm:$0xff]  ;;  %v13858_v20 = vld [vmem:[%s14496_s22 + $0xb8] sm:$0xff] }
 0x19d   : > { %v15287_v49 = vpop.f32.mrf.mxu1  ;;  %2809 = vmatpush.msrb.mxu3 %v13852_v16  ;;  %2855 = vmatpush.msrb.mxu1 %v14567_v43  ;;  %v13855_v43 = vld [vmem:[%s14496_s22 + $0x10] sm:$0xff] }
 0x19e   : > { %13031 = vmatmul.msk.f32.vlgmr.msra.gmra.mxu0 %vm1392_vm4, %v15044_v48  ;;  %13037 = vmatmul.msk.f32.vlgmr.msra.gmra.mxu2 %vm1392_vm4, %v15069_v38  ;;  %v15311_v48 = vpop.f32.mrf.mxu3  ;;  %v13856_v38 = vld [vmem:[%s14496_s22 + $0x8] sm:$0xff]  ;;  %v15324_v34 = vpop.f32.mrf.mxu2 }
 0x19f   : > { %2784 = vmatpush.msra.mxu2 %v13853_v28  ;;  %2810 = vmatpush.msrb.mxu3 %v13854_v32  ;;  %v13865_v32 = vld [vmem:[%s14496_s22 + $0x88] sm:$0xff] }
 0x1a0   : > { %13041 = vmatmul.msk.f32.gmra.mxu3 %vm1392_vm4, %v15095_v58  ;;  %13047 = vmatmul.msk.f32.gmra.mxu1 %vm1392_vm4, %v15140_v9  ;;  %v15317_v9 = vsel %vm2737_vm5, 1.0, %v19841_v45 }
 0x1a1   : > { %2856 = vmatpush.msrb.mxu1 %v14570_v44  ;;  %2785 = vmatpush.msra.mxu2 %v13855_v43  ;;  %19850 = vst [vmem:[#allocation71_spill] sm:$0xff] %v15317_v9  ;;  %v13857_v44 = vld [vmem:[%s14496_s22] sm:$0xff] }
 0x1a2   : > { %13054 = vmatpush.msk.msra.mxu0 %vm1399_vm3, %v15100_v26  ;;  %v15326_v26 = vpop.f32.mrf.mxu0 }
 0x1a3   : > { %2786 = vmatpush.msra.mxu2 %v13856_v38  ;;  %19851 = vst [vmem:[#allocation72_spill] sm:$0xff] %v15326_v26  ;;  %v13919_v26 = vld [vmem:[%s14496_s22 + $0x3c0] sm:$0xff] }
 0x1a5   : > { %v15314_v58 = vpop.f32.mrf.mxu1  ;;  %2787 = vmatpush.msra.mxu2 %v13857_v44 }
 0x1a6   : > { %19849 = vst [vmem:[#allocation70_spill] sm:$0xff] %v15314_v58  ;;  %13032 = vmatmul.msk.f32.gmra.mxu0 %vm1392_vm4, %v15055_v60  ;;  %13038 = vmatmul.msk.f32.gmra.mxu2 %vm1392_vm4, %v15082_v35  ;;  %v13859_v35 = vld [vmem:[%s14496_s22 + $0xb0] sm:$0xff] }
 0x1a8   : > { %13052 = vmatmul.msk.f32.vlgmr.msra.gmra.mxu3 %vm1392_vm4, %v15158_v40  ;;  %13059 = vmatmul.msk.f32.vlgmr.msra.gmra.mxu1 %vm626_vm1, %v15317_v9  ;;  %v15343_v40 = vsel %vm2738_vm6, 1.0, %v19841_v45 }
 0x1a9   : > { %2899 = vmatpush.msra.mxu3 %v13858_v20  ;;  %2945 = vmatpush.msra.mxu1 %v14598_v55  ;;  %v13860_v55 = vld [vmem:[%s14496_s22 + $0x58] sm:$0xff]  ;;  %v13872_v20 = vld [vmem:[%s14496_s22 + $0xc8] sm:$0xff] }
 0x1ab   : > { %v15336_v60 = vpop.f32.mrf.mxu3  ;;  %2900 = vmatpush.msra.mxu3 %v13859_v35  ;;  %2946 = vmatpush.msra.mxu1 %v14601_v56  ;;  %v13861_v56 = vld [vmem:[%s14496_s22 + $0x98] sm:$0xff]  ;;  %v13873_v35 = vld [vmem:[%s14496_s22 + $0x108] sm:$0xff] }
 0x1ad   : > { %v15340_v16 = vpop.f32.mrf.mxu1  ;;  %2901 = vmatpush.msra.mxu3 %v14576_v47  ;;  %2947 = vmatpush.msra.mxu1 %v14626_v63  ;;  %v15359_v63 = vpop.f32.mrf.mxu0 }
 0x1ae   : > { %19852 = vst [vmem:[#allocation73_spill] sm:$0xff] %v15340_v16  ;;  %13043 = vmatmul.msk.f32.vlgmr.msrb.gmra.mxu0 %vm1392_vm4, %v15102_v25  ;;  %13049 = vmatmul.msk.f32.vlgmr.msrb.gmra.mxu2 %vm1392_vm4, %v15142_v42  ;;  %v13862_v42 = vld [vmem:[%s14496_s22 + $0x50] sm:$0xff] }
 0x1af   : > { %2830 = vmatpush.msrb.mxu0 %v13860_v55  ;;  %2876 = vmatpush.msrb.mxu2 %v13861_v56  ;;  %19853 = vst [vmem:[#allocation74_spill] sm:$0xff] %v15359_v63  ;;  %v13863_v25 = vld [vmem:[%s14496_s22 + $0x90] sm:$0xff] }
 0x1b0   : > { %13053 = vmatmul.msk.f32.gmra.mxu3 %vm1392_vm4, %v15176_v6  ;;  %13060 = vmatmul.msk.f32.gmra.mxu1 %vm626_vm1, %v15343_v40  ;;  %v13864_v6 = vld [vmem:[%s14496_s22 + $0x48] sm:$0xff] }
 0x1b1   : > { %v15357_v47 = vpop.f32.mrf.mxu2  ;;  %2902 = vmatpush.msra.mxu3 %v14589_v52  ;;  %2948 = vmatpush.msra.mxu1 %v14634_v2  ;;  %v13866_v52 = vld [vmem:[%s14496_s22 + $0x40] sm:$0xff] }
 0x1b2   : > { %2831 = vmatpush.msrb.mxu0 %v13862_v42  ;;  %2877 = vmatpush.msrb.mxu2 %v13863_v25  ;;  %v13867_v2 = vld [vmem:[%s14496_s22 + $0x80] sm:$0xff] }
 0x1b3   : > { %v15365_v28 = vpop.f32.mrf.mxu3 }
 0x1b4   : > { %2832 = vmatpush.msrb.mxu0 %v13864_v6  ;;  %2878 = vmatpush.msrb.mxu2 %v13865_v32  ;;  %v13880_v32 = vld [vmem:[%s14496_s22 + $0x148] sm:$0xff] }
 0x1b5   : > { %v15369_v43 = vpop.f32.mrf.mxu1 }
 0x1b6   : > { %19854 = vst [vmem:[#allocation75_spill] sm:$0xff] %v15369_v43  ;;  %13044 = vmatmul.msk.f32.gmra.mxu0 %vm1392_vm4, %v15126_v51  ;;  %13050 = vmatmul.msk.f32.gmra.mxu2 %vm1392_vm4, %v15160_v53 }
 0x1b7   : > { %2833 = vmatpush.msrb.mxu0 %v13866_v52  ;;  %2879 = vmatpush.msrb.mxu2 %v13867_v2  ;;  %v13881_v52 = vld [vmem:[%s14496_s22 + $0x188] sm:$0xff] }
 0x1b8   : > { %13063 = vmatmul.msk.f32.vlgmr.msrb.gmra.mxu3 %vm626_vm1, %v15317_v9  ;;  %13067 = vmatmul.msk.f32.vlgmr.msrb.gmra.mxu1 %vm626_vm1, %v15317_v9 }
 0x1b9   : > { %v15381_v38 = vpop.f32.mrf.mxu2  ;;  %2991 = vmatpush.msrb.mxu3 %v14608_v59  ;;  %3037 = vmatpush.msrb.mxu1 %v14655_v11  ;;  %v13868_v59 = vld [vmem:[%s14496_s22 + $0xd8] sm:$0xff]  ;;  %v13870_v11 = vld [vmem:[%s14496_s22 + $0xd0] sm:$0xff] }
 0x1bb   : > { %v15385_v51 = vpop.f32.mrf.mxu0  ;;  %v15387_v53 = vpop.f32.mrf.mxu3  ;;  %2992 = vmatpush.msrb.mxu3 %v14619_v62  ;;  %3038 = vmatpush.msrb.mxu1 %v14661_v15  ;;  %v13869_v62 = vld [vmem:[%s14496_s22 + $0x118] sm:$0xff]  ;;  %v13871_v15 = vld [vmem:[%s14496_s22 + $0x110] sm:$0xff] }
 0x1bc   : > { %19855 = vst [vmem:[#allocation76_spill] sm:$0xff] %v15385_v51  ;;  %v19886_v51 = vld [vmem:[#allocation33_spill] sm:$0xff] }
 0x1bd   : > { %v15391_v44 = vpop.f32.mrf.mxu1  ;;  %2993 = vmatpush.msrb.mxu3 %v14629_v0  ;;  %3039 = vmatpush.msrb.mxu1 %v14683_v21 }
 0x1be   : > { %19856 = vst [vmem:[#allocation77_spill] sm:$0xff] %v15391_v44  ;;  %13055 = vmatmul.msk.f32.vlgmr.msra.gmra.mxu0 %vm1392_vm4, %v15182_v19  ;;  %13061 = vmatmul.msk.f32.vlgmr.msra.gmra.mxu2 %vm626_vm1, %v15317_v9  ;;  %v15881_v44 = vld [vmem:[#allocation2 + $0x10] sm:$0xf] }
 0x1bf   : > { %2922 = vmatpush.msra.mxu0 %v13868_v59  ;;  %2968 = vmatpush.msra.mxu2 %v13869_v62  ;;  %v19864_v62 = vld [vmem:[#allocation24_spill] sm:$0xff] }
 0x1c0   : > { %13064 = vmatmul.msk.f32.gmra.mxu3 %vm626_vm1, %v15343_v40  ;;  %13068 = vmatmul.msk.f32.gmra.mxu1 %vm626_vm1, %v15343_v40 }
 0x1c1   : > { %v15405_v0 = vpop.f32.mrf.mxu2  ;;  %2994 = vmatpush.msrb.mxu3 %v14637_v5  ;;  %3040 = vmatpush.msrb.mxu1 %v14691_v23  ;;  %v13874_v5 = vld [vmem:[%s14496_s22 + $0xc0] sm:$0xff] }
 0x1c2   : > { %2923 = vmatpush.msra.mxu0 %v13870_v11  ;;  %2969 = vmatpush.msra.mxu2 %v13871_v15  ;;  %v13875_v23 = vld [vmem:[%s14496_s22 + $0x100] sm:$0xff]  ;;  %v19865_v11 = vld [vmem:[#allocation28_spill] sm:$0xff] }
 0x1c3   : > { %v15411_v21 = vpop.f32.mrf.mxu0  ;;  %v15413_v19 = vpop.f32.mrf.mxu3 }
 0x1c4   : > { %19857 = vst [vmem:[#allocation78_spill] sm:$0xff] %v15411_v21  ;;  %2924 = vmatpush.msra.mxu0 %v13872_v20  ;;  %2970 = vmatpush.msra.mxu2 %v13873_v35  ;;  %v19868_v35 = vld [vmem:[#allocation25_spill] sm:$0xff] }
 0x1c5   : > { %v15417_v55 = vpop.f32.mrf.mxu1 }
 0x1c6   : > { %19858 = vst [vmem:[#allocation79_spill] sm:$0xff] %v15417_v55  ;;  %13056 = vmatmul.msk.f32.gmra.mxu0 %vm1392_vm4, %v15206_v30  ;;  %13062 = vmatmul.msk.f32.gmra.mxu2 %vm626_vm1, %v15343_v40 }
 0x1c7   : > { %2925 = vmatpush.msra.mxu0 %v13874_v5  ;;  %2971 = vmatpush.msra.mxu2 %v13875_v23  ;;  %v19869_v5 = vld [vmem:[#allocation30_spill] sm:$0xff] }
 0x1c8   : > { %13071 = vmatmul.msk.f32.vlgmr.msra.gmra.mxu3 %vm626_vm1, %v15317_v9  ;;  %13075 = vmatmul.msk.f32.vlgmr.msra.gmra.mxu1 %vm626_vm1, %v15317_v9 }
 0x1c9   : > { %v15429_v56 = vpop.f32.mrf.mxu2  ;;  %3083 = vmatpush.msra.mxu3 %v14658_v13  ;;  %3129 = vmatpush.msra.mxu1 %v14711_v29  ;;  %v13876_v13 = vld [vmem:[%s14496_s22 + $0x158] sm:$0xff]  ;;  %v13878_v29 = vld [vmem:[%s14496_s22 + $0x150] sm:$0xff] }
 0x1cb   : > { %v15433_v30 = vpop.f32.mrf.mxu0  ;;  %v15435_v42 = vpop.f32.mrf.mxu3  ;;  %3084 = vmatpush.msra.mxu3 %v14668_v18  ;;  %3130 = vmatpush.msra.mxu1 %v14717_v33  ;;  %v13877_v18 = vld [vmem:[%s14496_s22 + $0x198] sm:$0xff]  ;;  %v13879_v33 = vld [vmem:[%s14496_s22 + $0x190] sm:$0xff] }
 0x1cc   : > { %19859 = vst [vmem:[#allocation80_spill] sm:$0xff] %v15433_v30 }
 0x1cd   : > { %19860 = vst [vmem:[#allocation81_spill] sm:$0xff] %v15435_v42  ;;  %v15439_v25 = vpop.f32.mrf.mxu1  ;;  %3085 = vmatpush.msra.mxu3 %v14686_v22  ;;  %3131 = vmatpush.msra.mxu1 %v14739_v39 }
 0x1ce   : > { %19861 = vst [vmem:[#allocation82_spill] sm:$0xff] %v15439_v25  ;;  %13065 = vmatmul.msk.f32.vlgmr.msrb.gmra.mxu0 %vm626_vm1, %v15317_v9  ;;  %13069 = vmatmul.msk.f32.vlgmr.msrb.gmra.mxu2 %vm626_vm1, %v15317_v9 }
 0x1cf   : > { %3014 = vmatpush.msrb.mxu0 %v13876_v13  ;;  %3060 = vmatpush.msrb.mxu2 %v13877_v18  ;;  %v19870_v13 = vld [vmem:[#allocation26_spill] sm:$0xff]  ;;  %v19871_v18 = vld [vmem:[#allocation32_spill] sm:$0xff] }
 0x1d0   : > { %13072 = vmatmul.msk.f32.gmra.mxu3 %vm626_vm1, %v15343_v40  ;;  %13076 = vmatmul.msk.f32.gmra.mxu1 %vm626_vm1, %v15343_v40 }
 0x1d1   : > { %v15453_v22 = vpop.f32.mrf.mxu2  ;;  %3086 = vmatpush.msra.mxu3 %v14694_v24  ;;  %3132 = vmatpush.msra.mxu1 %v14747_v41  ;;  %v13882_v24 = vld [vmem:[%s14496_s22 + $0x140] sm:$0xff] }
 0x1d2   : > { %3015 = vmatpush.msrb.mxu0 %v13878_v29  ;;  %3061 = vmatpush.msrb.mxu2 %v13879_v33  ;;  %v13883_v41 = vld [vmem:[%s14496_s22 + $0x180] sm:$0xff]  ;;  %v13884_v29 = vld [vmem:[%s14496_s22 + $0x1d8] sm:$0xff] }
 0x1d3   : > { %v15459_v39 = vpop.f32.mrf.mxu0  ;;  %v15461_v6 = vpop.f32.mrf.mxu3  ;;  %v13885_v33 = vld [vmem:[%s14496_s22 + $0x218] sm:$0xff] }
 0x1d4   : > { %19862 = vst [vmem:[#allocation83_spill] sm:$0xff] %v15459_v39  ;;  %3016 = vmatpush.msrb.mxu0 %v13880_v32  ;;  %3062 = vmatpush.msrb.mxu2 %v13881_v52  ;;  %v19873_v52 = vld [vmem:[#allocation27_spill] sm:$0xff] }
 0x1d5   : > { %19863 = vst [vmem:[#allocation84_spill] sm:$0xff] %v15461_v6  ;;  %v15465_v2 = vpop.f32.mrf.mxu1 }
 0x1d6   : > { %13066 = vmatmul.msk.f32.gmra.mxu0 %vm626_vm1, %v15343_v40  ;;  %13070 = vmatmul.msk.f32.gmra.mxu2 %vm626_vm1, %v15343_v40 }
 0x1d7   : > { %3017 = vmatpush.msrb.mxu0 %v13882_v24  ;;  %3063 = vmatpush.msrb.mxu2 %v13883_v41  ;;  %v19874_v24 = vld [vmem:[#allocation34_spill] sm:$0xff]  ;;  %v13886_v41 = vld [vmem:[%s14496_s22 + $0x1d0] sm:$0xff] }
 0x1d8   : > { %13079 = vmatmul.msk.f32.vlgmr.msrb.gmra.mxu3 %vm626_vm1, %v15317_v9  ;;  %13083 = vmatmul.msk.f32.vlgmr.msrb.gmra.mxu1 %vm626_vm1, %v15317_v9 }
 0x1d9   : > { %v15477_v59 = vpop.f32.mrf.mxu2  ;;  %3175 = vmatpush.msrb.mxu3 %v19864_v62  ;;  %3221 = vmatpush.msrb.mxu1 %v19865_v11  ;;  %v13887_v62 = vld [vmem:[%s14496_s22 + $0x210] sm:$0xff] }
 0x1db   : > { %v15481_v15 = vpop.f32.mrf.mxu0  ;;  %v15483_v20 = vpop.f32.mrf.mxu3  ;;  %3176 = vmatpush.msrb.mxu3 %v19868_v35  ;;  %3222 = vmatpush.msrb.mxu1 %v19869_v5 }
 0x1dc   : > { %19866 = vst [vmem:[#allocation24_spill] sm:$0xff] %v15481_v15 }
 0x1dd   : > { %19867 = vst [vmem:[#allocation28_spill] sm:$0xff] %v15483_v20  ;;  %v15487_v23 = vpop.f32.mrf.mxu1  ;;  %3177 = vmatpush.msrb.mxu3 %v19870_v13  ;;  %3223 = vmatpush.msrb.mxu1 %v19871_v18  ;;  %v13888_v13 = vld [vmem:[%s14496_s22 + $0x1c8] sm:$0xff] }
 0x1de   : > { %13073 = vmatmul.msk.f32.vlgmr.msra.gmra.mxu0 %vm626_vm1, %v15317_v9  ;;  %13077 = vmatmul.msk.f32.vlgmr.msra.gmra.mxu2 %vm626_vm1, %v15317_v9  ;;  %v13889_v18 = vld [vmem:[%s14496_s22 + $0x208] sm:$0xff] }
 0x1df   : > { %3106 = vmatpush.msra.mxu0 %v13884_v29  ;;  %3152 = vmatpush.msra.mxu2 %v13885_v33  ;;  %v13890_v33 = vld [vmem:[%s14496_s22 + $0x1c0] sm:$0xff] }
 0x1e0   : > { %13080 = vmatmul.msk.f32.gmra.mxu3 %vm626_vm1, %v15343_v40  ;;  %13084 = vmatmul.msk.f32.gmra.mxu1 %vm626_vm1, %v15343_v40 }
 0x1e1   : > { %v15501_v32 = vpop.f32.mrf.mxu2  ;;  %3178 = vmatpush.msrb.mxu3 %v19873_v52  ;;  %3224 = vmatpush.msrb.mxu1 %v19874_v24  ;;  %v13891_v52 = vld [vmem:[%s14496_s22 + $0x200] sm:$0xff] }
 0x1e2   : > { %19872 = vst [vmem:[#allocation25_spill] sm:$0xff] %v15501_v32  ;;  %3107 = vmatpush.msra.mxu0 %v13886_v41  ;;  %3153 = vmatpush.msra.mxu2 %v13887_v62  ;;  %v19878_v24 = vld [vmem:[#allocation29_spill] sm:$0xff]  ;;  %v19879_v41 = vld [vmem:[#allocation36_spill] sm:$0xff] }
 0x1e3   : > { %v15507_v11 = vpop.f32.mrf.mxu0  ;;  %v2180_v35 = vpop.f32.mrf.mxu3 }
 0x1e4   : > { %19875 = vst [vmem:[#allocation30_spill] sm:$0xff] %v15507_v11  ;;  %v15510_v5 = vadd.f32 %v2180_v35, %v15311_v48  ;;  %3108 = vmatpush.msra.mxu0 %v13888_v13  ;;  %3154 = vmatpush.msra.mxu2 %v13889_v18  ;;  %v19882_v18 = vld [vmem:[#allocation31_spill] sm:$0xff] }
 0x1e5   : > { %v15514_v29 = vpop.f32.mrf.mxu1 }
 0x1e6   : > { %19876 = vst [vmem:[#allocation26_spill] sm:$0xff] %v15510_v5  ;;  %13074 = vmatmul.msk.f32.gmra.mxu0 %vm626_vm1, %v15343_v40  ;;  %13078 = vmatmul.msk.f32.gmra.mxu2 %vm626_vm1, %v15343_v40 }
 0x1e7   : > { %19877 = vst [vmem:[#allocation32_spill] sm:$0xff] %v15514_v29  ;;  %3109 = vmatpush.msra.mxu0 %v13890_v33  ;;  %3155 = vmatpush.msra.mxu2 %v13891_v52  ;;  %v19883_v33 = vld [vmem:[#allocation38_spill] sm:$0xff] }
 0x1e8   : > { %13087 = vmatmul.msk.f32.vlgmr.msra.gmra.mxu3 %vm626_vm1, %v15317_v9  ;;  %13091 = vmatmul.msk.f32.vlgmr.msra.gmra.mxu1 %vm626_vm1, %v15317_v9 }
 0x1e9   : > { %v2151_v48 = vpop.f32.mrf.mxu2  ;;  %3267 = vmatpush.msra.mxu3 %v19878_v24  ;;  %3313 = vmatpush.msra.mxu1 %v19879_v41  ;;  %v19887_v24 = vld [vmem:[#allocation40_spill] sm:$0xff]  ;;  %v19889_v41 = vld [vmem:[#allocation42_spill] sm:$0xff] }
 0x1ea   : > { %v15529_v62 = vadd.f32 %v2151_v48, %v15324_v34  ;;  %v13892_v34 = vld [vmem:[%s14496_s22 + $0x258] sm:$0xff] }
 0x1eb   : > { %v15531_v35 = vpop.f32.mrf.mxu0  ;;  %v2293_v13 = vpop.f32.mrf.mxu3  ;;  %3268 = vmatpush.msra.mxu3 %v19882_v18  ;;  %3314 = vmatpush.msra.mxu1 %v19883_v33  ;;  %v13893_v48 = vld [vmem:[%s14496_s22 + $0x298] sm:$0xff]  ;;  %v13894_v18 = vld [vmem:[%s14496_s22 + $0x250] sm:$0xff] }
 0x1ec   : > { %19880 = vst [vmem:[#allocation27_spill] sm:$0xff] %v15529_v62  ;;  %v15536_v52 = vadd.f32 %v2293_v13, %v15336_v60  ;;  %v13895_v33 = vld [vmem:[%s14496_s22 + $0x290] sm:$0xff] }
 0x1ed   : > { %19881 = vst [vmem:[#allocation34_spill] sm:$0xff] %v15531_v35  ;;  %v15538_v21 = vpop.f32.mrf.mxu1  ;;  %3269 = vmatpush.msra.mxu3 %v19886_v51  ;;  %3315 = vmatpush.msra.mxu1 %v19887_v24  ;;  %v19888_v51 = vld [vmem:[#allocation35_spill] sm:$0xff]  ;;  %v13918_v35 = vld [vmem:[%s14496_s22 + $0x3c8] sm:$0xff] }
 0x1ee   : > { %19884 = vst [vmem:[#allocation29_spill] sm:$0xff] %v15536_v52  ;;  %13081 = vmatmul.msk.f32.vlgmr.msrb.gmra.mxu0 %vm626_vm1, %v15317_v9  ;;  %13085 = vmatmul.msk.f32.vlgmr.msrb.gmra.mxu2 %vm626_vm1, %v15317_v9  ;;  %v13896_v52 = vld [vmem:[%s14496_s22 + $0x248] sm:$0xff] }
 0x1ef   : > { %19885 = vst [vmem:[#allocation36_spill] sm:$0xff] %v15538_v21  ;;  %3198 = vmatpush.msrb.mxu0 %v13892_v34  ;;  %3244 = vmatpush.msrb.mxu2 %v13893_v48 }
 0x1f0   : > { %13088 = vmatmul.msk.f32.gmra.mxu3 %vm626_vm1, %v15343_v40  ;;  %13092 = vmatmul.msk.f32.gmra.mxu1 %vm626_vm1, %v15343_v40 }
 0x1f1   : > { %v2264_v60 = vpop.f32.mrf.mxu2  ;;  %3270 = vmatpush.msra.mxu3 %v19888_v51  ;;  %3316 = vmatpush.msra.mxu1 %v19889_v41  ;;  %v13897_v51 = vld [vmem:[%s14496_s22 + $0x288] sm:$0xff] }
 0x1f2   : > { %v15555_v13 = vadd.f32 %v2264_v60, %v15357_v47  ;;  %3199 = vmatpush.msrb.mxu0 %v13894_v18  ;;  %3245 = vmatpush.msrb.mxu2 %v13895_v33  ;;  %v13898_v47 = vld [vmem:[%s14496_s22 + $0x240] sm:$0xff]  ;;  %v19894_v18 = vld [vmem:[#allocation44_spill] sm:$0xff]  ;;  %v1946_v33 = vadd.f32 %v15387_v53, %v15194_v36  ;;  %v1917_v53 = vadd.f32 %v15405_v0, %v15200_v50  ;;  %v13903_v50 = vld [vmem:[%s14496_s22 + $0x310] sm:$0xff] }
 0x1f3   : > { %v15559_v24 = vpop.f32.mrf.mxu0  ;;  %v2296_v34 = vpop.f32.mrf.mxu3  ;;  %v13899_v60 = vld [vmem:[%s14496_s22 + $0x280] sm:$0xff]  ;;  %v13900_v36 = vld [vmem:[%s14496_s22 + $0x2d8] sm:$0xff] }
 0x1f4   : > { %19890 = vst [vmem:[#allocation31_spill] sm:$0xff] %v15559_v24  ;;  %v15562_v48 = vadd.f32 %v2296_v34, %v15365_v28  ;;  %3200 = vmatpush.msrb.mxu0 %v13896_v52  ;;  %3246 = vmatpush.msrb.mxu2 %v13897_v51  ;;  %v19893_v52 = vld [vmem:[#allocation37_spill] sm:$0xff] }
 0x1f5   : > { %v15566_v41 = vpop.f32.mrf.mxu1 }
 0x1f6   : > { %19891 = vst [vmem:[#allocation38_spill] sm:$0xff] %v15562_v48  ;;  %13082 = vmatmul.msk.f32.gmra.mxu0 %vm626_vm1, %v15343_v40  ;;  %13086 = vmatmul.msk.f32.gmra.mxu2 %vm626_vm1, %v15343_v40  ;;  %v19898_v48 = vld [vmem:[#allocation46_spill] sm:$0xff] }
 0x1f7   : > { %19892 = vst [vmem:[#allocation33_spill] sm:$0xff] %v15566_v41  ;;  %3201 = vmatpush.msrb.mxu0 %v13898_v47  ;;  %3247 = vmatpush.msrb.mxu2 %v13899_v60  ;;  %v19897_v60 = vld [vmem:[#allocation39_spill] sm:$0xff] }
 0x1f8   : > { %13095 = vmatmul.msk.f32.vlgmr.msrb.gmra.mxu3 %vm626_vm1, %v15317_v9  ;;  %13099 = vmatmul.msk.f32.vlgmr.msrb.gmra.mxu1 %vm626_vm1, %v15317_v9 }
 0x1f9   : > { %v2267_v28 = vpop.f32.mrf.mxu2  ;;  %3359 = vmatpush.msrb.mxu3 %v19893_v52  ;;  %3405 = vmatpush.msrb.mxu1 %v19894_v18  ;;  %v19901_v52 = vld [vmem:[#allocation41_spill] sm:$0xff]  ;;  %v19902_v18 = vld [vmem:[#allocation48_spill] sm:$0xff] }
 0x1fa   : > { %v15583_v34 = vadd.f32 %v2267_v28, %v15381_v38  ;;  %v13901_v38 = vld [vmem:[%s14496_s22 + $0x318] sm:$0xff]  ;;  %v19903_v28 = vld [vmem:[#allocation43_spill] sm:$0xff] }
 0x1fb   : > { %v15585_v51 = vpop.f32.mrf.mxu0  ;;  %v2394_v47 = vpop.f32.mrf.mxu3  ;;  %3360 = vmatpush.msrb.mxu3 %v19897_v60  ;;  %3406 = vmatpush.msrb.mxu1 %v19898_v48 }
 0x1fc   : > { %19895 = vst [vmem:[#allocation40_spill] sm:$0xff] %v15583_v34  ;;  %v15589_v24 = vadd.f32 %v2394_v47, %v1946_v33  ;;  %v19904_v33 = vld [vmem:[#allocation50_spill] sm:$0xff]  ;;  %v1949_v47 = vadd.f32 %v15413_v19, %v15218_v54  ;;  %v13906_v54 = vld [vmem:[%s14496_s22 + $0x2c0] sm:$0xff] }
 0x1fd   : > { %19896 = vst [vmem:[#allocation35_spill] sm:$0xff] %v15585_v51  ;;  %v15591_v63 = vpop.f32.mrf.mxu1  ;;  %3361 = vmatpush.msrb.mxu3 %v19901_v52  ;;  %3407 = vmatpush.msrb.mxu1 %v19902_v18  ;;  %v13902_v52 = vld [vmem:[%s14496_s22 + $0x2d0] sm:$0xff]  ;;  %v13907_v19 = vld [vmem:[%s14496_s22 + $0x300] sm:$0xff] }
 0x1fe   : > { %19899 = vst [vmem:[#allocation42_spill] sm:$0xff] %v15589_v24  ;;  %13089 = vmatmul.msk.f32.vlgmr.msra.gmra.mxu0 %vm626_vm1, %v15317_v9  ;;  %13093 = vmatmul.msk.f32.vlgmr.msra.gmra.mxu2 %vm626_vm1, %v15317_v9 }
 0x1ff   : > { %19900 = vst [vmem:[#allocation37_spill] sm:$0xff] %v15591_v63  ;;  %3290 = vmatpush.msra.mxu0 %v13900_v36  ;;  %3336 = vmatpush.msra.mxu2 %v13901_v38  ;;  %v13904_v38 = vld [vmem:[%s14496_s22 + $0x2c8] sm:$0xff] }
 0x200   : > { %13096 = vmatmul.msk.f32.gmra.mxu3 %vm626_vm1, %v15343_v40  ;;  %13100 = vmatmul.msk.f32.gmra.mxu1 %vm626_vm1, %v15343_v40 }
 0x201   : > { %v2371_v48 = vpop.f32.mrf.mxu2  ;;  %3362 = vmatpush.msrb.mxu3 %v19903_v28  ;;  %3408 = vmatpush.msrb.mxu1 %v19904_v33  ;;  %v13905_v28 = vld [vmem:[%s14496_s22 + $0x308] sm:$0xff] }
 0x202   : > { %v15611_v60 = vadd.f32 %v2371_v48, %v1917_v53  ;;  %3291 = vmatpush.msra.mxu0 %v13902_v52  ;;  %3337 = vmatpush.msra.mxu2 %v13903_v50  ;;  %v1920_v53 = vadd.f32 %v15429_v56, %v15228_v17  ;;  %v19910_v52 = vld [vmem:[#allocation52_spill] sm:$0xff]  ;;  %v19914_v17 = vld [vmem:[#allocation47_spill] sm:$0xff]  ;;  %v19915_v56 = vld [vmem:[#allocation53_spill] sm:$0xff] }
 0x203   : > { %v15615_v0 = vpop.f32.mrf.mxu0  ;;  %v2397_v18 = vpop.f32.mrf.mxu3 }
 0x204   : > { %19905 = vst [vmem:[#allocation44_spill] sm:$0xff] %v15611_v60  ;;  %v15617_v36 = vadd.f32 %v2397_v18, %v1949_v47  ;;  %3292 = vmatpush.msra.mxu0 %v13904_v38  ;;  %3338 = vmatpush.msra.mxu2 %v13905_v28  ;;  %v19909_v47 = vld [vmem:[#allocation45_spill] sm:$0xff] }
 0x205   : > { %19906 = vst [vmem:[#allocation39_spill] sm:$0xff] %v15615_v0  ;;  %v15621_v33 = vpop.f32.mrf.mxu1  ;;  %v13913_v0 = vld [vmem:[%s14496_s22 + $0x388] sm:$0xff] }
 0x206   : > { %19907 = vst [vmem:[#allocation46_spill] sm:$0xff] %v15617_v36  ;;  %13090 = vmatmul.msk.f32.gmra.mxu0 %vm626_vm1, %v15343_v40  ;;  %13094 = vmatmul.msk.f32.gmra.mxu2 %vm626_vm1, %v15343_v40 }
 0x207   : > { %19908 = vst [vmem:[#allocation41_spill] sm:$0xff] %v15621_v33  ;;  %3293 = vmatpush.msra.mxu0 %v13906_v54  ;;  %3339 = vmatpush.msra.mxu2 %v13907_v19  ;;  %v19917_v54 = vld [vmem:[#allocation49_spill] sm:$0xff]  ;;  %v19918_v19 = vld [vmem:[#allocation54_spill] sm:$0xff] }
 0x208   : > { %13103 = vmatmul.msk.f32.vlgmr.msra.gmra.mxu3 %vm626_vm1, %v15317_v9  ;;  %13107 = vmatmul.msk.f32.vlgmr.msra.gmra.mxu1 %vm626_vm1, %v15317_v9 }
 0x209   : > { %v2374_v48 = vpop.f32.mrf.mxu2  ;;  %3451 = vmatpush.msra.mxu3 %v19909_v47  ;;  %3497 = vmatpush.msra.mxu1 %v19910_v52  ;;  %v2033_v47 = vadd.f32 %v15453_v22, %v15247_v27 }
 0x20a   : > { %v15637_v50 = vadd.f32 %v2374_v48, %v1920_v53  ;;  %v13908_v53 = vld [vmem:[%s14496_s22 + $0x358] sm:$0xff] }
 0x20b   : > { %v15639_v18 = vpop.f32.mrf.mxu0  ;;  %v15641_v38 = vpop.f32.mrf.mxu3  ;;  %3452 = vmatpush.msra.mxu3 %v19914_v17  ;;  %3498 = vmatpush.msra.mxu1 %v19915_v56  ;;  %v13909_v48 = vld [vmem:[%s14496_s22 + $0x398] sm:$0xff]  ;;  %v19919_v17 = vld [vmem:[#allocation51_spill] sm:$0xff] }
 0x20c   : > { %19911 = vst [vmem:[#allocation48_spill] sm:$0xff] %v15637_v50  ;;  %v13910_v56 = vld [vmem:[%s14496_s22 + $0x350] sm:$0xff] }
 0x20d   : > { %19912 = vst [vmem:[#allocation43_spill] sm:$0xff] %v15639_v18  ;;  %v15645_v28 = vpop.f32.mrf.mxu1  ;;  %3453 = vmatpush.msra.mxu3 %v19917_v54  ;;  %3499 = vmatpush.msra.mxu1 %v19918_v19  ;;  %v13911_v19 = vld [vmem:[%s14496_s22 + $0x390] sm:$0xff] }
 0x20e   : > { %19913 = vst [vmem:[#allocation50_spill] sm:$0xff] %v15641_v38  ;;  %13097 = vmatmul.msk.f32.vlgmr.msrb.gmra.mxu0 %vm626_vm1, %v15317_v9  ;;  %13101 = vmatmul.msk.f32.vlgmr.msrb.gmra.mxu2 %vm626_vm1, %v15317_v9 }
 0x20f   : > { %19916 = vst [vmem:[#allocation45_spill] sm:$0xff] %v15645_v28  ;;  %3382 = vmatpush.msrb.mxu0 %v13908_v53  ;;  %3428 = vmatpush.msrb.mxu2 %v13909_v48  ;;  %v19921_v53 = vld [vmem:[#allocation55_spill] sm:$0xff]  ;;  %v13912_v48 = vld [vmem:[%s14496_s22 + $0x348] sm:$0xff] }
 0x210   : > { %13104 = vmatmul.msk.f32.gmra.mxu3 %vm626_vm1, %v15343_v40  ;;  %13108 = vmatmul.msk.f32.gmra.mxu1 %vm626_vm1, %v15343_v40 }
 0x211   : > { %v2463_v52 = vpop.f32.mrf.mxu2  ;;  %3454 = vmatpush.msra.mxu3 %v19919_v17  ;;  %3383 = vmatpush.msrb.mxu0 %v13910_v56  ;;  %v13914_v17 = vld [vmem:[%s14496_s22 + $0x340] sm:$0xff] }
 0x212   : > { %v15663_v54 = vadd.f32 %v2463_v52, %v2033_v47  ;;  %3429 = vmatpush.msrb.mxu2 %v13911_v19  ;;  %3500 = vmatpush.msra.mxu1 %v19921_v53  ;;  %v13915_v47 = vld [vmem:[%s14496_s22 + $0x380] sm:$0xff]  ;;  %v2036_v52 = vadd.f32 %v15477_v59, %v15267_v61  ;;  %v13916_v59 = vld [vmem:[%s14496_s22 + $0x3d8] sm:$0xff] }
 0x213   : > { %v15667_v27 = vpop.f32.mrf.mxu0  ;;  %v15669_v22 = vpop.f32.mrf.mxu3  ;;  %3384 = vmatpush.msrb.mxu0 %v13912_v48  ;;  %v15689_v19 = vld [vmem:[#allocation2 + $0x4] sm:$0xf] }
 0x214   : > { %19920 = vst [vmem:[#allocation52_spill] sm:$0xff] %v15663_v54  ;;  %3430 = vmatpush.msrb.mxu2 %v13913_v0 }
 0x215   : > { %19922 = vst [vmem:[#allocation47_spill] sm:$0xff] %v15667_v27  ;;  %v15673_v51 = vpop.f32.mrf.mxu1  ;;  %3385 = vmatpush.msrb.mxu0 %v13914_v17 }
 0x216   : > { %19923 = vst [vmem:[#allocation53_spill] sm:$0xff] %v15669_v22  ;;  %13098 = vmatmul.msk.f32.gmra.mxu0 %vm626_vm1, %v15343_v40  ;;  %13102 = vmatmul.msk.f32.gmra.mxu2 %vm626_vm1, %v15343_v40 }
 0x217   : > { %3431 = vmatpush.msrb.mxu2 %v13915_v47  ;;  %v13917_v47 = vld [vmem:[%s14496_s22 + $0x3d0] sm:$0xff] }
 0x218   : > { %13111 = vmatmul.msk.f32.vlgmr.msrb.gmra.mxu3 %vm626_vm1, %v15317_v9  ;;  %13115 = vmatmul.msk.f32.vlgmr.msrb.gmra.mxu1 %vm626_vm1, %v15317_v9 }
 0x219   : > { %v2466_v0 = vpop.f32.mrf.mxu2  ;;  %13128 = vmatpush.msk.msrb.mxu3 %vm1399_vm3, %v15689_v19  ;;  %13134 = vmatpush.msk.msrb.mxu1 %vm1399_vm3, %v15689_v19 }
 0x21a   : > { %v15687_v56 = vadd.f32 %v2466_v0, %v2036_v52 }
 0x21b   : > { %v15691_v53 = vpop.f32.mrf.mxu0  ;;  %v15693_v48 = vpop.f32.mrf.mxu3 }
 0x21c   : > { %19924 = vst [vmem:[#allocation49_spill] sm:$0xff] %v15687_v56 }
 0x21d   : > { %19925 = vst [vmem:[#allocation54_spill] sm:$0xff] %v15691_v53  ;;  %v15699_v61 = vpop.f32.mrf.mxu1 }
 0x21e   : > { %19926 = vst [vmem:[#allocation51_spill] sm:$0xff] %v15693_v48  ;;  %13105 = vmatmul.msk.f32.vlgmr.msra.gmra.mxu0 %vm626_vm1, %v15317_v9  ;;  %13109 = vmatmul.msk.f32.vlgmr.msra.gmra.mxu2 %vm626_vm1, %v15317_v9 }
 0x21f   : > { %3474 = vmatpush.msra.mxu0 %v13916_v59  ;;  %13125 = vmatpush.msk.msra.mxu2 %vm1399_vm3, %v15689_v19 }
 0x220   : > { %13112 = vmatmul.msk.f32.gmra.mxu3 %vm626_vm1, %v15343_v40  ;;  %13116 = vmatmul.msk.f32.gmra.mxu1 %vm626_vm1, %v15343_v40 }
 0x221   : > { %v15712_v17 = vpop.f32.mrf.mxu2  ;;  %3475 = vmatpush.msra.mxu0 %v13917_v47 }
 0x222   : > { %19927 = vst [vmem:[#allocation55_spill] sm:$0xff] %v15712_v17 }
 0x223   : > { %v15715_v52 = vpop.f32.mrf.mxu0  ;;  %v15717_v0 = vpop.f32.mrf.mxu3  ;;  %3476 = vmatpush.msra.mxu0 %v13918_v35 }
 0x224   : > { %19928 = vst [vmem:[#allocation85_spill] sm:$0xff] %v15715_v52 }
 0x225   : > { %19929 = vst [vmem:[#allocation86_spill] sm:$0xff] %v15717_v0  ;;  %v2766_v59 = vpop.f32.mrf.mxu1  ;;  %3477 = vmatpush.msra.mxu0 %v13919_v26 }
 0x226   : > { %13106 = vmatmul.msk.f32.gmra.mxu0 %vm626_vm1, %v15343_v40  ;;  %13110 = vmatmul.msk.f32.gmra.mxu2 %vm626_vm1, %v15343_v40 }
 0x228   : > { %13119 = vmatmul.msk.f32.vlgmr.msra.gmra.mxu3 %vm626_vm1, %v15317_v9  ;;  %13123 = vmatmul.msk.f32.vlgmr.msra.gmra.mxu1 %vm626_vm1, %v15317_v9 }
 0x229   : > { %v15729_v47 = vpop.f32.mrf.mxu2  ;;  %13140 = vmatpush.msk.msra.mxu3 %vm1399_vm3, %v15689_v19  ;;  %13146 = vmatpush.msk.msra.mxu1 %vm1399_vm3, %v15689_v19 }
 0x22a   : > { %19930 = vst [vmem:[#allocation87_spill] sm:$0xff] %v15729_v47 }
 0x22b   : > { %v15735_v26 = vpop.f32.mrf.mxu0  ;;  %v15737_v35 = vpop.f32.mrf.mxu3 }
 0x22c   : > { %19931 = vst [vmem:[#allocation88_spill] sm:$0xff] %v15735_v26 }
 0x22d   : > { %19932 = vst [vmem:[#allocation89_spill] sm:$0xff] %v15737_v35  ;;  %v2769_v0 = vpop.f32.mrf.mxu1 }
 0x22e   : > { %13113 = vmatmul.msk.f32.vlgmr.msrb.gmra.mxu0 %vm626_vm1, %v15317_v9  ;;  %13117 = vmatmul.msk.f32.vlgmr.msrb.gmra.mxu2 %vm626_vm1, %v15317_v9 }
 0x22f   : > { %13131 = vmatpush.msk.msrb.mxu0 %vm1399_vm3, %v15689_v19  ;;  %13137 = vmatpush.msk.msrb.mxu2 %vm1399_vm3, %v15689_v19 }
 0x230   : > { %13120 = vmatmul.msk.f32.gmra.mxu3 %vm626_vm1, %v15343_v40  ;;  %13124 = vmatmul.msk.f32.gmra.mxu1 %vm626_vm1, %v15343_v40 }
 0x231   : > { %v15751_v35 = vpop.f32.mrf.mxu2 }
 0x233   : > { %v15753_v26 = vpop.f32.mrf.mxu0  ;;  %v15755_v5 = vpop.f32.mrf.mxu3 }
 0x234   : > { %19933 = vst [vmem:[#allocation90_spill] sm:$0xff] %v15753_v26 }
 0x235   : > { %19934 = vst [vmem:[#allocation91_spill] sm:$0xff] %v15755_v5  ;;  %v15757_v52 = vpop.f32.mrf.mxu1 }
 0x236   : > { %13114 = vmatmul.msk.f32.gmra.mxu0 %vm626_vm1, %v15343_v40  ;;  %13118 = vmatmul.msk.f32.gmra.mxu2 %vm626_vm1, %v15343_v40 }
 0x239   : > { %v15763_v48 = vpop.f32.mrf.mxu2 }
 0x23a   : > { %19935 = vst [vmem:[#allocation92_spill] sm:$0xff] %v15763_v48 }
 0x23b   : > { %v15765_v53 = vpop.f32.mrf.mxu0  ;;  %v15767_v11 = vpop.f32.mrf.mxu3 }
 0x23c   : > { %19936 = vst [vmem:[#allocation93_spill] sm:$0xff] %v15765_v53  ;;  %13129 = vmatmul.msk.f32.vlgmr.msrb.gmra.mxu3 %vm1392_vm4, %v15767_v11 }
 0x23d   : > { %v15771_v26 = vpop.f32.mrf.mxu1  ;;  %13152 = vmatpush.msk.msrb.mxu3 %vm1399_vm3, %v15689_v19 }
 0x23e   : > { %13121 = vmatmul.msk.f32.vlgmr.msra.gmra.mxu0 %vm626_vm1, %v15317_v9  ;;  %13126 = vmatmul.msk.f32.vlgmr.msra.gmra.mxu2 %vm1392_vm4, %v2766_v59 }
 0x23f   : > { %13143 = vmatpush.msk.msra.mxu0 %vm1399_vm3, %v15689_v19  ;;  %13149 = vmatpush.msk.msra.mxu2 %vm1399_vm3, %v15689_v19 }
 0x241   : > { %v15782_v53 = vpop.f32.mrf.mxu2 }
 0x243   : > { %v15784_v5 = vpop.f32.mrf.mxu0  ;;  %v15786_v31 = vpop.f32.mrf.mxu3 }
 0x244   : > { %19937 = vst [vmem:[#allocation94_spill] sm:$0xff] %v15784_v5  ;;  %13130 = vmatmul.msk.f32.gmra.mxu3 %vm1392_vm4, %v15786_v31 }
 0x245   : > { %v15790_v22 = vpop.f32.mrf.mxu1 }
 0x246   : > { %13122 = vmatmul.msk.f32.gmra.mxu0 %vm626_vm1, %v15343_v40  ;;  %13127 = vmatmul.msk.f32.gmra.mxu2 %vm1392_vm4, %v2769_v0 }
 0x249   : > { %v15795_v59 = vpop.f32.mrf.mxu2 }
 0x24b   : > { %v15797_v9 = vpop.f32.mrf.mxu0  ;;  %v15799_v27 = vpop.f32.mrf.mxu3 }
 0x24c   : > { %13135 = vmatmul.msk.f32.vlgmr.msrb.gmra.mxu1 %vm1392_vm4, %v15799_v27 }
 0x24d   : > { %v15803_v5 = vpop.f32.mrf.mxu1  ;;  %13158 = vmatpush.msk.msrb.mxu1 %vm1399_vm3, %v15689_v19 }
 0x24e   : > { %13132 = vmatmul.msk.f32.vlgmr.msrb.gmra.mxu0 %vm1392_vm4, %v15757_v52  ;;  %13138 = vmatmul.msk.f32.vlgmr.msrb.gmra.mxu2 %vm1392_vm4, %v15790_v22 }
 0x24f   : > { %13155 = vmatpush.msk.msrb.mxu0 %vm1399_vm3, %v15689_v19  ;;  %13161 = vmatpush.msk.msrb.mxu2 %vm1399_vm3, %v15689_v19 }
 0x251   : > { %v15815_v40 = vpop.f32.mrf.mxu2 }
 0x253   : > { %v15817_v0 = vpop.f32.mrf.mxu0  ;;  %v15819_v38 = vpop.f32.mrf.mxu3 }
 0x254   : > { %13136 = vmatmul.msk.f32.gmra.mxu1 %vm1392_vm4, %v15819_v38 }
 0x255   : > { %v15823_v18 = vpop.f32.mrf.mxu1 }
 0x256   : > { %13133 = vmatmul.msk.f32.gmra.mxu0 %vm1392_vm4, %v15771_v26  ;;  %13139 = vmatmul.msk.f32.gmra.mxu2 %vm1392_vm4, %v15803_v5 }
 0x259   : > { %v15829_v33 = vpop.f32.mrf.mxu2 }
 0x25b   : > { %v15831_v20 = vpop.f32.mrf.mxu0  ;;  %v15833_v10 = vpop.f32.mrf.mxu3 }
 0x25c   : > { %13141 = vmatmul.msk.f32.vlgmr.msra.gmra.mxu3 %vm1392_vm4, %v15833_v10 }
 0x25d   : > { %v15837_v15 = vpop.f32.mrf.mxu1  ;;  %13164 = vmatpush.msk.msra.mxu3 %vm1399_vm3, %v15689_v19 }
 0x25e   : > { %13144 = vmatmul.msk.f32.vlgmr.msra.gmra.mxu0 %vm1392_vm4, %v15823_v18 }
 0x25f   : > { %13167 = vmatpush.msk.msra.mxu0 %vm1399_vm3, %v15689_v19 }
 0x261   : > { %v15845_v57 = vpop.f32.mrf.mxu2 }
 0x263   : > { %v15847_v6 = vpop.f32.mrf.mxu0  ;;  %v15849_v8 = vpop.f32.mrf.mxu3 }
 0x264   : > { %13142 = vmatmul.msk.f32.gmra.mxu3 %vm1392_vm4, %v15849_v8 }
 0x265   : > { %v15853_v39 = vpop.f32.mrf.mxu1 }
 0x266   : > { %13145 = vmatmul.msk.f32.gmra.mxu0 %vm1392_vm4, %v15837_v15  ;;  %13150 = vmatmul.msk.f32.vlgmr.msra.gmra.mxu2 %vm1392_vm4, %v15853_v39 }
 0x267   : > { %13173 = vmatpush.msk.msra.mxu2 %vm1399_vm3, %v15881_v44 }
 0x269   : > { %v15859_v1 = vpop.f32.mrf.mxu2 }
 0x26b   : > { %v15861_v42 = vpop.f32.mrf.mxu0  ;;  %v15863_v14 = vpop.f32.mrf.mxu3 }
 0x26c   : > { %13147 = vmatmul.msk.f32.vlgmr.msra.gmra.mxu1 %vm1392_vm4, %v15863_v14 }
 0x26d   : > { %v15867_v30 = vpop.f32.mrf.mxu1  ;;  %13170 = vmatpush.msk.msra.mxu1 %vm1399_vm3, %v15689_v19 }
 0x26e   : > { %13151 = vmatmul.msk.f32.gmra.mxu2 %vm1392_vm4, %v15867_v30 }
 0x271   : > { %v15873_v55 = vpop.f32.mrf.mxu2 }
 0x273   : > { %v15875_v63 = vpop.f32.mrf.mxu0  ;;  %v15877_v41 = vpop.f32.mrf.mxu3 }
 0x274   : > { %13148 = vmatmul.msk.f32.gmra.mxu1 %vm1392_vm4, %v15877_v41 }
 0x275   : > { %v15883_v36 = vpop.f32.mrf.mxu1 }
 0x276   : > { %13156 = vmatmul.msk.f32.vlgmr.msrb.gmra.mxu0 %vm1392_vm4, %v15883_v36 }
 0x277   : > { %13179 = vmatpush.msk.msrb.mxu0 %vm1399_vm3, %v15881_v44 }
 0x279   : > { %v15891_v19 = vpop.f32.mrf.mxu2 }
 0x27b   : > { %v15893_v43 = vpop.f32.mrf.mxu0  ;;  %v15895_v24 = vpop.f32.mrf.mxu3 }
 0x27c   : > { %13153 = vmatmul.msk.f32.vlgmr.msrb.gmra.mxu3 %vm1392_vm4, %v15895_v24 }
 0x27d   : > { %v15899_v21 = vpop.f32.mrf.mxu1  ;;  %13176 = vmatpush.msk.msrb.mxu3 %vm1399_vm3, %v15881_v44 }
 0x27e   : > { %13157 = vmatmul.msk.f32.gmra.mxu0 %vm1392_vm4, %v15899_v21 }
 0x281   : > { %v3157_v16 = vpop.f32.mrf.mxu2 }
 0x283   : > { %v15905_v47 = vpop.f32.mrf.mxu0  ;;  %v15907_v62 = vpop.f32.mrf.mxu3 }
 0x284   : > { %13154 = vmatmul.msk.f32.gmra.mxu3 %vm1392_vm4, %v15907_v62 }
 0x285   : > { %v15911_v29 = vpop.f32.mrf.mxu1 }
 0x286   : > { %13162 = vmatmul.msk.f32.vlgmr.msrb.gmra.mxu2 %vm1392_vm4, %v15911_v29 }
 0x287   : > { %13185 = vmatpush.msk.msrb.mxu2 %vm1399_vm3, %v15881_v44 }
 0x289   : > { %v3160_v58 = vpop.f32.mrf.mxu2 }
 0x28b   : > { %v15917_v17 = vpop.f32.mrf.mxu0  ;;  %v15919_v32 = vpop.f32.mrf.mxu3 }
 0x28c   : > { %13159 = vmatmul.msk.f32.vlgmr.msrb.gmra.mxu1 %vm1392_vm4, %v15919_v32 }
 0x28d   : > { %v15923_v46 = vpop.f32.mrf.mxu1  ;;  %13182 = vmatpush.msk.msrb.mxu1 %vm1399_vm3, %v15881_v44 }
 0x28e   : > { %19938 = vst [vmem:[#allocation95_spill] sm:$0xff] %v15923_v46  ;;  %13163 = vmatmul.msk.f32.gmra.mxu2 %vm1392_vm4, %v15923_v46 }
 0x291   : > { %v3249_v54 = vpop.f32.mrf.mxu2 }
 0x293   : > { %v15929_v56 = vpop.f32.mrf.mxu3  ;;  %v15933_v28 = vpop.f32.mrf.mxu0 }
 0x294   : > { %13160 = vmatmul.msk.f32.gmra.mxu1 %vm1392_vm4, %v15929_v56 }
 0x295   : > { %v15935_v25 = vpop.f32.mrf.mxu1 }
 0x296   : > { %13168 = vmatmul.msk.f32.vlgmr.msra.gmra.mxu0 %vm1392_vm4, %v15935_v25  ;;  %13174 = vmatmul.msk.f32.vlgmr.msra.gmra.mxu2 %vm1392_vm4, %v15782_v53 }
 0x297   : > { %13191 = vmatpush.msk.msra.mxu0 %vm1399_vm3, %v15881_v44  ;;  %13197 = vmatpush.msk.msra.mxu2 %vm1399_vm3, %v15881_v44 }
 0x299   : > { %v3252_v60 = vpop.f32.mrf.mxu2 }
 0x29b   : > { %v15945_v12 = vpop.f32.mrf.mxu3  ;;  %v3295_v53 = vpop.f32.mrf.mxu0 }
 0x29c   : > { %13165 = vmatmul.msk.f32.vlgmr.msra.gmra.mxu3 %vm1392_vm4, %v15945_v12 }
 0x29d   : > { %v15949_v50 = vpop.f32.mrf.mxu1  ;;  %13188 = vmatpush.msk.msra.mxu3 %vm1399_vm3, %v15881_v44 }
 0x29e   : > { %19939 = vst [vmem:[#allocation96_spill] sm:$0xff] %v15949_v50  ;;  %13169 = vmatmul.msk.f32.gmra.mxu0 %vm1392_vm4, %v15949_v50  ;;  %13175 = vmatmul.msk.f32.gmra.mxu2 %vm1392_vm4, %v15795_v59 }
 0x2a1   : > { %v3341_v34 = vpop.f32.mrf.mxu2 }
 0x2a3   : > { %v15957_v48 = vpop.f32.mrf.mxu3  ;;  %v3298_v59 = vpop.f32.mrf.mxu0 }
 0x2a4   : > { %13166 = vmatmul.msk.f32.gmra.mxu3 %vm1392_vm4, %v15957_v48 }
 0x2a6   : > { %13180 = vmatmul.msk.f32.vlgmr.msrb.gmra.mxu0 %vm1392_vm4, %v15815_v40  ;;  %13186 = vmatmul.msk.f32.vlgmr.msrb.gmra.mxu2 %vm1392_vm4, %v15845_v57 }
 0x2a7   : > { %13203 = vmatpush.msk.msrb.mxu0 %vm1399_vm3, %v15881_v44  ;;  %13209 = vmatpush.msk.msrb.mxu2 %vm1399_vm3, %v15881_v44 }
 0x2a9   : > { %v3344_v57 = vpop.f32.mrf.mxu2 }
 0x2ab   : > { %v15969_v50 = vpop.f32.mrf.mxu3  ;;  %v3387_v40 = vpop.f32.mrf.mxu0 }
 0x2ac   : > { %13171 = vmatmul.msk.f32.vlgmr.msra.gmra.mxu1 %vm1392_vm4, %v15969_v50  ;;  %13177 = vmatmul.msk.f32.vlgmr.msrb.gmra.mxu3 %vm1392_vm4, %v15797_v9  ;;  %v15989_v9 = vld [vmem:[#allocation2 + $0x1c] sm:$0xf] }
 0x2ad   : > { %13194 = vmatpush.msk.msra.mxu1 %vm1399_vm3, %v15881_v44  ;;  %13200 = vmatpush.msk.msrb.mxu3 %vm1399_vm3, %v15881_v44 }
 0x2ae   : > { %13181 = vmatmul.msk.f32.gmra.mxu0 %vm1392_vm4, %v15829_v33  ;;  %13187 = vmatmul.msk.f32.gmra.mxu2 %vm1392_vm4, %v15859_v1 }
 0x2b1   : > { %v3433_v1 = vpop.f32.mrf.mxu2 }
 0x2b3   : > { %v15983_v46 = vpop.f32.mrf.mxu3  ;;  %v3390_v33 = vpop.f32.mrf.mxu0 }
 0x2b4   : > { %13172 = vmatmul.msk.f32.gmra.mxu1 %vm1392_vm4, %v15983_v46  ;;  %13178 = vmatmul.msk.f32.gmra.mxu3 %vm1392_vm4, %v15817_v0  ;;  %v13926_v0 = vld [vmem:[%s14496_s22 + $0x18] sm:$0xff] }
 0x2b6   : > { %13192 = vmatmul.msk.f32.vlgmr.msra.gmra.mxu0 %vm1392_vm4, %v15873_v55  ;;  %13198 = vmatmul.msk.f32.vlgmr.msra.gmra.mxu2 %vm1392_vm4, %v3157_v16 }
 0x2b7   : > { %13215 = vmatpush.msk.msra.mxu0 %vm1399_vm3, %v15881_v44  ;;  %13221 = vmatpush.msk.msra.mxu2 %vm1399_vm3, %v15989_v9 }
 0x2b9   : > { %v3436_v16 = vpop.f32.mrf.mxu2 }
 0x2bb   : > { %v3479_v55 = vpop.f32.mrf.mxu0 }
 0x2bc   : > { %13183 = vmatmul.msk.f32.vlgmr.msrb.gmra.mxu1 %vm1392_vm4, %v15831_v20  ;;  %13189 = vmatmul.msk.f32.vlgmr.msra.gmra.mxu3 %vm1392_vm4, %v15861_v42  ;;  %v16055_v42 = vpop.f32.mrf.mxu1 }
 0x2bd   : > { %13206 = vmatpush.msk.msrb.mxu1 %vm1399_vm3, %v15881_v44  ;;  %13212 = vmatpush.msk.msra.mxu3 %vm1399_vm3, %v15881_v44 }
 0x2be   : > { %13193 = vmatmul.msk.f32.gmra.mxu0 %vm1392_vm4, %v15891_v19  ;;  %13199 = vmatmul.msk.f32.gmra.mxu2 %vm1392_vm4, %v3160_v58  ;;  %v13927_v19 = vld [vmem:[%s14496_s22 + $0x20] sm:$0xff] }
 0x2c1   : > { %v16029_v58 = vpop.f32.mrf.mxu2 }
 0x2c4   : > { %13184 = vmatmul.msk.f32.gmra.mxu1 %vm1392_vm4, %v15847_v6  ;;  %13190 = vmatmul.msk.f32.gmra.mxu3 %vm1392_vm4, %v15875_v63  ;;  %v3482_v63 = vpop.f32.mrf.mxu0 }
 0x2c6   : > { %13204 = vmatmul.msk.f32.vlgmr.msrb.gmra.mxu0 %vm1392_vm4, %v3249_v54  ;;  %13210 = vmatmul.msk.f32.vlgmr.msrb.gmra.mxu2 %vm1392_vm4, %v3341_v34 }
 0x2c7   : > { %13227 = vmatpush.msk.msrb.mxu0 %vm1399_vm3, %v15989_v9  ;;  %13233 = vmatpush.msk.msrb.mxu2 %vm1399_vm3, %v15989_v9 }
 0x2cc   : > { %13195 = vmatmul.msk.f32.vlgmr.msra.gmra.mxu1 %vm1392_vm4, %v15893_v43  ;;  %13201 = vmatmul.msk.f32.vlgmr.msrb.gmra.mxu3 %vm1392_vm4, %v15917_v17  ;;  %v16042_v43 = vpop.f32.mrf.mxu2 }
 0x2cd   : > { %13218 = vmatpush.msk.msra.mxu1 %vm1399_vm3, %v15881_v44  ;;  %13224 = vmatpush.msk.msrb.mxu3 %vm1399_vm3, %v15989_v9  ;;  %v16044_v44 = vpop.f32.mrf.mxu0 }
 0x2ce   : > { %13205 = vmatmul.msk.f32.gmra.mxu0 %vm1392_vm4, %v3252_v60  ;;  %13211 = vmatmul.msk.f32.gmra.mxu2 %vm1392_vm4, %v3344_v57 }
 0x2d4   : > { %13196 = vmatmul.msk.f32.gmra.mxu1 %vm1392_vm4, %v15905_v47  ;;  %13202 = vmatmul.msk.f32.gmra.mxu3 %vm1392_vm4, %v15933_v28  ;;  %v16059_v6 = vpop.f32.mrf.mxu2  ;;  %v13923_v47 = vld [vmem:[%s14496_s22 + $0x70] sm:$0xff] }
 0x2d5   : > { %v16061_v20 = vpop.f32.mrf.mxu0 }
 0x2d6   : > { %13216 = vmatmul.msk.f32.vlgmr.msra.gmra.mxu0 %vm1392_vm4, %v3433_v1  ;;  %13222 = vmatmul.msk.f32.vlgmr.msra.gmra.mxu2 %vm1392_vm4, %v15767_v11  ;;  %v16073_v11 = vpop.f32.mrf.mxu1 }
 0x2d7   : > { %13239 = vmatpush.msk.msra.mxu0 %vm1399_vm3, %v15989_v9  ;;  %13245 = vmatpush.msk.msra.mxu2 %vm1399_vm3, %v15989_v9 }
 0x2dc   : > { %13207 = vmatmul.msk.f32.vlgmr.msrb.gmra.mxu1 %vm1392_vm4, %v3295_v53  ;;  %13213 = vmatmul.msk.f32.vlgmr.msra.gmra.mxu3 %vm1392_vm4, %v3387_v40  ;;  %v2239_v53 = vadd.f32 %v15487_v23, %v15287_v49  ;;  %v13930_v23 = vld [vmem:[%s14496_s22 + $0x8] sm:$0xff]  ;;  %v13931_v40 = vld [vmem:[%s14496_s22] sm:$0xff] }
 0x2dd   : > { %13230 = vmatpush.msk.msrb.mxu1 %vm1399_vm3, %v15989_v9  ;;  %13236 = vmatpush.msk.msra.mxu3 %vm1399_vm3, %v15989_v9  ;;  %v16088_v34 = vpop.f32.mrf.mxu0 }
 0x2de   : > { %13217 = vmatmul.msk.f32.gmra.mxu0 %vm1392_vm4, %v3436_v16  ;;  %13223 = vmatmul.msk.f32.gmra.mxu2 %vm1392_vm4, %v15786_v31  ;;  %v16071_v31 = vpop.f32.mrf.mxu3  ;;  %19941 = vst [vmem:[#allocation98_spill] sm:$0xff] %v16088_v34  ;;  %v16092_v28 = vpop.f32.mrf.mxu1 }
 0x2df   : > { %19942 = vst [vmem:[#allocation99_spill] sm:$0xff] %v16092_v28 }
 0x2e4   : > { %13208 = vmatmul.msk.f32.gmra.mxu1 %vm1392_vm4, %v3298_v59  ;;  %13214 = vmatmul.msk.f32.gmra.mxu3 %vm1392_vm4, %v3390_v33  ;;  %v2730_v59 = vadd.f32 %v15699_v61, %v2239_v53  ;;  %v4916_v61 = vadd.s32 1, %v14499_v7  ;;  %v13932_v33 = vld [vmem:[%s14496_s22 + $0xb8] sm:$0xff]  ;;  %v13947_v53 = vld [vmem:[%s14496_s22 + $0x80] sm:$0xff] }
 0x2e6   : > { %13228 = vmatmul.msk.f32.vlgmr.msrb.gmra.mxu0 %vm1392_vm4, %v15799_v27  ;;  %13234 = vmatmul.msk.f32.vlgmr.msrb.gmra.mxu2 %vm1392_vm4, %v15833_v10  ;;  %v16086_v10 = vpop.f32.mrf.mxu2  ;;  %v16090_v60 = vpop.f32.mrf.mxu3  ;;  %vm4918_vm8 = vcmp.eq.s32.totalorder %v14489_v3, %v4916_v61 }
 0x2e7   : > { %13251 = vmatpush.msk.msrb.mxu0 %vm1399_vm3, %v15989_v9  ;;  %13257 = vmatpush.msk.msrb.mxu2 %vm1399_vm3, %v15989_v9  ;;  %19940 = vst [vmem:[#allocation97_spill] sm:$0xff] %v16086_v10 }
 0x2ec   : > { %13219 = vmatmul.msk.f32.vlgmr.msra.gmra.mxu1 %vm1392_vm4, %v3479_v55  ;;  %13225 = vmatmul.msk.f32.vlgmr.msrb.gmra.mxu3 %vm1392_vm4, %v15757_v52  ;;  %v13922_v52 = vld [vmem:[%s14496_s22 + $0x30] sm:$0xff]  ;;  %v16208_v55 = vsel %vm4918_vm8, 1.0, %v19841_v45 }
 0x2ed   : > { %13242 = vmatpush.msk.msra.mxu1 %vm1399_vm3, %v15989_v9  ;;  %13248 = vmatpush.msk.msrb.mxu3 %vm1399_vm3, %v15989_v9 }
 0x2ee   : > { %13229 = vmatmul.msk.f32.gmra.mxu0 %vm1392_vm4, %v15819_v38  ;;  %13235 = vmatmul.msk.f32.gmra.mxu2 %vm1392_vm4, %v15849_v8  ;;  %v16101_v8 = vpop.f32.mrf.mxu2  ;;  %v16106_v38 = vpop.f32.mrf.mxu0 }
 0x2ef   : > { %19943 = vst [vmem:[#allocation100_spill] sm:$0xff] %v16101_v8  ;;  %v16108_v54 = vpop.f32.mrf.mxu3 }
 0x2f0   : > { %19944 = vst [vmem:[#allocation101_spill] sm:$0xff] %v16106_v38 }
 0x2f4   : > { %13220 = vmatmul.msk.f32.gmra.mxu1 %vm1392_vm4, %v3482_v63  ;;  %13226 = vmatmul.msk.f32.gmra.mxu3 %vm1392_vm4, %v15771_v26  ;;  %v13936_v63 = vld [vmem:[%s14496_s22 + $0xa8] sm:$0xff] }
 0x2f6   : > { %13240 = vmatmul.msk.f32.vlgmr.msra.gmra.mxu0 %vm1392_vm4, %v15863_v14  ;;  %13246 = vmatmul.msk.f32.vlgmr.msra.gmra.mxu2 %vm1392_vm4, %v15895_v24  ;;  %v16114_v14 = vpop.f32.mrf.mxu1  ;;  %v16124_v24 = vpop.f32.mrf.mxu2 }
 0x2f7   : > { %13263 = vmatpush.msk.msra.mxu0 %vm1399_vm3, %v15989_v9  ;;  %4944 = vmatpush.msra.mxu2 %v19841_v45  ;;  %19945 = vst [vmem:[#allocation102_spill] sm:$0xff] %v16114_v14  ;;  %v16126_v27 = vpop.f32.mrf.mxu0 }
 0x2f8   : > { %19946 = vst [vmem:[#allocation103_spill] sm:$0xff] %v16126_v27 }
 0x2fc   : > { %13231 = vmatmul.msk.f32.vlgmr.msrb.gmra.mxu1 %vm1392_vm4, %v15790_v22  ;;  %13237 = vmatmul.msk.f32.vlgmr.msra.gmra.mxu3 %vm1392_vm4, %v15823_v18  ;;  %v16132_v18 = vpop.f32.mrf.mxu3 }
 0x2fd   : > { %13254 = vmatpush.msk.msrb.mxu1 %vm1399_vm3, %v15989_v9  ;;  %13260 = vmatpush.msk.msra.mxu3 %vm1399_vm3, %v15989_v9 }
 0x2fe   : > { %13241 = vmatmul.msk.f32.gmra.mxu0 %vm1392_vm4, %v15877_v41  ;;  %13247 = vmatmul.msk.f32.gmra.mxu2 %vm1392_vm4, %v15907_v62  ;;  %v16134_v22 = vpop.f32.mrf.mxu1  ;;  %v2236_v62 = vadd.f32 %v15465_v2, %v15271_v37  ;;  %v13920_v41 = vld [vmem:[%s14496_s22 + $0x38] sm:$0xff] }
 0x2ff   : > { %19947 = vst [vmem:[#allocation104_spill] sm:$0xff] %v16134_v22  ;;  %v16149_v2 = vpop.f32.mrf.mxu0 }
 0x300   : > { %19948 = vst [vmem:[#allocation105_spill] sm:$0xff] %v16149_v2 }
 0x304   : > { %13232 = vmatmul.msk.f32.gmra.mxu1 %vm1392_vm4, %v15803_v5  ;;  %13238 = vmatmul.msk.f32.gmra.mxu3 %vm1392_vm4, %v15837_v15  ;;  %v13921_v5 = vld [vmem:[%s14496_s22 + $0x78] sm:$0xff]  ;;  %v2729_v15 = vadd.f32 %v15673_v51, %v2236_v62  ;;  %v4915_v51 = vadd.s32 1, %v14491_v4  ;;  %v16158_v26 = vpop.f32.mrf.mxu3  ;;  %v13928_v4 = vld [vmem:[%s14496_s22 + $0x60] sm:$0xff]  ;;  %v13937_v62 = vld [vmem:[%s14496_s22 + $0xe8] sm:$0xff] }
 0x306   : > { %13252 = vmatmul.msk.f32.vlgmr.msrb.gmra.mxu0 %vm1392_vm4, %v15919_v32  ;;  %13258 = vmatmul.msk.f32.vlgmr.msrb.gmra.mxu2 %vm1392_vm4, %v15945_v12  ;;  %v13924_v32 = vld [vmem:[%s14496_s22 + $0x28] sm:$0xff]  ;;  %vm4917_vm7 = vcmp.eq.s32.totalorder %v14489_v3, %v4915_v51  ;;  %v13938_v3 = vld [vmem:[%s14496_s22 + $0x58] sm:$0xff]  ;;  %v19955_v51 = vld [vmem:[#allocation95_spill] sm:$0xff] }
 0x307   : > { %4987 = vmatpush.msrb.mxu0 %v13920_v41  ;;  %5033 = vmatpush.msrb.mxu2 %v13921_v5  ;;  %v13925_v12 = vld [vmem:[%s14496_s22 + $0x68] sm:$0xff]  ;;  %v16182_v57 = vsel %vm4917_vm7, 1.0, %v19841_v45  ;;  %v13939_v41 = vld [vmem:[%s14496_s22 + $0x98] sm:$0xff]  ;;  %v2731_v5 = vadd.f32 %v15751_v35, %v15555_v13 }
 0x308   : > { %19951 = vst [vmem:[#allocation108_spill] sm:$0xff] %v16182_v57  ;;  %v13944_v35 = vld [vmem:[%s14496_s22 + $0x48] sm:$0xff] }
 0x309   : > { %v3882_v17 = vpop.f32.mrf.mxu2  ;;  %4988 = vmatpush.msrb.mxu0 %v13922_v52  ;;  %5034 = vmatpush.msrb.mxu2 %v13923_v47  ;;  %v13942_v52 = vld [vmem:[%s14496_s22 + $0x50] sm:$0xff] }
 0x30a   : > { %v16147_v37 = vadd.f32 %v3882_v17, %v2729_v15  ;;  %v13940_v15 = vld [vmem:[%s14496_s22 + $0xa0] sm:$0xff]  ;;  %v13943_v47 = vld [vmem:[%s14496_s22 + $0x90] sm:$0xff] }
 0x30b   : > { %4989 = vmatpush.msrb.mxu0 %v13924_v32  ;;  %5035 = vmatpush.msrb.mxu2 %v13925_v12  ;;  %v13945_v32 = vld [vmem:[%s14496_s22 + $0x88] sm:$0xff] }
 0x30c   : > { %13243 = vmatmul.msk.f32.vlgmr.msra.gmra.mxu1 %vm1392_vm4, %v15853_v39  ;;  %13249 = vmatmul.msk.f32.vlgmr.msrb.gmra.mxu3 %vm1392_vm4, %v15883_v36  ;;  %v16168_v39 = vpop.f32.mrf.mxu1  ;;  %v13929_v36 = vld [vmem:[%s14496_s22 + $0x10] sm:$0xff] }
 0x30d   : > { %4964 = vmatpush.msrb.mxu3 %v13926_v0  ;;  %4990 = vmatpush.msrb.mxu0 %v13927_v19  ;;  %19949 = vst [vmem:[#allocation106_spill] sm:$0xff] %v16168_v39  ;;  %v19956_v0 = vld [vmem:[#allocation96_spill] sm:$0xff]  ;;  %v13946_v19 = vld [vmem:[%s14496_s22 + $0x40] sm:$0xff] }
 0x30e   : > { %13253 = vmatmul.msk.f32.gmra.mxu0 %vm1392_vm4, %v15929_v56  ;;  %13259 = vmatmul.msk.f32.gmra.mxu2 %vm1392_vm4, %v15957_v48 }
 0x30f   : > { %5036 = vmatpush.msrb.mxu2 %v13928_v4  ;;  %4965 = vmatpush.msrb.mxu3 %v13929_v36  ;;  %v19957_v4 = vld [vmem:[#allocation40_spill] sm:$0xff] }
 0x310   : > { %13266 = vmatpush.msk.msra.mxu1 %vm1399_vm3, %v15989_v9  ;;  %v16194_v9 = vpop.f32.mrf.mxu3  ;;  %v19958_v36 = vld [vmem:[#allocation92_spill] sm:$0xff] }
 0x311   : > { %v3885_v49 = vpop.f32.mrf.mxu2  ;;  %4966 = vmatpush.msrb.mxu3 %v13930_v23  ;;  %v13948_v23 = vld [vmem:[%s14496_s22 + $0x138] sm:$0xff] }
 0x312   : > { %v16177_v56 = vadd.f32 %v3885_v49, %v2730_v59  ;;  %v2732_v59 = vadd.f32 %v19958_v36, %v19957_v4  ;;  %v13962_v4 = vld [vmem:[%s14496_s22 + $0xc0] sm:$0xff] }
 0x313   : > { %v16179_v48 = vpop.f32.mrf.mxu0  ;;  %4967 = vmatpush.msrb.mxu3 %v13931_v40  ;;  %v13949_v40 = vld [vmem:[%s14496_s22 + $0x178] sm:$0xff]  ;;  %v13963_v36 = vld [vmem:[%s14496_s22 + $0x100] sm:$0xff] }
 0x314   : > { %19950 = vst [vmem:[#allocation107_spill] sm:$0xff] %v16179_v48  ;;  %13244 = vmatmul.msk.f32.gmra.mxu1 %vm1392_vm4, %v15867_v30  ;;  %13250 = vmatmul.msk.f32.gmra.mxu3 %vm1392_vm4, %v15899_v21  ;;  %v16196_v1 = vpop.f32.mrf.mxu1  ;;  %v13933_v30 = vld [vmem:[%s14496_s22 + $0xf8] sm:$0xff]  ;;  %v13934_v21 = vld [vmem:[%s14496_s22 + $0xb0] sm:$0xff]  ;;  %v14046_v48 = vld [vmem:[%s14496_s22 + $0x3c8] sm:$0xff] }
 0x315   : > { %19952 = vst [vmem:[#allocation109_spill] sm:$0xff] %v16196_v1 }
 0x316   : > { %13264 = vmatmul.msk.f32.vlgmr.msra.gmra.mxu0 %vm1392_vm4, %v15969_v50  ;;  %13271 = vmatmul.msk.f32.vlgmr.msra.gmra.mxu2 %vm626_vm1, %v16182_v57  ;;  %v13935_v50 = vld [vmem:[%s14496_s22 + $0xf0] sm:$0xff] }
 0x317   : > { %5079 = vmatpush.msra.mxu0 %v13932_v33  ;;  %5125 = vmatpush.msra.mxu2 %v13933_v30 }
 0x319   : > { %v16201_v7 = vpop.f32.mrf.mxu2  ;;  %5080 = vmatpush.msra.mxu0 %v13934_v21  ;;  %5126 = vmatpush.msra.mxu2 %v13935_v50  ;;  %v13950_v21 = vld [vmem:[%s14496_s22 + $0x130] sm:$0xff] }
 0x31a   : > { %v13951_v50 = vld [vmem:[%s14496_s22 + $0x170] sm:$0xff] }
 0x31b   : > { %v16205_v16 = vpop.f32.mrf.mxu0  ;;  %5081 = vmatpush.msra.mxu0 %v13936_v63  ;;  %5127 = vmatpush.msra.mxu2 %v13937_v62  ;;  %v13952_v62 = vld [vmem:[%s14496_s22 + $0x128] sm:$0xff] }
 0x31c   : > { %19953 = vst [vmem:[#allocation110_spill] sm:$0xff] %v16205_v16  ;;  %13255 = vmatmul.msk.f32.vlgmr.msrb.gmra.mxu1 %vm1392_vm4, %v15911_v29  ;;  %13261 = vmatmul.msk.f32.vlgmr.msra.gmra.mxu3 %vm1392_vm4, %v15935_v25  ;;  %v13941_v25 = vld [vmem:[%s14496_s22 + $0xe0] sm:$0xff]  ;;  %v16230_v13 = vpop.f32.mrf.mxu1 }
 0x31d   : > { %5010 = vmatpush.msrb.mxu1 %v13938_v3  ;;  %5056 = vmatpush.msra.mxu3 %v13939_v41  ;;  %19954 = vst [vmem:[#allocation111_spill] sm:$0xff] %v16230_v13  ;;  %v13953_v3 = vld [vmem:[%s14496_s22 + $0x168] sm:$0xff]  ;;  %v13954_v41 = vld [vmem:[%s14496_s22 + $0xd8] sm:$0xff] }
 0x31e   : > { %13265 = vmatmul.msk.f32.gmra.mxu0 %vm1392_vm4, %v15983_v46  ;;  %13272 = vmatmul.msk.f32.gmra.mxu2 %vm626_vm1, %v16208_v55 }
 0x31f   : > { %v3911_v29 = vpop.f32.mrf.mxu3  ;;  %5082 = vmatpush.msra.mxu0 %v13940_v15  ;;  %5128 = vmatpush.msra.mxu2 %v13941_v25  ;;  %v13956_v25 = vld [vmem:[%s14496_s22 + $0x120] sm:$0xff] }
 0x320   : > { %v16226_v17 = vadd.f32 %v3911_v29, %v2731_v5  ;;  %5011 = vmatpush.msrb.mxu1 %v13942_v52  ;;  %5057 = vmatpush.msra.mxu3 %v13943_v47  ;;  %v13955_v5 = vld [vmem:[%s14496_s22 + $0x118] sm:$0xff]  ;;  %v13957_v52 = vld [vmem:[%s14496_s22 + $0x160] sm:$0xff] }
 0x321   : > { %v16232_v46 = vpop.f32.mrf.mxu2  ;;  %v19961_v29 = vld [vmem:[#allocation44_spill] sm:$0xff] }
 0x322   : > { %5012 = vmatpush.msrb.mxu1 %v13944_v35  ;;  %5058 = vmatpush.msra.mxu3 %v13945_v32  ;;  %v3977_v15 = vadd.f32 %v16071_v31, %v19961_v29  ;;  %v13958_v35 = vld [vmem:[%s14496_s22 + $0xd0] sm:$0xff]  ;;  %v13969_v29 = vld [vmem:[%s14496_s22 + $0x1e8] sm:$0xff] }
 0x323   : > { %v16236_v12 = vpop.f32.mrf.mxu0  ;;  %v13959_v32 = vld [vmem:[%s14496_s22 + $0x110] sm:$0xff] }
 0x324   : > { %13256 = vmatmul.msk.f32.gmra.mxu1 %vm1392_vm4, %v19955_v51  ;;  %13262 = vmatmul.msk.f32.gmra.mxu3 %vm1392_vm4, %v19956_v0  ;;  %v13960_v0 = vld [vmem:[%s14496_s22 + $0xc8] sm:$0xff] }
 0x325   : > { %5013 = vmatpush.msrb.mxu1 %v13946_v19  ;;  %5059 = vmatpush.msra.mxu3 %v13947_v53  ;;  %v13961_v19 = vld [vmem:[%s14496_s22 + $0x108] sm:$0xff] }
 0x326   : > { %13275 = vmatmul.msk.f32.vlgmr.msrb.gmra.mxu0 %vm626_vm1, %v16182_v57  ;;  %13279 = vmatmul.msk.f32.vlgmr.msrb.gmra.mxu2 %vm626_vm1, %v16182_v57 }
 0x327   : > { %v3914_v49 = vpop.f32.mrf.mxu3  ;;  %5171 = vmatpush.msrb.mxu0 %v13948_v23  ;;  %5217 = vmatpush.msrb.mxu2 %v13949_v40  ;;  %v13964_v23 = vld [vmem:[%s14496_s22 + $0x1b8] sm:$0xff] }
 0x328   : > { %v16252_v61 = vadd.f32 %v3914_v49, %v2732_v59  ;;  %v19965_v59 = vld [vmem:[#allocation48_spill] sm:$0xff] }
 0x329   : > { %v16254_v33 = vpop.f32.mrf.mxu1  ;;  %v16256_v30 = vpop.f32.mrf.mxu2  ;;  %5172 = vmatpush.msrb.mxu0 %v13950_v21  ;;  %5218 = vmatpush.msrb.mxu2 %v13951_v50  ;;  %v3978_v49 = vadd.f32 %v16090_v60, %v19965_v59  ;;  %v13965_v40 = vld [vmem:[%s14496_s22 + $0x1f8] sm:$0xff]  ;;  %v13972_v59 = vld [vmem:[%s14496_s22 + $0x1a0] sm:$0xff] }
 0x32a   : > { %19959 = vst [vmem:[#allocation95_spill] sm:$0xff] %v16254_v33 }
 0x32b   : > { %19960 = vst [vmem:[#allocation96_spill] sm:$0xff] %v16256_v30  ;;  %v16260_v63 = vpop.f32.mrf.mxu0  ;;  %5173 = vmatpush.msrb.mxu0 %v13952_v62  ;;  %5219 = vmatpush.msrb.mxu2 %v13953_v3  ;;  %v13966_v62 = vld [vmem:[%s14496_s22 + $0x1b0] sm:$0xff] }
 0x32c   : > { %13267 = vmatmul.msk.f32.vlgmr.msra.gmra.mxu1 %vm1392_vm4, %v16055_v42  ;;  %13273 = vmatmul.msk.f32.vlgmr.msrb.gmra.mxu3 %vm626_vm1, %v16182_v57  ;;  %v13967_v3 = vld [vmem:[%s14496_s22 + $0x1f0] sm:$0xff] }
 0x32d   : > { %5102 = vmatpush.msra.mxu1 %v13954_v41  ;;  %5148 = vmatpush.msrb.mxu3 %v13955_v5  ;;  %v13968_v5 = vld [vmem:[%s14496_s22 + $0x1a8] sm:$0xff] }
 0x32e   : > { %13276 = vmatmul.msk.f32.gmra.mxu0 %vm626_vm1, %v16208_v55  ;;  %13280 = vmatmul.msk.f32.gmra.mxu2 %vm626_vm1, %v16208_v55 }
 0x32f   : > { %v4062_v42 = vpop.f32.mrf.mxu3  ;;  %5174 = vmatpush.msrb.mxu0 %v13956_v25  ;;  %5220 = vmatpush.msrb.mxu2 %v13957_v52  ;;  %v13970_v52 = vld [vmem:[%s14496_s22 + $0x158] sm:$0xff] }
 0x330   : > { %v16278_v47 = vadd.f32 %v4062_v42, %v3977_v15  ;;  %5103 = vmatpush.msra.mxu1 %v13958_v35  ;;  %5149 = vmatpush.msrb.mxu3 %v13959_v32  ;;  %v19969_v15 = vld [vmem:[#allocation64_spill] sm:$0xff]  ;;  %v19970_v42 = vld [vmem:[#allocation82_spill] sm:$0xff]  ;;  %v19971_v32 = vld [vmem:[#allocation45_spill] sm:$0xff] }
 0x331   : > { %v16282_v31 = vpop.f32.mrf.mxu1  ;;  %v16284_v51 = vpop.f32.mrf.mxu2  ;;  %v2123_v25 = vadd.f32 %v19970_v42, %v19969_v15  ;;  %v13971_v35 = vld [vmem:[%s14496_s22 + $0x198] sm:$0xff]  ;;  %v13977_v15 = vld [vmem:[%s14496_s22 + $0x188] sm:$0xff]  ;;  %v13978_v42 = vld [vmem:[%s14496_s22 + $0x140] sm:$0xff] }
 0x332   : > { %19962 = vst [vmem:[#allocation40_spill] sm:$0xff] %v16282_v31  ;;  %5104 = vmatpush.msra.mxu1 %v13960_v0  ;;  %5150 = vmatpush.msrb.mxu3 %v13961_v19  ;;  %v19972_v19 = vld [vmem:[#allocation52_spill] sm:$0xff] }
 0x333   : > { %19963 = vst [vmem:[#allocation92_spill] sm:$0xff] %v16284_v51  ;;  %v16288_v53 = vpop.f32.mrf.mxu0  ;;  %v2722_v0 = vadd.f32 %v19971_v32, %v2123_v25  ;;  %v13979_v25 = vld [vmem:[%s14496_s22 + $0x180] sm:$0xff] }
 0x334   : > { %19964 = vst [vmem:[#allocation44_spill] sm:$0xff] %v16288_v53  ;;  %13268 = vmatmul.msk.f32.gmra.mxu1 %vm1392_vm4, %v16073_v11  ;;  %13274 = vmatmul.msk.f32.gmra.mxu3 %vm626_vm1, %v16208_v55 }
 0x335   : > { %5105 = vmatpush.msra.mxu1 %v13962_v4  ;;  %5151 = vmatpush.msrb.mxu3 %v13963_v36  ;;  %v3985_v4 = vadd.f32 %v16108_v54, %v19972_v19  ;;  %v13975_v54 = vld [vmem:[%s14496_s22 + $0x190] sm:$0xff]  ;;  %v13981_v19 = vld [vmem:[%s14496_s22 + $0x278] sm:$0xff] }
 0x336   : > { %13283 = vmatmul.msk.f32.vlgmr.msra.gmra.mxu0 %vm626_vm1, %v16182_v57  ;;  %13287 = vmatmul.msk.f32.vlgmr.msra.gmra.mxu2 %vm626_vm1, %v16182_v57 }
 0x337   : > { %v4065_v11 = vpop.f32.mrf.mxu3  ;;  %5263 = vmatpush.msra.mxu0 %v13964_v23  ;;  %5309 = vmatpush.msra.mxu2 %v13965_v40  ;;  %v13974_v40 = vld [vmem:[%s14496_s22 + $0x150] sm:$0xff] }
 0x338   : > { %v16304_v21 = vadd.f32 %v4065_v11, %v3978_v49  ;;  %v13973_v49 = vld [vmem:[%s14496_s22 + $0x1e0] sm:$0xff]  ;;  %v3992_v11 = vadd.f32 %v16124_v24, %v2722_v0  ;;  %v13980_v0 = vld [vmem:[%s14496_s22 + $0x238] sm:$0xff] }
 0x339   : > { %v16306_v50 = vpop.f32.mrf.mxu1  ;;  %v16308_v60 = vpop.f32.mrf.mxu2  ;;  %5264 = vmatpush.msra.mxu0 %v13966_v62  ;;  %5310 = vmatpush.msra.mxu2 %v13967_v3 }
 0x33a   : > { %19966 = vst [vmem:[#allocation48_spill] sm:$0xff] %v16306_v50 }
 0x33b   : > { %19967 = vst [vmem:[#allocation112_spill] sm:$0xff] %v16308_v60  ;;  %v16312_v41 = vpop.f32.mrf.mxu0  ;;  %5265 = vmatpush.msra.mxu0 %v13968_v5  ;;  %5311 = vmatpush.msra.mxu2 %v13969_v29  ;;  %v13976_v29 = vld [vmem:[%s14496_s22 + $0x148] sm:$0xff]  ;;  %v16775_v60 = vld [vmem:[#allocation2 + $0x14] sm:$0xf] }
 0x33c   : > { %19968 = vst [vmem:[#allocation113_spill] sm:$0xff] %v16312_v41  ;;  %13277 = vmatmul.msk.f32.vlgmr.msrb.gmra.mxu1 %vm626_vm1, %v16182_v57  ;;  %13281 = vmatmul.msk.f32.vlgmr.msra.gmra.mxu3 %vm626_vm1, %v16182_v57 }
 0x33d   : > { %5194 = vmatpush.msrb.mxu1 %v13970_v52  ;;  %5240 = vmatpush.msra.mxu3 %v13971_v35  ;;  %v19976_v52 = vld [vmem:[#allocation49_spill] sm:$0xff] }
 0x33e   : > { %13284 = vmatmul.msk.f32.gmra.mxu0 %vm626_vm1, %v16208_v55  ;;  %13288 = vmatmul.msk.f32.gmra.mxu2 %vm626_vm1, %v16208_v55  ;;  %v3986_v35 = vadd.f32 %v16132_v18, %v19976_v52  ;;  %v13982_v18 = vld [vmem:[%s14496_s22 + $0x230] sm:$0xff] }
 0x33f   : > { %v4178_v36 = vpop.f32.mrf.mxu3  ;;  %5266 = vmatpush.msra.mxu0 %v13972_v59  ;;  %5312 = vmatpush.msra.mxu2 %v13973_v49  ;;  %v13983_v49 = vld [vmem:[%s14496_s22 + $0x270] sm:$0xff] }
 0x340   : > { %v16334_v23 = vadd.f32 %v4178_v36, %v3985_v4  ;;  %5195 = vmatpush.msrb.mxu1 %v13974_v40  ;;  %5241 = vmatpush.msra.mxu3 %v13975_v54  ;;  %v19979_v40 = vld [vmem:[#allocation25_spill] sm:$0xff] }
 0x341   : > { %v16338_v62 = vpop.f32.mrf.mxu1  ;;  %v4268_v3 = vpop.f32.mrf.mxu2 }
 0x342   : > { %19973 = vst [vmem:[#allocation64_spill] sm:$0xff] %v16338_v62  ;;  %v16340_v5 = vadd.f32 %v4268_v3, %v3992_v11  ;;  %5196 = vmatpush.msrb.mxu1 %v13976_v29  ;;  %5242 = vmatpush.msra.mxu3 %v13977_v15  ;;  %v19978_v11 = vld [vmem:[#allocation68_spill] sm:$0xff]  ;;  %v13984_v15 = vld [vmem:[%s14496_s22 + $0x228] sm:$0xff] }
 0x343   : > { %v16344_v24 = vpop.f32.mrf.mxu0  ;;  %v2149_v54 = vadd.f32 %v19979_v40, %v19978_v11  ;;  %v13991_v11 = vld [vmem:[%s14496_s22 + $0x210] sm:$0xff] }
 0x344   : > { %19974 = vst [vmem:[#allocation82_spill] sm:$0xff] %v16340_v5  ;;  %13278 = vmatmul.msk.f32.gmra.mxu1 %vm626_vm1, %v16208_v55  ;;  %13282 = vmatmul.msk.f32.gmra.mxu3 %vm626_vm1, %v16208_v55 }
 0x345   : > { %19975 = vst [vmem:[#allocation45_spill] sm:$0xff] %v16344_v24  ;;  %5197 = vmatpush.msrb.mxu1 %v13978_v42  ;;  %5243 = vmatpush.msra.mxu3 %v13979_v25  ;;  %v13985_v42 = vld [vmem:[%s14496_s22 + $0x268] sm:$0xff]  ;;  %v19982_v25 = vld [vmem:[#allocation55_spill] sm:$0xff] }
 0x346   : > { %13291 = vmatmul.msk.f32.vlgmr.msrb.gmra.mxu0 %vm626_vm1, %v16182_v57  ;;  %13295 = vmatmul.msk.f32.vlgmr.msrb.gmra.mxu2 %vm626_vm1, %v16182_v57  ;;  %v2723_v52 = vadd.f32 %v19982_v25, %v2149_v54  ;;  %v19985_v54 = vld [vmem:[#allocation56_spill] sm:$0xff] }
 0x347   : > { %v4181_v32 = vpop.f32.mrf.mxu3  ;;  %5355 = vmatpush.msrb.mxu0 %v13980_v0  ;;  %5401 = vmatpush.msrb.mxu2 %v13981_v19  ;;  %v13988_v19 = vld [vmem:[%s14496_s22 + $0x220] sm:$0xff] }
 0x348   : > { %v16360_v4 = vadd.f32 %v4181_v32, %v3986_v35  ;;  %v13987_v35 = vld [vmem:[%s14496_s22 + $0x218] sm:$0xff]  ;;  %v3993_v32 = vadd.f32 %v16158_v26, %v2723_v52  ;;  %v13992_v52 = vld [vmem:[%s14496_s22 + $0x1c8] sm:$0xff] }
 0x349   : > { %v16362_v36 = vpop.f32.mrf.mxu1  ;;  %v4381_v59 = vpop.f32.mrf.mxu2  ;;  %5356 = vmatpush.msrb.mxu0 %v13982_v18  ;;  %5402 = vmatpush.msrb.mxu2 %v13983_v49  ;;  %v13990_v49 = vld [vmem:[%s14496_s22 + $0x1d0] sm:$0xff] }
 0x34a   : > { %19977 = vst [vmem:[#allocation52_spill] sm:$0xff] %v16362_v36  ;;  %v16369_v3 = vadd.f32 %v4381_v59, %v16147_v37  ;;  %v13986_v37 = vld [vmem:[%s14496_s22 + $0x1d8] sm:$0xff]  ;;  %v13989_v59 = vld [vmem:[%s14496_s22 + $0x260] sm:$0xff] }
 0x34b   : > { %v16371_v29 = vpop.f32.mrf.mxu0  ;;  %5357 = vmatpush.msrb.mxu0 %v13984_v15  ;;  %5403 = vmatpush.msrb.mxu2 %v13985_v42  ;;  %v19986_v15 = vld [vmem:[#allocation70_spill] sm:$0xff] }
 0x34c   : > { %19980 = vst [vmem:[#allocation49_spill] sm:$0xff] %v16369_v3  ;;  %13285 = vmatmul.msk.f32.vlgmr.msra.gmra.mxu1 %vm626_vm1, %v16182_v57  ;;  %13289 = vmatmul.msk.f32.vlgmr.msrb.gmra.mxu3 %vm626_vm1, %v16182_v57  ;;  %v1888_v42 = vadd.f32 %v19986_v15, %v19985_v54 }
 0x34d   : > { %19981 = vst [vmem:[#allocation68_spill] sm:$0xff] %v16371_v29  ;;  %5286 = vmatpush.msra.mxu1 %v13986_v37  ;;  %5332 = vmatpush.msrb.mxu3 %v13987_v35  ;;  %v13993_v37 = vld [vmem:[%s14496_s22 + $0x208] sm:$0xff] }
 0x34e   : > { %13292 = vmatmul.msk.f32.gmra.mxu0 %vm626_vm1, %v16208_v55  ;;  %13296 = vmatmul.msk.f32.gmra.mxu2 %vm626_vm1, %v16208_v55 }
 0x34f   : > { %v4294_v0 = vpop.f32.mrf.mxu3  ;;  %5358 = vmatpush.msrb.mxu0 %v13988_v19  ;;  %5404 = vmatpush.msrb.mxu2 %v13989_v59  ;;  %v19990_v19 = vld [vmem:[#allocation27_spill] sm:$0xff] }
 0x350   : > { %v16389_v18 = vadd.f32 %v4294_v0, %v3993_v32  ;;  %5287 = vmatpush.msra.mxu1 %v13990_v49  ;;  %5333 = vmatpush.msrb.mxu3 %v13991_v11  ;;  %v19989_v32 = vld [vmem:[#allocation32_spill] sm:$0xff]  ;;  %v19991_v59 = vld [vmem:[#allocation87_spill] sm:$0xff]  ;;  %v13995_v11 = vld [vmem:[%s14496_s22 + $0x200] sm:$0xff] }
 0x351   : > { %v16393_v26 = vpop.f32.mrf.mxu1  ;;  %v4384_v40 = vpop.f32.mrf.mxu2  ;;  %v2705_v0 = vadd.f32 %v19989_v32, %v1888_v42  ;;  %v2724_v49 = vadd.f32 %v19991_v59, %v19990_v19  ;;  %v13996_v42 = vld [vmem:[%s14496_s22 + $0x2b8] sm:$0xff]  ;;  %v13999_v19 = vld [vmem:[%s14496_s22 + $0x2f0] sm:$0xff]  ;;  %v19994_v59 = vld [vmem:[#allocation57_spill] sm:$0xff] }
 0x352   : > { %19983 = vst [vmem:[#allocation25_spill] sm:$0xff] %v16389_v18  ;;  %v16398_v25 = vadd.f32 %v4384_v40, %v16177_v56  ;;  %5288 = vmatpush.msra.mxu1 %v13992_v52  ;;  %5334 = vmatpush.msrb.mxu3 %v13993_v37  ;;  %v13994_v56 = vld [vmem:[%s14496_s22 + $0x1c0] sm:$0xff]  ;;  %v13997_v52 = vld [vmem:[%s14496_s22 + $0x2f8] sm:$0xff] }
 0x353   : > { %19984 = vst [vmem:[#allocation55_spill] sm:$0xff] %v16393_v26  ;;  %v16402_v35 = vpop.f32.mrf.mxu0  ;;  %v3975_v40 = vadd.f32 %v16029_v58, %v2705_v0  ;;  %v3994_v54 = vadd.f32 %v16194_v9, %v2724_v49  ;;  %v13998_v0 = vld [vmem:[%s14496_s22 + $0x2b0] sm:$0xff]  ;;  %v19995_v49 = vld [vmem:[#allocation73_spill] sm:$0xff] }
 0x354   : > { %19987 = vst [vmem:[#allocation56_spill] sm:$0xff] %v16398_v25  ;;  %13286 = vmatmul.msk.f32.gmra.mxu1 %vm626_vm1, %v16208_v55  ;;  %13290 = vmatmul.msk.f32.gmra.mxu3 %vm626_vm1, %v16208_v55 }
 0x355   : > { %19988 = vst [vmem:[#allocation70_spill] sm:$0xff] %v16402_v35  ;;  %5289 = vmatpush.msra.mxu1 %v13994_v56  ;;  %5335 = vmatpush.msrb.mxu3 %v13995_v11  ;;  %v4474_v37 = vadd.f32 %v16201_v7, %v3975_v40  ;;  %v1891_v56 = vadd.f32 %v19995_v49, %v19994_v59  ;;  %v14000_v7 = vld [vmem:[%s14496_s22 + $0x2a8] sm:$0xff]  ;;  %v14005_v59 = vld [vmem:[%s14496_s22 + $0x2e0] sm:$0xff] }
 0x356   : > { %13299 = vmatmul.msk.f32.vlgmr.msra.gmra.mxu0 %vm626_vm1, %v16182_v57  ;;  %13303 = vmatmul.msk.f32.vlgmr.msra.gmra.mxu2 %vm626_vm1, %v16182_v57  ;;  %v14001_v40 = vld [vmem:[%s14496_s22 + $0x2e8] sm:$0xff] }
 0x357   : > { %v4297_v15 = vpop.f32.mrf.mxu3  ;;  %5447 = vmatpush.msra.mxu0 %v13996_v42  ;;  %5493 = vmatpush.msra.mxu2 %v13997_v52  ;;  %v14002_v52 = vld [vmem:[%s14496_s22 + $0x258] sm:$0xff]  ;;  %v14041_v35 = vld [vmem:[%s14496_s22 + $0x388] sm:$0xff] }
 0x358   : > { %v16422_v32 = vadd.f32 %v4297_v15, %v3994_v54  ;;  %v19997_v54 = vld [vmem:[#allocation36_spill] sm:$0xff] }
 0x359   : > { %v16424_v58 = vpop.f32.mrf.mxu1  ;;  %v4526_v9 = vpop.f32.mrf.mxu2  ;;  %5448 = vmatpush.msra.mxu0 %v13998_v0  ;;  %5494 = vmatpush.msra.mxu2 %v13999_v19  ;;  %v2706_v15 = vadd.f32 %v19997_v54, %v1891_v56  ;;  %v14004_v19 = vld [vmem:[%s14496_s22 + $0x2a0] sm:$0xff] }
 0x35a   : > { %19992 = vst [vmem:[#allocation32_spill] sm:$0xff] %v16422_v32  ;;  %v16430_v11 = vadd.f32 %v4526_v9, %v4474_v37  ;;  %v14003_v37 = vld [vmem:[%s14496_s22 + $0x298] sm:$0xff] }
 0x35b   : > { %19993 = vst [vmem:[#allocation27_spill] sm:$0xff] %v16424_v58  ;;  %v16432_v42 = vpop.f32.mrf.mxu0  ;;  %5449 = vmatpush.msra.mxu0 %v14000_v7  ;;  %5495 = vmatpush.msra.mxu2 %v14001_v40  ;;  %v3976_v9 = vadd.f32 %v16042_v43, %v2706_v15  ;;  %v14006_v43 = vld [vmem:[%s14496_s22 + $0x250] sm:$0xff]  ;;  %v14040_v58 = vld [vmem:[%s14496_s22 + $0x348] sm:$0xff] }
 0x35c   : > { %19996 = vst [vmem:[#allocation87_spill] sm:$0xff] %v16432_v42  ;;  %13293 = vmatmul.msk.f32.vlgmr.msrb.gmra.mxu1 %vm626_vm1, %v16182_v57  ;;  %13297 = vmatmul.msk.f32.vlgmr.msra.gmra.mxu3 %vm626_vm1, %v16182_v57  ;;  %v14007_v7 = vld [vmem:[%s14496_s22 + $0x290] sm:$0xff] }
 0x35d   : > { %5378 = vmatpush.msrb.mxu1 %v14002_v52  ;;  %5424 = vmatpush.msra.mxu3 %v14003_v37  ;;  %v4475_v49 = vadd.f32 %v16232_v46, %v3976_v9  ;;  %v14008_v52 = vld [vmem:[%s14496_s22 + $0x248] sm:$0xff]  ;;  %v14011_v9 = vld [vmem:[%s14496_s22 + $0x280] sm:$0xff] }
 0x35e   : > { %13300 = vmatmul.msk.f32.gmra.mxu0 %vm626_vm1, %v16208_v55  ;;  %13304 = vmatmul.msk.f32.gmra.mxu2 %vm626_vm1, %v16208_v55  ;;  %v14009_v37 = vld [vmem:[%s14496_s22 + $0x288] sm:$0xff] }
 0x35f   : > { %v4410_v0 = vpop.f32.mrf.mxu3  ;;  %5450 = vmatpush.msra.mxu0 %v14004_v19  ;;  %5496 = vmatpush.msra.mxu2 %v14005_v59  ;;  %v14012_v19 = vld [vmem:[%s14496_s22 + $0x338] sm:$0xff] }
 0x360   : > { %v16452_v56 = vadd.f32 %v4410_v0, %v16226_v17  ;;  %5379 = vmatpush.msrb.mxu1 %v14006_v43  ;;  %5425 = vmatpush.msra.mxu3 %v14007_v7  ;;  %v14010_v17 = vld [vmem:[%s14496_s22 + $0x240] sm:$0xff]  ;;  %v14013_v59 = vld [vmem:[%s14496_s22 + $0x378] sm:$0xff] }
 0x361   : > { %v16456_v40 = vpop.f32.mrf.mxu1  ;;  %v4529_v54 = vpop.f32.mrf.mxu2 }
 0x362   : > { %19998 = vst [vmem:[#allocation57_spill] sm:$0xff] %v16452_v56  ;;  %v16458_v15 = vadd.f32 %v4529_v54, %v4475_v49  ;;  %5380 = vmatpush.msrb.mxu1 %v14008_v52  ;;  %5426 = vmatpush.msra.mxu3 %v14009_v37  ;;  %v14014_v54 = vld [vmem:[%s14496_s22 + $0x330] sm:$0xff]  ;;  %v14047_v56 = vld [vmem:[%s14496_s22 + $0x3c0] sm:$0xff] }
 0x363   : > { %19999 = vst [vmem:[#allocation73_spill] sm:$0xff] %v16456_v40  ;;  %v16462_v46 = vpop.f32.mrf.mxu0  ;;  %v14015_v52 = vld [vmem:[%s14496_s22 + $0x370] sm:$0xff]  ;;  %v14033_v40 = vld [vmem:[%s14496_s22 + $0x3e8] sm:$0xff] }
 0x364   : > { %13294 = vmatmul.msk.f32.gmra.mxu1 %vm626_vm1, %v16208_v55  ;;  %13298 = vmatmul.msk.f32.gmra.mxu3 %vm626_vm1, %v16208_v55 }
 0x365   : > { %5381 = vmatpush.msrb.mxu1 %v14010_v17  ;;  %5427 = vmatpush.msra.mxu3 %v14011_v9  ;;  %v14016_v17 = vld [vmem:[%s14496_s22 + $0x328] sm:$0xff] }
 0x366   : > { %13307 = vmatmul.msk.f32.vlgmr.msrb.gmra.mxu0 %vm626_vm1, %v16182_v57  ;;  %13311 = vmatmul.msk.f32.vlgmr.msrb.gmra.mxu2 %vm626_vm1, %v16182_v57  ;;  %v14017_v9 = vld [vmem:[%s14496_s22 + $0x368] sm:$0xff] }
 0x367   : > { %v4413_v0 = vpop.f32.mrf.mxu3  ;;  %5539 = vmatpush.msrb.mxu0 %v14012_v19  ;;  %5585 = vmatpush.msrb.mxu2 %v14013_v59  ;;  %v14020_v59 = vld [vmem:[%s14496_s22 + $0x320] sm:$0xff] }
 0x368   : > { %v16477_v49 = vadd.f32 %v4413_v0, %v16252_v61  ;;  %v14018_v61 = vld [vmem:[%s14496_s22 + $0x2d8] sm:$0xff] }
 0x369   : > { %v16479_v43 = vpop.f32.mrf.mxu1  ;;  %v16481_v7 = vpop.f32.mrf.mxu2  ;;  %5540 = vmatpush.msrb.mxu0 %v14014_v54  ;;  %5586 = vmatpush.msrb.mxu2 %v14015_v52  ;;  %v14019_v0 = vld [vmem:[%s14496_s22 + $0x318] sm:$0xff]  ;;  %v14021_v54 = vld [vmem:[%s14496_s22 + $0x360] sm:$0xff] }
 0x36a   : > { %20000 = vst [vmem:[#allocation36_spill] sm:$0xff] %v16477_v49 }
 0x36b   : > { %20001 = vst [vmem:[#allocation114_spill] sm:$0xff] %v16479_v43  ;;  %v16485_v37 = vpop.f32.mrf.mxu0  ;;  %5541 = vmatpush.msrb.mxu0 %v14016_v17  ;;  %5587 = vmatpush.msrb.mxu2 %v14017_v9  ;;  %v14022_v17 = vld [vmem:[%s14496_s22 + $0x2d0] sm:$0xff]  ;;  %v14024_v43 = vld [vmem:[%s14496_s22 + $0x2c8] sm:$0xff] }
 0x36c   : > { %20002 = vst [vmem:[#allocation115_spill] sm:$0xff] %v16481_v7  ;;  %13301 = vmatmul.msk.f32.vlgmr.msra.gmra.mxu1 %vm626_vm1, %v16182_v57  ;;  %13305 = vmatmul.msk.f32.vlgmr.msrb.gmra.mxu3 %vm626_vm1, %v16182_v57  ;;  %v14023_v9 = vld [vmem:[%s14496_s22 + $0x310] sm:$0xff] }
 0x36d   : > { %20003 = vst [vmem:[#allocation116_spill] sm:$0xff] %v16485_v37  ;;  %5470 = vmatpush.msra.mxu1 %v14018_v61  ;;  %5516 = vmatpush.msrb.mxu3 %v14019_v0 }
 0x36e   : > { %13308 = vmatmul.msk.f32.gmra.mxu0 %vm626_vm1, %v16208_v55  ;;  %13312 = vmatmul.msk.f32.gmra.mxu2 %vm626_vm1, %v16208_v55 }
 0x36f   : > { %v4549_v19 = vpop.f32.mrf.mxu3  ;;  %5542 = vmatpush.msrb.mxu0 %v14020_v59  ;;  %5588 = vmatpush.msrb.mxu2 %v14021_v54  ;;  %v14025_v59 = vld [vmem:[%s14496_s22 + $0x308] sm:$0xff]  ;;  %v14028_v54 = vld [vmem:[%s14496_s22 + $0x3b8] sm:$0xff] }
 0x370   : > { %v16502_v52 = vadd.f32 %v4549_v19, %v16278_v47  ;;  %5471 = vmatpush.msra.mxu1 %v14022_v17  ;;  %5517 = vmatpush.msrb.mxu3 %v14023_v9  ;;  %v14026_v47 = vld [vmem:[%s14496_s22 + $0x2c0] sm:$0xff]  ;;  %v14029_v17 = vld [vmem:[%s14496_s22 + $0x3f8] sm:$0xff] }
 0x371   : > { %v16506_v61 = vpop.f32.mrf.mxu1  ;;  %v16508_v0 = vpop.f32.mrf.mxu2  ;;  %v14027_v19 = vld [vmem:[%s14496_s22 + $0x300] sm:$0xff] }
 0x372   : > { %20004 = vst [vmem:[#allocation117_spill] sm:$0xff] %v16506_v61  ;;  %5472 = vmatpush.msra.mxu1 %v14024_v43  ;;  %5518 = vmatpush.msrb.mxu3 %v14025_v59  ;;  %v14031_v61 = vld [vmem:[%s14496_s22 + $0x3f0] sm:$0xff] }
 0x373   : > { %20005 = vst [vmem:[#allocation118_spill] sm:$0xff] %v16508_v0  ;;  %v16512_v31 = vpop.f32.mrf.mxu0 }
 0x374   : > { %20006 = vst [vmem:[#allocation119_spill] sm:$0xff] %v16512_v31  ;;  %13302 = vmatmul.msk.f32.gmra.mxu1 %vm626_vm1, %v16208_v55  ;;  %13306 = vmatmul.msk.f32.gmra.mxu3 %vm626_vm1, %v16208_v55 }
 0x375   : > { %5473 = vmatpush.msra.mxu1 %v14026_v47  ;;  %5519 = vmatpush.msrb.mxu3 %v14027_v19  ;;  %v14030_v19 = vld [vmem:[%s14496_s22 + $0x3b0] sm:$0xff] }
 0x376   : > { %13315 = vmatmul.msk.f32.vlgmr.msra.gmra.mxu0 %vm626_vm1, %v16182_v57  ;;  %13319 = vmatmul.msk.f32.vlgmr.msra.gmra.mxu2 %vm626_vm1, %v16182_v57 }
 0x377   : > { %v4552_v43 = vpop.f32.mrf.mxu3  ;;  %5631 = vmatpush.msra.mxu0 %v14028_v54  ;;  %5677 = vmatpush.msra.mxu2 %v14029_v17  ;;  %v14032_v54 = vld [vmem:[%s14496_s22 + $0x3a8] sm:$0xff]  ;;  %v14037_v17 = vld [vmem:[%s14496_s22 + $0x350] sm:$0xff] }
 0x378   : > { %v16527_v9 = vadd.f32 %v4552_v43, %v16304_v21  ;;  %v14034_v21 = vld [vmem:[%s14496_s22 + $0x358] sm:$0xff] }
 0x379   : > { %v16529_v59 = vpop.f32.mrf.mxu1  ;;  %v16531_v47 = vpop.f32.mrf.mxu2  ;;  %5632 = vmatpush.msra.mxu0 %v14030_v19  ;;  %5678 = vmatpush.msra.mxu2 %v14031_v61  ;;  %v14035_v43 = vld [vmem:[%s14496_s22 + $0x398] sm:$0xff]  ;;  %v14036_v61 = vld [vmem:[%s14496_s22 + $0x3a0] sm:$0xff] }
 0x37a   : > { %20007 = vst [vmem:[#allocation120_spill] sm:$0xff] %v16529_v59 }
 0x37b   : > { %20008 = vst [vmem:[#allocation121_spill] sm:$0xff] %v16531_v47  ;;  %v16535_v33 = vpop.f32.mrf.mxu0  ;;  %5633 = vmatpush.msra.mxu0 %v14032_v54  ;;  %5679 = vmatpush.msra.mxu2 %v14033_v40  ;;  %v14038_v54 = vld [vmem:[%s14496_s22 + $0x390] sm:$0xff] }
 0x37c   : > { %20009 = vst [vmem:[#allocation122_spill] sm:$0xff] %v16535_v33  ;;  %13309 = vmatmul.msk.f32.vlgmr.msrb.gmra.mxu1 %vm626_vm1, %v16182_v57  ;;  %13313 = vmatmul.msk.f32.vlgmr.msra.gmra.mxu3 %vm626_vm1, %v16182_v57 }
 0x37d   : > { %5562 = vmatpush.msrb.mxu1 %v14034_v21  ;;  %5608 = vmatpush.msra.mxu3 %v14035_v43  ;;  %v14039_v21 = vld [vmem:[%s14496_s22 + $0x3e0] sm:$0xff] }
 0x37e   : > { %13316 = vmatmul.msk.f32.gmra.mxu0 %vm626_vm1, %v16208_v55  ;;  %13320 = vmatmul.msk.f32.gmra.mxu2 %vm626_vm1, %v16208_v55 }
 0x37f   : > { %v4641_v40 = vpop.f32.mrf.mxu3  ;;  %5634 = vmatpush.msra.mxu0 %v14036_v61  ;;  %5563 = vmatpush.msrb.mxu1 %v14037_v17  ;;  %v14042_v61 = vld [vmem:[%s14496_s22 + $0x340] sm:$0xff] }
 0x380   : > { %v16552_v19 = vadd.f32 %v4641_v40, %v16334_v23  ;;  %5609 = vmatpush.msra.mxu3 %v14038_v54  ;;  %5680 = vmatpush.msra.mxu2 %v14039_v21  ;;  %v16569_v23 = vld [vmem:[#allocation2 + $0x8] sm:$0xf]  ;;  %v14043_v40 = vld [vmem:[%s14496_s22 + $0x380] sm:$0xff] }
 0x381   : > { %v16556_v43 = vpop.f32.mrf.mxu1  ;;  %v16558_v42 = vpop.f32.mrf.mxu2  ;;  %5564 = vmatpush.msrb.mxu1 %v14040_v58 }
 0x382   : > { %20010 = vst [vmem:[#allocation123_spill] sm:$0xff] %v16552_v19  ;;  %5610 = vmatpush.msra.mxu3 %v14041_v35 }
 0x383   : > { %20011 = vst [vmem:[#allocation124_spill] sm:$0xff] %v16556_v43  ;;  %v16562_v49 = vpop.f32.mrf.mxu0  ;;  %5565 = vmatpush.msrb.mxu1 %v14042_v61  ;;  %v14044_v61 = vld [vmem:[%s14496_s22 + $0x3d8] sm:$0xff] }
 0x384   : > { %20012 = vst [vmem:[#allocation125_spill] sm:$0xff] %v16558_v42  ;;  %13310 = vmatmul.msk.f32.gmra.mxu1 %vm626_vm1, %v16208_v55  ;;  %13314 = vmatmul.msk.f32.gmra.mxu3 %vm626_vm1, %v16208_v55 }
 0x385   : > { %20013 = vst [vmem:[#allocation126_spill] sm:$0xff] %v16562_v49  ;;  %5611 = vmatpush.msra.mxu3 %v14043_v40  ;;  %v14045_v40 = vld [vmem:[%s14496_s22 + $0x3d0] sm:$0xff] }
 0x386   : > { %13323 = vmatmul.msk.f32.vlgmr.msrb.gmra.mxu0 %vm626_vm1, %v16182_v57  ;;  %13327 = vmatmul.msk.f32.vlgmr.msrb.gmra.mxu2 %vm626_vm1, %v16182_v57 }
 0x387   : > { %v4644_v35 = vpop.f32.mrf.mxu3  ;;  %13340 = vmatpush.msk.msrb.mxu0 %vm1399_vm3, %v16569_v23  ;;  %13346 = vmatpush.msk.msrb.mxu2 %vm1399_vm3, %v16569_v23 }
 0x388   : > { %v16581_v58 = vadd.f32 %v4644_v35, %v16360_v4 }
 0x389   : > { %v16583_v17 = vpop.f32.mrf.mxu1  ;;  %v16585_v54 = vpop.f32.mrf.mxu2 }
 0x38a   : > { %20014 = vst [vmem:[#allocation127_spill] sm:$0xff] %v16581_v58 }
 0x38b   : > { %20015 = vst [vmem:[#allocation128_spill] sm:$0xff] %v16583_v17  ;;  %v16587_v21 = vpop.f32.mrf.mxu0 }
 0x38c   : > { %20016 = vst [vmem:[#allocation129_spill] sm:$0xff] %v16585_v54  ;;  %13317 = vmatmul.msk.f32.vlgmr.msra.gmra.mxu1 %vm626_vm1, %v16182_v57  ;;  %13321 = vmatmul.msk.f32.vlgmr.msrb.gmra.mxu3 %vm626_vm1, %v16182_v57 }
 0x38d   : > { %20017 = vst [vmem:[#allocation130_spill] sm:$0xff] %v16587_v21  ;;  %5654 = vmatpush.msra.mxu1 %v14044_v61  ;;  %13337 = vmatpush.msk.msrb.mxu3 %vm1399_vm3, %v16569_v23 }
 0x38e   : > { %13324 = vmatmul.msk.f32.gmra.mxu0 %vm626_vm1, %v16208_v55  ;;  %13328 = vmatmul.msk.f32.gmra.mxu2 %vm626_vm1, %v16208_v55 }
 0x38f   : > { %v16600_v4 = vpop.f32.mrf.mxu3  ;;  %5655 = vmatpush.msra.mxu1 %v14045_v40 }
 0x390   : > { %20018 = vst [vmem:[#allocation131_spill] sm:$0xff] %v16600_v4 }
 0x391   : > { %v16603_v35 = vpop.f32.mrf.mxu1  ;;  %v16605_v16 = vpop.f32.mrf.mxu2  ;;  %5656 = vmatpush.msra.mxu1 %v14046_v48 }
 0x392   : > { %20019 = vst [vmem:[#allocation132_spill] sm:$0xff] %v16603_v35 }
 0x393   : > { %20020 = vst [vmem:[#allocation133_spill] sm:$0xff] %v16605_v16  ;;  %v16608_v61 = vpop.f32.mrf.mxu0  ;;  %5657 = vmatpush.msra.mxu1 %v14047_v56 }
 0x394   : > { %20021 = vst [vmem:[#allocation134_spill] sm:$0xff] %v16608_v61  ;;  %13318 = vmatmul.msk.f32.gmra.mxu1 %vm626_vm1, %v16208_v55  ;;  %13322 = vmatmul.msk.f32.gmra.mxu3 %vm626_vm1, %v16208_v55 }
 0x396   : > { %13331 = vmatmul.msk.f32.vlgmr.msra.gmra.mxu0 %vm626_vm1, %v16182_v57  ;;  %13335 = vmatmul.msk.f32.vlgmr.msra.gmra.mxu2 %vm626_vm1, %v16182_v57 }
 0x397   : > { %v16619_v40 = vpop.f32.mrf.mxu3  ;;  %13352 = vmatpush.msk.msra.mxu0 %vm1399_vm3, %v16569_v23  ;;  %13358 = vmatpush.msk.msra.mxu2 %vm1399_vm3, %v16569_v23 }
 0x398   : > { %20022 = vst [vmem:[#allocation135_spill] sm:$0xff] %v16619_v40 }
 0x399   : > { %v16625_v48 = vpop.f32.mrf.mxu1  ;;  %v4946_v56 = vpop.f32.mrf.mxu2 }
 0x39a   : > { %20023 = vst [vmem:[#allocation136_spill] sm:$0xff] %v16625_v48 }
 0x39b   : > { %v16627_v61 = vpop.f32.mrf.mxu0 }
 0x39c   : > { %20024 = vst [vmem:[#allocation137_spill] sm:$0xff] %v16627_v61  ;;  %13325 = vmatmul.msk.f32.vlgmr.msrb.gmra.mxu1 %vm626_vm1, %v16182_v57  ;;  %13329 = vmatmul.msk.f32.vlgmr.msra.gmra.mxu3 %vm626_vm1, %v16182_v57 }
 0x39d   : > { %13343 = vmatpush.msk.msrb.mxu1 %vm1399_vm3, %v16569_v23  ;;  %13349 = vmatpush.msk.msra.mxu3 %vm1399_vm3, %v16569_v23 }
 0x39e   : > { %13332 = vmatmul.msk.f32.gmra.mxu0 %vm626_vm1, %v16208_v55  ;;  %13336 = vmatmul.msk.f32.gmra.mxu2 %vm626_vm1, %v16208_v55 }
 0x39f   : > { %v16641_v48 = vpop.f32.mrf.mxu3 }
 0x3a0   : > { %20025 = vst [vmem:[#allocation138_spill] sm:$0xff] %v16641_v48 }
 0x3a1   : > { %v16643_v61 = vpop.f32.mrf.mxu1  ;;  %v4949_v13 = vpop.f32.mrf.mxu2 }
 0x3a2   : > { %20026 = vst [vmem:[#allocation139_spill] sm:$0xff] %v16643_v61 }
 0x3a3   : > { %v16645_v1 = vpop.f32.mrf.mxu0 }
 0x3a4   : > { %13326 = vmatmul.msk.f32.gmra.mxu1 %vm626_vm1, %v16208_v55  ;;  %13330 = vmatmul.msk.f32.gmra.mxu3 %vm626_vm1, %v16208_v55 }
 0x3a6   : > { %13341 = vmatmul.msk.f32.vlgmr.msrb.gmra.mxu0 %vm1392_vm4, %v16645_v1 }
 0x3a7   : > { %v16653_v16 = vpop.f32.mrf.mxu3  ;;  %13364 = vmatpush.msk.msrb.mxu0 %vm1399_vm3, %v16569_v23 }
 0x3a8   : > { %20027 = vst [vmem:[#allocation140_spill] sm:$0xff] %v16653_v16 }
 0x3a9   : > { %v16657_v48 = vpop.f32.mrf.mxu1  ;;  %v16659_v61 = vpop.f32.mrf.mxu2 }
 0x3aa   : > { %20028 = vst [vmem:[#allocation141_spill] sm:$0xff] %v16657_v48 }
 0x3ab   : > { %v16661_v25 = vpop.f32.mrf.mxu0 }
 0x3ac   : > { %13333 = vmatmul.msk.f32.vlgmr.msra.gmra.mxu1 %vm626_vm1, %v16182_v57  ;;  %13338 = vmatmul.msk.f32.vlgmr.msrb.gmra.mxu3 %vm1392_vm4, %v4946_v56 }
 0x3ad   : > { %13355 = vmatpush.msk.msra.mxu1 %vm1399_vm3, %v16569_v23  ;;  %13361 = vmatpush.msk.msrb.mxu3 %vm1399_vm3, %v16569_v23 }
 0x3ae   : > { %13342 = vmatmul.msk.f32.gmra.mxu0 %vm1392_vm4, %v16661_v25 }
 0x3af   : > { %v16672_v16 = vpop.f32.mrf.mxu3 }
 0x3b1   : > { %v16674_v48 = vpop.f32.mrf.mxu1  ;;  %v16676_v54 = vpop.f32.mrf.mxu2 }
 0x3b2   : > { %20029 = vst [vmem:[#allocation142_spill] sm:$0xff] %v16674_v48 }
 0x3b3   : > { %v16678_v3 = vpop.f32.mrf.mxu0 }
 0x3b4   : > { %13334 = vmatmul.msk.f32.gmra.mxu1 %vm626_vm1, %v16208_v55  ;;  %13339 = vmatmul.msk.f32.gmra.mxu3 %vm1392_vm4, %v4949_v13 }
 0x3b5   : > { %13347 = vmatmul.msk.f32.vlgmr.msrb.gmra.mxu2 %vm1392_vm4, %v16678_v3 }
 0x3b6   : > { %13370 = vmatpush.msk.msrb.mxu2 %vm1399_vm3, %v16569_v23 }
 0x3b7   : > { %v16687_v56 = vpop.f32.mrf.mxu3 }
 0x3b9   : > { %v16689_v57 = vpop.f32.mrf.mxu1  ;;  %v16691_v48 = vpop.f32.mrf.mxu2 }
 0x3bb   : > { %v16693_v35 = vpop.f32.mrf.mxu0 }
 0x3bc   : > { %13344 = vmatmul.msk.f32.vlgmr.msrb.gmra.mxu1 %vm1392_vm4, %v16659_v61  ;;  %13350 = vmatmul.msk.f32.vlgmr.msra.gmra.mxu3 %vm1392_vm4, %v16691_v48 }
 0x3bd   : > { %13348 = vmatmul.msk.f32.gmra.mxu2 %vm1392_vm4, %v16693_v35  ;;  %13367 = vmatpush.msk.msrb.mxu1 %vm1399_vm3, %v16569_v23 }
 0x3be   : > { %13373 = vmatpush.msk.msra.mxu3 %vm1399_vm3, %v16569_v23 }
 0x3bf   : > { %v16705_v55 = vpop.f32.mrf.mxu3 }
 0x3c1   : > { %v16707_v13 = vpop.f32.mrf.mxu1  ;;  %v16709_v21 = vpop.f32.mrf.mxu2 }
 0x3c3   : > { %v16711_v17 = vpop.f32.mrf.mxu0 }
 0x3c4   : > { %13345 = vmatmul.msk.f32.gmra.mxu1 %vm1392_vm4, %v16676_v54  ;;  %13351 = vmatmul.msk.f32.gmra.mxu3 %vm1392_vm4, %v16709_v21 }
 0x3c5   : > { %13353 = vmatmul.msk.f32.vlgmr.msra.gmra.mxu0 %vm1392_vm4, %v16711_v17 }
 0x3c6   : > { %13376 = vmatpush.msk.msra.mxu0 %vm1399_vm3, %v16569_v23 }
 0x3c7   : > { %v16721_v49 = vpop.f32.mrf.mxu3 }
 0x3c9   : > { %v16723_v26 = vpop.f32.mrf.mxu1  ;;  %v16725_v29 = vpop.f32.mrf.mxu2 }
 0x3cb   : > { %v16727_v36 = vpop.f32.mrf.mxu0 }
 0x3cc   : > { %13356 = vmatmul.msk.f32.vlgmr.msra.gmra.mxu1 %vm1392_vm4, %v16725_v29 }
 0x3cd   : > { %13354 = vmatmul.msk.f32.gmra.mxu0 %vm1392_vm4, %v16727_v36  ;;  %13379 = vmatpush.msk.msra.mxu1 %vm1399_vm3, %v16569_v23 }
 0x3cf   : > { %v16735_v24 = vpop.f32.mrf.mxu3 }
 0x3d1   : > { %v16737_v40 = vpop.f32.mrf.mxu1  ;;  %v16739_v32 = vpop.f32.mrf.mxu2 }
 0x3d3   : > { %v16741_v2 = vpop.f32.mrf.mxu0 }
 0x3d4   : > { %13357 = vmatmul.msk.f32.gmra.mxu1 %vm1392_vm4, %v16739_v32  ;;  %13359 = vmatmul.msk.f32.vlgmr.msra.gmra.mxu2 %vm1392_vm4, %v16741_v2 }
 0x3d5   : > { %13382 = vmatpush.msk.msra.mxu2 %vm1399_vm3, %v16569_v23 }
 0x3d7   : > { %v16749_v27 = vpop.f32.mrf.mxu3 }
 0x3d9   : > { %v16751_v4 = vpop.f32.mrf.mxu1  ;;  %v16753_v18 = vpop.f32.mrf.mxu2 }
 0x3da   : > { %13362 = vmatmul.msk.f32.vlgmr.msrb.gmra.mxu3 %vm1392_vm4, %v16753_v18 }
 0x3db   : > { %v16757_v39 = vpop.f32.mrf.mxu0  ;;  %13385 = vmatpush.msk.msrb.mxu3 %vm1399_vm3, %v16775_v60 }
 0x3dc   : > { %13360 = vmatmul.msk.f32.gmra.mxu2 %vm1392_vm4, %v16757_v39 }
 0x3df   : > { %v16761_v22 = vpop.f32.mrf.mxu3 }
 0x3e1   : > { %v16763_v42 = vpop.f32.mrf.mxu1  ;;  %v16765_v5 = vpop.f32.mrf.mxu2 }
 0x3e2   : > { %13363 = vmatmul.msk.f32.gmra.mxu3 %vm1392_vm4, %v16765_v5 }
 0x3e3   : > { %v16769_v23 = vpop.f32.mrf.mxu0 }
 0x3e4   : > { %13365 = vmatmul.msk.f32.vlgmr.msrb.gmra.mxu0 %vm1392_vm4, %v16769_v23 }
 0x3e5   : > { %13388 = vmatpush.msk.msrb.mxu0 %vm1399_vm3, %v16775_v60 }
 0x3e7   : > { %v16777_v43 = vpop.f32.mrf.mxu3 }
 0x3e9   : > { %v16773_v47 = vpop.f32.mrf.mxu2  ;;  %v16783_v33 = vpop.f32.mrf.mxu1 }
 0x3ea   : > { %13368 = vmatmul.msk.f32.vlgmr.msrb.gmra.mxu1 %vm1392_vm4, %v16773_v47 }
 0x3eb   : > { %v16785_v8 = vpop.f32.mrf.mxu0  ;;  %13391 = vmatpush.msk.msrb.mxu1 %vm1399_vm3, %v16775_v60 }
 0x3ec   : > { %13366 = vmatmul.msk.f32.gmra.mxu0 %vm1392_vm4, %v16785_v8 }
 0x3ef   : > { %v5337_v62 = vpop.f32.mrf.mxu3 }
 0x3f1   : > { %v16793_v59 = vpop.f32.mrf.mxu2  ;;  %v16801_v41 = vpop.f32.mrf.mxu1 }
 0x3f2   : > { %13369 = vmatmul.msk.f32.gmra.mxu1 %vm1392_vm4, %v16793_v59 }
 0x3f3   : > { %v16797_v31 = vpop.f32.mrf.mxu0 }
 0x3f4   : > { %13371 = vmatmul.msk.f32.vlgmr.msrb.gmra.mxu2 %vm1392_vm4, %v16797_v31 }
 0x3f5   : > { %13394 = vmatpush.msk.msrb.mxu2 %vm1399_vm3, %v16775_v60 }
 0x3f7   : > { %v5340_v53 = vpop.f32.mrf.mxu3 }
 0x3f9   : > { %v16805_v58 = vpop.f32.mrf.mxu2  ;;  %v5383_v38 = vpop.f32.mrf.mxu1 }
 0x3fa   : > { %13374 = vmatmul.msk.f32.vlgmr.msra.gmra.mxu3 %vm1392_vm4, %v16805_v58 }
 0x3fb   : > { %v16809_v50 = vpop.f32.mrf.mxu0  ;;  %13397 = vmatpush.msk.msra.mxu3 %vm1399_vm3, %v16775_v60 }
 0x3fc   : > { %13372 = vmatmul.msk.f32.gmra.mxu2 %vm1392_vm4, %v16809_v50 }
 0x3ff   : > { %v5429_v34 = vpop.f32.mrf.mxu3 }
 0x401   : > { %v16815_v14 = vpop.f32.mrf.mxu2  ;;  %v5386_v28 = vpop.f32.mrf.mxu1 }
 0x402   : > { %13375 = vmatmul.msk.f32.gmra.mxu3 %vm1392_vm4, %v16815_v14 }
 0x403   : > { %v16819_v19 = vpop.f32.mrf.mxu0 }
 0x404   : > { %13377 = vmatmul.msk.f32.vlgmr.msra.gmra.mxu0 %vm1392_vm4, %v16819_v19 }
 0x405   : > { %13400 = vmatpush.msk.msra.mxu0 %vm1399_vm3, %v16775_v60 }
 0x407   : > { %v5432_v30 = vpop.f32.mrf.mxu3 }
 0x409   : > { %v16825_v0 = vpop.f32.mrf.mxu2 }
 0x40a   : > { %13380 = vmatmul.msk.f32.vlgmr.msra.gmra.mxu1 %vm1392_vm4, %v16825_v0  ;;  %13386 = vmatmul.msk.f32.vlgmr.msrb.gmra.mxu3 %vm1392_vm4, %v16672_v16  ;;  %v5475_v16 = vpop.f32.mrf.mxu1 }
 0x40b   : > { %v16831_v7 = vpop.f32.mrf.mxu0  ;;  %13403 = vmatpush.msk.msra.mxu1 %vm1399_vm3, %v16775_v60  ;;  %13409 = vmatpush.msk.msrb.mxu3 %vm1399_vm3, %v16775_v60 }
 0x40c   : > { %13378 = vmatmul.msk.f32.gmra.mxu0 %vm1392_vm4, %v16831_v7 }
 0x411   : > { %v16839_v51 = vpop.f32.mrf.mxu2 }
 0x412   : > { %13381 = vmatmul.msk.f32.gmra.mxu1 %vm1392_vm4, %v16839_v51  ;;  %13387 = vmatmul.msk.f32.gmra.mxu3 %vm1392_vm4, %v16687_v56  ;;  %v5478_v37 = vpop.f32.mrf.mxu1 }
 0x413   : > { %v16845_v10 = vpop.f32.mrf.mxu0 }
 0x414   : > { %13383 = vmatmul.msk.f32.vlgmr.msra.gmra.mxu2 %vm1392_vm4, %v16845_v10  ;;  %13389 = vmatmul.msk.f32.vlgmr.msrb.gmra.mxu0 %vm1392_vm4, %v16689_v57  ;;  %v5521_v57 = vpop.f32.mrf.mxu3 }
 0x415   : > { %13406 = vmatpush.msk.msra.mxu2 %vm1399_vm3, %v16775_v60  ;;  %13412 = vmatpush.msk.msrb.mxu0 %vm1399_vm3, %v16775_v60 }
 0x41a   : > { %13392 = vmatmul.msk.f32.vlgmr.msrb.gmra.mxu1 %vm1392_vm4, %v16705_v55  ;;  %13398 = vmatmul.msk.f32.vlgmr.msra.gmra.mxu3 %vm1392_vm4, %v16735_v24  ;;  %v5567_v55 = vpop.f32.mrf.mxu1 }
 0x41b   : > { %v16859_v56 = vpop.f32.mrf.mxu0  ;;  %13415 = vmatpush.msk.msrb.mxu1 %vm1399_vm3, %v16775_v60  ;;  %13421 = vmatpush.msk.msra.mxu3 %vm1399_vm3, %v16775_v60 }
 0x41c   : > { %13384 = vmatmul.msk.f32.gmra.mxu2 %vm1392_vm4, %v16859_v56  ;;  %13390 = vmatmul.msk.f32.gmra.mxu0 %vm1392_vm4, %v16707_v13  ;;  %v5524_v24 = vpop.f32.mrf.mxu3  ;;  %v16881_v13 = vld [vmem:[#allocation2 + $0x20] sm:$0xf] }
 0x422   : > { %13393 = vmatmul.msk.f32.gmra.mxu1 %vm1392_vm4, %v16721_v49  ;;  %13399 = vmatmul.msk.f32.gmra.mxu3 %vm1392_vm4, %v16749_v27 }
 0x424   : > { %13395 = vmatmul.msk.f32.vlgmr.msrb.gmra.mxu2 %vm1392_vm4, %v16723_v26  ;;  %13401 = vmatmul.msk.f32.vlgmr.msra.gmra.mxu0 %vm1392_vm4, %v16751_v4  ;;  %v5613_v27 = vpop.f32.mrf.mxu3  ;;  %v5570_v26 = vpop.f32.mrf.mxu1 }
 0x425   : > { %13418 = vmatpush.msk.msrb.mxu2 %vm1399_vm3, %v16775_v60  ;;  %13424 = vmatpush.msk.msra.mxu0 %vm1399_vm3, %v16775_v60 }
 0x42a   : > { %13404 = vmatmul.msk.f32.vlgmr.msra.gmra.mxu1 %vm1392_vm4, %v16761_v22  ;;  %13410 = vmatmul.msk.f32.vlgmr.msrb.gmra.mxu3 %vm1392_vm4, %v5337_v62 }
 0x42b   : > { %13427 = vmatpush.msk.msra.mxu1 %vm1399_vm3, %v16775_v60  ;;  %13433 = vmatpush.msk.msrb.mxu3 %vm1399_vm3, %v16881_v13 }
 0x42c   : > { %13396 = vmatmul.msk.f32.gmra.mxu2 %vm1392_vm4, %v16737_v40  ;;  %13402 = vmatmul.msk.f32.gmra.mxu0 %vm1392_vm4, %v16763_v42  ;;  %v5616_v22 = vpop.f32.mrf.mxu3  ;;  %v5659_v62 = vpop.f32.mrf.mxu1 }
 0x432   : > { %13405 = vmatmul.msk.f32.gmra.mxu1 %vm1392_vm4, %v16777_v43  ;;  %13411 = vmatmul.msk.f32.gmra.mxu3 %vm1392_vm4, %v5340_v53 }
 0x434   : > { %13407 = vmatmul.msk.f32.vlgmr.msra.gmra.mxu2 %vm1392_vm4, %v16783_v33  ;;  %13413 = vmatmul.msk.f32.vlgmr.msrb.gmra.mxu0 %vm1392_vm4, %v5383_v38  ;;  %v5662_v38 = vpop.f32.mrf.mxu1  ;;  %v16934_v33 = vpop.f32.mrf.mxu2 }
 0x435   : > { %13430 = vmatpush.msk.msra.mxu2 %vm1399_vm3, %v16775_v60  ;;  %13436 = vmatpush.msk.msrb.mxu0 %vm1399_vm3, %v16881_v13 }
 0x43a   : > { %13416 = vmatmul.msk.f32.vlgmr.msrb.gmra.mxu1 %vm1392_vm4, %v5429_v34  ;;  %13422 = vmatmul.msk.f32.vlgmr.msra.gmra.mxu3 %vm1392_vm4, %v5521_v57  ;;  %v16917_v34 = vpop.f32.mrf.mxu3 }
 0x43b   : > { %13439 = vmatpush.msk.msrb.mxu1 %vm1399_vm3, %v16881_v13  ;;  %13445 = vmatpush.msk.msra.mxu3 %vm1399_vm3, %v16881_v13 }
 0x43c   : > { %13408 = vmatmul.msk.f32.gmra.mxu2 %vm1392_vm4, %v16801_v41  ;;  %13414 = vmatmul.msk.f32.gmra.mxu0 %vm1392_vm4, %v5386_v28  ;;  %v16926_v28 = vpop.f32.mrf.mxu0  ;;  %v16938_v53 = vpop.f32.mrf.mxu1 }
 0x43d   : > { %v16952_v60 = vpop.f32.mrf.mxu2 }
 0x442   : > { %13417 = vmatmul.msk.f32.gmra.mxu1 %vm1392_vm4, %v5432_v30  ;;  %13423 = vmatmul.msk.f32.gmra.mxu3 %vm1392_vm4, %v5524_v24  ;;  %v16936_v30 = vpop.f32.mrf.mxu3 }
 0x444   : > { %13419 = vmatmul.msk.f32.vlgmr.msrb.gmra.mxu2 %vm1392_vm4, %v5475_v16  ;;  %13425 = vmatmul.msk.f32.vlgmr.msra.gmra.mxu0 %vm1392_vm4, %v5567_v55  ;;  %v16956_v42 = vpop.f32.mrf.mxu1 }
 0x445   : > { %13442 = vmatpush.msk.msrb.mxu2 %vm1399_vm3, %v16881_v13  ;;  %13448 = vmatpush.msk.msra.mxu0 %vm1399_vm3, %v16881_v13  ;;  %v16971_v49 = vpop.f32.mrf.mxu2 }
 0x44a   : > { %13428 = vmatmul.msk.f32.vlgmr.msra.gmra.mxu1 %vm1392_vm4, %v5613_v27  ;;  %13434 = vmatmul.msk.f32.vlgmr.msrb.gmra.mxu3 %vm1392_vm4, %v16645_v1  ;;  %v16946_v1 = vpop.f32.mrf.mxu0  ;;  %v16954_v41 = vpop.f32.mrf.mxu3 }
 0x44b   : > { %13451 = vmatpush.msk.msra.mxu1 %vm1399_vm3, %v16881_v13  ;;  %13457 = vmatpush.msk.msrb.mxu3 %vm1399_vm3, %v16881_v13 }
 0x44c   : > { %13420 = vmatmul.msk.f32.gmra.mxu2 %vm1392_vm4, %v5478_v37  ;;  %13426 = vmatmul.msk.f32.gmra.mxu0 %vm1392_vm4, %v5570_v26  ;;  %v16979_v37 = vpop.f32.mrf.mxu1 }
 0x452   : > { %13429 = vmatmul.msk.f32.gmra.mxu1 %vm1392_vm4, %v5616_v22  ;;  %13435 = vmatmul.msk.f32.gmra.mxu3 %vm1392_vm4, %v16661_v25  ;;  %v16969_v25 = vpop.f32.mrf.mxu0 }
 0x454   : > { %13431 = vmatmul.msk.f32.vlgmr.msra.gmra.mxu2 %vm1392_vm4, %v5659_v62  ;;  %13437 = vmatmul.msk.f32.vlgmr.msrb.gmra.mxu0 %vm1392_vm4, %v16659_v61 }
 0x455   : > { %13454 = vmatpush.msk.msra.mxu2 %vm1399_vm3, %v16881_v13  ;;  %13460 = vmatpush.msk.msrb.mxu0 %vm1399_vm3, %v16881_v13 }
 0x45a   : > { %13440 = vmatmul.msk.f32.vlgmr.msrb.gmra.mxu1 %vm1392_vm4, %v16678_v3  ;;  %13446 = vmatmul.msk.f32.vlgmr.msra.gmra.mxu3 %vm1392_vm4, %v16711_v17  ;;  %v16977_v3 = vpop.f32.mrf.mxu3  ;;  %v16989_v43 = vpop.f32.mrf.mxu0 }
 0x45b   : > { %13463 = vmatpush.msk.msrb.mxu1 %vm1399_vm3, %v16881_v13  ;;  %13469 = vmatpush.msk.msra.mxu3 %vm1399_vm3, %v16881_v13 }
 0x45c   : > { %13432 = vmatmul.msk.f32.gmra.mxu2 %vm1392_vm4, %v5662_v38  ;;  %13438 = vmatmul.msk.f32.gmra.mxu0 %vm1392_vm4, %v16676_v54 }
 0x462   : > { %13441 = vmatmul.msk.f32.gmra.mxu1 %vm1392_vm4, %v16693_v35  ;;  %13447 = vmatmul.msk.f32.gmra.mxu3 %vm1392_vm4, %v16727_v36  ;;  %v16995_v36 = vpop.f32.mrf.mxu2  ;;  %v16997_v17 = vpop.f32.mrf.mxu3 }
 0x464   : > { %13443 = vmatmul.msk.f32.vlgmr.msrb.gmra.mxu2 %vm1392_vm4, %v16691_v48  ;;  %13449 = vmatmul.msk.f32.vlgmr.msra.gmra.mxu0 %vm1392_vm4, %v16725_v29  ;;  %v17006_v29 = vpop.f32.mrf.mxu1 }
 0x465   : > { %13466 = vmatpush.msk.msrb.mxu2 %vm1399_vm3, %v16881_v13  ;;  %13472 = vmatpush.msk.msra.mxu0 %vm1399_vm3, %v16881_v13 }
 0x46a   : > { %13452 = vmatmul.msk.f32.vlgmr.msra.gmra.mxu1 %vm1392_vm4, %v16741_v2  ;;  %13458 = vmatmul.msk.f32.vlgmr.msrb.gmra.mxu3 %vm1392_vm4, %v16769_v23  ;;  %v17008_v2 = vpop.f32.mrf.mxu0  ;;  %v17014_v54 = vpop.f32.mrf.mxu2 }
 0x46b   : > { %13475 = vmatpush.msk.msra.mxu1 %vm1399_vm3, %v16881_v13  ;;  %7253 = vmatpush.msrb.mxu3 %v19841_v45 }
 0x46c   : > { %13444 = vmatmul.msk.f32.gmra.mxu2 %vm1392_vm4, %v16709_v21  ;;  %13450 = vmatmul.msk.f32.gmra.mxu0 %vm1392_vm4, %v16739_v32  ;;  %v17020_v21 = vpop.f32.mrf.mxu3  ;;  %v17022_v32 = vpop.f32.mrf.mxu1 }
 0x472   : > { %13453 = vmatmul.msk.f32.gmra.mxu1 %vm1392_vm4, %v16757_v39  ;;  %13459 = vmatmul.msk.f32.gmra.mxu3 %vm1392_vm4, %v16785_v8  ;;  %v17026_v4 = vpop.f32.mrf.mxu0  ;;  %v17036_v8 = vpop.f32.mrf.mxu2 }
 0x473   : > { %20030 = vst [vmem:[#allocation143_spill] sm:$0xff] %v17036_v8  ;;  %v20058_v8 = vld [vmem:[#allocation46_spill] sm:$0xff] }
 0x474   : > { %13455 = vmatmul.msk.f32.vlgmr.msra.gmra.mxu2 %vm1392_vm4, %v16753_v18  ;;  %13461 = vmatmul.msk.f32.vlgmr.msrb.gmra.mxu0 %vm1392_vm4, %v16773_v47  ;;  %v17040_v18 = vpop.f32.mrf.mxu1 }
 0x475   : > { %13478 = vmatpush.msk.msra.mxu2 %vm1399_vm3, %v16881_v13  ;;  %20032 = vst [vmem:[#allocation145_spill] sm:$0xff] %v17040_v18 }
 0x47a   : > { %13464 = vmatmul.msk.f32.vlgmr.msrb.gmra.mxu1 %vm1392_vm4, %v16797_v31  ;;  %13470 = vmatmul.msk.f32.vlgmr.msra.gmra.mxu3 %vm1392_vm4, %v16819_v19  ;;  %v17052_v31 = vpop.f32.mrf.mxu2 }
 0x47b   : > { %20034 = vst [vmem:[#allocation147_spill] sm:$0xff] %v17052_v31  ;;  %v20051_v31 = vld [vmem:[#allocation23_spill] sm:$0xff] }
 0x47c   : > { %13456 = vmatmul.msk.f32.gmra.mxu2 %vm1392_vm4, %v16765_v5  ;;  %13462 = vmatmul.msk.f32.gmra.mxu0 %vm1392_vm4, %v16793_v59 }
 0x47d   : > { %v17038_v39 = vpop.f32.mrf.mxu3 }
 0x47e   : > { %20031 = vst [vmem:[#allocation144_spill] sm:$0xff] %v17038_v39 }
 0x481   : > { %v17042_v47 = vpop.f32.mrf.mxu0 }
 0x482   : > { %20033 = vst [vmem:[#allocation146_spill] sm:$0xff] %v17042_v47  ;;  %13465 = vmatmul.msk.f32.gmra.mxu1 %vm1392_vm4, %v16809_v50  ;;  %13471 = vmatmul.msk.f32.gmra.mxu3 %vm1392_vm4, %v16831_v7  ;;  %v17066_v7 = vpop.f32.mrf.mxu2 }
 0x483   : > { %20038 = vst [vmem:[#allocation151_spill] sm:$0xff] %v17066_v7 }
 0x484   : > { %13467 = vmatmul.msk.f32.vlgmr.msrb.gmra.mxu2 %vm1392_vm4, %v16805_v58  ;;  %13473 = vmatmul.msk.f32.vlgmr.msra.gmra.mxu0 %vm1392_vm4, %v16825_v0 }
 0x485   : > { %v17054_v5 = vpop.f32.mrf.mxu3 }
 0x486   : > { %20035 = vst [vmem:[#allocation148_spill] sm:$0xff] %v17054_v5 }
 0x487   : > { %v17056_v59 = vpop.f32.mrf.mxu1 }
 0x488   : > { %20036 = vst [vmem:[#allocation149_spill] sm:$0xff] %v17056_v59 }
 0x489   : > { %v17058_v19 = vpop.f32.mrf.mxu0 }
 0x48a   : > { %20037 = vst [vmem:[#allocation150_spill] sm:$0xff] %v17058_v19  ;;  %13476 = vmatmul.msk.f32.vlgmr.msra.gmra.mxu1 %vm1392_vm4, %v16845_v10  ;;  %13481 = vmatmul.msk.f32.vlgmr.msrb.gmra.mxu3 %vm7235_vm9, %v20051_v31 }
 0x48c   : > { %13468 = vmatmul.msk.f32.gmra.mxu2 %vm1392_vm4, %v16815_v14  ;;  %13474 = vmatmul.msk.f32.gmra.mxu0 %vm1392_vm4, %v16839_v51 }
 0x48d   : > { %v6213_v50 = vpop.f32.mrf.mxu3 }
 0x48f   : > { %v17068_v0 = vpop.f32.mrf.mxu1 }
 0x490   : > { %20039 = vst [vmem:[#allocation152_spill] sm:$0xff] %v17068_v0 }
 0x491   : > { %v6242_v58 = vpop.f32.mrf.mxu0 }
 0x492   : > { %13477 = vmatmul.msk.f32.gmra.mxu1 %vm1392_vm4, %v16859_v56 }
 0x494   : > { %13479 = vmatmul.msk.f32.vlgmr.msra.gmra.mxu2 %vm1392_vm4, %v16934_v33 }
 0x495   : > { %v6216_v35 = vpop.f32.mrf.mxu3 }
 0x497   : > { %v17074_v10 = vpop.f32.mrf.mxu2  ;;  %v17076_v61 = vpop.f32.mrf.mxu1 }
 0x498   : > { %20040 = vst [vmem:[#allocation153_spill] sm:$0xff] %v17074_v10 }
 0x499   : > { %v6245_v14 = vpop.f32.mrf.mxu0 }
 0x49c   : > { %13480 = vmatmul.msk.f32.gmra.mxu2 %vm1392_vm4, %v16952_v60 }
 0x49d   : > { %v17080_v51 = vpop.f32.mrf.mxu3 }
 0x49f   : > { %v17082_v40 = vpop.f32.mrf.mxu2  ;;  %v17084_v48 = vpop.f32.mrf.mxu1 }
 0x4a0   : > { %20041 = vst [vmem:[#allocation154_spill] sm:$0xff] %v17082_v40 }
 0x4a1   : > { %v17086_v23 = vpop.f32.mrf.mxu0 }
 0x4a5   : > { %v17088_v16 = vpop.f32.mrf.mxu3 }
 0x4a7   : > { %v17090_v56 = vpop.f32.mrf.mxu2  ;;  %v17092_v57 = vpop.f32.mrf.mxu1 }
 0x4a9   : > { %v17094_v24 = vpop.f32.mrf.mxu0 }
 0x4ad   : > { %v17096_v55 = vpop.f32.mrf.mxu3 }
 0x4af   : > { %v17098_v13 = vpop.f32.mrf.mxu2  ;;  %v17100_v27 = vpop.f32.mrf.mxu1 }
 0x4b1   : > { %v17102_v26 = vpop.f32.mrf.mxu0 }
 0x4b5   : > { %v17104_v22 = vpop.f32.mrf.mxu3 }
 0x4b7   : > { %v17106_v62 = vpop.f32.mrf.mxu2  ;;  %v17108_v38 = vpop.f32.mrf.mxu1 }
 0x4b8   : > { %20042 = vst [vmem:[#allocation155_spill] sm:$0xff] %v17106_v62  ;;  %v17142_v62 = vld [vmem:[#allocation5] ss:$0 sm:$0xff] }
 0x4b9   : > { %20043 = vst [vmem:[#allocation156_spill] sm:$0xff] %v17108_v38  ;;  %v17110_v33 = vpop.f32.mrf.mxu0 }
 0x4bd   : > { %v17112_v60 = vpop.f32.mrf.mxu3 }
 0x4be   : > { %20044 = vst [vmem:[#allocation157_spill] sm:$0xff] %v17112_v60 }
 0x4bf   : > { %v17114_v45 = vpop.f32.mrf.mxu2  ;;  %v17116_v40 = vpop.f32.mrf.mxu1 }
 0x4c0   : > { %20045 = vst [vmem:[#allocation158_spill] sm:$0xff] %v17114_v45  ;;  %v6157_v45 = vadd.f32 %v16926_v28, %v16502_v52  ;;  %v20060_v52 = vld [vmem:[#allocation77_spill] sm:$0xff] }
 0x4c1   : > { %20046 = vst [vmem:[#allocation159_spill] sm:$0xff] %v17116_v40  ;;  %v17118_v10 = vpop.f32.mrf.mxu0 }
 0x4c2   : > { %20047 = vst [vmem:[#allocation160_spill] sm:$0xff] %v17118_v10  ;;  %v6155_v10 = vadd.f32 %v16917_v34, %v16430_v11  ;;  %v3980_v11 = vadd.f32 %v16061_v20, %v20058_v8 }
 0x4c5   : > { %v17120_v0 = vpop.f32.mrf.mxu3 }
 0x4c6   : > { %20048 = vst [vmem:[#allocation161_spill] sm:$0xff] %v17120_v0  ;;  %v6654_v0 = vadd.f32 %v6213_v50, %v6155_v10  ;;  %v20059_v50 = vld [vmem:[#allocation59_spill] sm:$0xff] }
 0x4c7   : > { %v17122_v7 = vpop.f32.mrf.mxu2  ;;  %v17124_v59 = vpop.f32.mrf.mxu1  ;;  %v2007_v28 = vadd.f32 %v20060_v52, %v20059_v50  ;;  %v20068_v52 = vld [vmem:[#allocation60_spill] sm:$0xff] }
 0x4c8   : > { %20049 = vst [vmem:[#allocation162_spill] sm:$0xff] %v17122_v7  ;;  %v6156_v7 = vadd.f32 %v16936_v30, %v16458_v15  ;;  %v6158_v30 = vadd.f32 %v16946_v1, %v16527_v9 }
 0x4c9   : > { %20050 = vst [vmem:[#allocation163_spill] sm:$0xff] %v17124_v59  ;;  %v17128_v19 = vpop.f32.mrf.mxu0  ;;  %v20055_v59 = vld [vmem:[#allocation42_spill] sm:$0xff] }
 0x4ca   : > { %20052 = vst [vmem:[#allocation23_spill] sm:$0xff] %v17128_v19  ;;  %v3979_v40 = vadd.f32 %v16044_v44, %v20055_v59  ;;  %v6655_v19 = vadd.f32 %v6216_v35, %v6156_v7  ;;  %v6656_v44 = vadd.f32 %v6242_v58, %v6157_v45  ;;  %v6657_v8 = vadd.f32 %v6245_v14, %v6158_v30  ;;  %v20062_v45 = vld [vmem:[#allocation37_spill] sm:$0xff]  ;;  %v20063_v58 = vld [vmem:[#allocation116_spill] sm:$0xff] }
 0x4cb   : > { %v2714_v1 = vadd.f32 %v20062_v45, %v2007_v28  ;;  %v20065_v14 = vld [vmem:[#allocation96_spill] sm:$0xff]  ;;  %v20073_v45 = vld [vmem:[#allocation81_spill] sm:$0xff] }
 0x4cc   : > { %v4478_v34 = vadd.f32 %v16236_v12, %v3979_v40  ;;  %v20069_v28 = vld [vmem:[#allocation80_spill] sm:$0xff] }
 0x4cd   : > { %v6706_v47 = vpop.f32.mrf.mxu3 }
 0x4ce   : > { %v7063_v38 = vadd.f32 %v6706_v47, %v6654_v0  ;;  %v20061_v47 = vld [vmem:[#allocation33_spill] sm:$0xff]  ;;  %v4479_v0 = vadd.f32 %v16260_v63, %v3980_v11 }
 0x4cf   : > { %v17130_v60 = vpop.f32.mrf.mxu2  ;;  %v17132_v5 = vpop.f32.mrf.mxu1  ;;  %v20064_v11 = vld [vmem:[#allocation97_spill] sm:$0xff] }
 0x4d0   : > { %20053 = vst [vmem:[#allocation164_spill] sm:$0xff] %v17130_v60  ;;  %v20056_v60 = vld [vmem:[#allocation58_spill] sm:$0xff]  ;;  %v7099_v12 = vadd.f32 %v17142_v62, %v7063_v38  ;;  %v4888_v40 = vadd.f32 %v20063_v58, %v4479_v0  ;;  %v20075_v58 = vld [vmem:[#allocation83_spill] sm:$0xff] }
 0x4d1   : > { %20054 = vst [vmem:[#allocation165_spill] sm:$0xff] %v17132_v5  ;;  %v6729_v39 = vpop.f32.mrf.mxu0  ;;  %v20057_v5 = vld [vmem:[#allocation75_spill] sm:$0xff] }
 0x4d2   : > { %v2004_v18 = vadd.f32 %v20057_v5, %v20056_v60  ;;  %v4887_v5 = vadd.f32 %v16462_v46, %v4478_v34  ;;  %v7065_v10 = vadd.f32 %v6729_v39, %v6656_v44  ;;  %v3984_v34 = vadd.f32 %v20064_v11, %v2714_v1  ;;  %v20078_v11 = vld [vmem:[#allocation66_spill] sm:$0xff] }
 0x4d3   : > { %v6160_v39 = vadd.f32 %v16956_v42, %v4888_v40  ;;  %v17173_v44 = vmax.f32 %v7099_v12, 0.0  ;;  %v20071_v42 = vld [vmem:[#allocation115_spill] sm:$0xff]  ;;  %v20072_v12 = vld [vmem:[#allocation62_spill] sm:$0xff] }
 0x4d4   : > { %v2713_v7 = vadd.f32 %v20061_v47, %v2004_v18  ;;  %v6159_v63 = vadd.f32 %v16938_v53, %v4887_v5  ;;  %v7101_v30 = vadd.f32 %v17142_v62, %v7065_v10  ;;  %v20066_v53 = vld [vmem:[#allocation61_spill] sm:$0xff]  ;;  %v1975_v47 = vadd.f32 %v20069_v28, %v20068_v52  ;;  %v20082_v52 = vld [vmem:[#allocation28_spill] sm:$0xff] }
 0x4d5   : > { %v6709_v15 = vpop.f32.mrf.mxu3  ;;  %v2062_v1 = vadd.f32 %v20073_v45, %v20072_v12  ;;  %v20084_v12 = vld [vmem:[#allocation43_spill] sm:$0xff] }
 0x4d6   : > { %v7064_v59 = vadd.f32 %v6709_v15, %v6655_v19  ;;  %v3983_v19 = vadd.f32 %v16059_v6, %v2713_v7  ;;  %v6658_v38 = vadd.f32 %v17076_v61, %v6159_v63  ;;  %v20070_v7 = vld [vmem:[#allocation92_spill] sm:$0xff]  ;;  %v6659_v61 = vadd.f32 %v17084_v48, %v6160_v39 }
 0x4d7   : > { %v17156_v35 = vpop.f32.mrf.mxu2  ;;  %v6752_v20 = vpop.f32.mrf.mxu1  ;;  %v4483_v0 = vadd.f32 %v20070_v7, %v3984_v34  ;;  %v20077_v63 = vld [vmem:[#allocation84_spill] sm:$0xff]  ;;  %v20083_v7 = vld [vmem:[#allocation41_spill] sm:$0xff]  ;;  %v2711_v45 = vadd.f32 %v20084_v12, %v1975_v47  ;;  %v20089_v47 = vld [vmem:[#allocation98_spill] sm:$0xff] }
 0x4d8   : > { %v7100_v9 = vadd.f32 %v17142_v62, %v7064_v59  ;;  %v4482_v15 = vadd.f32 %v20065_v14, %v3983_v19  ;;  %v20067_v59 = vld [vmem:[#allocation79_spill] sm:$0xff]  ;;  %v7067_v10 = vadd.f32 %v6752_v20, %v6658_v38  ;;  %v20079_v34 = vld [vmem:[#allocation24_spill] sm:$0xff]  ;;  %v20080_v20 = vld [vmem:[#allocation118_spill] sm:$0xff] }
 0x4d9   : > { %v6732_v18 = vpop.f32.mrf.mxu0  ;;  %v2120_v50 = vadd.f32 %v20067_v59, %v20066_v53  ;;  %v20074_v19 = vld [vmem:[#allocation63_spill] sm:$0xff]  ;;  %v17193_v14 = vadd.f32 %v20079_v34, %v20078_v11  ;;  %v4892_v39 = vadd.f32 %v20080_v20, %v4483_v0  ;;  %v17202_v53 = vmax.f32 %v7101_v30, 0.0  ;;  %v20087_v11 = vld [vmem:[#allocation53_spill] sm:$0xff] }
 0x4da   : > { %v17164_v60 = vmax.f32 %v7100_v9, 0.0  ;;  %v7066_v46 = vadd.f32 %v6732_v18, %v6657_v8  ;;  %v4891_v8 = vadd.f32 %v20071_v42, %v4482_v15  ;;  %v1978_v40 = vadd.f32 %v20075_v58, %v20074_v19  ;;  %v20076_v18 = vld [vmem:[#allocation65_spill] sm:$0xff]  ;;  %v20081_v59 = vld [vmem:[#allocation67_spill] sm:$0xff]  ;;  %v20085_v19 = vld [vmem:[#allocation50_spill] sm:$0xff] }
 0x4db   : > { %v2178_v28 = vadd.f32 %v20082_v52, %v20081_v59  ;;  %v2721_v42 = vadd.f32 %v20083_v7, %v2120_v50  ;;  %v2717_v58 = vadd.f32 %v20085_v19, %v2062_v1  ;;  %v20086_v30 = vld [vmem:[#allocation47_spill] sm:$0xff]  ;;  %v20094_v7 = vld [vmem:[#allocation48_spill] sm:$0xff] }
 0x4dc   : > { %v7102_v6 = vadd.f32 %v17142_v62, %v7066_v46  ;;  %7272 = vmatpush.msra.mxu3 %v17164_v60  ;;  %v2065_v46 = vadd.f32 %v20077_v63, %v20076_v18  ;;  %v6163_v38 = vadd.f32 %v16954_v41, %v4891_v8  ;;  %v6164_v63 = vadd.f32 %v16977_v3, %v4892_v39  ;;  %v20088_v50 = vld [vmem:[#allocation99_spill] sm:$0xff] }
 0x4dd   : > { %v6798_v5 = vpop.f32.mrf.mxu3  ;;  %v7103_v41 = vadd.f32 %v17142_v62, %v7067_v10  ;;  %v3987_v20 = vadd.f32 %v20089_v47, %v2717_v58  ;;  %v20090_v3 = vld [vmem:[#allocation123_spill] sm:$0xff] }
 0x4de   : > { %v17182_v9 = vmax.f32 %v7102_v6, 0.0  ;;  %7273 = vmatpush.msra.mxu3 %v17173_v44  ;;  %v6662_v0 = vadd.f32 %v17080_v51, %v6163_v38  ;;  %v2718_v34 = vadd.f32 %v20087_v11, %v2065_v46  ;;  %v6165_v51 = vadd.f32 %v16969_v25, %v20090_v3  ;;  %v20091_v38 = vld [vmem:[#allocation102_spill] sm:$0xff]  ;;  %v20093_v46 = vld [vmem:[#allocation44_spill] sm:$0xff]  ;;  %v20095_v19 = vld [vmem:[#allocation127_spill] sm:$0xff] }
 0x4df   : > { %v17195_v15 = vpop.f32.mrf.mxu2  ;;  %v6755_v48 = vpop.f32.mrf.mxu1  ;;  %13482 = vmatmul.msk.f32.vlgmr.msra.gmra.mxu3 %vm7235_vm9, %v20051_v31  ;;  %v6663_v10 = vadd.f32 %v17088_v16, %v6164_v63  ;;  %v4486_v52 = vadd.f32 %v20093_v46, %v3987_v20  ;;  %v6166_v58 = vadd.f32 %v16989_v43, %v20095_v19  ;;  %v17233_v16 = vmax.f32 %v7103_v41, 0.0  ;;  %v20100_v41 = vld [vmem:[#allocation100_spill] sm:$0xff] }
 0x4e0   : > { %v7068_v6 = vadd.f32 %v6755_v48, %v6659_v61  ;;  %7292 = vmatpush.msrb.mxu0 %v17182_v9  ;;  %v2712_v61 = vadd.f32 %v20086_v30, %v1978_v40  ;;  %v3981_v48 = vadd.f32 %v20088_v50, %v2711_v45  ;;  %v7071_v1 = vadd.f32 %v6798_v5, %v6662_v0  ;;  %v20092_v40 = vld [vmem:[#allocation101_spill] sm:$0xff]  ;;  %v20097_v0 = vld [vmem:[#allocation64_spill] sm:$0xff] }
 0x4e1   : > { %v6821_v18 = vpop.f32.mrf.mxu0  ;;  %v3988_v59 = vadd.f32 %v20092_v40, %v2718_v34  ;;  %v6664_v30 = vadd.f32 %v17086_v23, %v6165_v51  ;;  %v20096_v5 = vld [vmem:[#allocation113_spill] sm:$0xff]  ;;  %v20099_v34 = vld [vmem:[#allocation120_spill] sm:$0xff]  ;;  %v6665_v20 = vadd.f32 %v17094_v24, %v6166_v58  ;;  %v3991_v51 = vadd.f32 %v20100_v41, %v2721_v42  ;;  %v20111_v41 = vld [vmem:[#allocation86_spill] sm:$0xff] }
 0x4e2   : > { %v7104_v8 = vadd.f32 %v17142_v62, %v7068_v6  ;;  %7293 = vmatpush.msrb.mxu0 %v17202_v53  ;;  %v3982_v6 = vadd.f32 %v20091_v38, %v2712_v61  ;;  %v4480_v12 = vadd.f32 %v20094_v7, %v3981_v48  ;;  %v20098_v61 = vld [vmem:[#allocation119_spill] sm:$0xff]  ;;  %v7107_v43 = vadd.f32 %v17142_v62, %v7071_v1  ;;  %v20103_v24 = vld [vmem:[#allocation69_spill] sm:$0xff] }
 0x4e3   : > { %13483 = vmatmul.msk.f32.vlgmr.msrb.gmra.mxu0 %vm7235_vm9, %v20051_v31  ;;  %v4487_v63 = vadd.f32 %v20096_v5, %v3988_v59  ;;  %v4895_v11 = vadd.f32 %v20098_v61, %v4486_v52  ;;  %v7073_v23 = vadd.f32 %v6821_v18, %v6664_v30  ;;  %v20104_v52 = vld [vmem:[#allocation30_spill] sm:$0xff] }
 0x4e4   : > { %v17223_v39 = vmax.f32 %v7104_v8, 0.0  ;;  %v4481_v8 = vadd.f32 %v20097_v0, %v3982_v6  ;;  %v4889_v50 = vadd.f32 %v20099_v34, %v4480_v12  ;;  %v20102_v6 = vld [vmem:[#allocation124_spill] sm:$0xff]  ;;  %v2094_v1 = vadd.f32 %v20104_v52, %v20103_v24  ;;  %v20116_v52 = vld [vmem:[#allocation25_spill] sm:$0xff] }
 0x4e5   : > { %v6801_v45 = vpop.f32.mrf.mxu3  ;;  %v6167_v18 = vadd.f32 %v16979_v37, %v4895_v11  ;;  %v17262_v37 = vmax.f32 %v7107_v43, 0.0  ;;  %v20109_v43 = vld [vmem:[#allocation85_spill] sm:$0xff] }
 0x4e6   : > { %v7072_v25 = vadd.f32 %v6801_v45, %v6663_v10  ;;  %7312 = vmatpush.msrb.mxu1 %v17223_v39  ;;  %v20101_v10 = vld [vmem:[#allocation122_spill] sm:$0xff]  ;;  %v4890_v40 = vadd.f32 %v20102_v6, %v4481_v8  ;;  %v6161_v59 = vadd.f32 %v16971_v49, %v4889_v50  ;;  %v20105_v45 = vld [vmem:[#allocation112_spill] sm:$0xff]  ;;  %v20107_v8 = vld [vmem:[#allocation51_spill] sm:$0xff] }
 0x4e7   : > { %v6775_v48 = vpop.f32.mrf.mxu2  ;;  %v6844_v47 = vpop.f32.mrf.mxu1  ;;  %v4896_v38 = vadd.f32 %v20101_v10, %v4487_v63  ;;  %v4490_v42 = vadd.f32 %v20105_v45, %v3991_v51  ;;  %v6666_v30 = vadd.f32 %v17092_v57, %v6167_v18  ;;  %v20106_v63 = vld [vmem:[#allocation54_spill] sm:$0xff]  ;;  %v2725_v61 = vadd.f32 %v20107_v8, %v2178_v28  ;;  %v20113_v28 = vld [vmem:[#allocation125_spill] sm:$0xff]  ;;  %v20121_v8 = vld [vmem:[#allocation135_spill] sm:$0xff] }
 0x4e8   : > { %v7108_v3 = vadd.f32 %v17142_v62, %v7072_v25  ;;  %7313 = vmatpush.msrb.mxu1 %v17233_v16  ;;  %v6162_v19 = vadd.f32 %v16995_v36, %v4890_v40  ;;  %v6660_v49 = vadd.f32 %v17090_v56, %v6161_v59  ;;  %v7109_v25 = vadd.f32 %v17142_v62, %v7073_v23  ;;  %v20108_v36 = vld [vmem:[#allocation121_spill] sm:$0xff]  ;;  %v20112_v51 = vld [vmem:[#allocation82_spill] sm:$0xff] }
 0x4e9   : > { %v6824_v46 = vpop.f32.mrf.mxu0  ;;  %13484 = vmatmul.msk.f32.vlgmr.msrb.gmra.mxu1 %vm7235_vm9, %v20051_v31  ;;  %v6168_v58 = vadd.f32 %v17006_v29, %v4896_v38  ;;  %v2719_v0 = vadd.f32 %v20106_v63, %v17193_v14  ;;  %v4899_v11 = vadd.f32 %v20108_v36, %v4490_v42  ;;  %v7075_v50 = vadd.f32 %v6844_v47, %v6666_v30  ;;  %v20118_v30 = vld [vmem:[#allocation103_spill] sm:$0xff] }
 0x4ea   : > { %v17252_v7 = vmax.f32 %v7108_v3, 0.0  ;;  %v7074_v12 = vadd.f32 %v6824_v46, %v6665_v20  ;;  %v6661_v29 = vadd.f32 %v17098_v13, %v6162_v19  ;;  %v7069_v34 = vadd.f32 %v6775_v48, %v6660_v49  ;;  %v20110_v3 = vld [vmem:[#allocation26_spill] sm:$0xff] }
 0x4eb   : > { %v6667_v57 = vadd.f32 %v17100_v27, %v6168_v58  ;;  %v2720_v23 = vadd.f32 %v20109_v43, %v2094_v1  ;;  %v2726_v14 = vadd.f32 %v20111_v41, %v20110_v3  ;;  %v4900_v10 = vadd.f32 %v20113_v28, %v20112_v51  ;;  %v20114_v27 = vld [vmem:[#allocation104_spill] sm:$0xff]  ;;  %v20115_v46 = vld [vmem:[#allocation106_spill] sm:$0xff]  ;;  %v20117_v1 = vld [vmem:[#allocation131_spill] sm:$0xff] }
 0x4ec   : > { %v7110_v5 = vadd.f32 %v17142_v62, %v7074_v12  ;;  %7352 = vmatpush.msrb.mxu3 %v17252_v7  ;;  %v6171_v38 = vadd.f32 %v16997_v17, %v4899_v11  ;;  %v3989_v48 = vadd.f32 %v20114_v27, %v2719_v0  ;;  %v17283_v59 = vmax.f32 %v7109_v25, 0.0  ;;  %v20120_v0 = vld [vmem:[#allocation32_spill] sm:$0xff]  ;;  %v20125_v28 = vld [vmem:[#allocation55_spill] sm:$0xff] }
 0x4ed   : > { %v6890_v56 = vpop.f32.mrf.mxu3  ;;  %v3990_v24 = vadd.f32 %v20115_v46, %v2720_v23  ;;  %v4901_v18 = vadd.f32 %v20117_v1, %v20116_v52  ;;  %v6172_v17 = vadd.f32 %v17020_v21, %v4900_v10  ;;  %v7105_v42 = vadd.f32 %v17142_v62, %v7069_v34  ;;  %v20122_v34 = vld [vmem:[#allocation45_spill] sm:$0xff]  ;;  %v20124_v23 = vld [vmem:[#allocation68_spill] sm:$0xff]  ;;  %v20128_v52 = vld [vmem:[#allocation130_spill] sm:$0xff] }
 0x4ee   : > { %v17270_v20 = vmax.f32 %v7110_v5, 0.0  ;;  %7353 = vmatpush.msrb.mxu3 %v17262_v37  ;;  %v6670_v12 = vadd.f32 %v17096_v55, %v6171_v38  ;;  %v7111_v19 = vadd.f32 %v17142_v62, %v7075_v50  ;;  %v3995_v25 = vadd.f32 %v20118_v30, %v2725_v61  ;;  %v20119_v5 = vld [vmem:[#allocation105_spill] sm:$0xff]  ;;  %v20123_v61 = vld [vmem:[#allocation52_spill] sm:$0xff]  ;;  %v20126_v38 = vld [vmem:[#allocation126_spill] sm:$0xff] }
 0x4ef   : > { %v6778_v13 = vpop.f32.mrf.mxu2  ;;  %v6847_v6 = vpop.f32.mrf.mxu1  ;;  %13486 = vmatmul.msk.f32.vlgmr.msrb.gmra.mxu3 %vm7235_vm9, %v20051_v31  ;;  %v3996_v63 = vadd.f32 %v20119_v5, %v2726_v14  ;;  %v4902_v21 = vadd.f32 %v20121_v8, %v20120_v0  ;;  %v6173_v55 = vadd.f32 %v17008_v2, %v4901_v18  ;;  %v6671_v36 = vadd.f32 %v17104_v22, %v6172_v17  ;;  %v20132_v30 = vld [vmem:[#allocation74_spill] sm:$0xff]  ;;  %v20135_v0 = vld [vmem:[#allocation145_spill] sm:$0xff] }
 0x4f0   : > { %v7070_v47 = vadd.f32 %v6778_v13, %v6661_v29  ;;  %v7076_v40 = vadd.f32 %v6847_v6, %v6667_v57  ;;  %7372 = vmatpush.msra.mxu0 %v17270_v20  ;;  %v7079_v11 = vadd.f32 %v6890_v56, %v6670_v12  ;;  %v4494_v50 = vadd.f32 %v20122_v34, %v3995_v25  ;;  %v20127_v6 = vld [vmem:[#allocation128_spill] sm:$0xff]  ;;  %v20133_v25 = vld [vmem:[#allocation31_spill] sm:$0xff] }
 0x4f1   : > { %v6913_v45 = vpop.f32.mrf.mxu0  ;;  %v4488_v43 = vadd.f32 %v20123_v61, %v3989_v48  ;;  %v4495_v3 = vadd.f32 %v20124_v23, %v3996_v63  ;;  %v6174_v41 = vadd.f32 %v17026_v4, %v4902_v21  ;;  %v6672_v2 = vadd.f32 %v17102_v26, %v6173_v55  ;;  %v20134_v63 = vld [vmem:[#allocation143_spill] sm:$0xff]  ;;  %v20138_v61 = vld [vmem:[#allocation88_spill] sm:$0xff]  ;;  %v20139_v23 = vld [vmem:[#allocation29_spill] sm:$0xff] }
 0x4f2   : > { %v7106_v58 = vadd.f32 %v17142_v62, %v7070_v47  ;;  %v7112_v49 = vadd.f32 %v17142_v62, %v7076_v40  ;;  %7373 = vmatpush.msra.mxu0 %v17283_v59  ;;  %v17314_v22 = vmax.f32 %v7105_v42, 0.0  ;;  %v17316_v56 = vmax.f32 %v7111_v19, 0.0  ;;  %v20136_v21 = vld [vmem:[#allocation155_spill] sm:$0xff] }
 0x4f3   : > { %13487 = vmatmul.msk.f32.vlgmr.msra.gmra.mxu0 %vm7235_vm9, %v20051_v31  ;;  %v4489_v10 = vadd.f32 %v20125_v28, %v3990_v24  ;;  %v4903_v13 = vadd.f32 %v20126_v38, %v4494_v50  ;;  %v4897_v27 = vadd.f32 %v20127_v6, %v4488_v43  ;;  %v6673_v4 = vadd.f32 %v17110_v33, %v6174_v41  ;;  %v20129_v24 = vld [vmem:[#allocation132_spill] sm:$0xff]  ;;  %v20143_v28 = vld [vmem:[#allocation158_spill] sm:$0xff] }
 0x4f4   : > { %v17303_v29 = vmax.f32 %v7106_v58, 0.0  ;;  %v17305_v57 = vmax.f32 %v7112_v49, 0.0  ;;  %v7115_v26 = vadd.f32 %v17142_v62, %v7079_v11  ;;  %v7081_v40 = vadd.f32 %v6913_v45, %v6672_v2  ;;  %v20130_v33 = vld [vmem:[#allocation72_spill] sm:$0xff]  ;;  %v20131_v45 = vld [vmem:[#allocation34_spill] sm:$0xff]  ;;  %v20142_v2 = vld [vmem:[#allocation129_spill] sm:$0xff] }
 0x4f5   : > { %v6893_v14 = vpop.f32.mrf.mxu3  ;;  %v4904_v1 = vadd.f32 %v20128_v52, %v4495_v3  ;;  %v4898_v18 = vadd.f32 %v20129_v24, %v4489_v10  ;;  %v6169_v17 = vadd.f32 %v17014_v54, %v4897_v27  ;;  %v2207_v42 = vadd.f32 %v20131_v45, %v20130_v33  ;;  %v20140_v3 = vld [vmem:[#allocation89_spill] sm:$0xff]  ;;  %v20146_v52 = vld [vmem:[#allocation38_spill] sm:$0xff]  ;;  %v20150_v33 = vld [vmem:[#allocation144_spill] sm:$0xff] }
 0x4f6   : > { %v7080_v51 = vadd.f32 %v6893_v14, %v6671_v36  ;;  %7332 = vmatpush.msrb.mxu2 %v17303_v29  ;;  %7392 = vmatpush.msra.mxu1 %v17305_v57  ;;  %v6175_v19 = vadd.f32 %v17022_v32, %v4903_v13  ;;  %v2210_v5 = vadd.f32 %v20133_v25, %v20132_v30  ;;  %v20137_v36 = vld [vmem:[#allocation156_spill] sm:$0xff]  ;;  %v17347_v32 = vmax.f32 %v7115_v26, 0.0  ;;  %v20141_v14 = vld [vmem:[#allocation49_spill] sm:$0xff]  ;;  %v20144_v13 = vld [vmem:[#allocation159_spill] sm:$0xff] }
 0x4f7   : > { %v6867_v48 = vpop.f32.mrf.mxu2  ;;  %v6936_v47 = vpop.f32.mrf.mxu1  ;;  %v6170_v54 = vadd.f32 %v20134_v63, %v4898_v18  ;;  %v6176_v8 = vadd.f32 %v20135_v0, %v4904_v1  ;;  %v6668_v55 = vadd.f32 %v20136_v21, %v6169_v17  ;;  %v7117_v34 = vadd.f32 %v17142_v62, %v7081_v40  ;;  %v20145_v26 = vld [vmem:[#allocation90_spill] sm:$0xff]  ;;  %v20147_v1 = vld [vmem:[#allocation91_spill] sm:$0xff]  ;;  %v20148_v18 = vld [vmem:[#allocation56_spill] sm:$0xff] }
 0x4f8   : > { %v7116_v46 = vadd.f32 %v17142_v62, %v7080_v51  ;;  %7333 = vmatpush.msrb.mxu2 %v17314_v22  ;;  %7393 = vmatpush.msra.mxu1 %v17316_v56  ;;  %v6674_v11 = vadd.f32 %v20137_v36, %v6175_v19  ;;  %v2727_v43 = vadd.f32 %v20138_v61, %v2207_v42  ;;  %v20149_v17 = vld [vmem:[#allocation133_spill] sm:$0xff]  ;;  %v20154_v0 = vld [vmem:[#allocation138_spill] sm:$0xff]  ;;  %v20155_v21 = vld [vmem:[#allocation148_spill] sm:$0xff] }
 0x4f9   : > { %v6916_v12 = vpop.f32.mrf.mxu0  ;;  %13488 = vmatmul.msk.f32.vlgmr.msra.gmra.mxu1 %vm7235_vm9, %v20051_v31  ;;  %13485 = vmatmul.msk.f32.vlgmr.msrb.gmra.mxu2 %vm7235_vm9, %v20051_v31  ;;  %v2733_v41 = vadd.f32 %v20140_v3, %v20139_v23  ;;  %v4907_v51 = vadd.f32 %v20142_v2, %v20141_v14  ;;  %v6669_v10 = vadd.f32 %v20143_v28, %v6170_v54  ;;  %v17369_v25 = vmax.f32 %v7117_v34, 0.0  ;;  %v20153_v54 = vld [vmem:[#allocation57_spill] sm:$0xff]  ;;  %v20157_v34 = vld [vmem:[#allocation107_spill] sm:$0xff]  ;;  %v20158_v2 = vld [vmem:[#allocation110_spill] sm:$0xff] }
 0x4fa   : > { %v17336_v58 = vmax.f32 %v7116_v46, 0.0  ;;  %v7082_v49 = vadd.f32 %v6916_v12, %v6673_v4  ;;  %v6675_v6 = vadd.f32 %v20144_v13, %v6176_v8  ;;  %v7077_v27 = vadd.f32 %v6867_v48, %v6668_v55  ;;  %v20151_v48 = vld [vmem:[#allocation109_spill] sm:$0xff]  ;;  %v20159_v28 = vld [vmem:[#allocation36_spill] sm:$0xff] }
 0x4fb   : > { %v7083_v4 = vadd.f32 %v6936_v47, %v6674_v11  ;;  %v2728_v46 = vadd.f32 %v20145_v26, %v2210_v5  ;;  %v2734_v24 = vadd.f32 %v20147_v1, %v20146_v52  ;;  %v4908_v12 = vadd.f32 %v20149_v17, %v20148_v18  ;;  %v20152_v5 = vld [vmem:[#allocation111_spill] sm:$0xff]  ;;  %v20156_v36 = vld [vmem:[#allocation157_spill] sm:$0xff]  ;;  %v20163_v18 = vld [vmem:[#allocation70_spill] sm:$0xff] }
 0x4fc   : > { %v7118_v50 = vadd.f32 %v17142_v62, %v7082_v49  ;;  %7432 = vmatpush.msra.mxu3 %v17336_v58  ;;  %v6179_v45 = vadd.f32 %v20150_v33, %v4907_v51  ;;  %v3997_v47 = vadd.f32 %v20151_v48, %v2727_v43  ;;  %v4909_v8 = vadd.f32 %v20154_v0, %v20153_v54  ;;  %v20167_v48 = vld [vmem:[#allocation160_spill] sm:$0xff]  ;;  %v20168_v54 = vld [vmem:[#allocation73_spill] sm:$0xff] }
 0x4fd   : > { %v6982_v38 = vpop.f32.mrf.mxu3  ;;  %v3998_v63 = vadd.f32 %v20152_v5, %v2728_v46  ;;  %v6180_v55 = vadd.f32 %v20155_v21, %v4908_v12  ;;  %v7113_v61 = vadd.f32 %v17142_v62, %v7077_v27  ;;  %v7119_v43 = vadd.f32 %v17142_v62, %v7083_v4  ;;  %v20162_v27 = vld [vmem:[#allocation161_spill] sm:$0xff]  ;;  %v20170_v21 = vld [vmem:[#allocation136_spill] sm:$0xff] }
 0x4fe   : > { %v17356_v40 = vmax.f32 %v7118_v50, 0.0  ;;  %7433 = vmatpush.msra.mxu3 %v17347_v32  ;;  %v6678_v11 = vadd.f32 %v20156_v36, %v6179_v45  ;;  %v4003_v14 = vadd.f32 %v20157_v34, %v2733_v41  ;;  %v4004_v51 = vadd.f32 %v20158_v2, %v2734_v24  ;;  %v20164_v41 = vld [vmem:[#allocation27_spill] sm:$0xff]  ;;  %v20166_v45 = vld [vmem:[#allocation150_spill] sm:$0xff] }
 0x4ff   : > { %v6870_v42 = vpop.f32.mrf.mxu2  ;;  %v6939_v19 = vpop.f32.mrf.mxu1  ;;  %13490 = vmatmul.msk.f32.vlgmr.msra.gmra.mxu3 %vm7235_vm9, %v20051_v31  ;;  %v6679_v4 = vadd.f32 %v20162_v27, %v6180_v55  ;;  %v4496_v12 = vadd.f32 %v20164_v41, %v3997_v47  ;;  %v20165_v24 = vld [vmem:[#allocation87_spill] sm:$0xff]  ;;  %v17402_v5 = vmax.f32 %v7119_v43, 0.0  ;;  %v4497_v0 = vadd.f32 %v20168_v54, %v3998_v63  ;;  %v20178_v41 = vld [vmem:[#allocation162_spill] sm:$0xff] }
 0x500   : > { %v7078_v49 = vadd.f32 %v6870_v42, %v6669_v10  ;;  %v7084_v30 = vadd.f32 %v6939_v19, %v6675_v6  ;;  %7452 = vmatpush.msrb.mxu0 %v17356_v40  ;;  %v20160_v10 = vld [vmem:[#allocation140_spill] sm:$0xff]  ;;  %v20161_v6 = vld [vmem:[#allocation146_spill] sm:$0xff]  ;;  %v7087_v46 = vadd.f32 %v6982_v38, %v6678_v11  ;;  %v4502_v17 = vadd.f32 %v20163_v18, %v4003_v14  ;;  %v20171_v36 = vld [vmem:[#allocation23_spill] sm:$0xff] }
 0x501   : > { %v7005_v50 = vpop.f32.mrf.mxu0  ;;  %v4910_v13 = vadd.f32 %v20160_v10, %v20159_v28  ;;  %v6181_v26 = vadd.f32 %v20161_v6, %v4909_v8  ;;  %v4503_v33 = vadd.f32 %v20165_v24, %v4004_v51  ;;  %v17400_v38 = vmax.f32 %v7113_v61, 0.0  ;;  %v20169_v8 = vld [vmem:[#allocation134_spill] sm:$0xff]  ;;  %v20172_v61 = vld [vmem:[#allocation137_spill] sm:$0xff]  ;;  %v20173_v63 = vld [vmem:[#allocation139_spill] sm:$0xff] }
 0x502   : > { %v7114_v23 = vadd.f32 %v17142_v62, %v7078_v49  ;;  %v7120_v3 = vadd.f32 %v17142_v62, %v7084_v30  ;;  %7453 = vmatpush.msrb.mxu0 %v17369_v25  ;;  %v4911_v47 = vadd.f32 %v20169_v8, %v4502_v17  ;;  %v4905_v55 = vadd.f32 %v20170_v21, %v4496_v12  ;;  %v20174_v28 = vld [vmem:[#allocation147_spill] sm:$0xff]  ;;  %v20177_v18 = vld [vmem:[#allocation152_spill] sm:$0xff] }
 0x503   : > { %13491 = vmatmul.msk.f32.vlgmr.msrb.gmra.mxu0 %vm7235_vm9, %v20051_v31  ;;  %v6182_v42 = vadd.f32 %v20166_v45, %v4910_v13  ;;  %v6680_v49 = vadd.f32 %v20167_v48, %v6181_v26  ;;  %v7123_v34 = vadd.f32 %v17142_v62, %v7087_v46  ;;  %v4912_v43 = vadd.f32 %v20172_v61, %v4503_v33  ;;  %v20179_v24 = vld [vmem:[#allocation163_spill] sm:$0xff] }
 0x504   : > { %v17389_v52 = vmax.f32 %v7114_v23, 0.0  ;;  %v17391_v1 = vmax.f32 %v7120_v3, 0.0  ;;  %v4906_v51 = vadd.f32 %v20173_v63, %v4497_v0  ;;  %v6177_v10 = vadd.f32 %v20174_v28, %v4905_v55  ;;  %v20181_v0 = vld [vmem:[#allocation165_spill] sm:$0xff]  ;;  %v20182_v55 = vld [vmem:[#allocation76_spill] sm:$0xff]  ;;  %v20185_v63 = vld [vmem:[#allocation39_spill] sm:$0xff] }
 0x505   : > { %v6985_v19 = vpop.f32.mrf.mxu3  ;;  %v6681_v11 = vadd.f32 %v20171_v36, %v6182_v42  ;;  %v7089_v14 = vadd.f32 %v7005_v50, %v6680_v49  ;;  %v20175_v50 = vld [vmem:[#allocation149_spill] sm:$0xff]  ;;  %v6184_v17 = vadd.f32 %v20177_v18, %v4912_v43  ;;  %v17434_v49 = vld [vmem:[%s19729_s2 + $0xf8] sm:$0xff]  ;;  %v20183_v36 = vld [vmem:[#allocation35_spill] sm:$0xff] }
 0x506   : > { %v7088_v30 = vadd.f32 %v6985_v19, %v6679_v4  ;;  %7412 = vmatpush.msra.mxu2 %v17389_v52  ;;  %7472 = vmatpush.msrb.mxu1 %v17391_v1  ;;  %v6183_v6 = vadd.f32 %v20175_v50, %v4911_v47  ;;  %v20176_v4 = vld [vmem:[#allocation151_spill] sm:$0xff]  ;;  %v6676_v12 = vadd.f32 %v20178_v41, %v6177_v10  ;;  %v17429_v19 = vmax.f32 %v7123_v34, 0.0  ;;  %v20184_v43 = vld [vmem:[#allocation78_spill] sm:$0xff]  ;;  %v20186_v28 = vld [vmem:[#allocation93_spill] sm:$0xff] }
 0x507   : > { %v6959_v23 = vpop.f32.mrf.mxu2  ;;  %v7028_v3 = vpop.f32.mrf.mxu1  ;;  %v6178_v46 = vadd.f32 %v20176_v4, %v4906_v51  ;;  %v7125_v45 = vadd.f32 %v17142_v62, %v7089_v14  ;;  %v6683_v8 = vadd.f32 %v20181_v0, %v6184_v17  ;;  %v2326_v51 = vadd.f32 %v20185_v63, %v20184_v43  ;;  %v17461_v50 = vld [vmem:[%s19729_s2 + $0xe8] sm:$0xff]  ;;  %v20188_v17 = vld [vmem:[#allocation95_spill] sm:$0xff]  ;;  %v20194_v43 = vld [vmem:[#allocation153_spill] sm:$0xff] }
 0x508   : > { %v7124_v2 = vadd.f32 %v17142_v62, %v7088_v30  ;;  %7413 = vmatpush.msra.mxu2 %v17400_v38  ;;  %7473 = vmatpush.msrb.mxu1 %v17402_v5  ;;  %v6682_v33 = vadd.f32 %v20179_v24, %v6183_v6  ;;  %v7085_v48 = vadd.f32 %v6959_v23, %v6676_v12  ;;  %v20180_v30 = vld [vmem:[#allocation164_spill] sm:$0xff]  ;;  %v17448_v23 = vld [vmem:[%s19729_s2 + $0xf0] sm:$0xff] }
 0x509   : > { %v7008_v13 = vpop.f32.mrf.mxu0  ;;  %13492 = vmatmul.msk.f32.vlgmr.msrb.gmra.mxu1 %vm7235_vm9, %v20051_v31  ;;  %13489 = vmatmul.msk.f32.vlgmr.msra.gmra.mxu2 %vm7235_vm9, %v20051_v31  ;;  %v6677_v54 = vadd.f32 %v20180_v30, %v6178_v46  ;;  %v20187_v46 = vld [vmem:[#allocation94_spill] sm:$0xff] }
 0x50a   : > { %v17420_v26 = vmax.f32 %v7124_v2, 0.0  ;;  %v7090_v27 = vadd.f32 %v7008_v13, %v6681_v11  ;;  %v7091_v47 = vadd.f32 %v7028_v3, %v6682_v33  ;;  %v2323_v11 = vadd.f32 %v20183_v36, %v20182_v55  ;;  %v17481_v33 = vld [vmem:[%s19729_s2 + $0xe0] sm:$0xff] }
 0x50b   : > { %v17451_v3 = vmax.f32 %v7125_v45, 0.0  ;;  %v7121_v13 = vadd.f32 %v17142_v62, %v7085_v48  ;;  %v2736_v18 = vadd.f32 %v20187_v46, %v2326_v51  ;;  %v20189_v45 = vld [vmem:[#allocation40_spill] sm:$0xff]  ;;  %v20190_v48 = vld [vmem:[#allocation114_spill] sm:$0xff]  ;;  %v20191_v55 = vld [vmem:[#allocation117_spill] sm:$0xff] }
 0x50c   : > { %v7126_v42 = vadd.f32 %v17142_v62, %v7090_v27  ;;  %7512 = vmatpush.msrb.mxu3 %v17420_v26  ;;  %v2735_v10 = vadd.f32 %v20186_v28, %v2323_v11  ;;  %v7127_v6 = vadd.f32 %v17142_v62, %v7091_v47  ;;  %v17496_v47 = vld [vmem:[%s19729_s2 + $0xd8] sm:$0xff]  ;;  %v20192_v11 = vld [vmem:[#allocation141_spill] sm:$0xff]  ;;  %v17518_v51 = vld [vmem:[%s19729_s2 + $0xc8] sm:$0xff] }
 0x50d   : > { %v20195_v28 = vld [vmem:[#allocation154_spill] sm:$0xff] }
 0x50e   : > { %v17438_v21 = vmax.f32 %v7126_v42, 0.0  ;;  %7513 = vmatpush.msrb.mxu3 %v17429_v19  ;;  %v4005_v41 = vadd.f32 %v20188_v17, %v2735_v10  ;;  %v4006_v42 = vadd.f32 %v20189_v45, %v2736_v18  ;;  %v17489_v0 = vmax.f32 %v7127_v6, 0.0  ;;  %v17528_v6 = vld [vmem:[%s19729_s2 + $0xc0] sm:$0xff] }
 0x50f   : > { %v6962_v34 = vpop.f32.mrf.mxu2  ;;  %v7031_v14 = vpop.f32.mrf.mxu1  ;;  %13494 = vmatmul.msk.f32.vlgmr.msrb.gmra.mxu3 %vm7235_vm9, %v20051_v31 }
 0x510   : > { %v7086_v2 = vadd.f32 %v6962_v34, %v6677_v54  ;;  %v7092_v61 = vadd.f32 %v7031_v14, %v6683_v8  ;;  %7532 = vmatpush.msra.mxu0 %v17438_v21  ;;  %7590 = vmatpush.msra.mxu3 %v17434_v49  ;;  %v4504_v30 = vadd.f32 %v20190_v48, %v4005_v41  ;;  %v17487_v54 = vmax.f32 %v7121_v13, 0.0  ;;  %v17509_v14 = vld [vmem:[%s19729_s2 + $0xd0] sm:$0xff]  ;;  %v17623_v48 = vld [vmem:[%s19729_s2 + $0x18] sm:$0xff] }
 0x511   : > { %v4505_v36 = vadd.f32 %v20191_v55, %v4006_v42  ;;  %v17616_v42 = vld [vmem:[%s19729_s2 + $0x20] sm:$0xff] }
 0x512   : > { %v7122_v27 = vadd.f32 %v17142_v62, %v7086_v2  ;;  %v7128_v4 = vadd.f32 %v17142_v62, %v7092_v61  ;;  %7533 = vmatpush.msra.mxu0 %v17451_v3  ;;  %7591 = vmatpush.msra.mxu3 %v17448_v23  ;;  %v4913_v34 = vadd.f32 %v20192_v11, %v4504_v30  ;;  %v20193_v2 = vld [vmem:[#allocation142_spill] sm:$0xff]  ;;  %v17630_v30 = vld [vmem:[%s19729_s2 + $0x10] sm:$0xff] }
 0x513   : > { %13495 = vmatmul.msk.f32.vlgmr.msra.gmra.mxu0 %vm7235_vm9, %v20051_v31  ;;  %v4914_v61 = vadd.f32 %v20193_v2, %v4505_v36 }
 0x514   : > { %v17472_v12 = vmax.f32 %v7122_v27, 0.0  ;;  %v17474_v24 = vmax.f32 %v7128_v4, 0.0  ;;  %7592 = vmatpush.msra.mxu3 %v17461_v50  ;;  %7613 = vmatpush.msrb.mxu0 %v17434_v49  ;;  %v6185_v63 = vadd.f32 %v20194_v43, %v4913_v34 }
 0x515   : > { %v6186_v10 = vadd.f32 %v20195_v28, %v4914_v61  ;;  %v17691_v61 = vld [vmem:[%s19729_s2 + $0x1b8] sm:$0xff] }
 0x516   : > { %7492 = vmatpush.msrb.mxu2 %v17472_v12  ;;  %7552 = vmatpush.msra.mxu1 %v17474_v24  ;;  %v6684_v13 = vadd.f32 %v17156_v35, %v6185_v63 }
 0x517   : > { %v7057_v8 = vpop.f32.mrf.mxu2  ;;  %7593 = vmatpush.msra.mxu3 %v17481_v33  ;;  %7614 = vmatpush.msrb.mxu0 %v17448_v23  ;;  %v6685_v27 = vadd.f32 %v17195_v15, %v6186_v10  ;;  %v17712_v10 = vld [vmem:[%s19729_s2 + $0x1a8] sm:$0xff] }
 0x518   : > { %7493 = vmatpush.msrb.mxu2 %v17487_v54  ;;  %7553 = vmatpush.msra.mxu1 %v17489_v0  ;;  %v7093_v4 = vadd.f32 %v7057_v8, %v6684_v13  ;;  %v17637_v8 = vld [vmem:[%s19729_s2 + $0x8] sm:$0xff] }
 0x519   : > { %13496 = vmatmul.msk.f32.vlgmr.msra.gmra.mxu1 %vm7235_vm9, %v20051_v31  ;;  %13493 = vmatmul.msk.f32.vlgmr.msrb.gmra.mxu2 %vm7235_vm9, %v20051_v31 }
 0x51a   : > { %7594 = vmatpush.msra.mxu3 %v17496_v47  ;;  %7615 = vmatpush.msrb.mxu0 %v17461_v50  ;;  %v7129_v18 = vadd.f32 %v17142_v62, %v7093_v4  ;;  %v17740_v4 = vld [vmem:[%s19729_s2 + $0x190] sm:$0xff] }
 0x51b   : > { %7636 = vmatpush.msrb.mxu1 %v17434_v49 }
 0x51c   : > { %7595 = vmatpush.msra.mxu3 %v17509_v14  ;;  %7616 = vmatpush.msrb.mxu0 %v17481_v33  ;;  %v17550_v41 = vmax.f32 %v7129_v18, 0.0  ;;  %v17761_v18 = vld [vmem:[%s19729_s2 + $0x180] sm:$0xff] }
 0x51d   : > { %7637 = vmatpush.msrb.mxu1 %v17448_v23 }
 0x51e   : > { %7596 = vmatpush.msra.mxu3 %v17518_v51  ;;  %7617 = vmatpush.msrb.mxu0 %v17496_v47 }
 0x51f   : > { %v7060_v46 = vpop.f32.mrf.mxu2  ;;  %7638 = vmatpush.msrb.mxu1 %v17461_v50 }
 0x520   : > { %v7094_v35 = vadd.f32 %v7060_v46, %v6685_v27  ;;  %7597 = vmatpush.msra.mxu3 %v17528_v6  ;;  %7618 = vmatpush.msrb.mxu0 %v17509_v14  ;;  %v17731_v27 = vld [vmem:[%s19729_s2 + $0x198] sm:$0xff] }
 0x521   : > { %7639 = vmatpush.msrb.mxu1 %v17481_v33 }
 0x522   : > { %7682 = vmatpush.msrb.mxu3 %v17434_v49  ;;  %v7130_v15 = vadd.f32 %v17142_v62, %v7094_v35  ;;  %7619 = vmatpush.msrb.mxu0 %v17518_v51  ;;  %v7255_v62 = vpop.f32.mrf.mxu3  ;;  %v17752_v35 = vld [vmem:[%s19729_s2 + $0x188] sm:$0xff] }
 0x523   : > { %7640 = vmatpush.msrb.mxu1 %v17496_v47 }
 0x524   : > { %7683 = vmatpush.msrb.mxu3 %v17448_v23  ;;  %v17544_v17 = vmax.f32 %v7130_v15, 0.0  ;;  %7620 = vmatpush.msrb.mxu0 %v17528_v6 }
 0x525   : > { %7641 = vmatpush.msrb.mxu1 %v17509_v14 }
 0x526   : > { %7684 = vmatpush.msrb.mxu3 %v17461_v50  ;;  %7705 = vmatpush.msra.mxu0 %v17434_v49 }
 0x527   : > { %7572 = vmatpush.msra.mxu2 %v17544_v17  ;;  %7642 = vmatpush.msrb.mxu1 %v17518_v51 }
 0x528   : > { %7685 = vmatpush.msrb.mxu3 %v17481_v33  ;;  %7706 = vmatpush.msra.mxu0 %v17448_v23 }
 0x529   : > { %7573 = vmatpush.msra.mxu2 %v17550_v41  ;;  %7643 = vmatpush.msrb.mxu1 %v17528_v6 }
 0x52a   : > { %13497 = vmatmul.msk.f32.vlgmr.msra.gmra.mxu2 %vm7235_vm9, %v20051_v31  ;;  %7686 = vmatpush.msrb.mxu3 %v17496_v47 }
 0x52b   : > { %7659 = vmatpush.msrb.mxu2 %v17434_v49  ;;  %7707 = vmatpush.msra.mxu0 %v17461_v50 }
 0x52c   : > { %7687 = vmatpush.msrb.mxu3 %v17509_v14  ;;  %7728 = vmatpush.msra.mxu1 %v17434_v49 }
 0x52d   : > { %7660 = vmatpush.msrb.mxu2 %v17448_v23  ;;  %7708 = vmatpush.msra.mxu0 %v17481_v33 }
 0x52e   : > { %7688 = vmatpush.msrb.mxu3 %v17518_v51  ;;  %7729 = vmatpush.msra.mxu1 %v17448_v23 }
 0x52f   : > { %7661 = vmatpush.msrb.mxu2 %v17461_v50  ;;  %7709 = vmatpush.msra.mxu0 %v17496_v47 }
 0x530   : > { %7689 = vmatpush.msrb.mxu3 %v17528_v6  ;;  %7730 = vmatpush.msra.mxu1 %v17461_v50 }
 0x531   : > { %7662 = vmatpush.msrb.mxu2 %v17481_v33  ;;  %7710 = vmatpush.msra.mxu0 %v17509_v14 }
 0x532   : > { %7731 = vmatpush.msra.mxu1 %v17481_v33 }
 0x533   : > { %7663 = vmatpush.msrb.mxu2 %v17496_v47  ;;  %7711 = vmatpush.msra.mxu0 %v17518_v51 }
 0x534   : > { %7732 = vmatpush.msra.mxu1 %v17496_v47 }
 0x535   : > { %7664 = vmatpush.msrb.mxu2 %v17509_v14  ;;  %7712 = vmatpush.msra.mxu0 %v17528_v6 }
 0x536   : > { %7733 = vmatpush.msra.mxu1 %v17509_v14 }
 0x537   : > { %7665 = vmatpush.msrb.mxu2 %v17518_v51 }
 0x538   : > { %7734 = vmatpush.msra.mxu1 %v17518_v51 }
 0x539   : > { %7666 = vmatpush.msrb.mxu2 %v17528_v6 }
 0x53a   : > { %7735 = vmatpush.msra.mxu1 %v17528_v6 }
 0x53b   : > { %7751 = vmatpush.msra.mxu2 %v17434_v49  ;;  %v17597_v49 = vld [vmem:[%s19729_s2 + $0x38] sm:$0xff] }
 0x53d   : > { %7752 = vmatpush.msra.mxu2 %v17448_v23 }
 0x53f   : > { %7753 = vmatpush.msra.mxu2 %v17461_v50  ;;  %v17603_v50 = vld [vmem:[%s19729_s2 + $0x30] sm:$0xff] }
 0x541   : > { %7754 = vmatpush.msra.mxu2 %v17481_v33  ;;  %v17609_v33 = vld [vmem:[%s19729_s2 + $0x28] sm:$0xff] }
 0x543   : > { %7755 = vmatpush.msra.mxu2 %v17496_v47  ;;  %v17644_v47 = vld [vmem:[%s19729_s2] sm:$0xff] }
 0x545   : > { %7756 = vmatpush.msra.mxu2 %v17509_v14 }
 0x547   : > { %7757 = vmatpush.msra.mxu2 %v17518_v51  ;;  %v17700_v51 = vld [vmem:[%s19729_s2 + $0x1b0] sm:$0xff] }
 0x549   : > { %7758 = vmatpush.msra.mxu2 %v17528_v6  ;;  %v17722_v6 = vld [vmem:[%s19729_s2 + $0x1a0] sm:$0xff] }
 0x560   : > { %v7295_v2 = vpop.f32.mrf.mxu0 }
 0x562   : > { %v7275_v23 = vpop.f32.mrf.mxu3 }
 0x563   : > { %13498 = vmatmul.msk.f32.vlgmr.msra.gmra.mxu3 %vm7578_vm10, %v7275_v23  ;;  %v20197_v23 = vld [vmem:[#allocation71_spill] sm:$0xff] }
 0x564   : > { %7774 = vmatpush.msra.mxu3 %v17597_v49 }
 0x566   : > { %v7315_v45 = vpop.f32.mrf.mxu1  ;;  %7775 = vmatpush.msra.mxu3 %v17603_v50 }
 0x567   : > { %13499 = vmatmul.msk.f32.vlgmr.msrb.gmra.mxu0 %vm7578_vm10, %v7315_v45  ;;  %v7177_v45 = vld [vmem:[%s19729_s2 + $0x70] sm:$0xff] }
 0x568   : > { %7776 = vmatpush.msra.mxu3 %v17609_v33  ;;  %7797 = vmatpush.msrb.mxu0 %v17597_v49 }
 0x56a   : > { %7777 = vmatpush.msra.mxu3 %v17616_v42  ;;  %7798 = vmatpush.msrb.mxu0 %v17603_v50 }
 0x56c   : > { %7778 = vmatpush.msra.mxu3 %v17623_v48  ;;  %7799 = vmatpush.msrb.mxu0 %v17609_v33 }
 0x56e   : > { %7779 = vmatpush.msra.mxu3 %v17630_v30  ;;  %7800 = vmatpush.msrb.mxu0 %v17616_v42 }
 0x570   : > { %7780 = vmatpush.msra.mxu3 %v17637_v8  ;;  %7801 = vmatpush.msrb.mxu0 %v17623_v48  ;;  %v17704_v28 = vpop.f32.mrf.mxu0 }
 0x572   : > { %v7355_v55 = vpop.f32.mrf.mxu3  ;;  %7781 = vmatpush.msra.mxu3 %v17644_v47  ;;  %7802 = vmatpush.msrb.mxu0 %v17630_v30 }
 0x573   : > { %13500 = vmatmul.msk.f32.vlgmr.msrb.gmra.mxu1 %vm7578_vm10, %v7355_v55  ;;  %v7172_v55 = vld [vmem:[%s19729_s2 + $0x48] sm:$0xff] }
 0x574   : > { %7803 = vmatpush.msrb.mxu0 %v17637_v8  ;;  %7820 = vmatpush.msrb.mxu1 %v17597_v49 }
 0x576   : > { %v7395_v36 = vpop.f32.mrf.mxu1  ;;  %7804 = vmatpush.msrb.mxu0 %v17644_v47  ;;  %7821 = vmatpush.msrb.mxu1 %v17603_v50 }
 0x577   : > { %13501 = vmatmul.msk.f32.vlgmr.msrb.gmra.mxu2 %vm7578_vm10, %v7395_v36  ;;  %v7171_v36 = vld [vmem:[%s19729_s2 + $0x40] sm:$0xff] }
 0x578   : > { %7822 = vmatpush.msrb.mxu1 %v17609_v33  ;;  %7843 = vmatpush.msrb.mxu2 %v17597_v49 }
 0x57a   : > { %7823 = vmatpush.msrb.mxu1 %v17616_v42  ;;  %7844 = vmatpush.msrb.mxu2 %v17603_v50 }
 0x57c   : > { %7824 = vmatpush.msrb.mxu1 %v17623_v48  ;;  %7845 = vmatpush.msrb.mxu2 %v17609_v33  ;;  %v17674_v14 = vpop.f32.mrf.mxu2 }
 0x57e   : > { %7825 = vmatpush.msrb.mxu1 %v17630_v30  ;;  %7846 = vmatpush.msrb.mxu2 %v17616_v42 }
 0x580   : > { %7826 = vmatpush.msrb.mxu1 %v17637_v8  ;;  %7847 = vmatpush.msrb.mxu2 %v17623_v48  ;;  %v7455_v46 = vpop.f32.mrf.mxu0 }
 0x582   : > { %v7435_v11 = vpop.f32.mrf.mxu3  ;;  %7827 = vmatpush.msrb.mxu1 %v17644_v47  ;;  %7848 = vmatpush.msrb.mxu2 %v17630_v30 }
 0x583   : > { %13502 = vmatmul.msk.f32.vlgmr.msrb.gmra.mxu3 %vm7578_vm10, %v7435_v11 }
 0x584   : > { %7866 = vmatpush.msrb.mxu3 %v17597_v49  ;;  %7849 = vmatpush.msrb.mxu2 %v17637_v8 }
 0x586   : > { %7867 = vmatpush.msrb.mxu3 %v17603_v50  ;;  %v7475_v34 = vpop.f32.mrf.mxu1  ;;  %7850 = vmatpush.msrb.mxu2 %v17644_v47 }
 0x587   : > { %13503 = vmatmul.msk.f32.vlgmr.msra.gmra.mxu0 %vm7578_vm10, %v7475_v34 }
 0x588   : > { %7868 = vmatpush.msrb.mxu3 %v17609_v33  ;;  %7889 = vmatpush.msra.mxu0 %v17597_v49 }
 0x58a   : > { %7869 = vmatpush.msrb.mxu3 %v17616_v42  ;;  %7890 = vmatpush.msra.mxu0 %v17603_v50 }
 0x58b   : > { %13506 = vmatmul.msk.f32.vlgmr.msra.gmra.mxu3 %vm7578_vm10, %v7255_v62 }
 0x58c   : > { %7870 = vmatpush.msrb.mxu3 %v17623_v48  ;;  %7891 = vmatpush.msra.mxu0 %v17609_v33  ;;  %v17693_v43 = vpop.f32.mrf.mxu2 }
 0x58e   : > { %7871 = vmatpush.msrb.mxu3 %v17630_v30  ;;  %7892 = vmatpush.msra.mxu0 %v17616_v42 }
 0x58f   : > { %13507 = vmatmul.msk.f32.vlgmr.msrb.gmra.mxu0 %vm7578_vm10, %v7295_v2 }
 0x590   : > { %7872 = vmatpush.msrb.mxu3 %v17637_v8  ;;  %7893 = vmatpush.msra.mxu0 %v17623_v48  ;;  %v7535_v62 = vpop.f32.mrf.mxu0 }
 0x592   : > { %7873 = vmatpush.msrb.mxu3 %v17644_v47  ;;  %7894 = vmatpush.msra.mxu0 %v17630_v30  ;;  %v7515_v63 = vpop.f32.mrf.mxu3 }
 0x593   : > { %13504 = vmatmul.msk.f32.vlgmr.msra.gmra.mxu1 %vm7578_vm10, %v7515_v63  ;;  %13510 = vmatmul.msk.f32.vlgmr.msrb.gmra.mxu3 %vm7578_vm10, %v17693_v43 }
 0x594   : > { %7955 = vmatpush.msra.mxu3 %v17691_v61  ;;  %7895 = vmatpush.msra.mxu0 %v17637_v8 }
 0x595   : > { %7912 = vmatpush.msra.mxu1 %v17597_v49 }
 0x596   : > { %7956 = vmatpush.msra.mxu3 %v17700_v51  ;;  %7896 = vmatpush.msra.mxu0 %v17644_v47  ;;  %v7555_v13 = vpop.f32.mrf.mxu1 }
 0x597   : > { %7913 = vmatpush.msra.mxu1 %v17603_v50  ;;  %13505 = vmatmul.msk.f32.vlgmr.msra.gmra.mxu2 %vm7578_vm10, %v7555_v13 }
 0x598   : > { %7957 = vmatpush.msra.mxu3 %v17712_v10  ;;  %7975 = vmatpush.msrb.mxu0 %v17691_v61 }
 0x599   : > { %7914 = vmatpush.msra.mxu1 %v17609_v33  ;;  %7935 = vmatpush.msra.mxu2 %v17597_v49  ;;  %v20196_v49 = vmov 0.0  }
 0x59a   : > { %7958 = vmatpush.msra.mxu3 %v17722_v6  ;;  %7976 = vmatpush.msrb.mxu0 %v17700_v51 }
 0x59b   : > { %7915 = vmatpush.msra.mxu1 %v17616_v42  ;;  %7936 = vmatpush.msra.mxu2 %v17603_v50 }
 0x59c   : > { %7959 = vmatpush.msra.mxu3 %v17731_v27  ;;  %7977 = vmatpush.msrb.mxu0 %v17712_v10  ;;  %v7495_v15 = vpop.f32.mrf.mxu2 }
 0x59d   : > { %13508 = vmatmul.msk.f32.vlgmr.msrb.gmra.mxu1 %vm7578_vm10, %v17674_v14  ;;  %7937 = vmatpush.msra.mxu2 %v17609_v33  ;;  %v7178_v33 = vld [vmem:[%s19729_s2 + $0x78] sm:$0xff] }
 0x59e   : > { %7916 = vmatpush.msra.mxu1 %v17623_v48  ;;  %7960 = vmatpush.msra.mxu3 %v17740_v4 }
 0x59f   : > { %7978 = vmatpush.msrb.mxu0 %v17722_v6  ;;  %7938 = vmatpush.msra.mxu2 %v17616_v42  ;;  %v7176_v42 = vld [vmem:[%s19729_s2 + $0x68] sm:$0xff] }
 0x5a0   : > { %13511 = vmatmul.msk.f32.vlgmr.msra.gmra.mxu0 %vm7578_vm10, %v7455_v46  ;;  %7917 = vmatpush.msra.mxu1 %v17630_v30 }
 0x5a1   : > { %7961 = vmatpush.msra.mxu3 %v17752_v35  ;;  %7979 = vmatpush.msrb.mxu0 %v17731_v27 }
 0x5a2   : > { %13509 = vmatmul.msk.f32.vlgmr.msrb.gmra.mxu2 %vm7578_vm10, %v17704_v28  ;;  %7918 = vmatpush.msra.mxu1 %v17637_v8 }
 0x5a3   : > { %7939 = vmatpush.msra.mxu2 %v17623_v48  ;;  %7962 = vmatpush.msra.mxu3 %v17761_v18  ;;  %v7175_v48 = vld [vmem:[%s19729_s2 + $0x60] sm:$0xff] }
 0x5a4   : > { %7980 = vmatpush.msrb.mxu0 %v17740_v4  ;;  %7919 = vmatpush.msra.mxu1 %v17644_v47 }
 0x5a5   : > { %7940 = vmatpush.msra.mxu2 %v17630_v30  ;;  %13514 = vmatmul.msk.f32.vlgmr.msra.gmra.mxu3 %vm7578_vm10, %v7295_v2  ;;  %v7174_v30 = vld [vmem:[%s19729_s2 + $0x58] sm:$0xff] }
 0x5a6   : > { %8035 = vmatpush.msrb.mxu3 %v17691_v61  ;;  %7981 = vmatpush.msrb.mxu0 %v17752_v35 }
 0x5a7   : > { %7995 = vmatpush.msrb.mxu1 %v17691_v61  ;;  %7941 = vmatpush.msra.mxu2 %v17637_v8  ;;  %v7173_v8 = vld [vmem:[%s19729_s2 + $0x50] sm:$0xff] }
 0x5a8   : > { %8036 = vmatpush.msrb.mxu3 %v17700_v51  ;;  %7982 = vmatpush.msrb.mxu0 %v17761_v18 }
 0x5a9   : > { %7996 = vmatpush.msrb.mxu1 %v17700_v51  ;;  %7942 = vmatpush.msra.mxu2 %v17644_v47 }
 0x5aa   : > { %13515 = vmatmul.msk.f32.vlgmr.msrb.gmra.mxu0 %vm7578_vm10, %v17674_v14  ;;  %8037 = vmatpush.msrb.mxu3 %v17712_v10 }
 0x5ab   : > { %8055 = vmatpush.msra.mxu0 %v17691_v61  ;;  %13512 = vmatmul.msk.f32.vlgmr.msra.gmra.mxu1 %vm7578_vm10, %v7495_v15 }
 0x5ac   : > { %7997 = vmatpush.msrb.mxu1 %v17712_v10  ;;  %8015 = vmatpush.msrb.mxu2 %v17691_v61 }
 0x5ad   : > { %8038 = vmatpush.msrb.mxu3 %v17722_v6  ;;  %8056 = vmatpush.msra.mxu0 %v17700_v51  ;;  %v7575_v50 = vpop.f32.mrf.mxu2 }
 0x5ae   : > { %7998 = vmatpush.msrb.mxu1 %v17722_v6  ;;  %8016 = vmatpush.msrb.mxu2 %v17700_v51 }
 0x5af   : > { %8039 = vmatpush.msrb.mxu3 %v17731_v27  ;;  %8057 = vmatpush.msra.mxu0 %v17712_v10 }
 0x5b0   : > { %7999 = vmatpush.msrb.mxu1 %v17731_v27  ;;  %8017 = vmatpush.msrb.mxu2 %v17712_v10 }
 0x5b1   : > { %8040 = vmatpush.msrb.mxu3 %v17740_v4  ;;  %8058 = vmatpush.msra.mxu0 %v17722_v6 }
 0x5b2   : > { %8000 = vmatpush.msrb.mxu1 %v17740_v4  ;;  %8018 = vmatpush.msrb.mxu2 %v17722_v6 }
 0x5b3   : > { %13513 = vmatmul.msk.f32.vlgmr.msra.gmra.mxu2 %vm7578_vm10, %v7535_v62  ;;  %8041 = vmatpush.msrb.mxu3 %v17752_v35 }
 0x5b4   : > { %8059 = vmatpush.msra.mxu0 %v17731_v27  ;;  %8001 = vmatpush.msrb.mxu1 %v17752_v35 }
 0x5b5   : > { %8019 = vmatpush.msrb.mxu2 %v17731_v27  ;;  %8042 = vmatpush.msrb.mxu3 %v17761_v18 }
 0x5b6   : > { %8060 = vmatpush.msra.mxu0 %v17740_v4  ;;  %8002 = vmatpush.msrb.mxu1 %v17761_v18 }
 0x5b7   : > { %8020 = vmatpush.msrb.mxu2 %v17740_v4  ;;  %13518 = vmatmul.msk.f32.vlgmr.msrb.gmra.mxu3 %vm7578_vm10, %v7455_v46 }
 0x5b8   : > { %8135 = vmatpush.msra.mxu3 %v20196_v49  ;;  %13516 = vmatmul.msk.f32.vlgmr.msrb.gmra.mxu1 %vm7578_vm10, %v17704_v28 }
 0x5b9   : > { %8061 = vmatpush.msra.mxu0 %v17752_v35  ;;  %8075 = vmatpush.msra.mxu1 %v17691_v61 }
 0x5ba   : > { %8214 = vmatpush.msrb.mxu3 %v17303_v29  ;;  %8021 = vmatpush.msrb.mxu2 %v17752_v35 }
 0x5bb   : > { %8062 = vmatpush.msra.mxu0 %v17761_v18  ;;  %8076 = vmatpush.msra.mxu1 %v17700_v51 }
 0x5bc   : > { %8215 = vmatpush.msrb.mxu3 %v17314_v22  ;;  %8022 = vmatpush.msrb.mxu2 %v17761_v18 }
 0x5bd   : > { %13519 = vmatmul.msk.f32.vlgmr.msra.gmra.mxu0 %vm7578_vm10, %v7495_v15  ;;  %13517 = vmatmul.msk.f32.vlgmr.msrb.gmra.mxu2 %vm7578_vm10, %v17693_v43 }
 0x5be   : > { %8154 = vmatpush.msrb.mxu0 %v17164_v60  ;;  %8077 = vmatpush.msra.mxu1 %v17712_v10 }
 0x5bf   : > { %8098 = vmatpush.msra.mxu2 %v17691_v61  ;;  %13522 = vmatmul.msk.f32.vlgmr.msra.gmra.mxu3 %vm7235_vm9, %v20197_v23 }
 0x5c0   : > { %8155 = vmatpush.msrb.mxu0 %v17173_v44  ;;  %8078 = vmatpush.msra.mxu1 %v17722_v6 }
 0x5c1   : > { %8099 = vmatpush.msra.mxu2 %v17700_v51  ;;  %8294 = vmatpush.msra.mxu3 %v17389_v52 }
 0x5c2   : > { %8234 = vmatpush.msra.mxu0 %v17252_v7  ;;  %8079 = vmatpush.msra.mxu1 %v17731_v27 }
 0x5c3   : > { %8100 = vmatpush.msra.mxu2 %v17712_v10  ;;  %8295 = vmatpush.msra.mxu3 %v17400_v38 }
 0x5c4   : > { %8235 = vmatpush.msra.mxu0 %v17262_v37  ;;  %8080 = vmatpush.msra.mxu1 %v17740_v4 }
 0x5c5   : > { %8101 = vmatpush.msra.mxu2 %v17722_v6  ;;  %13523 = vmatmul.msk.f32.vlgmr.msrb.gmra.mxu0 %vm7235_vm9, %v20197_v23 }
 0x5c6   : > { %8314 = vmatpush.msrb.mxu0 %v17336_v58  ;;  %8081 = vmatpush.msra.mxu1 %v17752_v35 }
 0x5c7   : > { %8102 = vmatpush.msra.mxu2 %v17731_v27  ;;  %13526 = vmatmul.msk.f32.vlgmr.msrb.gmra.mxu3 %vm7235_vm9, %v20197_v23 }
 0x5c8   : > { %8315 = vmatpush.msrb.mxu0 %v17347_v32  ;;  %8082 = vmatpush.msra.mxu1 %v17761_v18 }
 0x5c9   : > { %8103 = vmatpush.msra.mxu2 %v17740_v4  ;;  %13520 = vmatmul.msk.f32.vlgmr.msra.gmra.mxu1 %vm7578_vm10, %v7535_v62  ;;  %v17970_v62 = vld [vmem:[%s19729_s2 + $0x138] sm:$0xff] }
 0x5ca   : > { %8174 = vmatpush.msrb.mxu1 %v17182_v9  ;;  %8374 = vmatpush.msrb.mxu3 %v17472_v12 }
 0x5cb   : > { %8104 = vmatpush.msra.mxu2 %v17752_v35 }
 0x5cc   : > { %8175 = vmatpush.msrb.mxu1 %v17202_v53  ;;  %8375 = vmatpush.msrb.mxu3 %v17487_v54 }
 0x5cd   : > { %8105 = vmatpush.msra.mxu2 %v17761_v18  ;;  %13527 = vmatmul.msk.f32.vlgmr.msra.gmra.mxu0 %vm7235_vm9, %v20197_v23 }
 0x5ce   : > { %8254 = vmatpush.msra.mxu1 %v17270_v20  ;;  %13521 = vmatmul.msk.f32.vlgmr.msra.gmra.mxu2 %vm7578_vm10, %v7575_v50 }
 0x5cf   : > { %8194 = vmatpush.msrb.mxu2 %v17223_v39  ;;  %8394 = vmatpush.msra.mxu0 %v17420_v26 }
 0x5d0   : > { %8255 = vmatpush.msra.mxu1 %v17283_v59  ;;  %13530 = vmatmul.msk.f32.vlgmr.msra.gmra.mxu3 %vm7235_vm9, %v20197_v23 }
 0x5d1   : > { %8195 = vmatpush.msrb.mxu2 %v17233_v16  ;;  %8395 = vmatpush.msra.mxu0 %v17429_v19 }
 0x5d2   : > { %13524 = vmatmul.msk.f32.vlgmr.msrb.gmra.mxu1 %vm7235_vm9, %v20197_v23  ;;  %8454 = vmatpush.msra.mxu3 %v17544_v17 }
 0x5d3   : > { %8274 = vmatpush.msra.mxu2 %v17305_v57  ;;  %8334 = vmatpush.msrb.mxu1 %v17356_v40 }
 0x5d4   : > { %8455 = vmatpush.msra.mxu3 %v17550_v41 }
 0x5d5   : > { %8275 = vmatpush.msra.mxu2 %v17316_v56  ;;  %8335 = vmatpush.msrb.mxu1 %v17369_v25 }
 0x5d6   : > { %13525 = vmatmul.msk.f32.vlgmr.msrb.gmra.mxu2 %vm7235_vm9, %v20197_v23  ;;  %13531 = vmatmul.msk.f32.vlgmr.msrb.gmra.mxu0 %vm7235_vm9, %v20197_v23 }
 0x5d7   : > { %8354 = vmatpush.msrb.mxu2 %v17391_v1  ;;  %8471 = vmatpush.msrb.mxu0 %v7178_v33 }
 0x5d8   : > { %13534 = vmatmul.msk.f32.vlgmr.msrb.gmra.mxu3 %vm7235_vm9, %v20197_v23 }
 0x5d9   : > { %8355 = vmatpush.msrb.mxu2 %v17402_v5  ;;  %8540 = vmatpush.msrb.mxu3 %v7178_v33 }
 0x5da   : > { %13528 = vmatmul.msk.f32.vlgmr.msra.gmra.mxu1 %vm7235_vm9, %v20197_v23  ;;  %8472 = vmatpush.msrb.mxu0 %v7177_v45 }
 0x5db   : > { %8414 = vmatpush.msra.mxu1 %v17438_v21  ;;  %8541 = vmatpush.msrb.mxu3 %v7177_v45 }
 0x5dc   : > { %8473 = vmatpush.msrb.mxu0 %v7176_v42 }
 0x5dd   : > { %8415 = vmatpush.msra.mxu1 %v17451_v3  ;;  %8542 = vmatpush.msrb.mxu3 %v7176_v42 }
 0x5de   : > { %13529 = vmatmul.msk.f32.vlgmr.msra.gmra.mxu2 %vm7235_vm9, %v20197_v23  ;;  %13535 = vmatmul.msk.f32.vlgmr.msra.gmra.mxu0 %vm7235_vm9, %v20197_v23 }
 0x5df   : > { %8434 = vmatpush.msra.mxu2 %v17474_v24  ;;  %8474 = vmatpush.msrb.mxu0 %v7175_v48 }
 0x5e0   : > { %13538 = vmatmul.msk.f32.vlgmr.msra.gmra.mxu3 %vm7235_vm9, %v20197_v23 }
 0x5e1   : > { %8435 = vmatpush.msra.mxu2 %v17489_v0  ;;  %8543 = vmatpush.msrb.mxu3 %v7175_v48 }
 0x5e2   : > { %13532 = vmatmul.msk.f32.vlgmr.msrb.gmra.mxu1 %vm7235_vm9, %v20197_v23  ;;  %8475 = vmatpush.msrb.mxu0 %v7174_v30 }
 0x5e3   : > { %8494 = vmatpush.msrb.mxu1 %v7178_v33  ;;  %8544 = vmatpush.msrb.mxu3 %v7174_v30 }
 0x5e4   : > { %8476 = vmatpush.msrb.mxu0 %v7173_v8  ;;  %v17933_v34 = vpop.f32.mrf.mxu0 }
 0x5e5   : > { %8495 = vmatpush.msrb.mxu1 %v7177_v45  ;;  %8545 = vmatpush.msrb.mxu3 %v7173_v8  ;;  %20198 = vst [vmem:[#allocation42_spill] sm:$0xff] %v17933_v34 }
 0x5e6   : > { %13533 = vmatmul.msk.f32.vlgmr.msrb.gmra.mxu2 %vm7235_vm9, %v20197_v23  ;;  %v17923_v47 = vpop.f32.mrf.mxu3  ;;  %8477 = vmatpush.msrb.mxu0 %v7172_v55 }
 0x5e7   : > { %8517 = vmatpush.msrb.mxu2 %v7178_v33  ;;  %8496 = vmatpush.msrb.mxu1 %v7176_v42 }
 0x5e8   : > { %8546 = vmatpush.msrb.mxu3 %v7172_v55  ;;  %8478 = vmatpush.msrb.mxu0 %v7171_v36 }
 0x5e9   : > { %8518 = vmatpush.msrb.mxu2 %v7177_v45  ;;  %8497 = vmatpush.msrb.mxu1 %v7175_v48 }
 0x5ea   : > { %13536 = vmatmul.msk.f32.vlgmr.msra.gmra.mxu1 %vm7235_vm9, %v20197_v23  ;;  %8563 = vmatpush.msra.mxu0 %v7178_v33 }
 0x5eb   : > { %8519 = vmatpush.msrb.mxu2 %v7176_v42  ;;  %8498 = vmatpush.msrb.mxu1 %v7174_v30 }
 0x5ec   : > { %8547 = vmatpush.msrb.mxu3 %v7171_v36  ;;  %8564 = vmatpush.msra.mxu0 %v7177_v45 }
 0x5ed   : > { %8520 = vmatpush.msrb.mxu2 %v7175_v48  ;;  %8499 = vmatpush.msrb.mxu1 %v7173_v8 }
 0x5ee   : > { %13537 = vmatmul.msk.f32.vlgmr.msra.gmra.mxu2 %vm7235_vm9, %v20197_v23  ;;  %8632 = vmatpush.msra.mxu3 %v7178_v33  ;;  %v18017_v23 = vld [vmem:[%s19729_s2 + $0x108] sm:$0xff] }
 0x5ef   : > { %8521 = vmatpush.msrb.mxu2 %v7174_v30  ;;  %8500 = vmatpush.msrb.mxu1 %v7172_v55 }
 0x5f0   : > { %8565 = vmatpush.msra.mxu0 %v7176_v42  ;;  %8633 = vmatpush.msra.mxu3 %v7177_v45  ;;  %v17935_v14 = vpop.f32.mrf.mxu1 }
 0x5f1   : > { %8522 = vmatpush.msrb.mxu2 %v7173_v8  ;;  %8501 = vmatpush.msrb.mxu1 %v7171_v36 }
 0x5f2   : > { %8566 = vmatpush.msra.mxu0 %v7175_v48  ;;  %8634 = vmatpush.msra.mxu3 %v7176_v42 }
 0x5f3   : > { %8523 = vmatpush.msrb.mxu2 %v7172_v55  ;;  %8586 = vmatpush.msra.mxu1 %v7178_v33 }
 0x5f4   : > { %8567 = vmatpush.msra.mxu0 %v7174_v30  ;;  %8635 = vmatpush.msra.mxu3 %v7175_v48 }
 0x5f5   : > { %8524 = vmatpush.msrb.mxu2 %v7171_v36  ;;  %8587 = vmatpush.msra.mxu1 %v7177_v45 }
 0x5f6   : > { %8568 = vmatpush.msra.mxu0 %v7173_v8  ;;  %8636 = vmatpush.msra.mxu3 %v7174_v30 }
 0x5f7   : > { %8609 = vmatpush.msra.mxu2 %v7178_v33  ;;  %8588 = vmatpush.msra.mxu1 %v7176_v42  ;;  %v17976_v33 = vld [vmem:[%s19729_s2 + $0x130] sm:$0xff] }
 0x5f8   : > { %8569 = vmatpush.msra.mxu0 %v7172_v55  ;;  %8637 = vmatpush.msra.mxu3 %v7173_v8 }
 0x5f9   : > { %8610 = vmatpush.msra.mxu2 %v7177_v45  ;;  %8589 = vmatpush.msra.mxu1 %v7175_v48 }
 0x5fa   : > { %8570 = vmatpush.msra.mxu0 %v7171_v36  ;;  %8638 = vmatpush.msra.mxu3 %v7172_v55  ;;  %v17943_v63 = vpop.f32.mrf.mxu2 }
 0x5fb   : > { %8611 = vmatpush.msra.mxu2 %v7176_v42  ;;  %8590 = vmatpush.msra.mxu1 %v7174_v30  ;;  %20201 = vst [vmem:[#allocation46_spill] sm:$0xff] %v17943_v63  ;;  %v17984_v42 = vld [vmem:[%s19729_s2 + $0x128] sm:$0xff] }
 0x5fc   : > { %8639 = vmatpush.msra.mxu3 %v7171_v36 }
 0x5fd   : > { %8612 = vmatpush.msra.mxu2 %v7175_v48  ;;  %8591 = vmatpush.msra.mxu1 %v7173_v8 }
 0x5ff   : > { %8613 = vmatpush.msra.mxu2 %v7174_v30  ;;  %8592 = vmatpush.msra.mxu1 %v7172_v55  ;;  %v17992_v30 = vld [vmem:[%s19729_s2 + $0x120] sm:$0xff] }
 0x601   : > { %8614 = vmatpush.msra.mxu2 %v7173_v8  ;;  %8593 = vmatpush.msra.mxu1 %v7171_v36 }
 0x603   : > { %8615 = vmatpush.msra.mxu2 %v7172_v55  ;;  %v18000_v55 = vld [vmem:[%s19729_s2 + $0x118] sm:$0xff] }
 0x604   : > { %v17939_v61 = vpop.f32.mrf.mxu0 }
 0x605   : > { %20199 = vst [vmem:[#allocation58_spill] sm:$0xff] %v17939_v61  ;;  %8616 = vmatpush.msra.mxu2 %v7171_v36 }
 0x606   : > { %v17931_v11 = vpop.f32.mrf.mxu3 }
 0x60c   : > { %v17947_v28 = vpop.f32.mrf.mxu0 }
 0x60d   : > { %20202 = vst [vmem:[#allocation59_spill] sm:$0xff] %v17947_v28 }
 0x60e   : > { %v17937_v2 = vpop.f32.mrf.mxu3 }
 0x610   : > { %v17941_v43 = vpop.f32.mrf.mxu1 }
 0x611   : > { %20200 = vst [vmem:[#allocation75_spill] sm:$0xff] %v17941_v43 }
 0x616   : > { %v17945_v51 = vpop.f32.mrf.mxu3 }
 0x61a   : > { %v17949_v10 = vpop.f32.mrf.mxu1  ;;  %v17953_v6 = vpop.f32.mrf.mxu2 }
 0x61b   : > { %20203 = vst [vmem:[#allocation77_spill] sm:$0xff] %v17953_v6 }
 0x61d   : > { %v17957_v4 = vpop.f32.mrf.mxu0 }
 0x61e   : > { %20205 = vst [vmem:[#allocation37_spill] sm:$0xff] %v17957_v4 }
 0x625   : > { %v17961_v35 = vpop.f32.mrf.mxu2 }
 0x626   : > { %20207 = vst [vmem:[#allocation97_spill] sm:$0xff] %v17961_v35 }
 0x627   : > { %v17965_v15 = vpop.f32.mrf.mxu0 }
 0x628   : > { %v17951_v13 = vpop.f32.mrf.mxu3  ;;  %v17955_v27 = vpop.f32.mrf.mxu1  ;;  %20208 = vst [vmem:[#allocation96_spill] sm:$0xff] %v17965_v15  ;;  %v18098_v15 = vld [vmem:[%s19729_s2 + $0x1f0] sm:$0xff] }
 0x629   : > { %20204 = vst [vmem:[#allocation33_spill] sm:$0xff] %v17955_v27 }
 0x635   : > { %v17963_v18 = vpop.f32.mrf.mxu1 }
 0x636   : > { %v17979_v45 = vpop.f32.mrf.mxu2 }
 0x637   : > { %20209 = vst [vmem:[#allocation61_spill] sm:$0xff] %v17979_v45 }
 0x63a   : > { %v17959_v46 = vpop.f32.mrf.mxu3  ;;  %v17995_v8 = vpop.f32.mrf.mxu0 }
 0x63b   : > { %20206 = vst [vmem:[#allocation116_spill] sm:$0xff] %v17959_v46  ;;  %v18111_v46 = vld [vmem:[%s19729_s2 + $0x1e8] sm:$0xff] }
 0x63c   : > { %20211 = vst [vmem:[#allocation60_spill] sm:$0xff] %v17995_v8  ;;  %v18028_v8 = vld [vmem:[%s19729_s2 + $0x100] sm:$0xff] }
 0x640   : > { %v18021_v45 = vpop.f32.mrf.mxu2 }
 0x641   : > { %20212 = vst [vmem:[#allocation80_spill] sm:$0xff] %v18021_v45 }
 0x642   : > { %v8137_v50 = vpop.f32.mrf.mxu3  ;;  %v8157_v4 = vpop.f32.mrf.mxu0 }
 0x643   : > { %13539 = vmatmul.msk.f32.vlgmr.msrb.gmra.mxu0 %vm7578_vm10, %v8137_v50  ;;  %v18010_v50 = vld [vmem:[%s19729_s2 + $0x110] sm:$0xff] }
 0x644   : > { %8663 = vmatpush.msrb.mxu0 %v17970_v62 }
 0x646   : > { %v17986_v48 = vpop.f32.mrf.mxu1  ;;  %8664 = vmatpush.msrb.mxu0 %v17976_v33 }
 0x647   : > { %20210 = vst [vmem:[#allocation79_spill] sm:$0xff] %v17986_v48 }
 0x648   : > { %8665 = vmatpush.msrb.mxu0 %v17984_v42 }
 0x64a   : > { %v18002_v36 = vpop.f32.mrf.mxu3  ;;  %8666 = vmatpush.msrb.mxu0 %v17992_v30 }
 0x64b   : > { %13541 = vmatmul.msk.f32.vlgmr.msrb.gmra.mxu2 %vm7578_vm10, %v18002_v36 }
 0x64c   : > { %8667 = vmatpush.msrb.mxu0 %v18000_v55  ;;  %8709 = vmatpush.msrb.mxu2 %v17970_v62 }
 0x64e   : > { %8668 = vmatpush.msrb.mxu0 %v18010_v50  ;;  %8710 = vmatpush.msrb.mxu2 %v17976_v33 }
 0x64f   : > { %v18023_v6 = vpop.f32.mrf.mxu1 }
 0x650   : > { %13540 = vmatmul.msk.f32.vlgmr.msrb.gmra.mxu1 %vm7578_vm10, %v18023_v6  ;;  %8669 = vmatpush.msrb.mxu0 %v18017_v23 }
 0x651   : > { %8686 = vmatpush.msrb.mxu1 %v17970_v62  ;;  %8711 = vmatpush.msrb.mxu2 %v17984_v42  ;;  %v18045_v48 = vpop.f32.mrf.mxu2 }
 0x652   : > { %8670 = vmatpush.msrb.mxu0 %v18028_v8  ;;  %20213 = vst [vmem:[#allocation92_spill] sm:$0xff] %v18045_v48  ;;  %v8237_v48 = vpop.f32.mrf.mxu0 }
 0x653   : > { %8687 = vmatpush.msrb.mxu1 %v17976_v33  ;;  %v18037_v61 = vpop.f32.mrf.mxu3  ;;  %8712 = vmatpush.msrb.mxu2 %v17992_v30 }
 0x654   : > { %13543 = vmatmul.msk.f32.vlgmr.msra.gmra.mxu0 %vm7578_vm10, %v18037_v61 }
 0x655   : > { %8688 = vmatpush.msrb.mxu1 %v17984_v42  ;;  %8755 = vmatpush.msra.mxu0 %v17970_v62 }
 0x656   : > { %8713 = vmatpush.msrb.mxu2 %v18000_v55 }
 0x657   : > { %v18047_v27 = vpop.f32.mrf.mxu1  ;;  %8689 = vmatpush.msrb.mxu1 %v17992_v30  ;;  %8756 = vmatpush.msra.mxu0 %v17976_v33 }
 0x658   : > { %13542 = vmatmul.msk.f32.vlgmr.msrb.gmra.mxu3 %vm7578_vm10, %v18047_v27  ;;  %8714 = vmatpush.msrb.mxu2 %v18010_v50 }
 0x659   : > { %8690 = vmatpush.msrb.mxu1 %v18000_v55  ;;  %8732 = vmatpush.msrb.mxu3 %v17970_v62  ;;  %v8197_v45 = vpop.f32.mrf.mxu2 }
 0x65a   : > { %8757 = vmatpush.msra.mxu0 %v17984_v42  ;;  %8715 = vmatpush.msrb.mxu2 %v18017_v23  ;;  %v8317_v63 = vpop.f32.mrf.mxu0 }
 0x65b   : > { %8691 = vmatpush.msrb.mxu1 %v18010_v50  ;;  %8733 = vmatpush.msrb.mxu3 %v17976_v33  ;;  %v18060_v43 = vpop.f32.mrf.mxu3 }
 0x65c   : > { %8758 = vmatpush.msra.mxu0 %v17992_v30  ;;  %8716 = vmatpush.msrb.mxu2 %v18028_v8 }
 0x65d   : > { %8692 = vmatpush.msrb.mxu1 %v18017_v23  ;;  %8734 = vmatpush.msrb.mxu3 %v17984_v42 }
 0x65e   : > { %13545 = vmatmul.msk.f32.vlgmr.msra.gmra.mxu2 %vm7578_vm10, %v18060_v43  ;;  %13547 = vmatmul.msk.f32.vlgmr.msrb.gmra.mxu0 %vm7578_vm10, %v8157_v4  ;;  %v18087_v4 = vld [vmem:[%s19729_s2 + $0x1f8] sm:$0xff] }
 0x65f   : > { %8759 = vmatpush.msra.mxu0 %v18000_v55  ;;  %8801 = vmatpush.msra.mxu2 %v17970_v62  ;;  %v18071_v35 = vpop.f32.mrf.mxu1 }
 0x660   : > { %8693 = vmatpush.msrb.mxu1 %v18028_v8  ;;  %8735 = vmatpush.msrb.mxu3 %v17992_v30 }
 0x661   : > { %13544 = vmatmul.msk.f32.vlgmr.msra.gmra.mxu1 %vm7578_vm10, %v18071_v35  ;;  %8760 = vmatpush.msra.mxu0 %v18010_v50  ;;  %v8277_v34 = vpop.f32.mrf.mxu2 }
 0x662   : > { %8778 = vmatpush.msra.mxu1 %v17970_v62  ;;  %8802 = vmatpush.msra.mxu2 %v17976_v33 }
 0x663   : > { %8736 = vmatpush.msrb.mxu3 %v18000_v55  ;;  %8761 = vmatpush.msra.mxu0 %v18017_v23 }
 0x664   : > { %8779 = vmatpush.msra.mxu1 %v17976_v33  ;;  %8803 = vmatpush.msra.mxu2 %v17984_v42 }
 0x665   : > { %8737 = vmatpush.msrb.mxu3 %v18010_v50  ;;  %8762 = vmatpush.msra.mxu0 %v18028_v8 }
 0x666   : > { %8780 = vmatpush.msra.mxu1 %v17984_v42  ;;  %8804 = vmatpush.msra.mxu2 %v17992_v30 }
 0x667   : > { %8738 = vmatpush.msrb.mxu3 %v18017_v23  ;;  %8852 = vmatpush.msrb.mxu0 %v18087_v4  ;;  %v18102_v28 = vpop.f32.mrf.mxu1 }
 0x668   : > { %13549 = vmatmul.msk.f32.vlgmr.msrb.gmra.mxu2 %vm7578_vm10, %v8237_v48  ;;  %13551 = vmatmul.msk.f32.vlgmr.msra.gmra.mxu0 %vm7578_vm10, %v8317_v63  ;;  %v18121_v63 = vld [vmem:[%s19729_s2 + $0x1e0] sm:$0xff]  ;;  %v18141_v48 = vld [vmem:[%s19729_s2 + $0x1d0] sm:$0xff] }
 0x669   : > { %8781 = vmatpush.msra.mxu1 %v17992_v30  ;;  %8805 = vmatpush.msra.mxu2 %v18000_v55 }
 0x66a   : > { %8739 = vmatpush.msrb.mxu3 %v18028_v8  ;;  %8853 = vmatpush.msrb.mxu0 %v18098_v15 }
 0x66b   : > { %13546 = vmatmul.msk.f32.vlgmr.msra.gmra.mxu3 %vm7578_vm10, %v18102_v28  ;;  %13548 = vmatmul.msk.f32.vlgmr.msrb.gmra.mxu1 %vm7578_vm10, %v8197_v45  ;;  %v18130_v45 = vld [vmem:[%s19729_s2 + $0x1d8] sm:$0xff] }
 0x66c   : > { %8782 = vmatpush.msra.mxu1 %v18000_v55  ;;  %8806 = vmatpush.msra.mxu2 %v18010_v50 }
 0x66d   : > { %8824 = vmatpush.msra.mxu3 %v17970_v62  ;;  %8854 = vmatpush.msrb.mxu0 %v18111_v46  ;;  %v8397_v62 = vpop.f32.mrf.mxu0 }
 0x66e   : > { %8783 = vmatpush.msra.mxu1 %v18010_v50  ;;  %8807 = vmatpush.msra.mxu2 %v18017_v23 }
 0x66f   : > { %8825 = vmatpush.msra.mxu3 %v17976_v33  ;;  %8855 = vmatpush.msrb.mxu0 %v18121_v63  ;;  %v8357_v33 = vpop.f32.mrf.mxu2 }
 0x670   : > { %8784 = vmatpush.msra.mxu1 %v18017_v23  ;;  %8808 = vmatpush.msra.mxu2 %v18028_v8 }
 0x671   : > { %8826 = vmatpush.msra.mxu3 %v17984_v42  ;;  %8856 = vmatpush.msrb.mxu0 %v18130_v45  ;;  %v18152_v42 = vld [vmem:[%s19729_s2 + $0x1c8] sm:$0xff] }
 0x672   : > { %8892 = vmatpush.msrb.mxu2 %v18087_v4  ;;  %8785 = vmatpush.msra.mxu1 %v18028_v8 }
 0x673   : > { %13553 = vmatmul.msk.f32.vlgmr.msra.gmra.mxu2 %vm7578_vm10, %v8397_v62  ;;  %8827 = vmatpush.msra.mxu3 %v17992_v30  ;;  %v18161_v30 = vld [vmem:[%s19729_s2 + $0x1c0] sm:$0xff] }
 0x674   : > { %8857 = vmatpush.msrb.mxu0 %v18141_v48  ;;  %8872 = vmatpush.msrb.mxu1 %v18087_v4 }
 0x675   : > { %8893 = vmatpush.msrb.mxu2 %v18098_v15  ;;  %13550 = vmatmul.msk.f32.vlgmr.msrb.gmra.mxu3 %vm7578_vm10, %v8277_v34 }
 0x676   : > { %13552 = vmatmul.msk.f32.vlgmr.msra.gmra.mxu1 %vm7578_vm10, %v8357_v33  ;;  %8828 = vmatpush.msra.mxu3 %v18000_v55  ;;  %v18423_v55 = vld [vmem:[%s19729_s2 + $0x140] sm:$0xff] }
 0x677   : > { %8858 = vmatpush.msrb.mxu0 %v18152_v42  ;;  %8873 = vmatpush.msrb.mxu1 %v18098_v15  ;;  %v8437_v34 = vpop.f32.mrf.mxu2 }
 0x678   : > { %8894 = vmatpush.msrb.mxu2 %v18111_v46  ;;  %8829 = vmatpush.msra.mxu3 %v18010_v50 }
 0x679   : > { %8859 = vmatpush.msrb.mxu0 %v18161_v30  ;;  %8874 = vmatpush.msrb.mxu1 %v18111_v46 }
 0x67a   : > { %8895 = vmatpush.msrb.mxu2 %v18121_v63  ;;  %8830 = vmatpush.msra.mxu3 %v18017_v23  ;;  %v18381_v23 = vld [vmem:[%s19729_s2 + $0x168] sm:$0xff] }
 0x67b   : > { %13555 = vmatmul.msk.f32.vlgmr.msrb.gmra.mxu0 %vm7578_vm10, %v18023_v6  ;;  %8875 = vmatpush.msrb.mxu1 %v18121_v63 }
 0x67c   : > { %8932 = vmatpush.msra.mxu0 %v18087_v4  ;;  %8896 = vmatpush.msrb.mxu2 %v18130_v45 }
 0x67d   : > { %8831 = vmatpush.msra.mxu3 %v18028_v8  ;;  %8876 = vmatpush.msrb.mxu1 %v18130_v45 }
 0x67e   : > { %8933 = vmatpush.msra.mxu0 %v18098_v15  ;;  %8897 = vmatpush.msrb.mxu2 %v18141_v48 }
 0x67f   : > { %8912 = vmatpush.msrb.mxu3 %v18087_v4  ;;  %8877 = vmatpush.msrb.mxu1 %v18141_v48 }
 0x680   : > { %13554 = vmatmul.msk.f32.vlgmr.msra.gmra.mxu3 %vm7578_vm10, %v8437_v34  ;;  %8934 = vmatpush.msra.mxu0 %v18111_v46 }
 0x681   : > { %8898 = vmatpush.msrb.mxu2 %v18152_v42  ;;  %8913 = vmatpush.msrb.mxu3 %v18098_v15 }
 0x682   : > { %8935 = vmatpush.msra.mxu0 %v18121_v63  ;;  %8878 = vmatpush.msrb.mxu1 %v18152_v42 }
 0x683   : > { %8899 = vmatpush.msrb.mxu2 %v18161_v30  ;;  %8914 = vmatpush.msrb.mxu3 %v18111_v46 }
 0x684   : > { %13557 = vmatmul.msk.f32.vlgmr.msrb.gmra.mxu2 %vm7578_vm10, %v18047_v27  ;;  %8936 = vmatpush.msra.mxu0 %v18130_v45  ;;  %v18399_v27 = vld [vmem:[%s19729_s2 + $0x158] sm:$0xff] }
 0x685   : > { %8972 = vmatpush.msra.mxu2 %v18087_v4  ;;  %8879 = vmatpush.msrb.mxu1 %v18161_v30 }
 0x686   : > { %8915 = vmatpush.msrb.mxu3 %v18121_v63  ;;  %13556 = vmatmul.msk.f32.vlgmr.msrb.gmra.mxu1 %vm7578_vm10, %v18002_v36 }
 0x687   : > { %8937 = vmatpush.msra.mxu0 %v18141_v48  ;;  %8952 = vmatpush.msra.mxu1 %v18087_v4 }
 0x688   : > { %8973 = vmatpush.msra.mxu2 %v18098_v15  ;;  %8916 = vmatpush.msrb.mxu3 %v18130_v45 }
 0x689   : > { %8938 = vmatpush.msra.mxu0 %v18152_v42  ;;  %8953 = vmatpush.msra.mxu1 %v18098_v15 }
 0x68a   : > { %8974 = vmatpush.msra.mxu2 %v18111_v46  ;;  %8917 = vmatpush.msrb.mxu3 %v18141_v48 }
 0x68b   : > { %8939 = vmatpush.msra.mxu0 %v18161_v30  ;;  %8954 = vmatpush.msra.mxu1 %v18111_v46 }
 0x68c   : > { %8975 = vmatpush.msra.mxu2 %v18121_v63  ;;  %8918 = vmatpush.msrb.mxu3 %v18152_v42 }
 0x68d   : > { %13559 = vmatmul.msk.f32.vlgmr.msra.gmra.mxu0 %vm7578_vm10, %v18071_v35  ;;  %8955 = vmatpush.msra.mxu1 %v18121_v63  ;;  %v18409_v35 = vld [vmem:[%s19729_s2 + $0x150] sm:$0xff] }
 0x68e   : > { %9032 = vmatpush.msrb.mxu0 %v20196_v49  ;;  %8976 = vmatpush.msra.mxu2 %v18130_v45 }
 0x68f   : > { %8919 = vmatpush.msrb.mxu3 %v18161_v30  ;;  %8956 = vmatpush.msra.mxu1 %v18130_v45 }
 0x690   : > { %9111 = vmatpush.msra.mxu0 %v17303_v29  ;;  %13558 = vmatmul.msk.f32.vlgmr.msrb.gmra.mxu3 %vm7578_vm10, %v18037_v61  ;;  %v20214_v29 = vld [vmem:[#allocation108_spill] sm:$0xff] }
 0x691   : > { %8977 = vmatpush.msra.mxu2 %v18141_v48  ;;  %8995 = vmatpush.msra.mxu3 %v18087_v4 }
 0x692   : > { %9112 = vmatpush.msra.mxu0 %v17314_v22  ;;  %8957 = vmatpush.msra.mxu1 %v18141_v48 }
 0x693   : > { %8978 = vmatpush.msra.mxu2 %v18152_v42  ;;  %8996 = vmatpush.msra.mxu3 %v18098_v15  ;;  %v18416_v15 = vld [vmem:[%s19729_s2 + $0x148] sm:$0xff] }
 0x694   : > { %8958 = vmatpush.msra.mxu1 %v18152_v42 }
 0x695   : > { %8979 = vmatpush.msra.mxu2 %v18161_v30  ;;  %8997 = vmatpush.msra.mxu3 %v18111_v46 }
 0x696   : > { %13561 = vmatmul.msk.f32.vlgmr.msra.gmra.mxu2 %vm7578_vm10, %v18102_v28  ;;  %13563 = vmatmul.msk.f32.vlgmr.msrb.gmra.mxu0 %vm7235_vm9, %v20214_v29 }
 0x697   : > { %9071 = vmatpush.msrb.mxu2 %v17182_v9  ;;  %9191 = vmatpush.msrb.mxu0 %v17389_v52  ;;  %v7185_v9 = vld [vmem:[%s19729_s2 + $0xb0] sm:$0xff] }
 0x698   : > { %8959 = vmatpush.msra.mxu1 %v18161_v30  ;;  %8998 = vmatpush.msra.mxu3 %v18121_v63 }
 0x699   : > { %13560 = vmatmul.msk.f32.vlgmr.msra.gmra.mxu1 %vm7578_vm10, %v18060_v43  ;;  %9072 = vmatpush.msrb.mxu2 %v17202_v53  ;;  %v7184_v53 = vld [vmem:[%s19729_s2 + $0xa8] sm:$0xff]  ;;  %v18389_v43 = vld [vmem:[%s19729_s2 + $0x160] sm:$0xff] }
 0x69a   : > { %9051 = vmatpush.msrb.mxu1 %v17164_v60  ;;  %9192 = vmatpush.msrb.mxu0 %v17400_v38  ;;  %v8457_v60 = vpop.f32.mrf.mxu3 }
 0x69b   : > { %8999 = vmatpush.msra.mxu3 %v18130_v45  ;;  %9151 = vmatpush.msra.mxu2 %v17270_v20 }
 0x69c   : > { %9052 = vmatpush.msrb.mxu1 %v17173_v44  ;;  %v7186_v44 = vld [vmem:[%s19729_s2 + $0xb8] sm:$0xff] }
 0x69d   : > { %9000 = vmatpush.msra.mxu3 %v18141_v48  ;;  %9152 = vmatpush.msra.mxu2 %v17283_v59  ;;  %v7179_v59 = vld [vmem:[%s19729_s2 + $0x80] sm:$0xff] }
 0x69e   : > { %9131 = vmatpush.msra.mxu1 %v17252_v7  ;;  %13567 = vmatmul.msk.f32.vlgmr.msra.gmra.mxu0 %vm7235_vm9, %v20214_v29  ;;  %v7181_v7 = vld [vmem:[%s19729_s2 + $0x90] sm:$0xff] }
 0x69f   : > { %9001 = vmatpush.msra.mxu3 %v18152_v42  ;;  %13565 = vmatmul.msk.f32.vlgmr.msrb.gmra.mxu2 %vm7235_vm9, %v20214_v29 }
 0x6a0   : > { %9132 = vmatpush.msra.mxu1 %v17262_v37  ;;  %9271 = vmatpush.msra.mxu0 %v17472_v12  ;;  %v7180_v37 = vld [vmem:[%s19729_s2 + $0x88] sm:$0xff] }
 0x6a1   : > { %9231 = vmatpush.msrb.mxu2 %v17356_v40  ;;  %9002 = vmatpush.msra.mxu3 %v18161_v30  ;;  %v18481_v30 = vld [vmem:[%s19729_s2 + $0x238] sm:$0xff] }
 0x6a2   : > { %13562 = vmatmul.msk.f32.vlgmr.msra.gmra.mxu3 %vm7578_vm10, %v8457_v60  ;;  %13564 = vmatmul.msk.f32.vlgmr.msrb.gmra.mxu1 %vm7235_vm9, %v20214_v29  ;;  %v18493_v60 = vld [vmem:[%s19729_s2 + $0x230] sm:$0xff] }
 0x6a3   : > { %9091 = vmatpush.msrb.mxu3 %v17223_v39  ;;  %9211 = vmatpush.msrb.mxu1 %v17336_v58  ;;  %v7183_v39 = vld [vmem:[%s19729_s2 + $0xa0] sm:$0xff] }
 0x6a4   : > { %9232 = vmatpush.msrb.mxu2 %v17369_v25  ;;  %9272 = vmatpush.msra.mxu0 %v17487_v54 }
 0x6a5   : > { %9092 = vmatpush.msrb.mxu3 %v17233_v16  ;;  %9212 = vmatpush.msrb.mxu1 %v17347_v32  ;;  %v7182_v16 = vld [vmem:[%s19729_s2 + $0x98] sm:$0xff] }
 0x6a6   : > { %13571 = vmatmul.msk.f32.vlgmr.msrb.gmra.mxu0 %vm7235_vm9, %v20214_v29 }
 0x6a7   : > { %9171 = vmatpush.msra.mxu3 %v17305_v57  ;;  %9351 = vmatpush.msrb.mxu0 %v17544_v17 }
 0x6a8   : > { %13569 = vmatmul.msk.f32.vlgmr.msra.gmra.mxu2 %vm7235_vm9, %v20214_v29 }
 0x6a9   : > { %9172 = vmatpush.msra.mxu3 %v17316_v56  ;;  %9311 = vmatpush.msra.mxu2 %v17438_v21 }
 0x6aa   : > { %9352 = vmatpush.msrb.mxu0 %v17550_v41  ;;  %13566 = vmatmul.msk.f32.vlgmr.msrb.gmra.mxu3 %vm7235_vm9, %v20214_v29  ;;  %v18375_v41 = vld [vmem:[%s19729_s2 + $0x170] sm:$0xff] }
 0x6ab   : > { %13568 = vmatmul.msk.f32.vlgmr.msra.gmra.mxu1 %vm7235_vm9, %v20214_v29  ;;  %9251 = vmatpush.msrb.mxu3 %v17391_v1 }
 0x6ac   : > { %9291 = vmatpush.msra.mxu1 %v17420_v26  ;;  %9312 = vmatpush.msra.mxu2 %v17451_v3 }
 0x6ad   : > { %9252 = vmatpush.msrb.mxu3 %v17402_v5 }
 0x6ae   : > { %9292 = vmatpush.msra.mxu1 %v17429_v19  ;;  %13575 = vmatmul.msk.f32.vlgmr.msra.gmra.mxu0 %vm7235_vm9, %v20214_v29 }
 0x6af   : > { %9437 = vmatpush.msra.mxu0 %v7186_v44 }
 0x6b0   : > { %13573 = vmatmul.msk.f32.vlgmr.msrb.gmra.mxu2 %vm7235_vm9, %v20214_v29 }
 0x6b1   : > { %9391 = vmatpush.msrb.mxu2 %v7186_v44  ;;  %9438 = vmatpush.msra.mxu0 %v7185_v9 }
 0x6b2   : > { %13570 = vmatmul.msk.f32.vlgmr.msra.gmra.mxu3 %vm7235_vm9, %v20214_v29 }
 0x6b3   : > { %13572 = vmatmul.msk.f32.vlgmr.msrb.gmra.mxu1 %vm7235_vm9, %v20214_v29  ;;  %9331 = vmatpush.msra.mxu3 %v17474_v24 }
 0x6b4   : > { %9368 = vmatpush.msrb.mxu1 %v7186_v44  ;;  %9392 = vmatpush.msrb.mxu2 %v7185_v9 }
 0x6b5   : > { %9332 = vmatpush.msra.mxu3 %v17489_v0  ;;  %9439 = vmatpush.msra.mxu0 %v7184_v53  ;;  %v18369_v0 = vld [vmem:[%s19729_s2 + $0x178] sm:$0xff] }
 0x6b6   : > { %13579 = vmatmul.msk.f32.vlgmr.msrb.gmra.mxu0 %vm7235_vm9, %v20214_v29  ;;  %9369 = vmatpush.msrb.mxu1 %v7185_v9 }
 0x6b7   : > { %9393 = vmatpush.msrb.mxu2 %v7184_v53  ;;  %9440 = vmatpush.msra.mxu0 %v7183_v39 }
 0x6b8   : > { %13577 = vmatmul.msk.f32.vlgmr.msra.gmra.mxu2 %vm7235_vm9, %v20214_v29  ;;  %9370 = vmatpush.msrb.mxu1 %v7184_v53 }
 0x6b9   : > { %9394 = vmatpush.msrb.mxu2 %v7183_v39  ;;  %9441 = vmatpush.msra.mxu0 %v7182_v16 }
 0x6ba   : > { %13574 = vmatmul.msk.f32.vlgmr.msrb.gmra.mxu3 %vm7235_vm9, %v20214_v29  ;;  %9371 = vmatpush.msrb.mxu1 %v7183_v39 }
 0x6bb   : > { %13576 = vmatmul.msk.f32.vlgmr.msra.gmra.mxu1 %vm7235_vm9, %v20214_v29  ;;  %9414 = vmatpush.msrb.mxu3 %v7186_v44 }
 0x6bc   : > { %9372 = vmatpush.msrb.mxu1 %v7182_v16  ;;  %9395 = vmatpush.msrb.mxu2 %v7182_v16 }
 0x6bd   : > { %9415 = vmatpush.msrb.mxu3 %v7185_v9  ;;  %9442 = vmatpush.msra.mxu0 %v7181_v7 }
 0x6be   : > { %9373 = vmatpush.msrb.mxu1 %v7181_v7  ;;  %9396 = vmatpush.msrb.mxu2 %v7181_v7 }
 0x6bf   : > { %9416 = vmatpush.msrb.mxu3 %v7184_v53  ;;  %9443 = vmatpush.msra.mxu0 %v7180_v37 }
 0x6c0   : > { %v18325_v20 = vpop.f32.mrf.mxu0  ;;  %9374 = vmatpush.msrb.mxu1 %v7180_v37  ;;  %9397 = vmatpush.msrb.mxu2 %v7180_v37 }
 0x6c1   : > { %9417 = vmatpush.msrb.mxu3 %v7183_v39  ;;  %9444 = vmatpush.msra.mxu0 %v7179_v59 }
 0x6c2   : > { %13578 = vmatmul.msk.f32.vlgmr.msra.gmra.mxu3 %vm7235_vm9, %v20214_v29  ;;  %9375 = vmatpush.msrb.mxu1 %v7179_v59 }
 0x6c3   : > { %9418 = vmatpush.msrb.mxu3 %v7182_v16  ;;  %9398 = vmatpush.msrb.mxu2 %v7179_v59 }
 0x6c4   : > { %9460 = vmatpush.msra.mxu1 %v7186_v44  ;;  %9529 = vmatpush.msrb.mxu0 %v7186_v44 }
 0x6c5   : > { %9419 = vmatpush.msrb.mxu3 %v7181_v7  ;;  %9483 = vmatpush.msra.mxu2 %v7186_v44 }
 0x6c6   : > { %9461 = vmatpush.msra.mxu1 %v7185_v9  ;;  %9530 = vmatpush.msrb.mxu0 %v7185_v9 }
 0x6c7   : > { %9420 = vmatpush.msrb.mxu3 %v7180_v37  ;;  %9484 = vmatpush.msra.mxu2 %v7185_v9 }
 0x6c8   : > { %9462 = vmatpush.msra.mxu1 %v7184_v53  ;;  %9531 = vmatpush.msrb.mxu0 %v7184_v53 }
 0x6c9   : > { %9421 = vmatpush.msrb.mxu3 %v7179_v59  ;;  %9485 = vmatpush.msra.mxu2 %v7184_v53 }
 0x6ca   : > { %9463 = vmatpush.msra.mxu1 %v7183_v39  ;;  %9532 = vmatpush.msrb.mxu0 %v7183_v39 }
 0x6cb   : > { %9506 = vmatpush.msra.mxu3 %v7186_v44  ;;  %9486 = vmatpush.msra.mxu2 %v7183_v39  ;;  %v18502_v44 = vld [vmem:[%s19729_s2 + $0x228] sm:$0xff] }
 0x6cc   : > { %9464 = vmatpush.msra.mxu1 %v7182_v16  ;;  %9533 = vmatpush.msrb.mxu0 %v7182_v16 }
 0x6cd   : > { %9507 = vmatpush.msra.mxu3 %v7185_v9  ;;  %v18332_v22 = vpop.f32.mrf.mxu1  ;;  %9487 = vmatpush.msra.mxu2 %v7182_v16  ;;  %v18511_v9 = vld [vmem:[%s19729_s2 + $0x220] sm:$0xff] }
 0x6ce   : > { %v18334_v56 = vpop.f32.mrf.mxu2  ;;  %9465 = vmatpush.msra.mxu1 %v7181_v7  ;;  %9534 = vmatpush.msrb.mxu0 %v7181_v7 }
 0x6cf   : > { %9508 = vmatpush.msra.mxu3 %v7184_v53  ;;  %9488 = vmatpush.msra.mxu2 %v7181_v7 }
 0x6d0   : > { %9466 = vmatpush.msra.mxu1 %v7180_v37  ;;  %9535 = vmatpush.msrb.mxu0 %v7180_v37 }
 0x6d1   : > { %v18330_v57 = vpop.f32.mrf.mxu0  ;;  %9509 = vmatpush.msra.mxu3 %v7183_v39  ;;  %9489 = vmatpush.msra.mxu2 %v7180_v37 }
 0x6d2   : > { %9467 = vmatpush.msra.mxu1 %v7179_v59  ;;  %9536 = vmatpush.msrb.mxu0 %v7179_v59 }
 0x6d3   : > { %9510 = vmatpush.msra.mxu3 %v7182_v16  ;;  %9490 = vmatpush.msra.mxu2 %v7179_v59  ;;  %v18524_v16 = vld [vmem:[%s19729_s2 + $0x218] sm:$0xff] }
 0x6d5   : > { %9511 = vmatpush.msra.mxu3 %v7181_v7 }
 0x6d7   : > { %9512 = vmatpush.msra.mxu3 %v7180_v37  ;;  %v18536_v37 = vld [vmem:[%s19729_s2 + $0x210] sm:$0xff] }
 0x6d9   : > { %9513 = vmatpush.msra.mxu3 %v7179_v59  ;;  %v18545_v59 = vld [vmem:[%s19729_s2 + $0x208] sm:$0xff] }
 0x6db   : > { %v18336_v58 = vpop.f32.mrf.mxu0  ;;  %v18344_v52 = vpop.f32.mrf.mxu3 }
 0x6de   : > { %v18338_v32 = vpop.f32.mrf.mxu1 }
 0x6e1   : > { %v18340_v40 = vpop.f32.mrf.mxu2 }
 0x6e5   : > { %v18342_v25 = vpop.f32.mrf.mxu0 }
 0x6e8   : > { %v18346_v1 = vpop.f32.mrf.mxu1 }
 0x6eb   : > { %v18348_v38 = vpop.f32.mrf.mxu2 }
 0x6ee   : > { %v18352_v26 = vpop.f32.mrf.mxu3 }
 0x6f3   : > { %v18354_v19 = vpop.f32.mrf.mxu1 }
 0x6f6   : > { %v18356_v21 = vpop.f32.mrf.mxu2 }
 0x6f8   : > { %v18350_v5 = vpop.f32.mrf.mxu0  ;;  %v18360_v12 = vpop.f32.mrf.mxu3 }
 0x703   : > { %v18362_v24 = vpop.f32.mrf.mxu1  ;;  %v18394_v6 = vpop.f32.mrf.mxu3 }
 0x707   : > { %v18364_v54 = vpop.f32.mrf.mxu2 }
 0x70a   : > { %v18358_v3 = vpop.f32.mrf.mxu0 }
 0x713   : > { %v9034_v17 = vpop.f32.mrf.mxu0  ;;  %v18427_v36 = vpop.f32.mrf.mxu3 }
 0x714   : > { %13580 = vmatmul.msk.f32.vlgmr.msrb.gmra.mxu1 %vm7578_vm10, %v9034_v17 }
 0x715   : > { %9560 = vmatpush.msrb.mxu1 %v18369_v0 }
 0x716   : > { %v18384_v61 = vpop.f32.mrf.mxu1 }
 0x717   : > { %9561 = vmatpush.msrb.mxu1 %v18375_v41 }
 0x719   : > { %v18391_v28 = vpop.f32.mrf.mxu2  ;;  %9562 = vmatpush.msrb.mxu1 %v18381_v23 }
 0x71b   : > { %v18401_v46 = vpop.f32.mrf.mxu0  ;;  %9563 = vmatpush.msrb.mxu1 %v18389_v43 }
 0x71c   : > { %13582 = vmatmul.msk.f32.vlgmr.msrb.gmra.mxu3 %vm7578_vm10, %v18401_v46 }
 0x71d   : > { %9564 = vmatpush.msrb.mxu1 %v18399_v27  ;;  %9606 = vmatpush.msrb.mxu3 %v18369_v0 }
 0x71f   : > { %9565 = vmatpush.msrb.mxu1 %v18409_v35  ;;  %9607 = vmatpush.msrb.mxu3 %v18375_v41  ;;  %v9054_v8 = vpop.f32.mrf.mxu1 }
 0x721   : > { %9566 = vmatpush.msrb.mxu1 %v18416_v15  ;;  %9608 = vmatpush.msrb.mxu3 %v18381_v23 }
 0x722   : > { %v18429_v50 = vpop.f32.mrf.mxu2 }
 0x723   : > { %v18431_v4 = vpop.f32.mrf.mxu0  ;;  %9567 = vmatpush.msrb.mxu1 %v18423_v55  ;;  %9609 = vmatpush.msrb.mxu3 %v18389_v43 }
 0x724   : > { %13581 = vmatmul.msk.f32.vlgmr.msrb.gmra.mxu2 %vm7578_vm10, %v18429_v50  ;;  %13584 = vmatmul.msk.f32.vlgmr.msra.gmra.mxu1 %vm7578_vm10, %v18431_v4 }
 0x725   : > { %9583 = vmatpush.msrb.mxu2 %v18369_v0  ;;  %9652 = vmatpush.msra.mxu1 %v18369_v0  ;;  %v18447_v63 = vpop.f32.mrf.mxu3 }
 0x726   : > { %9610 = vmatpush.msrb.mxu3 %v18399_v27 }
 0x727   : > { %9584 = vmatpush.msrb.mxu2 %v18375_v41  ;;  %9653 = vmatpush.msra.mxu1 %v18375_v41 }
 0x728   : > { %9611 = vmatpush.msrb.mxu3 %v18409_v35  ;;  %v9134_v45 = vpop.f32.mrf.mxu1 }
 0x729   : > { %9585 = vmatpush.msrb.mxu2 %v18381_v23  ;;  %9654 = vmatpush.msra.mxu1 %v18381_v23 }
 0x72a   : > { %9612 = vmatpush.msrb.mxu3 %v18416_v15 }
 0x72b   : > { %v18450_v62 = vpop.f32.mrf.mxu2  ;;  %9586 = vmatpush.msrb.mxu2 %v18389_v43  ;;  %9655 = vmatpush.msra.mxu1 %v18389_v43  ;;  %v18454_v48 = vpop.f32.mrf.mxu0 }
 0x72c   : > { %13583 = vmatmul.msk.f32.vlgmr.msra.gmra.mxu0 %vm7578_vm10, %v18450_v62  ;;  %9613 = vmatpush.msrb.mxu3 %v18423_v55 }
 0x72d   : > { %9587 = vmatpush.msrb.mxu2 %v18399_v27  ;;  %9629 = vmatpush.msra.mxu0 %v18369_v0  ;;  %v9094_v33 = vpop.f32.mrf.mxu3 }
 0x72e   : > { %13586 = vmatmul.msk.f32.vlgmr.msra.gmra.mxu3 %vm7578_vm10, %v18454_v48  ;;  %13588 = vmatmul.msk.f32.vlgmr.msrb.gmra.mxu1 %vm7578_vm10, %v9054_v8 }
 0x72f   : > { %9656 = vmatpush.msra.mxu1 %v18399_v27  ;;  %9698 = vmatpush.msra.mxu3 %v18369_v0 }
 0x730   : > { %9588 = vmatpush.msrb.mxu2 %v18409_v35  ;;  %9630 = vmatpush.msra.mxu0 %v18375_v41  ;;  %v9214_v34 = vpop.f32.mrf.mxu1 }
 0x731   : > { %9657 = vmatpush.msra.mxu1 %v18409_v35  ;;  %9699 = vmatpush.msra.mxu3 %v18375_v41 }
 0x732   : > { %9589 = vmatpush.msrb.mxu2 %v18416_v15  ;;  %9631 = vmatpush.msra.mxu0 %v18381_v23 }
 0x733   : > { %9658 = vmatpush.msra.mxu1 %v18416_v15  ;;  %9700 = vmatpush.msra.mxu3 %v18381_v23  ;;  %v18474_v42 = vpop.f32.mrf.mxu2 }
 0x734   : > { %9590 = vmatpush.msrb.mxu2 %v18423_v55  ;;  %9632 = vmatpush.msra.mxu0 %v18389_v43 }
 0x735   : > { %13585 = vmatmul.msk.f32.vlgmr.msra.gmra.mxu2 %vm7578_vm10, %v18474_v42  ;;  %9659 = vmatpush.msra.mxu1 %v18423_v55  ;;  %v9174_v39 = vpop.f32.mrf.mxu3 }
 0x736   : > { %9675 = vmatpush.msra.mxu2 %v18369_v0  ;;  %9701 = vmatpush.msra.mxu3 %v18389_v43 }
 0x737   : > { %9633 = vmatpush.msra.mxu0 %v18399_v27  ;;  %9749 = vmatpush.msrb.mxu1 %v18481_v30 }
 0x738   : > { %13590 = vmatmul.msk.f32.vlgmr.msrb.gmra.mxu3 %vm7578_vm10, %v9134_v45  ;;  %13592 = vmatmul.msk.f32.vlgmr.msra.gmra.mxu1 %vm7578_vm10, %v9214_v34  ;;  %v9294_v7 = vpop.f32.mrf.mxu1 }
 0x739   : > { %9676 = vmatpush.msra.mxu2 %v18375_v41  ;;  %9702 = vmatpush.msra.mxu3 %v18399_v27 }
 0x73a   : > { %9634 = vmatpush.msra.mxu0 %v18409_v35  ;;  %9750 = vmatpush.msrb.mxu1 %v18493_v60 }
 0x73b   : > { %9677 = vmatpush.msra.mxu2 %v18381_v23  ;;  %9703 = vmatpush.msra.mxu3 %v18409_v35  ;;  %v18515_v53 = vpop.f32.mrf.mxu2 }
 0x73c   : > { %9635 = vmatpush.msra.mxu0 %v18416_v15  ;;  %9751 = vmatpush.msrb.mxu1 %v18502_v44 }
 0x73d   : > { %9678 = vmatpush.msra.mxu2 %v18389_v43  ;;  %9704 = vmatpush.msra.mxu3 %v18416_v15  ;;  %v9254_v17 = vpop.f32.mrf.mxu3 }
 0x73e   : > { %9636 = vmatpush.msra.mxu0 %v18423_v55  ;;  %9752 = vmatpush.msrb.mxu1 %v18511_v9 }
 0x73f   : > { %13587 = vmatmul.msk.f32.vlgmr.msrb.gmra.mxu0 %vm7578_vm10, %v18515_v53  ;;  %13589 = vmatmul.msk.f32.vlgmr.msrb.gmra.mxu2 %vm7578_vm10, %v9094_v33 }
 0x740   : > { %9679 = vmatpush.msra.mxu2 %v18399_v27  ;;  %9705 = vmatpush.msra.mxu3 %v18423_v55 }
 0x741   : > { %9721 = vmatpush.msrb.mxu0 %v18369_v0  ;;  %9753 = vmatpush.msrb.mxu1 %v18524_v16  ;;  %v18554_v0 = vld [vmem:[%s19729_s2 + $0x200] sm:$0xff] }
 0x742   : > { %9789 = vmatpush.msrb.mxu3 %v18481_v30  ;;  %9680 = vmatpush.msra.mxu2 %v18409_v35 }
 0x743   : > { %13594 = vmatmul.msk.f32.vlgmr.msra.gmra.mxu3 %vm7578_vm10, %v9294_v7  ;;  %9722 = vmatpush.msrb.mxu0 %v18375_v41 }
 0x744   : > { %9754 = vmatpush.msrb.mxu1 %v18536_v37  ;;  %9790 = vmatpush.msrb.mxu3 %v18493_v60 }
 0x745   : > { %9681 = vmatpush.msra.mxu2 %v18416_v15  ;;  %9723 = vmatpush.msrb.mxu0 %v18381_v23  ;;  %v9334_v41 = vpop.f32.mrf.mxu3  ;;  %v9354_v23 = vpop.f32.mrf.mxu0 }
 0x746   : > { %9755 = vmatpush.msrb.mxu1 %v18545_v59  ;;  %9791 = vmatpush.msrb.mxu3 %v18502_v44 }
 0x747   : > { %9682 = vmatpush.msra.mxu2 %v18423_v55  ;;  %9724 = vmatpush.msrb.mxu0 %v18389_v43 }
 0x748   : > { %9756 = vmatpush.msrb.mxu1 %v18554_v0  ;;  %9792 = vmatpush.msrb.mxu3 %v18511_v9 }
 0x749   : > { %9769 = vmatpush.msrb.mxu2 %v18481_v30  ;;  %13591 = vmatmul.msk.f32.vlgmr.msra.gmra.mxu0 %vm7578_vm10, %v9174_v39 }
 0x74a   : > { %13593 = vmatmul.msk.f32.vlgmr.msra.gmra.mxu2 %vm7578_vm10, %v9254_v17  ;;  %9725 = vmatpush.msrb.mxu0 %v18399_v27 }
 0x74b   : > { %13596 = vmatmul.msk.f32.vlgmr.msrb.gmra.mxu1 %vm7578_vm10, %v18429_v50  ;;  %9770 = vmatpush.msrb.mxu2 %v18493_v60 }
 0x74c   : > { %9829 = vmatpush.msra.mxu1 %v18481_v30  ;;  %9793 = vmatpush.msrb.mxu3 %v18524_v16 }
 0x74d   : > { %9726 = vmatpush.msrb.mxu0 %v18409_v35  ;;  %9771 = vmatpush.msrb.mxu2 %v18502_v44 }
 0x74e   : > { %9830 = vmatpush.msra.mxu1 %v18493_v60  ;;  %9794 = vmatpush.msrb.mxu3 %v18536_v37 }
 0x74f   : > { %9727 = vmatpush.msrb.mxu0 %v18416_v15  ;;  %9772 = vmatpush.msrb.mxu2 %v18511_v9 }
 0x750   : > { %9831 = vmatpush.msra.mxu1 %v18502_v44  ;;  %9795 = vmatpush.msrb.mxu3 %v18545_v59 }
 0x751   : > { %9728 = vmatpush.msrb.mxu0 %v18423_v55  ;;  %9773 = vmatpush.msrb.mxu2 %v18524_v16  ;;  %v7784_v55 = vadd.f32 %v17937_v2, %v17923_v47  ;;  %v7830_v2 = vadd.f32 %v17949_v10, %v17935_v14  ;;  %v20216_v10 = vld [vmem:[#allocation42_spill] sm:$0xff] }
 0x752   : > { %9832 = vmatpush.msra.mxu1 %v18511_v9  ;;  %9796 = vmatpush.msrb.mxu3 %v18554_v0 }
 0x753   : > { %9809 = vmatpush.msra.mxu0 %v18481_v30  ;;  %13598 = vmatmul.msk.f32.vlgmr.msrb.gmra.mxu3 %vm7578_vm10, %v18450_v62 }
 0x754   : > { %13595 = vmatmul.msk.f32.vlgmr.msrb.gmra.mxu0 %vm7578_vm10, %v9334_v41  ;;  %9833 = vmatpush.msra.mxu1 %v18524_v16 }
 0x755   : > { %9869 = vmatpush.msra.mxu3 %v18481_v30  ;;  %9774 = vmatpush.msrb.mxu2 %v18536_v37 }
 0x756   : > { %9810 = vmatpush.msra.mxu0 %v18493_v60  ;;  %9834 = vmatpush.msra.mxu1 %v18536_v37 }
 0x757   : > { %9870 = vmatpush.msra.mxu3 %v18493_v60  ;;  %9775 = vmatpush.msrb.mxu2 %v18545_v59 }
 0x758   : > { %9811 = vmatpush.msra.mxu0 %v18502_v44  ;;  %9835 = vmatpush.msra.mxu1 %v18545_v59 }
 0x759   : > { %9871 = vmatpush.msra.mxu3 %v18502_v44  ;;  %9776 = vmatpush.msrb.mxu2 %v18554_v0 }
 0x75a   : > { %9812 = vmatpush.msra.mxu0 %v18511_v9  ;;  %13597 = vmatmul.msk.f32.vlgmr.msrb.gmra.mxu2 %vm7578_vm10, %v18401_v46 }
 0x75b   : > { %9836 = vmatpush.msra.mxu1 %v18554_v0  ;;  %9849 = vmatpush.msra.mxu2 %v18481_v30 }
 0x75c   : > { %9872 = vmatpush.msra.mxu3 %v18511_v9  ;;  %9813 = vmatpush.msra.mxu0 %v18524_v16 }
 0x75d   : > { %13600 = vmatmul.msk.f32.vlgmr.msra.gmra.mxu1 %vm7578_vm10, %v18474_v42  ;;  %9850 = vmatpush.msra.mxu2 %v18493_v60 }
 0x75e   : > { %9873 = vmatpush.msra.mxu3 %v18524_v16  ;;  %9814 = vmatpush.msra.mxu0 %v18536_v37 }
 0x75f   : > { %9851 = vmatpush.msra.mxu2 %v18502_v44  ;;  %10022 = vmatpush.msrb.mxu1 %v20196_v49 }
 0x760   : > { %9874 = vmatpush.msra.mxu3 %v18536_v37  ;;  %9815 = vmatpush.msra.mxu0 %v18545_v59 }
 0x761   : > { %9852 = vmatpush.msra.mxu2 %v18511_v9 }
 0x762   : > { %9875 = vmatpush.msra.mxu3 %v18545_v59  ;;  %9816 = vmatpush.msra.mxu0 %v18554_v0 }
 0x763   : > { %13599 = vmatmul.msk.f32.vlgmr.msra.gmra.mxu0 %vm7578_vm10, %v18431_v4  ;;  %9853 = vmatpush.msra.mxu2 %v18524_v16  ;;  %v8110_v4 = vadd.f32 %v17951_v13, %v7784_v55 }
 0x764   : > { %9876 = vmatpush.msra.mxu3 %v18554_v0  ;;  %9892 = vmatpush.msrb.mxu0 %v18481_v30 }
 0x765   : > { %13602 = vmatmul.msk.f32.vlgmr.msra.gmra.mxu3 %vm7578_vm10, %v18515_v53  ;;  %9854 = vmatpush.msra.mxu2 %v18536_v37  ;;  %v8644_v45 = vadd.f32 %v18325_v20, %v8110_v4  ;;  %v8112_v20 = vadd.f32 %v17963_v18, %v7830_v2  ;;  %v20217_v18 = vld [vmem:[#allocation59_spill] sm:$0xff] }
 0x766   : > { %9893 = vmatpush.msrb.mxu0 %v18493_v60  ;;  %13604 = vmatmul.msk.f32.vlgmr.msrb.gmra.mxu1 %vm10004_vm11, %v20051_v31  ;;  %v7807_v17 = vadd.f32 %v20217_v18, %v20216_v10 }
 0x767   : > { %9855 = vmatpush.msra.mxu2 %v18545_v59  ;;  %v8646_v39 = vadd.f32 %v18334_v56, %v8112_v20  ;;  %v20218_v56 = vld [vmem:[#allocation96_spill] sm:$0xff] }
 0x768   : > { %9894 = vmatpush.msrb.mxu0 %v18502_v44  ;;  %v8111_v41 = vadd.f32 %v20218_v56, %v7807_v17 }
 0x769   : > { %9856 = vmatpush.msra.mxu2 %v18554_v0  ;;  %v8838_v14 = vadd.f32 %v18348_v38, %v8646_v39  ;;  %v20223_v39 = vld [vmem:[#allocation33_spill] sm:$0xff] }
 0x76a   : > { %9895 = vmatpush.msrb.mxu0 %v18511_v9  ;;  %13601 = vmatmul.msk.f32.vlgmr.msra.gmra.mxu2 %vm7578_vm10, %v18454_v48  ;;  %v8836_v48 = vadd.f32 %v18336_v58, %v8644_v45  ;;  %v18651_v9 = vld [vmem:[#allocation7] ss:$0 sm:$0xff]  ;;  %v8645_v4 = vadd.f32 %v18332_v22, %v8111_v41  ;;  %v20221_v45 = vld [vmem:[#allocation80_spill] sm:$0xff] }
 0x76b   : > { %v18708_v41 = vld [vmem:[%s19730_s3 + $0xf8] sm:$0xff] }
 0x76c   : > { %9896 = vmatpush.msrb.mxu0 %v18524_v16  ;;  %v9007_v42 = vadd.f32 %v18350_v5, %v8836_v48  ;;  %v7876_v5 = vadd.f32 %v17945_v51, %v17931_v11  ;;  %v9009_v51 = vadd.f32 %v18364_v54, %v8838_v14  ;;  %v20224_v14 = vld [vmem:[#allocation79_spill] sm:$0xff] }
 0x76e   : > { %9897 = vmatpush.msrb.mxu0 %v18536_v37 }
 0x770   : > { %9898 = vmatpush.msrb.mxu0 %v18545_v59  ;;  %v20215_v59 = vld [vmem:[#allocation116_spill] sm:$0xff] }
 0x772   : > { %9899 = vmatpush.msrb.mxu0 %v18554_v0  ;;  %v8114_v0 = vadd.f32 %v20215_v59, %v7876_v5  ;;  %v20222_v5 = vld [vmem:[#allocation75_spill] sm:$0xff] }
 0x773   : > { %13603 = vmatmul.msk.f32.vlgmr.msrb.gmra.mxu0 %vm7578_vm10, %v9354_v23  ;;  %v20219_v23 = vld [vmem:[#allocation46_spill] sm:$0xff]  ;;  %v7922_v59 = vadd.f32 %v20223_v39, %v20222_v5 }
 0x774   : > { %v8648_v11 = vadd.f32 %v18330_v57, %v8114_v0  ;;  %v8837_v57 = vadd.f32 %v18346_v1, %v8645_v4  ;;  %v20229_v4 = vld [vmem:[#allocation61_spill] sm:$0xff] }
 0x776   : > { %v8840_v55 = vadd.f32 %v18342_v25, %v8648_v11  ;;  %v9008_v20 = vadd.f32 %v18362_v24, %v8837_v57  ;;  %v8116_v24 = vadd.f32 %v20224_v14, %v7922_v59  ;;  %v20225_v11 = vld [vmem:[#allocation58_spill] sm:$0xff]  ;;  %v20230_v57 = vld [vmem:[#allocation92_spill] sm:$0xff] }
 0x791   : > { %v9377_v43 = vpop.f32.mrf.mxu1 }
 0x792   : > { %v9541_v60 = vadd.f32 %v9377_v43, %v9007_v42  ;;  %v20220_v43 = vld [vmem:[#allocation97_spill] sm:$0xff]  ;;  %v9011_v42 = vadd.f32 %v18358_v3, %v8840_v55  ;;  %v18720_v55 = vld [vmem:[%s19730_s3 + $0xf0] sm:$0xff] }
 0x79f   : > { %v9423_v46 = vpop.f32.mrf.mxu3 }
 0x7a0   : > { %v9543_v38 = vadd.f32 %v9423_v46, %v9009_v51  ;;  %v20226_v51 = vld [vmem:[#allocation37_spill] sm:$0xff] }
 0x7a1   : > { %v9469_v27 = vpop.f32.mrf.mxu1 }
 0x7a2   : > { %v9545_v2 = vadd.f32 %v9469_v27, %v9011_v42 }
 0x7a7   : > { %v9400_v15 = vpop.f32.mrf.mxu2 }
 0x7a8   : > { %v9542_v3 = vadd.f32 %v9400_v15, %v9008_v20  ;;  %v8650_v15 = vadd.f32 %v18340_v40, %v8116_v24  ;;  %v20227_v40 = vld [vmem:[#allocation60_spill] sm:$0xff] }
 0x7a9   : > { %v9446_v50 = vpop.f32.mrf.mxu0 }
 0x7ab   : > { %v9569_v35 = vpop.f32.mrf.mxu1 }
 0x7ac   : > { %v9733_v44 = vadd.f32 %v9569_v35, %v9541_v60  ;;  %v7853_v35 = vadd.f32 %v20220_v43, %v20219_v23  ;;  %v8842_v23 = vadd.f32 %v18356_v21, %v8650_v15  ;;  %v9933_v15 = vld [vmem:[%s19730_s3 + $0x8] sm:$0xff] }
 0x7ae   : > { %v8113_v48 = vadd.f32 %v20221_v45, %v7853_v35  ;;  %v9013_v21 = vadd.f32 %v18391_v28, %v8842_v23  ;;  %v18745_v28 = vld [vmem:[%s19730_s3 + $0xe0] sm:$0xff]  ;;  %v9983_v23 = vld [vmem:[%s19730_s3 + $0x198] sm:$0xff] }
 0x7b1   : > { %v18639_v8 = vpop.f32.mrf.mxu3 }
 0x7b5   : > { %v9661_v62 = vpop.f32.mrf.mxu1 }
 0x7b6   : > { %v9737_v46 = vadd.f32 %v9661_v62, %v9545_v2 }
 0x7b8   : > { %v18646_v33 = vpop.f32.mrf.mxu2 }
 0x7bb   : > { %v9615_v34 = vpop.f32.mrf.mxu3 }
 0x7bc   : > { %v18649_v30 = vpop.f32.mrf.mxu0  ;;  %v9735_v60 = vadd.f32 %v9615_v34, %v9543_v38  ;;  %v20228_v38 = vld [vmem:[#allocation77_spill] sm:$0xff] }
 0x7bd   : > { %v7945_v45 = vadd.f32 %v20229_v4, %v20228_v38 }
 0x7c2   : > { %v9592_v53 = vpop.f32.mrf.mxu2 }
 0x7c3   : > { %v9734_v27 = vadd.f32 %v9592_v53, %v9542_v3  ;;  %v7899_v53 = vadd.f32 %v20226_v51, %v20225_v11  ;;  %v9987_v11 = vld [vmem:[%s19730_s3 + $0x1b8] sm:$0xff] }
 0x7c6   : > { %v9638_v7 = vpop.f32.mrf.mxu0  ;;  %v18662_v37 = vpop.f32.mrf.mxu3 }
 0x7c8   : > { %v9758_v47 = vpop.f32.mrf.mxu1 }
 0x7c9   : > { %v9904_v13 = vadd.f32 %v9758_v47, %v9733_v44  ;;  %v8647_v47 = vadd.f32 %v18344_v52, %v8113_v48 }
 0x7cb   : > { %v9916_v58 = vadd.f32 %v18651_v9, %v9904_v13  ;;  %v8839_v22 = vadd.f32 %v18360_v12, %v8647_v47  ;;  %v9547_v47 = vadd.f32 %v18639_v8, %v9013_v21 }
 0x7cd   : > { %v18660_v16 = vmax.f32 %v9916_v58, 0.0  ;;  %v18680_v44 = vpop.f32.mrf.mxu2  ;;  %v9010_v1 = vadd.f32 %v18427_v36, %v8839_v22  ;;  %v9739_v20 = vadd.f32 %v18662_v37, %v9547_v47  ;;  %v9945_v47 = vld [vmem:[%s19730_s3 + $0x68] sm:$0xff] }
 0x7cf   : > { %10042 = vmatpush.msrb.mxu2 %v18660_v16  ;;  %v9544_v10 = vadd.f32 %v9446_v50, %v9010_v1 }
 0x7d0   : > { %13605 = vmatmul.msk.f32.vlgmr.msrb.gmra.mxu2 %vm10004_vm11, %v20051_v31 }
 0x7d1   : > { %v18685_v25 = vpop.f32.mrf.mxu0  ;;  %v9736_v17 = vadd.f32 %v9638_v7, %v9544_v10  ;;  %v8115_v7 = vadd.f32 %v20227_v40, %v7899_v53  ;;  %v9937_v10 = vld [vmem:[%s19730_s3 + $0x28] sm:$0xff]  ;;  %v9986_v53 = vld [vmem:[%s19730_s3 + $0x1b0] sm:$0xff] }
 0x7d2   : > { %v9982_v40 = vld [vmem:[%s19730_s3 + $0x190] sm:$0xff] }
 0x7d3   : > { %v8649_v42 = vadd.f32 %v18338_v32, %v8115_v7  ;;  %v9981_v7 = vld [vmem:[%s19730_s3 + $0x188] sm:$0xff] }
 0x7d5   : > { %v8841_v32 = vadd.f32 %v18354_v19, %v8649_v42  ;;  %v18757_v19 = vld [vmem:[%s19730_s3 + $0xd8] sm:$0xff] }
 0x7d6   : > { %v9798_v54 = vpop.f32.mrf.mxu3 }
 0x7d7   : > { %v9906_v13 = vadd.f32 %v9798_v54, %v9735_v60  ;;  %v18732_v60 = vld [vmem:[%s19730_s3 + $0xe8] sm:$0xff]  ;;  %v8117_v54 = vadd.f32 %v20230_v57, %v7945_v45  ;;  %v9012_v8 = vadd.f32 %v18384_v61, %v8841_v32  ;;  %v9958_v61 = vld [vmem:[%s19730_s3 + $0xd0] sm:$0xff]  ;;  %v9944_v32 = vld [vmem:[%s19730_s3 + $0x60] sm:$0xff] }
 0x7d8   : > { %v9946_v57 = vld [vmem:[%s19730_s3 + $0x70] sm:$0xff] }
 0x7d9   : > { %v9918_v58 = vadd.f32 %v18651_v9, %v9906_v13  ;;  %v8651_v13 = vadd.f32 %v18352_v26, %v8117_v54  ;;  %v9546_v37 = vadd.f32 %v18646_v33, %v9012_v8  ;;  %v9940_v8 = vld [vmem:[%s19730_s3 + $0x40] sm:$0xff] }
 0x7da   : > { %v9838_v34 = vpop.f32.mrf.mxu1 }
 0x7db   : > { %v18692_v0 = vmax.f32 %v9918_v58, 0.0  ;;  %v9908_v52 = vadd.f32 %v9838_v34, %v9737_v46  ;;  %v8843_v46 = vadd.f32 %v18394_v6, %v8651_v13  ;;  %v9738_v34 = vadd.f32 %v18680_v44, %v9546_v37  ;;  %v9957_v6 = vld [vmem:[%s19730_s3 + $0xc8] sm:$0xff]  ;;  %v9939_v44 = vld [vmem:[%s19730_s3 + $0x38] sm:$0xff]  ;;  %v9942_v13 = vld [vmem:[%s19730_s3 + $0x50] sm:$0xff] }
 0x7dc   : > { %v9967_v37 = vld [vmem:[%s19730_s3 + $0x118] sm:$0xff] }
 0x7dd   : > { %v9920_v18 = vadd.f32 %v18651_v9, %v9908_v52  ;;  %v9778_v12 = vpop.f32.mrf.mxu2  ;;  %10082 = vmatpush.msra.mxu0 %v18692_v0  ;;  %v9014_v58 = vadd.f32 %v18447_v63, %v8843_v46  ;;  %v9956_v63 = vld [vmem:[%s19730_s3 + $0xc0] sm:$0xff]  ;;  %v9969_v46 = vld [vmem:[%s19730_s3 + $0x128] sm:$0xff] }
 0x7de   : > { %v9905_v62 = vadd.f32 %v9778_v12, %v9734_v27  ;;  %13607 = vmatmul.msk.f32.vlgmr.msra.gmra.mxu0 %vm10004_vm11, %v20051_v31  ;;  %v9935_v12 = vld [vmem:[%s19730_s3 + $0x18] sm:$0xff] }
 0x7df   : > { %v18700_v36 = vmax.f32 %v9920_v18, 0.0  ;;  %v9548_v5 = vadd.f32 %v18649_v30, %v9014_v58  ;;  %v9965_v58 = vld [vmem:[%s19730_s3 + $0x108] sm:$0xff] }
 0x7e0   : > { %v9917_v56 = vadd.f32 %v18651_v9, %v9905_v62  ;;  %v9818_v50 = vpop.f32.mrf.mxu0  ;;  %v9934_v62 = vld [vmem:[%s19730_s3 + $0x10] sm:$0xff] }
 0x7e1   : > { %v9907_v43 = vadd.f32 %v9818_v50, %v9736_v17  ;;  %10122 = vmatpush.msra.mxu2 %v18700_v36  ;;  %v9740_v1 = vadd.f32 %v18685_v25, %v9548_v5  ;;  %v9938_v25 = vld [vmem:[%s19730_s3 + $0x30] sm:$0xff]  ;;  %v9932_v17 = vld [vmem:[%s19730_s3] sm:$0xff] }
 0x7e2   : > { %v18713_v35 = vmax.f32 %v9917_v56, 0.0  ;;  %13609 = vmatmul.msk.f32.vlgmr.msra.gmra.mxu2 %vm10004_vm11, %v20051_v31  ;;  %v9985_v56 = vld [vmem:[%s19730_s3 + $0x1a8] sm:$0xff]  ;;  %v9984_v50 = vld [vmem:[%s19730_s3 + $0x1a0] sm:$0xff] }
 0x7e3   : > { %v9919_v48 = vadd.f32 %v18651_v9, %v9907_v43  ;;  %10198 = vmatpush.msrb.mxu2 %v18708_v41 }
 0x7e4   : > { %10062 = vmatpush.msrb.mxu3 %v18713_v35 }
 0x7e5   : > { %v18736_v2 = vmax.f32 %v9919_v48, 0.0  ;;  %13606 = vmatmul.msk.f32.vlgmr.msrb.gmra.mxu3 %vm10004_vm11, %v20051_v31  ;;  %10199 = vmatpush.msrb.mxu2 %v18720_v55  ;;  %v20231_v48 = vld [vmem:[#allocation71_spill] sm:$0xff] }
 0x7e7   : > { %10102 = vmatpush.msra.mxu1 %v18736_v2  ;;  %10200 = vmatpush.msrb.mxu2 %v18732_v60 }
 0x7e8   : > { %v9878_v22 = vpop.f32.mrf.mxu3  ;;  %13608 = vmatmul.msk.f32.vlgmr.msra.gmra.mxu1 %vm10004_vm11, %v20051_v31 }
 0x7e9   : > { %v9910_v26 = vadd.f32 %v9878_v22, %v9739_v20  ;;  %10201 = vmatpush.msrb.mxu2 %v18745_v28  ;;  %v9941_v20 = vld [vmem:[%s19730_s3 + $0x48] sm:$0xff]  ;;  %v9971_v22 = vld [vmem:[%s19730_s3 + $0x138] sm:$0xff] }
 0x7eb   : > { %v9922_v3 = vadd.f32 %v18651_v9, %v9910_v26  ;;  %10202 = vmatpush.msrb.mxu2 %v18757_v19  ;;  %v9968_v26 = vld [vmem:[%s19730_s3 + $0x120] sm:$0xff] }
 0x7ed   : > { %v18773_v39 = vmax.f32 %v9922_v3, 0.0  ;;  %v9858_v33 = vpop.f32.mrf.mxu2  ;;  %10203 = vmatpush.msrb.mxu2 %v9958_v61  ;;  %v9964_v3 = vld [vmem:[%s19730_s3 + $0x100] sm:$0xff] }
 0x7ee   : > { %v9909_v59 = vadd.f32 %v9858_v33, %v9738_v34 }
 0x7ef   : > { %10162 = vmatpush.msrb.mxu0 %v18773_v39  ;;  %10204 = vmatpush.msrb.mxu2 %v9957_v6 }
 0x7f0   : > { %v9921_v30 = vadd.f32 %v18651_v9, %v9909_v59  ;;  %v9901_v52 = vpop.f32.mrf.mxu0  ;;  %13611 = vmatmul.msk.f32.vlgmr.msrb.gmra.mxu0 %vm10004_vm11, %v20051_v31 }
 0x7f1   : > { %v9911_v27 = vadd.f32 %v9901_v52, %v9740_v1  ;;  %10244 = vmatpush.msra.mxu0 %v18708_v41  ;;  %10205 = vmatpush.msrb.mxu2 %v9956_v63  ;;  %v9995_v52 = vld [vmem:[%s19730_s3 + $0x1f8] sm:$0xff] }
 0x7f2   : > { %v18790_v14 = vmax.f32 %v9921_v30, 0.0 }
 0x7f3   : > { %10290 = vmatpush.msra.mxu2 %v9939_v44  ;;  %v9923_v24 = vadd.f32 %v18651_v9, %v9911_v27  ;;  %10245 = vmatpush.msra.mxu0 %v18720_v55  ;;  %v9936_v9 = vld [vmem:[%s19730_s3 + $0x20] sm:$0xff] }
 0x7f4   : > { %10142 = vmatpush.msra.mxu3 %v18790_v14 }
 0x7f5   : > { %10291 = vmatpush.msra.mxu2 %v9938_v25  ;;  %v18798_v18 = vmax.f32 %v9923_v24, 0.0  ;;  %13610 = vmatmul.msk.f32.vlgmr.msra.gmra.mxu3 %vm10004_vm11, %v20051_v31 }
 0x7f6   : > { %10246 = vmatpush.msra.mxu0 %v18732_v60  ;;  %10221 = vmatpush.msrb.mxu3 %v18708_v41 }
 0x7f7   : > { %10292 = vmatpush.msra.mxu2 %v9937_v10  ;;  %10182 = vmatpush.msrb.mxu1 %v18798_v18 }
 0x7f8   : > { %10247 = vmatpush.msra.mxu0 %v18745_v28  ;;  %13612 = vmatmul.msk.f32.vlgmr.msrb.gmra.mxu1 %vm10004_vm11, %v20051_v31 }
 0x7f9   : > { %10222 = vmatpush.msrb.mxu3 %v18720_v55  ;;  %10267 = vmatpush.msra.mxu1 %v18708_v41  ;;  %v10024_v41 = vpop.f32.mrf.mxu1 }
 0x7fa   : > { %10248 = vmatpush.msra.mxu0 %v18757_v19  ;;  %10293 = vmatpush.msra.mxu2 %v9936_v9 }
 0x7fb   : > { %10223 = vmatpush.msrb.mxu3 %v18732_v60  ;;  %10268 = vmatpush.msra.mxu1 %v18720_v55  ;;  %v9980_v55 = vld [vmem:[%s19730_s3 + $0x180] sm:$0xff] }
 0x7fc   : > { %10249 = vmatpush.msra.mxu0 %v9958_v61  ;;  %10294 = vmatpush.msra.mxu2 %v9935_v12 }
 0x7fd   : > { %10224 = vmatpush.msrb.mxu3 %v18745_v28  ;;  %10269 = vmatpush.msra.mxu1 %v18732_v60  ;;  %v9947_v60 = vld [vmem:[%s19730_s3 + $0x78] sm:$0xff] }
 0x7fe   : > { %10250 = vmatpush.msra.mxu0 %v9957_v6  ;;  %10295 = vmatpush.msra.mxu2 %v9934_v62 }
 0x7ff   : > { %10225 = vmatpush.msrb.mxu3 %v18757_v19  ;;  %10270 = vmatpush.msra.mxu1 %v18745_v28  ;;  %v9943_v28 = vld [vmem:[%s19730_s3 + $0x58] sm:$0xff] }
 0x800   : > { %10251 = vmatpush.msra.mxu0 %v9956_v63  ;;  %10296 = vmatpush.msra.mxu2 %v9933_v15 }
 0x801   : > { %10226 = vmatpush.msrb.mxu3 %v9958_v61  ;;  %10271 = vmatpush.msra.mxu1 %v18757_v19  ;;  %v9970_v19 = vld [vmem:[%s19730_s3 + $0x130] sm:$0xff] }
 0x802   : > { %10336 = vmatpush.msrb.mxu0 %v9939_v44  ;;  %10297 = vmatpush.msra.mxu2 %v9932_v17 }
 0x803   : > { %10227 = vmatpush.msrb.mxu3 %v9957_v6  ;;  %10272 = vmatpush.msra.mxu1 %v9958_v61  ;;  %v9966_v61 = vld [vmem:[%s19730_s3 + $0x110] sm:$0xff] }
 0x804   : > { %10337 = vmatpush.msrb.mxu0 %v9938_v25 }
 0x805   : > { %10228 = vmatpush.msrb.mxu3 %v9956_v63  ;;  %10273 = vmatpush.msra.mxu1 %v9957_v6 }
 0x806   : > { %10338 = vmatpush.msrb.mxu0 %v9937_v10 }
 0x807   : > { %10313 = vmatpush.msra.mxu3 %v9939_v44  ;;  %10274 = vmatpush.msra.mxu1 %v9956_v63 }
 0x808   : > { %10339 = vmatpush.msrb.mxu0 %v9936_v9 }
 0x809   : > { %10314 = vmatpush.msra.mxu3 %v9938_v25  ;;  %10359 = vmatpush.msrb.mxu1 %v9939_v44 }
 0x80a   : > { %10340 = vmatpush.msrb.mxu0 %v9935_v12 }
 0x80b   : > { %10315 = vmatpush.msra.mxu3 %v9937_v10  ;;  %10360 = vmatpush.msrb.mxu1 %v9938_v25 }
 0x80c   : > { %10341 = vmatpush.msrb.mxu0 %v9934_v62 }
 0x80d   : > { %10316 = vmatpush.msra.mxu3 %v9936_v9  ;;  %10361 = vmatpush.msrb.mxu1 %v9937_v10 }
 0x80e   : > { %10342 = vmatpush.msrb.mxu0 %v9933_v15 }
 0x80f   : > { %10317 = vmatpush.msra.mxu3 %v9935_v12  ;;  %10362 = vmatpush.msrb.mxu1 %v9936_v9  ;;  %v9994_v9 = vld [vmem:[%s19730_s3 + $0x1f0] sm:$0xff] }
 0x810   : > { %10343 = vmatpush.msrb.mxu0 %v9932_v17 }
 0x811   : > { %10318 = vmatpush.msra.mxu3 %v9934_v62  ;;  %10363 = vmatpush.msrb.mxu1 %v9935_v12 }
 0x813   : > { %10319 = vmatpush.msra.mxu3 %v9933_v15  ;;  %10364 = vmatpush.msrb.mxu1 %v9934_v62  ;;  %v9993_v62 = vld [vmem:[%s19730_s3 + $0x1e8] sm:$0xff] }
 0x815   : > { %10365 = vmatpush.msrb.mxu1 %v9933_v15  ;;  %10320 = vmatpush.msra.mxu3 %v9932_v17  ;;  %v9992_v15 = vld [vmem:[%s19730_s3 + $0x1e0] sm:$0xff] }
 0x817   : > { %10366 = vmatpush.msrb.mxu1 %v9932_v17  ;;  %v9991_v17 = vld [vmem:[%s19730_s3 + $0x1d8] sm:$0xff] }
 0x853   : > { %v10044_v51 = vpop.f32.mrf.mxu2 }
 0x854   : > { %13613 = vmatmul.msk.f32.vlgmr.msrb.gmra.mxu2 %vm7578_vm10, %v10044_v51 }
 0x855   : > { %10379 = vmatpush.msrb.mxu2 %v9987_v11 }
 0x857   : > { %10380 = vmatpush.msrb.mxu2 %v9986_v53 }
 0x859   : > { %10381 = vmatpush.msrb.mxu2 %v9985_v56 }
 0x85b   : > { %v10084_v43 = vpop.f32.mrf.mxu0  ;;  %10382 = vmatpush.msrb.mxu2 %v9984_v50 }
 0x85c   : > { %13614 = vmatmul.msk.f32.vlgmr.msrb.gmra.mxu3 %vm7578_vm10, %v10084_v43  ;;  %13617 = vmatmul.msk.f32.vlgmr.msra.gmra.mxu2 %vm7578_vm10, %v10024_v41  ;;  %v9989_v41 = vld [vmem:[%s19730_s3 + $0x1c8] sm:$0xff] }
 0x85d   : > { %10399 = vmatpush.msrb.mxu3 %v9987_v11  ;;  %10383 = vmatpush.msrb.mxu2 %v9983_v23 }
 0x85f   : > { %10400 = vmatpush.msrb.mxu3 %v9986_v53  ;;  %10384 = vmatpush.msrb.mxu2 %v9982_v40 }
 0x861   : > { %10401 = vmatpush.msrb.mxu3 %v9985_v56  ;;  %10385 = vmatpush.msrb.mxu2 %v9981_v7 }
 0x863   : > { %10402 = vmatpush.msrb.mxu3 %v9984_v50  ;;  %10386 = vmatpush.msrb.mxu2 %v9980_v55 }
 0x865   : > { %10475 = vmatpush.msra.mxu2 %v20196_v49  ;;  %v10124_v38 = vpop.f32.mrf.mxu2  ;;  %10403 = vmatpush.msrb.mxu3 %v9983_v23  ;;  %v10104_v45 = vpop.f32.mrf.mxu1 }
 0x866   : > { %13615 = vmatmul.msk.f32.vlgmr.msra.gmra.mxu0 %vm7578_vm10, %v10124_v38  ;;  %v9948_v38 = vld [vmem:[%s19730_s3 + $0x80] sm:$0xff] }
 0x867   : > { %10419 = vmatpush.msra.mxu0 %v9987_v11  ;;  %10404 = vmatpush.msrb.mxu3 %v9982_v40 }
 0x868   : > { %v10064_v4 = vpop.f32.mrf.mxu3 }
 0x869   : > { %10420 = vmatpush.msra.mxu0 %v9986_v53  ;;  %13618 = vmatmul.msk.f32.vlgmr.msra.gmra.mxu3 %vm7578_vm10, %v10064_v4 }
 0x86a   : > { %13621 = vmatmul.msk.f32.vlgmr.msrb.gmra.mxu2 %vm7578_vm10, %v10064_v4  ;;  %10405 = vmatpush.msrb.mxu3 %v9981_v7  ;;  %v9979_v4 = vld [vmem:[%s19730_s3 + $0x178] sm:$0xff] }
 0x86b   : > { %10421 = vmatpush.msra.mxu0 %v9985_v56  ;;  %10555 = vmatpush.msrb.mxu2 %v18736_v2 }
 0x86c   : > { %10406 = vmatpush.msrb.mxu3 %v9980_v55 }
 0x86d   : > { %10422 = vmatpush.msra.mxu0 %v9984_v50  ;;  %v10164_v21 = vpop.f32.mrf.mxu0 }
 0x86e   : > { %10495 = vmatpush.msra.mxu3 %v18660_v16  ;;  %13616 = vmatmul.msk.f32.vlgmr.msra.gmra.mxu1 %vm7578_vm10, %v10164_v21  ;;  %v9977_v21 = vld [vmem:[%s19730_s3 + $0x168] sm:$0xff] }
 0x86f   : > { %13619 = vmatmul.msk.f32.vlgmr.msrb.gmra.mxu0 %vm7578_vm10, %v10104_v45  ;;  %10442 = vmatpush.msra.mxu1 %v9987_v11 }
 0x870   : > { %10423 = vmatpush.msra.mxu0 %v9983_v23 }
 0x871   : > { %10443 = vmatpush.msra.mxu1 %v9986_v53  ;;  %13622 = vmatmul.msk.f32.vlgmr.msrb.gmra.mxu3 %vm7578_vm10, %v10104_v45  ;;  %v9978_v45 = vld [vmem:[%s19730_s3 + $0x170] sm:$0xff] }
 0x872   : > { %10424 = vmatpush.msra.mxu0 %v9982_v40  ;;  %13625 = vmatmul.msk.f32.vlgmr.msra.gmra.mxu2 %vm10004_vm11, %v20231_v48 }
 0x873   : > { %10444 = vmatpush.msra.mxu1 %v9985_v56  ;;  %10575 = vmatpush.msrb.mxu3 %v18700_v36 }
 0x874   : > { %10425 = vmatpush.msra.mxu0 %v9981_v7  ;;  %10635 = vmatpush.msra.mxu2 %v18798_v18 }
 0x875   : > { %10445 = vmatpush.msra.mxu1 %v9984_v50  ;;  %v10184_v54 = vpop.f32.mrf.mxu1  ;;  %v9990_v50 = vld [vmem:[%s19730_s3 + $0x1d0] sm:$0xff] }
 0x876   : > { %10426 = vmatpush.msra.mxu0 %v9980_v55 }
 0x877   : > { %10446 = vmatpush.msra.mxu1 %v9983_v23  ;;  %v9988_v23 = vld [vmem:[%s19730_s3 + $0x1c0] sm:$0xff] }
 0x878   : > { %10515 = vmatpush.msrb.mxu0 %v18713_v35  ;;  %v10144_v42 = vpop.f32.mrf.mxu3 }
 0x879   : > { %10447 = vmatpush.msra.mxu1 %v9982_v40  ;;  %13623 = vmatmul.msk.f32.vlgmr.msra.gmra.mxu0 %vm7578_vm10, %v10144_v42 }
 0x87a   : > { %13620 = vmatmul.msk.f32.vlgmr.msrb.gmra.mxu1 %vm7578_vm10, %v10144_v42  ;;  %10595 = vmatpush.msra.mxu0 %v18790_v14  ;;  %v9976_v42 = vld [vmem:[%s19730_s3 + $0x160] sm:$0xff] }
 0x87b   : > { %10448 = vmatpush.msra.mxu1 %v9981_v7  ;;  %13626 = vmatmul.msk.f32.vlgmr.msra.gmra.mxu3 %vm10004_vm11, %v20231_v48 }
 0x87c   : > { %13629 = vmatmul.msk.f32.vlgmr.msrb.gmra.mxu2 %vm10004_vm11, %v20231_v48  ;;  %10651 = vmatpush.msra.mxu3 %v9947_v60 }
 0x87d   : > { %10449 = vmatpush.msra.mxu1 %v9980_v55  ;;  %10720 = vmatpush.msrb.mxu2 %v9947_v60 }
 0x87e   : > { %10652 = vmatpush.msra.mxu3 %v9946_v57 }
 0x87f   : > { %10535 = vmatpush.msrb.mxu1 %v18692_v0  ;;  %10721 = vmatpush.msrb.mxu2 %v9946_v57 }
 0x880   : > { %10653 = vmatpush.msra.mxu3 %v9945_v47 }
 0x881   : > { %13627 = vmatmul.msk.f32.vlgmr.msrb.gmra.mxu0 %vm10004_vm11, %v20231_v48  ;;  %10722 = vmatpush.msrb.mxu2 %v9945_v47 }
 0x882   : > { %13624 = vmatmul.msk.f32.vlgmr.msra.gmra.mxu1 %vm7578_vm10, %v10184_v54  ;;  %10674 = vmatpush.msrb.mxu0 %v9947_v60  ;;  %v9973_v54 = vld [vmem:[%s19730_s3 + $0x148] sm:$0xff] }
 0x883   : > { %10615 = vmatpush.msra.mxu1 %v18773_v39  ;;  %13630 = vmatmul.msk.f32.vlgmr.msrb.gmra.mxu3 %vm10004_vm11, %v20231_v48 }
 0x884   : > { %13633 = vmatmul.msk.f32.vlgmr.msra.gmra.mxu2 %vm10004_vm11, %v20231_v48  ;;  %10675 = vmatpush.msrb.mxu0 %v9946_v57 }
 0x885   : > { %10654 = vmatpush.msra.mxu3 %v9944_v32  ;;  %10723 = vmatpush.msrb.mxu2 %v9944_v32 }
 0x886   : > { %10676 = vmatpush.msrb.mxu0 %v9945_v47 }
 0x887   : > { %10655 = vmatpush.msra.mxu3 %v9943_v28  ;;  %10724 = vmatpush.msrb.mxu2 %v9943_v28 }
 0x888   : > { %10677 = vmatpush.msrb.mxu0 %v9944_v32 }
 0x889   : > { %13631 = vmatmul.msk.f32.vlgmr.msra.gmra.mxu0 %vm10004_vm11, %v20231_v48  ;;  %10656 = vmatpush.msra.mxu3 %v9942_v13 }
 0x88a   : > { %13628 = vmatmul.msk.f32.vlgmr.msrb.gmra.mxu1 %vm10004_vm11, %v20231_v48  ;;  %10678 = vmatpush.msrb.mxu0 %v9943_v28 }
 0x88b   : > { %10697 = vmatpush.msrb.mxu1 %v9947_v60  ;;  %10725 = vmatpush.msrb.mxu2 %v9942_v13  ;;  %v9975_v60 = vld [vmem:[%s19730_s3 + $0x158] sm:$0xff] }
 0x88c   : > { %10679 = vmatpush.msrb.mxu0 %v9942_v13  ;;  %10657 = vmatpush.msra.mxu3 %v9941_v20 }
 0x88d   : > { %10698 = vmatpush.msrb.mxu1 %v9946_v57  ;;  %10726 = vmatpush.msrb.mxu2 %v9941_v20  ;;  %v9974_v57 = vld [vmem:[%s19730_s3 + $0x150] sm:$0xff] }
 0x88e   : > { %10680 = vmatpush.msrb.mxu0 %v9941_v20  ;;  %10658 = vmatpush.msra.mxu3 %v9940_v8 }
 0x88f   : > { %10699 = vmatpush.msrb.mxu1 %v9945_v47  ;;  %10727 = vmatpush.msrb.mxu2 %v9940_v8 }
 0x890   : > { %10747 = vmatpush.msrb.mxu3 %v9971_v22  ;;  %10681 = vmatpush.msrb.mxu0 %v9940_v8 }
 0x891   : > { %10700 = vmatpush.msrb.mxu1 %v9944_v32  ;;  %10816 = vmatpush.msra.mxu2 %v9971_v22  ;;  %v9972_v32 = vld [vmem:[%s19730_s3 + $0x140] sm:$0xff] }
 0x892   : > { %13632 = vmatmul.msk.f32.vlgmr.msra.gmra.mxu1 %vm10004_vm11, %v20231_v48  ;;  %10770 = vmatpush.msra.mxu0 %v9971_v22 }
 0x893   : > { %10701 = vmatpush.msrb.mxu1 %v9943_v28  ;;  %10748 = vmatpush.msrb.mxu3 %v9970_v19 }
 0x894   : > { %10771 = vmatpush.msra.mxu0 %v9970_v19  ;;  %10817 = vmatpush.msra.mxu2 %v9970_v19 }
 0x895   : > { %10702 = vmatpush.msrb.mxu1 %v9942_v13  ;;  %10749 = vmatpush.msrb.mxu3 %v9969_v46 }
 0x896   : > { %10772 = vmatpush.msra.mxu0 %v9969_v46  ;;  %10818 = vmatpush.msra.mxu2 %v9969_v46 }
 0x897   : > { %10703 = vmatpush.msrb.mxu1 %v9941_v20  ;;  %10750 = vmatpush.msrb.mxu3 %v9968_v26 }
 0x898   : > { %10773 = vmatpush.msra.mxu0 %v9968_v26  ;;  %10819 = vmatpush.msra.mxu2 %v9968_v26 }
 0x899   : > { %10704 = vmatpush.msrb.mxu1 %v9940_v8  ;;  %10751 = vmatpush.msrb.mxu3 %v9967_v37 }
 0x89a   : > { %10774 = vmatpush.msra.mxu0 %v9967_v37  ;;  %10820 = vmatpush.msra.mxu2 %v9967_v37 }
 0x89b   : > { %10793 = vmatpush.msra.mxu1 %v9971_v22  ;;  %10752 = vmatpush.msrb.mxu3 %v9966_v61 }
 0x89c   : > { %10775 = vmatpush.msra.mxu0 %v9966_v61  ;;  %10821 = vmatpush.msra.mxu2 %v9966_v61 }
 0x89d   : > { %10794 = vmatpush.msra.mxu1 %v9970_v19  ;;  %10753 = vmatpush.msrb.mxu3 %v9965_v58 }
 0x89e   : > { %10776 = vmatpush.msra.mxu0 %v9965_v58  ;;  %10822 = vmatpush.msra.mxu2 %v9965_v58 }
 0x89f   : > { %10795 = vmatpush.msra.mxu1 %v9969_v46  ;;  %10754 = vmatpush.msrb.mxu3 %v9964_v3 }
 0x8a0   : > { %10777 = vmatpush.msra.mxu0 %v9964_v3  ;;  %10823 = vmatpush.msra.mxu2 %v9964_v3 }
 0x8a1   : > { %10796 = vmatpush.msra.mxu1 %v9968_v26 }
 0x8a3   : > { %10797 = vmatpush.msra.mxu1 %v9967_v37 }
 0x8a5   : > { %10798 = vmatpush.msra.mxu1 %v9966_v61 }
 0x8a7   : > { %10799 = vmatpush.msra.mxu1 %v9965_v58 }
 0x8a9   : > { %10800 = vmatpush.msra.mxu1 %v9964_v3 }
 0x8d7   : > { %v18944_v34 = vpop.f32.mrf.mxu2 }
 0x8df   : > { %v10230_v6 = vpop.f32.mrf.mxu3  ;;  %v18946_v5 = vpop.f32.mrf.mxu2 }
 0x8e0   : > { %v10300_v8 = vadd.f32 %v18946_v5, %v18944_v34 }
 0x8e3   : > { %v18948_v33 = vpop.f32.mrf.mxu0 }
 0x8eb   : > { %v18952_v1 = vpop.f32.mrf.mxu1 }
 0x8ec   : > { %v10322_v59 = vpop.f32.mrf.mxu3  ;;  %v18954_v44 = vpop.f32.mrf.mxu0 }
 0x8ed   : > { %v18950_v63 = vpop.f32.mrf.mxu2  ;;  %v10323_v30 = vadd.f32 %v10322_v59, %v10230_v6  ;;  %v10346_v28 = vadd.f32 %v18954_v44, %v18948_v33 }
 0x8ee   : > { %v10454_v26 = vadd.f32 %v18950_v63, %v10300_v8 }
 0x8f4   : > { %v10408_v27 = vpop.f32.mrf.mxu3 }
 0x8f5   : > { %v10477_v25 = vpop.f32.mrf.mxu2  ;;  %v18959_v24 = vadd.f32 %v10408_v27, %v10323_v30 }
 0x8f6   : > { %v18961_v10 = vpop.f32.mrf.mxu0  ;;  %13634 = vmatmul.msk.f32.vlgmr.msra.gmra.mxu3 %vm7578_vm10, %v10477_v25 }
 0x8f7   : > { %v18967_v12 = vpop.f32.mrf.mxu1  ;;  %10840 = vmatpush.msra.mxu3 %v9995_v52  ;;  %v10456_v13 = vadd.f32 %v18961_v10, %v10346_v28  ;;  %v10003_v10 = vld [vmem:[%s19730_s3 + $0x238] sm:$0xff] }
 0x8f8   : > { %v10369_v5 = vadd.f32 %v18967_v12, %v18952_v1  ;;  %v10001_v12 = vld [vmem:[%s19730_s3 + $0x228] sm:$0xff] }
 0x8f9   : > { %10841 = vmatpush.msra.mxu3 %v9994_v9 }
 0x8fb   : > { %10842 = vmatpush.msra.mxu3 %v9993_v62 }
 0x8fd   : > { %10843 = vmatpush.msra.mxu3 %v9992_v15 }
 0x8fe   : > { %v10497_v11 = vpop.f32.mrf.mxu3  ;;  %v10517_v51 = vpop.f32.mrf.mxu0 }
 0x8ff   : > { %v10557_v53 = vpop.f32.mrf.mxu2  ;;  %v18978_v56 = vpop.f32.mrf.mxu1  ;;  %13638 = vmatmul.msk.f32.vlgmr.msrb.gmra.mxu3 %vm7578_vm10, %v10497_v11  ;;  %13635 = vmatmul.msk.f32.vlgmr.msrb.gmra.mxu0 %vm7578_vm10, %v10517_v51 }
 0x900   : > { %13636 = vmatmul.msk.f32.vlgmr.msrb.gmra.mxu1 %vm7578_vm10, %v10557_v53  ;;  %10844 = vmatpush.msra.mxu3 %v9991_v17  ;;  %v10457_v63 = vadd.f32 %v18978_v56, %v10369_v5  ;;  %v9999_v56 = vld [vmem:[%s19730_s3 + $0x218] sm:$0xff] }
 0x901   : > { %10880 = vmatpush.msrb.mxu1 %v9995_v52  ;;  %10860 = vmatpush.msrb.mxu0 %v9995_v52 }
 0x902   : > { %10845 = vmatpush.msra.mxu3 %v9990_v50 }
 0x903   : > { %10881 = vmatpush.msrb.mxu1 %v9994_v9  ;;  %10861 = vmatpush.msrb.mxu0 %v9994_v9 }
 0x904   : > { %10846 = vmatpush.msra.mxu3 %v9989_v41 }
 0x905   : > { %10882 = vmatpush.msrb.mxu1 %v9993_v62  ;;  %10862 = vmatpush.msrb.mxu0 %v9993_v62 }
 0x906   : > { %10847 = vmatpush.msra.mxu3 %v9988_v23  ;;  %v10577_v43 = vpop.f32.mrf.mxu3  ;;  %v10597_v40 = vpop.f32.mrf.mxu0 }
 0x907   : > { %10883 = vmatpush.msrb.mxu1 %v9992_v15  ;;  %10863 = vmatpush.msrb.mxu0 %v9992_v15  ;;  %v10537_v7 = vpop.f32.mrf.mxu1 }
 0x908   : > { %10936 = vmatpush.msrb.mxu3 %v20196_v49  ;;  %13640 = vmatmul.msk.f32.vlgmr.msra.gmra.mxu1 %vm7578_vm10, %v10577_v43 }
 0x909   : > { %13642 = vmatmul.msk.f32.vlgmr.msra.gmra.mxu3 %vm7578_vm10, %v10517_v51  ;;  %10884 = vmatpush.msrb.mxu1 %v9991_v17 }
 0x90a   : > { %11016 = vmatpush.msra.mxu3 %v18736_v2  ;;  %13637 = vmatmul.msk.f32.vlgmr.msrb.gmra.mxu2 %vm7578_vm10, %v10597_v40  ;;  %v9952_v2 = vld [vmem:[%s19730_s3 + $0xa0] sm:$0xff] }
 0x90b   : > { %13639 = vmatmul.msk.f32.vlgmr.msra.gmra.mxu0 %vm7578_vm10, %v10537_v7  ;;  %10903 = vmatpush.msrb.mxu2 %v9995_v52 }
 0x90c   : > { %10864 = vmatpush.msrb.mxu0 %v9991_v17  ;;  %10885 = vmatpush.msrb.mxu1 %v9990_v50 }
 0x90d   : > { %10904 = vmatpush.msrb.mxu2 %v9994_v9 }
 0x90e   : > { %10865 = vmatpush.msrb.mxu0 %v9990_v50  ;;  %10886 = vmatpush.msrb.mxu1 %v9989_v41 }
 0x90f   : > { %10905 = vmatpush.msrb.mxu2 %v9993_v62  ;;  %v10617_v55 = vpop.f32.mrf.mxu1 }
 0x910   : > { %10866 = vmatpush.msrb.mxu0 %v9989_v41  ;;  %10887 = vmatpush.msrb.mxu1 %v9988_v23 }
 0x911   : > { %10906 = vmatpush.msrb.mxu2 %v9992_v15  ;;  %13644 = vmatmul.msk.f32.vlgmr.msrb.gmra.mxu1 %vm7578_vm10, %v10597_v40  ;;  %v9997_v40 = vld [vmem:[%s19730_s3 + $0x208] sm:$0xff] }
 0x912   : > { %10976 = vmatpush.msra.mxu1 %v18713_v35  ;;  %10867 = vmatpush.msrb.mxu0 %v9988_v23  ;;  %v10637_v35 = vpop.f32.mrf.mxu2 }
 0x913   : > { %13646 = vmatmul.msk.f32.vlgmr.msrb.gmra.mxu3 %vm10004_vm11, %v20214_v29  ;;  %13641 = vmatmul.msk.f32.vlgmr.msra.gmra.mxu2 %vm7578_vm10, %v10617_v55  ;;  %v9996_v55 = vld [vmem:[%s19730_s3 + $0x200] sm:$0xff] }
 0x914   : > { %10956 = vmatpush.msra.mxu0 %v18660_v16  ;;  %11056 = vmatpush.msrb.mxu1 %v18790_v14  ;;  %v9955_v16 = vld [vmem:[%s19730_s3 + $0xb8] sm:$0xff]  ;;  %v9950_v14 = vld [vmem:[%s19730_s3 + $0x90] sm:$0xff] }
 0x915   : > { %11096 = vmatpush.msrb.mxu3 %v18798_v18  ;;  %13643 = vmatmul.msk.f32.vlgmr.msrb.gmra.mxu0 %vm7578_vm10, %v10557_v53  ;;  %v9949_v18 = vld [vmem:[%s19730_s3 + $0x88] sm:$0xff]  ;;  %v10000_v53 = vld [vmem:[%s19730_s3 + $0x220] sm:$0xff] }
 0x916   : > { %10907 = vmatpush.msrb.mxu2 %v9991_v17  ;;  %11036 = vmatpush.msrb.mxu0 %v18700_v36  ;;  %v9954_v36 = vld [vmem:[%s19730_s3 + $0xb0] sm:$0xff] }
 0x917   : > { %v10002_v17 = vld [vmem:[%s19730_s3 + $0x230] sm:$0xff] }
 0x918   : > { %10908 = vmatpush.msrb.mxu2 %v9990_v50 }
 0x919   : > { %13648 = vmatmul.msk.f32.vlgmr.msra.gmra.mxu1 %vm10004_vm11, %v20214_v29 }
 0x91a   : > { %10909 = vmatpush.msrb.mxu2 %v9989_v41  ;;  %11135 = vmatpush.msra.mxu1 %v9955_v16 }
 0x91b   : > { %13650 = vmatmul.msk.f32.vlgmr.msra.gmra.mxu3 %vm10004_vm11, %v20214_v29 }
 0x91c   : > { %10910 = vmatpush.msrb.mxu2 %v9988_v23  ;;  %11181 = vmatpush.msra.mxu3 %v9955_v16  ;;  %v9998_v23 = vld [vmem:[%s19730_s3 + $0x210] sm:$0xff] }
 0x91d   : > { %13647 = vmatmul.msk.f32.vlgmr.msra.gmra.mxu0 %vm10004_vm11, %v20214_v29  ;;  %13645 = vmatmul.msk.f32.vlgmr.msrb.gmra.mxu2 %vm7578_vm10, %v10637_v35 }
 0x91e   : > { %10996 = vmatpush.msra.mxu2 %v18692_v0  ;;  %11112 = vmatpush.msra.mxu0 %v9955_v16  ;;  %v9953_v0 = vld [vmem:[%s19730_s3 + $0xa8] sm:$0xff] }
 0x91f   : > { %11136 = vmatpush.msra.mxu1 %v9954_v36  ;;  %11182 = vmatpush.msra.mxu3 %v9954_v36 }
 0x920   : > { %11076 = vmatpush.msrb.mxu2 %v18773_v39  ;;  %11113 = vmatpush.msra.mxu0 %v9954_v36  ;;  %v9951_v39 = vld [vmem:[%s19730_s3 + $0x98] sm:$0xff] }
 0x921   : > { %13652 = vmatmul.msk.f32.vlgmr.msrb.gmra.mxu1 %vm10004_vm11, %v20214_v29  ;;  %11183 = vmatpush.msra.mxu3 %v9953_v0 }
 0x922   : > { %11114 = vmatpush.msra.mxu0 %v9953_v0  ;;  %11137 = vmatpush.msra.mxu1 %v9953_v0 }
 0x923   : > { %13654 = vmatmul.msk.f32.vlgmr.msrb.gmra.mxu3 %vm10004_vm11, %v20214_v29 }
 0x924   : > { %11115 = vmatpush.msra.mxu0 %v9952_v2  ;;  %11138 = vmatpush.msra.mxu1 %v9952_v2 }
 0x925   : > { %13651 = vmatmul.msk.f32.vlgmr.msrb.gmra.mxu0 %vm10004_vm11, %v20214_v29  ;;  %13649 = vmatmul.msk.f32.vlgmr.msra.gmra.mxu2 %vm10004_vm11, %v20214_v29 }
 0x926   : > { %11158 = vmatpush.msra.mxu2 %v9955_v16  ;;  %11184 = vmatpush.msra.mxu3 %v9952_v2 }
 0x927   : > { %11116 = vmatpush.msra.mxu0 %v9951_v39  ;;  %11139 = vmatpush.msra.mxu1 %v9951_v39 }
 0x928   : > { %11159 = vmatpush.msra.mxu2 %v9954_v36  ;;  %11185 = vmatpush.msra.mxu3 %v9951_v39 }
 0x929   : > { %11117 = vmatpush.msra.mxu0 %v9950_v14  ;;  %11140 = vmatpush.msra.mxu1 %v9950_v14 }
 0x92a   : > { %11160 = vmatpush.msra.mxu2 %v9953_v0  ;;  %11186 = vmatpush.msra.mxu3 %v9950_v14 }
 0x92b   : > { %11118 = vmatpush.msra.mxu0 %v9949_v18  ;;  %11141 = vmatpush.msra.mxu1 %v9949_v18 }
 0x92c   : > { %11161 = vmatpush.msra.mxu2 %v9952_v2  ;;  %11187 = vmatpush.msra.mxu3 %v9949_v18 }
 0x92d   : > { %13653 = vmatmul.msk.f32.vlgmr.msrb.gmra.mxu2 %vm10004_vm11, %v20214_v29  ;;  %11119 = vmatpush.msra.mxu0 %v9948_v38 }
 0x92e   : > { %11162 = vmatpush.msra.mxu2 %v9951_v39  ;;  %11142 = vmatpush.msra.mxu1 %v9948_v38 }
 0x92f   : > { %11188 = vmatpush.msra.mxu3 %v9948_v38  ;;  %11208 = vmatpush.msrb.mxu0 %v9979_v4 }
 0x930   : > { %11163 = vmatpush.msra.mxu2 %v9950_v14  ;;  %11231 = vmatpush.msrb.mxu1 %v9979_v4 }
 0x931   : > { %11277 = vmatpush.msrb.mxu3 %v9979_v4  ;;  %11209 = vmatpush.msrb.mxu0 %v9978_v45 }
 0x932   : > { %11164 = vmatpush.msra.mxu2 %v9949_v18  ;;  %11232 = vmatpush.msrb.mxu1 %v9978_v45 }
 0x933   : > { %11278 = vmatpush.msrb.mxu3 %v9978_v45  ;;  %11210 = vmatpush.msrb.mxu0 %v9977_v21 }
 0x934   : > { %11165 = vmatpush.msra.mxu2 %v9948_v38  ;;  %11233 = vmatpush.msrb.mxu1 %v9977_v21 }
 0x935   : > { %11279 = vmatpush.msrb.mxu3 %v9977_v21  ;;  %11211 = vmatpush.msrb.mxu0 %v9976_v42 }
 0x936   : > { %11254 = vmatpush.msrb.mxu2 %v9979_v4  ;;  %11234 = vmatpush.msrb.mxu1 %v9976_v42 }
 0x937   : > { %11280 = vmatpush.msrb.mxu3 %v9976_v42  ;;  %11212 = vmatpush.msrb.mxu0 %v9975_v60 }
 0x938   : > { %11255 = vmatpush.msrb.mxu2 %v9978_v45  ;;  %11235 = vmatpush.msrb.mxu1 %v9975_v60  ;;  %v13848_v45 = vld [vmem:[#allocation8] ss:$0 sm:$0xff] }
 0x939   : > { %11281 = vmatpush.msrb.mxu3 %v9975_v60  ;;  %11213 = vmatpush.msrb.mxu0 %v9974_v57 }
 0x93a   : > { %11256 = vmatpush.msrb.mxu2 %v9977_v21  ;;  %11236 = vmatpush.msrb.mxu1 %v9974_v57 }
 0x93b   : > { %11282 = vmatpush.msrb.mxu3 %v9974_v57  ;;  %11214 = vmatpush.msrb.mxu0 %v9973_v54 }
 0x93c   : > { %11257 = vmatpush.msrb.mxu2 %v9976_v42  ;;  %11237 = vmatpush.msrb.mxu1 %v9973_v54 }
 0x93d   : > { %11283 = vmatpush.msrb.mxu3 %v9973_v54  ;;  %11215 = vmatpush.msrb.mxu0 %v9972_v32 }
 0x93e   : > { %11258 = vmatpush.msrb.mxu2 %v9975_v60  ;;  %11238 = vmatpush.msrb.mxu1 %v9972_v32 }
 0x93f   : > { %11284 = vmatpush.msrb.mxu3 %v9972_v32 }
 0x940   : > { %11259 = vmatpush.msrb.mxu2 %v9974_v57 }
 0x942   : > { %11260 = vmatpush.msrb.mxu2 %v9973_v54 }
 0x944   : > { %11261 = vmatpush.msrb.mxu2 %v9972_v32 }
 0x979   : > { %v10660_v47 = vpop.f32.mrf.mxu3 }
 0x97a   : > { %v10732_v37 = vadd.f32 %v10660_v47, %v10454_v26 }
 0x97c   : > { %v10683_v20 = vpop.f32.mrf.mxu0 }
 0x97d   : > { %v10706_v22 = vpop.f32.mrf.mxu1  ;;  %v10733_v19 = vadd.f32 %v10683_v20, %v18959_v24 }
 0x97e   : > { %v10734_v46 = vadd.f32 %v10706_v22, %v10456_v13 }
 0x982   : > { %v10756_v61 = vpop.f32.mrf.mxu3 }
 0x983   : > { %v10828_v58 = vadd.f32 %v10756_v61, %v10732_v37 }
 0x985   : > { %v10802_v3 = vpop.f32.mrf.mxu1 }
 0x986   : > { %v10830_v6 = vadd.f32 %v10802_v3, %v10734_v46 }
 0x988   : > { %v10779_v33 = vpop.f32.mrf.mxu0 }
 0x989   : > { %v10829_v59 = vadd.f32 %v10779_v33, %v10733_v19  ;;  %v11399_v33 = vld [vmem:[%s19731_s4 + $0x38] sm:$0xff] }
 0x98c   : > { %v10849_v44 = vpop.f32.mrf.mxu3 }
 0x98d   : > { %v19082_v30 = vadd.f32 %v10849_v44, %v10828_v58  ;;  %v10729_v52 = vpop.f32.mrf.mxu2  ;;  %v11398_v44 = vld [vmem:[%s19731_s4 + $0x30] sm:$0xff] }
 0x98e   : > { %v10889_v27 = vpop.f32.mrf.mxu1  ;;  %v10735_v62 = vadd.f32 %v10729_v52, %v10457_v63  ;;  %v11422_v52 = vld [vmem:[%s19731_s4 + $0xf0] sm:$0xff]  ;;  %v11396_v63 = vld [vmem:[%s19731_s4 + $0x20] sm:$0xff] }
 0x98f   : > { %v19084_v25 = vadd.f32 %v10889_v27, %v10830_v6 }
 0x992   : > { %v10869_v34 = vpop.f32.mrf.mxu0 }
 0x993   : > { %v19088_v24 = vadd.f32 %v10869_v34, %v10829_v59  ;;  %v11421_v34 = vld [vmem:[%s19731_s4 + $0xe8] sm:$0xff] }
 0x996   : > { %v10938_v9 = vpop.f32.mrf.mxu3  ;;  %v10978_v15 = vpop.f32.mrf.mxu1 }
 0x997   : > { %13655 = vmatmul.msk.f32.vlgmr.msra.gmra.mxu0 %vm7578_vm10, %v10938_v9  ;;  %v10825_v11 = vpop.f32.mrf.mxu2  ;;  %13656 = vmatmul.msk.f32.vlgmr.msra.gmra.mxu1 %vm7578_vm10, %v10978_v15 }
 0x998   : > { %11301 = vmatpush.msra.mxu0 %v10003_v10  ;;  %v10831_v1 = vadd.f32 %v10825_v11, %v10735_v62  ;;  %11321 = vmatpush.msra.mxu1 %v10003_v10  ;;  %v11395_v62 = vld [vmem:[%s19731_s4 + $0x18] sm:$0xff]  ;;  %v11394_v11 = vld [vmem:[%s19731_s4 + $0x10] sm:$0xff] }
 0x99a   : > { %11302 = vmatpush.msra.mxu0 %v10002_v17  ;;  %v10958_v51 = vpop.f32.mrf.mxu0  ;;  %11322 = vmatpush.msra.mxu1 %v10002_v17 }
 0x99c   : > { %11303 = vmatpush.msra.mxu0 %v10001_v12  ;;  %11323 = vmatpush.msra.mxu1 %v10001_v12 }
 0x99e   : > { %v11018_v50 = vpop.f32.mrf.mxu3  ;;  %11304 = vmatpush.msra.mxu0 %v10000_v53  ;;  %v11058_v41 = vpop.f32.mrf.mxu1  ;;  %11324 = vmatpush.msra.mxu1 %v10000_v53 }
 0x99f   : > { %13657 = vmatmul.msk.f32.vlgmr.msra.gmra.mxu2 %vm7578_vm10, %v11018_v50  ;;  %13659 = vmatmul.msk.f32.vlgmr.msrb.gmra.mxu0 %vm7578_vm10, %v10958_v51  ;;  %v11417_v51 = vld [vmem:[%s19731_s4 + $0xc8] sm:$0xff] }
 0x9a0   : > { %11305 = vmatpush.msra.mxu0 %v9999_v56  ;;  %11341 = vmatpush.msra.mxu2 %v10003_v10  ;;  %v10912_v43 = vpop.f32.mrf.mxu2 }
 0x9a1   : > { %13658 = vmatmul.msk.f32.vlgmr.msra.gmra.mxu3 %vm7578_vm10, %v11058_v41  ;;  %v19117_v7 = vadd.f32 %v10912_v43, %v10831_v1  ;;  %11325 = vmatpush.msra.mxu1 %v9999_v56  ;;  %v11418_v1 = vld [vmem:[%s19731_s4 + $0xd0] sm:$0xff]  ;;  %v11445_v43 = vld [vmem:[%s19731_s4 + $0x1a8] sm:$0xff] }
 0x9a2   : > { %11306 = vmatpush.msra.mxu0 %v9998_v23  ;;  %11342 = vmatpush.msra.mxu2 %v10002_v17  ;;  %v11038_v16 = vpop.f32.mrf.mxu0 }
 0x9a3   : > { %11364 = vmatpush.msra.mxu3 %v10003_v10  ;;  %11326 = vmatpush.msra.mxu1 %v9998_v23  ;;  %v11420_v10 = vld [vmem:[%s19731_s4 + $0xe0] sm:$0xff] }
 0x9a4   : > { %11307 = vmatpush.msra.mxu0 %v9997_v40  ;;  %11343 = vmatpush.msra.mxu2 %v10001_v12 }
 0x9a5   : > { %11365 = vmatpush.msra.mxu3 %v10002_v17  ;;  %11327 = vmatpush.msra.mxu1 %v9997_v40 }
 0x9a6   : > { %11308 = vmatpush.msra.mxu0 %v9996_v55  ;;  %11344 = vmatpush.msra.mxu2 %v10000_v53  ;;  %v11098_v0 = vpop.f32.mrf.mxu3 }
 0x9a7   : > { %13661 = vmatmul.msk.f32.vlgmr.msrb.gmra.mxu2 %vm7578_vm10, %v11038_v16  ;;  %13663 = vmatmul.msk.f32.vlgmr.msra.gmra.mxu0 %vm7578_vm10, %v10978_v15  ;;  %v11419_v15 = vld [vmem:[%s19731_s4 + $0xd8] sm:$0xff]  ;;  %v11441_v16 = vld [vmem:[%s19731_s4 + $0x188] sm:$0xff] }
 0x9a8   : > { %11345 = vmatpush.msra.mxu2 %v9999_v56  ;;  %v10998_v35 = vpop.f32.mrf.mxu2  ;;  %11366 = vmatpush.msra.mxu3 %v10001_v12  ;;  %v11393_v12 = vld [vmem:[%s19731_s4 + $0x8] sm:$0xff] }
 0x9a9   : > { %11484 = vmatpush.msrb.mxu0 %v20196_v49  ;;  %13660 = vmatmul.msk.f32.vlgmr.msrb.gmra.mxu1 %vm7578_vm10, %v10998_v35  ;;  %v11440_v35 = vld [vmem:[%s19731_s4 + $0x180] sm:$0xff] }
 0x9aa   : > { %11346 = vmatpush.msra.mxu2 %v9998_v23  ;;  %11328 = vmatpush.msra.mxu1 %v9996_v55 }
 0x9ab   : > { %11367 = vmatpush.msra.mxu3 %v10000_v53  ;;  %v11392_v53 = vld [vmem:[%s19731_s4] sm:$0xff] }
 0x9ac   : > { %11347 = vmatpush.msra.mxu2 %v9997_v40 }
 0x9ad   : > { %11368 = vmatpush.msra.mxu3 %v9999_v56 }
 0x9ae   : > { %11348 = vmatpush.msra.mxu2 %v9996_v55 }
 0x9af   : > { %13665 = vmatmul.msk.f32.vlgmr.msra.gmra.mxu2 %vm7578_vm10, %v11058_v41  ;;  %11369 = vmatpush.msra.mxu3 %v9998_v23  ;;  %v11447_v41 = vld [vmem:[%s19731_s4 + $0x1b8] sm:$0xff]  ;;  %v11446_v23 = vld [vmem:[%s19731_s4 + $0x1b0] sm:$0xff] }
 0x9b0   : > { %13667 = vmatmul.msk.f32.vlgmr.msrb.gmra.mxu0 %vm1392_vm4, %v20051_v31  ;;  %v11078_v36 = vpop.f32.mrf.mxu2 }
 0x9b1   : > { %11370 = vmatpush.msra.mxu3 %v9997_v40  ;;  %13664 = vmatmul.msk.f32.vlgmr.msra.gmra.mxu1 %vm7578_vm10, %v11018_v50  ;;  %v11416_v50 = vld [vmem:[%s19731_s4 + $0xc0] sm:$0xff] }
 0x9b2   : > { %13662 = vmatmul.msk.f32.vlgmr.msrb.gmra.mxu3 %vm7578_vm10, %v11078_v36  ;;  %v11444_v40 = vld [vmem:[%s19731_s4 + $0x1a0] sm:$0xff]  ;;  %v11407_v36 = vld [vmem:[%s19731_s4 + $0x78] sm:$0xff] }
 0x9b3   : > { %11371 = vmatpush.msra.mxu3 %v9996_v55  ;;  %v11442_v55 = vld [vmem:[%s19731_s4 + $0x190] sm:$0xff] }
 0x9ba   : > { %13666 = vmatmul.msk.f32.vlgmr.msra.gmra.mxu3 %vm7578_vm10, %v11098_v0  ;;  %v11406_v0 = vld [vmem:[%s19731_s4 + $0x70] sm:$0xff] }
 0xa14   : > { %v11121_v2 = vpop.f32.mrf.mxu0  ;;  %v11144_v14 = vpop.f32.mrf.mxu1 }
 0xa15   : > { %v11193_v18 = vadd.f32 %v11121_v2, %v19082_v30  ;;  %v11194_v32 = vadd.f32 %v11144_v14, %v19088_v24  ;;  %v11423_v30 = vld [vmem:[%s19731_s4 + $0xf8] sm:$0xff]  ;;  %v11405_v2 = vld [vmem:[%s19731_s4 + $0x68] sm:$0xff] }
 0xa16   : > { %v11403_v14 = vld [vmem:[%s19731_s4 + $0x58] sm:$0xff] }
 0xa1c   : > { %v11217_v39 = vpop.f32.mrf.mxu0 }
 0xa1d   : > { %v11289_v4 = vadd.f32 %v11217_v39, %v11193_v18  ;;  %v11404_v39 = vld [vmem:[%s19731_s4 + $0x60] sm:$0xff] }
 0xa22   : > { %v11167_v38 = vpop.f32.mrf.mxu2 }
 0xa23   : > { %v11195_v20 = vadd.f32 %v11167_v38, %v19084_v25  ;;  %v11397_v25 = vld [vmem:[%s19731_s4 + $0x28] sm:$0xff]  ;;  %v11402_v38 = vld [vmem:[%s19731_s4 + $0x50] sm:$0xff] }
 0xa24   : > { %v11310_v21 = vpop.f32.mrf.mxu0  ;;  %v11190_v28 = vpop.f32.mrf.mxu3 }
 0xa25   : > { %v11376_v42 = vadd.f32 %v11310_v21, %v11289_v4  ;;  %v11196_v59 = vadd.f32 %v11190_v28, %v19117_v7  ;;  %v11443_v7 = vld [vmem:[%s19731_s4 + $0x198] sm:$0xff]  ;;  %v11401_v4 = vld [vmem:[%s19731_s4 + $0x48] sm:$0xff]  ;;  %v11450_v28 = vld [vmem:[%s19731_s4 + $0x1d0] sm:$0xff] }
 0xa26   : > { %v11240_v57 = vpop.f32.mrf.mxu1  ;;  %v11455_v21 = vld [vmem:[%s19731_s4 + $0x1f8] sm:$0xff] }
 0xa27   : > { %v11384_v60 = vadd.f32 %v13848_v45, %v11376_v42  ;;  %v11290_v13 = vadd.f32 %v11240_v57, %v11194_v32  ;;  %v11454_v42 = vld [vmem:[%s19731_s4 + $0x1f0] sm:$0xff]  ;;  %v11452_v57 = vld [vmem:[%s19731_s4 + $0x1e0] sm:$0xff]  ;;  %v11431_v32 = vld [vmem:[%s19731_s4 + $0x138] sm:$0xff] }
 0xa29   : > { %v19133_v54 = vmax.f32 %v11384_v60, 0.0  ;;  %v11453_v60 = vld [vmem:[%s19731_s4 + $0x1e8] sm:$0xff] }
 0xa2a   : > { %v11263_v47 = vpop.f32.mrf.mxu2 }
 0xa2b   : > { %13668 = vmatpush.msk.msrb.mxu1 %vm1399_vm3, %v19133_v54  ;;  %v11291_v19 = vadd.f32 %v11263_v47, %v11195_v20  ;;  %v11451_v47 = vld [vmem:[%s19731_s4 + $0x1d8] sm:$0xff]  ;;  %v11430_v20 = vld [vmem:[%s19731_s4 + $0x130] sm:$0xff] }
 0xa2c   : > { %13669 = vmatmul.msk.f32.vlgmr.msrb.gmra.mxu1 %vm1392_vm4, %v20051_v31 }
 0xa2d   : > { %11592 = vmatpush.msra.mxu1 %v11423_v30  ;;  %v11486_v56 = vpop.f32.mrf.mxu0 }
 0xa2e   : > { %v11330_v8 = vpop.f32.mrf.mxu1 }
 0xa2f   : > { %v11377_v22 = vadd.f32 %v11330_v8, %v11290_v13  ;;  %11593 = vmatpush.msra.mxu1 %v11422_v52  ;;  %v11449_v8 = vld [vmem:[%s19731_s4 + $0x1c8] sm:$0xff] }
 0xa31   : > { %v11385_v46 = vadd.f32 %v13848_v45, %v11377_v22  ;;  %11594 = vmatpush.msra.mxu1 %v11421_v34 }
 0xa32   : > { %v11350_v26 = vpop.f32.mrf.mxu2 }
 0xa33   : > { %v11378_v37 = vadd.f32 %v11350_v26, %v11291_v19  ;;  %v19141_v61 = vmax.f32 %v11385_v46, 0.0  ;;  %11595 = vmatpush.msra.mxu1 %v11420_v10  ;;  %v11429_v19 = vld [vmem:[%s19731_s4 + $0x128] sm:$0xff]  ;;  %v11448_v46 = vld [vmem:[%s19731_s4 + $0x1c0] sm:$0xff] }
 0xa34   : > { %v11428_v26 = vld [vmem:[%s19731_s4 + $0x120] sm:$0xff] }
 0xa35   : > { %v11386_v58 = vadd.f32 %v13848_v45, %v11378_v37  ;;  %v11286_v3 = vpop.f32.mrf.mxu3  ;;  %13670 = vmatpush.msk.msrb.mxu2 %vm1399_vm3, %v19141_v61  ;;  %11596 = vmatpush.msra.mxu1 %v11419_v15  ;;  %v11427_v37 = vld [vmem:[%s19731_s4 + $0x118] sm:$0xff] }
 0xa36   : > { %13671 = vmatmul.msk.f32.vlgmr.msrb.gmra.mxu2 %vm1392_vm4, %v20051_v31  ;;  %v11292_v27 = vadd.f32 %v11286_v3, %v11196_v59  ;;  %v11424_v59 = vld [vmem:[%s19731_s4 + $0x100] sm:$0xff] }
 0xa37   : > { %v19145_v6 = vmax.f32 %v11386_v58, 0.0  ;;  %11615 = vmatpush.msra.mxu2 %v11423_v30  ;;  %11597 = vmatpush.msra.mxu1 %v11418_v1  ;;  %v11426_v58 = vld [vmem:[%s19731_s4 + $0x110] sm:$0xff] }
 0xa39   : > { %13672 = vmatpush.msk.msrb.mxu3 %vm1399_vm3, %v19145_v6  ;;  %11616 = vmatpush.msra.mxu2 %v11422_v52 }
 0xa3a   : > { %13673 = vmatmul.msk.f32.vlgmr.msrb.gmra.mxu3 %vm1392_vm4, %v20051_v31  ;;  %11598 = vmatpush.msra.mxu1 %v11417_v51 }
 0xa3b   : > { %11638 = vmatpush.msra.mxu3 %v11399_v33  ;;  %11617 = vmatpush.msra.mxu2 %v11421_v34 }
 0xa3c   : > { %11599 = vmatpush.msra.mxu1 %v11416_v50 }
 0xa3d   : > { %v11373_v5 = vpop.f32.mrf.mxu3  ;;  %11639 = vmatpush.msra.mxu3 %v11398_v44  ;;  %11618 = vmatpush.msra.mxu2 %v11420_v10 }
 0xa3e   : > { %v11379_v24 = vadd.f32 %v11373_v5, %v11292_v27  ;;  %11681 = vmatpush.msrb.mxu1 %v11447_v41 }
 0xa3f   : > { %11640 = vmatpush.msra.mxu3 %v11397_v25  ;;  %11619 = vmatpush.msra.mxu2 %v11419_v15  ;;  %v11414_v15 = vld [vmem:[%s19731_s4 + $0xb0] sm:$0xff] }
 0xa40   : > { %v11387_v9 = vadd.f32 %v13848_v45, %v11379_v24  ;;  %11682 = vmatpush.msrb.mxu1 %v11446_v23  ;;  %v11400_v45 = vld [vmem:[%s19731_s4 + $0x40] sm:$0xff] }
 0xa41   : > { %11641 = vmatpush.msra.mxu3 %v11396_v63  ;;  %11620 = vmatpush.msra.mxu2 %v11418_v1 }
 0xa42   : > { %v19184_v17 = vmax.f32 %v11387_v9, 0.0  ;;  %11683 = vmatpush.msrb.mxu1 %v11445_v43 }
 0xa43   : > { %11642 = vmatpush.msra.mxu3 %v11395_v62  ;;  %11621 = vmatpush.msra.mxu2 %v11417_v51 }
 0xa44   : > { %13674 = vmatpush.msk.msra.mxu0 %vm1399_vm3, %v19184_v17  ;;  %11684 = vmatpush.msrb.mxu1 %v11444_v40 }
 0xa45   : > { %11643 = vmatpush.msra.mxu3 %v11394_v11  ;;  %13675 = vmatmul.msk.f32.vlgmr.msra.gmra.mxu0 %vm1392_vm4, %v20051_v31 }
 0xa46   : > { %11661 = vmatpush.msrb.mxu0 %v11399_v33  ;;  %11622 = vmatpush.msra.mxu2 %v11416_v50  ;;  %v11425_v33 = vld [vmem:[%s19731_s4 + $0x108] sm:$0xff]  ;;  %v11439_v50 = vld [vmem:[%s19731_s4 + $0x178] sm:$0xff] }
 0xa47   : > { %11644 = vmatpush.msra.mxu3 %v11393_v12  ;;  %11685 = vmatpush.msrb.mxu1 %v11443_v7 }
 0xa48   : > { %11662 = vmatpush.msrb.mxu0 %v11398_v44  ;;  %11704 = vmatpush.msrb.mxu2 %v11447_v41  ;;  %v11463_v41 = vld [vmem:[%s19731_s4 + $0x238] sm:$0xff] }
 0xa49   : > { %11645 = vmatpush.msra.mxu3 %v11392_v53  ;;  %11686 = vmatpush.msrb.mxu1 %v11442_v55 }
 0xa4a   : > { %11663 = vmatpush.msrb.mxu0 %v11397_v25  ;;  %13678 = vmatmul.msk.f32.vlgmr.msra.gmra.mxu3 %vm7578_vm10, %v11486_v56  ;;  %v11409_v56 = vld [vmem:[%s19731_s4 + $0x88] sm:$0xff] }
 0xa4b   : > { %11735 = vmatpush.msrb.mxu3 %v20196_v49  ;;  %11705 = vmatpush.msrb.mxu2 %v11446_v23  ;;  %v11438_v23 = vld [vmem:[%s19731_s4 + $0x170] sm:$0xff] }
 0xa4c   : > { %11664 = vmatpush.msrb.mxu0 %v11396_v63  ;;  %11687 = vmatpush.msrb.mxu1 %v11441_v16 }
 0xa4d   : > { %13685 = vmatpush.msk.msra.mxu3 %vm1399_vm3, %v19141_v61  ;;  %11706 = vmatpush.msrb.mxu2 %v11445_v43  ;;  %v11462_v43 = vld [vmem:[%s19731_s4 + $0x230] sm:$0xff] }
 0xa4e   : > { %11665 = vmatpush.msrb.mxu0 %v11395_v62  ;;  %11688 = vmatpush.msrb.mxu1 %v11440_v35  ;;  %v11415_v62 = vld [vmem:[%s19731_s4 + $0xb8] sm:$0xff] }
 0xa4f   : > { %11707 = vmatpush.msrb.mxu2 %v11444_v40  ;;  %v11437_v40 = vld [vmem:[%s19731_s4 + $0x168] sm:$0xff] }
 0xa50   : > { %11666 = vmatpush.msrb.mxu0 %v11394_v11 }
 0xa51   : > { %11708 = vmatpush.msrb.mxu2 %v11443_v7  ;;  %v11461_v7 = vld [vmem:[%s19731_s4 + $0x228] sm:$0xff] }
 0xa52   : > { %11667 = vmatpush.msrb.mxu0 %v11393_v12  ;;  %13682 = vmatmul.msk.f32.vlgmr.msrb.gmra.mxu3 %vm1392_vm4, %v20231_v48  ;;  %v11411_v12 = vld [vmem:[%s19731_s4 + $0x98] sm:$0xff] }
 0xa53   : > { %11709 = vmatpush.msrb.mxu2 %v11442_v55  ;;  %11854 = vmatpush.msrb.mxu3 %v11407_v36  ;;  %v11436_v55 = vld [vmem:[%s19731_s4 + $0x160] sm:$0xff] }
 0xa54   : > { %11668 = vmatpush.msrb.mxu0 %v11392_v53  ;;  %v11410_v53 = vld [vmem:[%s19731_s4 + $0x90] sm:$0xff] }
 0xa55   : > { %11710 = vmatpush.msrb.mxu2 %v11441_v16  ;;  %11855 = vmatpush.msrb.mxu3 %v11406_v0  ;;  %v11460_v16 = vld [vmem:[%s19731_s4 + $0x220] sm:$0xff] }
 0xa56   : > { %13683 = vmatpush.msk.msra.mxu0 %vm1399_vm3, %v19133_v54 }
 0xa57   : > { %11711 = vmatpush.msrb.mxu2 %v11440_v35  ;;  %11856 = vmatpush.msrb.mxu3 %v11405_v2  ;;  %v11435_v35 = vld [vmem:[%s19731_s4 + $0x158] sm:$0xff] }
 0xa59   : > { %11857 = vmatpush.msrb.mxu3 %v11404_v39 }
 0xa5a   : > { %13686 = vmatmul.msk.f32.vlgmr.msra.gmra.mxu3 %vm1392_vm4, %v20231_v48 }
 0xa5b   : > { %11858 = vmatpush.msrb.mxu3 %v11403_v14 }
 0xa5d   : > { %11859 = vmatpush.msrb.mxu3 %v11402_v38 }
 0xa5f   : > { %11860 = vmatpush.msrb.mxu3 %v11401_v4 }
 0xa61   : > { %11861 = vmatpush.msrb.mxu3 %v11400_v45 }
 0xa63   : > { %11947 = vmatpush.msra.mxu3 %v11455_v21 }
 0xa65   : > { %11948 = vmatpush.msra.mxu3 %v11454_v42 }
 0xa67   : > { %11949 = vmatpush.msra.mxu3 %v11453_v60 }
 0xa69   : > { %11950 = vmatpush.msra.mxu3 %v11452_v57 }
 0xa6b   : > { %11951 = vmatpush.msra.mxu3 %v11451_v47 }
 0xa6d   : > { %11952 = vmatpush.msra.mxu3 %v11450_v28 }
 0xa6f   : > { %11953 = vmatpush.msra.mxu3 %v11449_v8 }
 0xa71   : > { %11954 = vmatpush.msra.mxu3 %v11448_v46 }
 0xaa9   : > { %v11509_v18 = vpop.f32.mrf.mxu1 }
 0xaaa   : > { %13676 = vmatmul.msk.f32.vlgmr.msra.gmra.mxu1 %vm7578_vm10, %v11509_v18  ;;  %v11432_v18 = vld [vmem:[%s19731_s4 + $0x140] sm:$0xff] }
 0xaab   : > { %13689 = vmatpush.msk.msra.mxu1 %vm1399_vm3, %v19184_v17 }
 0xab9   : > { %v11532_v13 = vpop.f32.mrf.mxu2 }
 0xaba   : > { %13679 = vmatmul.msk.f32.vlgmr.msrb.gmra.mxu0 %vm7578_vm10, %v11532_v13  ;;  %13680 = vmatmul.msk.f32.vlgmr.msrb.gmra.mxu1 %vm7578_vm10, %v11532_v13 }
 0xabb   : > { %13687 = vmatpush.msk.msrb.mxu0 %vm1399_vm3, %v19145_v6  ;;  %11902 = vmatpush.msrb.mxu1 %v11431_v32 }
 0xabd   : > { %v11555_v22 = vpop.f32.mrf.mxu3  ;;  %11903 = vmatpush.msrb.mxu1 %v11430_v20 }
 0xabe   : > { %13677 = vmatmul.msk.f32.vlgmr.msra.gmra.mxu2 %vm7578_vm10, %v11555_v22  ;;  %v12218_v22 = vld [vmem:[%s19732_s5 + $0x30] sm:$0xff] }
 0xabf   : > { %11831 = vmatpush.msra.mxu2 %v11407_v36  ;;  %11904 = vmatpush.msrb.mxu1 %v11429_v19  ;;  %v11459_v36 = vld [vmem:[%s19731_s4 + $0x218] sm:$0xff] }
 0xac1   : > { %11832 = vmatpush.msra.mxu2 %v11406_v0  ;;  %11905 = vmatpush.msrb.mxu1 %v11428_v26  ;;  %v11434_v0 = vld [vmem:[%s19731_s4 + $0x150] sm:$0xff] }
 0xac2   : > { %13684 = vmatmul.msk.f32.vlgmr.msra.gmra.mxu0 %vm1392_vm4, %v20231_v48  ;;  %v11578_v3 = vpop.f32.mrf.mxu0  ;;  %13690 = vmatmul.msk.f32.vlgmr.msra.gmra.mxu1 %vm1392_vm4, %v20231_v48 }
 0xac3   : > { %11833 = vmatpush.msra.mxu2 %v11405_v2  ;;  %11906 = vmatpush.msrb.mxu1 %v11427_v37  ;;  %v11458_v2 = vld [vmem:[%s19731_s4 + $0x210] sm:$0xff] }
 0xac4   : > { %11879 = vmatpush.msra.mxu0 %v11431_v32 }
 0xac5   : > { %11834 = vmatpush.msra.mxu2 %v11404_v39  ;;  %11907 = vmatpush.msrb.mxu1 %v11426_v58  ;;  %v11433_v39 = vld [vmem:[%s19731_s4 + $0x148] sm:$0xff] }
 0xac6   : > { %13681 = vmatmul.msk.f32.vlgmr.msrb.gmra.mxu2 %vm7578_vm10, %v11578_v3  ;;  %11880 = vmatpush.msra.mxu0 %v11430_v20  ;;  %v12216_v3 = vld [vmem:[%s19732_s5 + $0x20] sm:$0xff] }
 0xac7   : > { %11835 = vmatpush.msra.mxu2 %v11403_v14  ;;  %11908 = vmatpush.msrb.mxu1 %v11425_v33  ;;  %v11457_v14 = vld [vmem:[%s19731_s4 + $0x208] sm:$0xff] }
 0xac8   : > { %11881 = vmatpush.msra.mxu0 %v11429_v19  ;;  %v12217_v19 = vld [vmem:[%s19732_s5 + $0x28] sm:$0xff] }
 0xac9   : > { %11836 = vmatpush.msra.mxu2 %v11402_v38  ;;  %11909 = vmatpush.msrb.mxu1 %v11424_v59  ;;  %v11456_v38 = vld [vmem:[%s19731_s4 + $0x200] sm:$0xff] }
 0xaca   : > { %13688 = vmatmul.msk.f32.vlgmr.msrb.gmra.mxu0 %vm1392_vm4, %v20231_v48 }
 0xacb   : > { %13698 = vmatpush.msk.msra.mxu1 %vm1399_vm3, %v19133_v54  ;;  %11837 = vmatpush.msra.mxu2 %v11401_v4 }
 0xacc   : > { %11882 = vmatpush.msra.mxu0 %v11428_v26 }
 0xacd   : > { %v11647_v44 = vpop.f32.mrf.mxu3  ;;  %11838 = vmatpush.msra.mxu2 %v11400_v45 }
 0xace   : > { %11883 = vmatpush.msra.mxu0 %v11427_v37 }
 0xacf   : > { %11924 = vmatpush.msrb.mxu2 %v11455_v21 }
 0xad0   : > { %11884 = vmatpush.msra.mxu0 %v11426_v58 }
 0xad1   : > { %11925 = vmatpush.msrb.mxu2 %v11454_v42 }
 0xad2   : > { %11885 = vmatpush.msra.mxu0 %v11425_v33  ;;  %v12215_v33 = vld [vmem:[%s19732_s5 + $0x18] sm:$0xff] }
 0xad3   : > { %11926 = vmatpush.msrb.mxu2 %v11453_v60 }
 0xad4   : > { %11886 = vmatpush.msra.mxu0 %v11424_v59  ;;  %v12214_v59 = vld [vmem:[%s19732_s5 + $0x10] sm:$0xff] }
 0xad5   : > { %11927 = vmatpush.msrb.mxu2 %v11452_v57  ;;  %v11737_v30 = vpop.f32.mrf.mxu3 }
 0xad6   : > { %11978 = vmatpush.msrb.mxu0 %v20196_v49  ;;  %13691 = vmatmul.msk.f32.vlgmr.msra.gmra.mxu2 %vm7578_vm10, %v11737_v30  ;;  %v12212_v30 = vld [vmem:[%s19732_s5] sm:$0xff] }
 0xad7   : > { %11928 = vmatpush.msrb.mxu2 %v11451_v47 }
 0xad9   : > { %11929 = vmatpush.msrb.mxu2 %v11450_v28  ;;  %v12219_v28 = vld [vmem:[%s19732_s5 + $0x38] sm:$0xff] }
 0xadb   : > { %11930 = vmatpush.msrb.mxu2 %v11449_v8 }
 0xadd   : > { %11931 = vmatpush.msrb.mxu2 %v11448_v46  ;;  %v11777_v54 = vpop.f32.mrf.mxu3 }
 0xade   : > { %13692 = vmatmul.msk.f32.vlgmr.msrb.gmra.mxu3 %vm7578_vm10, %v11777_v54  ;;  %13695 = vmatmul.msk.f32.vlgmr.msrb.gmra.mxu2 %vm7578_vm10, %v11777_v54  ;;  %v12227_v54 = vld [vmem:[%s19732_s5 + $0x78] sm:$0xff] }
 0xadf   : > { %13704 = vmatpush.msk.msra.mxu2 %vm1399_vm3, %v19184_v17  ;;  %12074 = vmatpush.msrb.mxu3 %v11415_v62  ;;  %v11413_v17 = vld [vmem:[%s19731_s4 + $0xa8] sm:$0xff] }
 0xae1   : > { %12075 = vmatpush.msrb.mxu3 %v11414_v15  ;;  %12145 = vmatpush.msrb.mxu2 %v11439_v50 }
 0xae3   : > { %12076 = vmatpush.msrb.mxu3 %v11413_v17  ;;  %12146 = vmatpush.msrb.mxu2 %v11438_v23 }
 0xae5   : > { %12147 = vmatpush.msrb.mxu2 %v11437_v40 }
 0xae6   : > { %13705 = vmatmul.msk.f32.vlgmr.msra.gmra.mxu2 %vm1392_vm4, %v20214_v29 }
 0xae7   : > { %12148 = vmatpush.msrb.mxu2 %v11436_v55 }
 0xae9   : > { %12149 = vmatpush.msrb.mxu2 %v11435_v35 }
 0xaeb   : > { %12150 = vmatpush.msrb.mxu2 %v11434_v0 }
 0xaed   : > { %12151 = vmatpush.msrb.mxu2 %v11433_v39 }
 0xaef   : > { %12152 = vmatpush.msrb.mxu2 %v11432_v18 }
 0xb27   : > { %v11601_v52 = vpop.f32.mrf.mxu1 }
 0xb28   : > { %v11648_v27 = vadd.f32 %v11647_v44, %v11601_v52  ;;  %v12213_v44 = vld [vmem:[%s19732_s5 + $0x8] sm:$0xff]  ;;  %v12226_v52 = vld [vmem:[%s19732_s5 + $0x70] sm:$0xff] }
 0xb37   : > { %v11670_v25 = vpop.f32.mrf.mxu0  ;;  %v11690_v34 = vpop.f32.mrf.mxu1 }
 0xb38   : > { %v19339_v5 = vadd.f32 %v11690_v34, %v11648_v27  ;;  %v12225_v27 = vld [vmem:[%s19732_s5 + $0x68] sm:$0xff]  ;;  %v12223_v34 = vld [vmem:[%s19732_s5 + $0x58] sm:$0xff] }
 0xb3f   : > { %v11757_v24 = vpop.f32.mrf.mxu0  ;;  %v11817_v9 = vpop.f32.mrf.mxu1 }
 0xb40   : > { %13693 = vmatmul.msk.f32.vlgmr.msra.gmra.mxu0 %vm7578_vm10, %v11757_v24  ;;  %13696 = vmatmul.msk.f32.vlgmr.msra.gmra.mxu3 %vm7578_vm10, %v11817_v9  ;;  %v12221_v24 = vld [vmem:[%s19732_s5 + $0x48] sm:$0xff] }
 0xb41   : > { %v11624_v63 = vpop.f32.mrf.mxu2  ;;  %13700 = vmatpush.msk.msra.mxu0 %vm1399_vm3, %v19141_v61  ;;  %v11412_v61 = vld [vmem:[%s19731_s4 + $0xa0] sm:$0xff] }
 0xb42   : > { %v11671_v10 = vadd.f32 %v11670_v25, %v11624_v63  ;;  %12077 = vmatpush.msrb.mxu3 %v11412_v61  ;;  %v12224_v25 = vld [vmem:[%s19732_s5 + $0x60] sm:$0xff] }
 0xb44   : > { %12078 = vmatpush.msrb.mxu3 %v11411_v12 }
 0xb46   : > { %12079 = vmatpush.msrb.mxu3 %v11410_v53 }
 0xb47   : > { %v11797_v11 = vpop.f32.mrf.mxu0 }
 0xb48   : > { %13694 = vmatmul.msk.f32.vlgmr.msrb.gmra.mxu1 %vm7578_vm10, %v11797_v11  ;;  %13697 = vmatmul.msk.f32.vlgmr.msrb.gmra.mxu0 %vm1392_vm4, %v20214_v29  ;;  %v13849_v11 = vld [vmem:[#allocation10] ss:$0 sm:$0xff] }
 0xb49   : > { %v11713_v1 = vpop.f32.mrf.mxu2  ;;  %13702 = vmatpush.msk.msrb.mxu1 %vm1399_vm3, %v19145_v6  ;;  %12097 = vmatpush.msrb.mxu0 %v11415_v62  ;;  %v11408_v6 = vld [vmem:[%s19731_s4 + $0x80] sm:$0xff] }
 0xb4a   : > { %v19365_v51 = vadd.f32 %v11713_v1, %v11671_v10  ;;  %12080 = vmatpush.msrb.mxu3 %v11409_v56  ;;  %v12220_v10 = vld [vmem:[%s19732_s5 + $0x40] sm:$0xff] }
 0xb4b   : > { %12098 = vmatpush.msrb.mxu0 %v11414_v15 }
 0xb4c   : > { %12081 = vmatpush.msrb.mxu3 %v11408_v6 }
 0xb4d   : > { %12099 = vmatpush.msrb.mxu0 %v11413_v17 }
 0xb4e   : > { %12167 = vmatpush.msra.mxu3 %v11463_v41 }
 0xb4f   : > { %12100 = vmatpush.msrb.mxu0 %v11412_v61 }
 0xb50   : > { %13699 = vmatmul.msk.f32.vlgmr.msra.gmra.mxu1 %vm1392_vm4, %v20214_v29  ;;  %13701 = vmatmul.msk.f32.vlgmr.msra.gmra.mxu0 %vm1392_vm4, %v20214_v29 }
 0xb51   : > { %12101 = vmatpush.msrb.mxu0 %v11411_v12  ;;  %12122 = vmatpush.msra.mxu1 %v11439_v50  ;;  %v12265_v50 = vld [vmem:[%s19732_s5 + $0x1a8] sm:$0xff] }
 0xb52   : > { %12168 = vmatpush.msra.mxu3 %v11462_v43 }
 0xb53   : > { %12102 = vmatpush.msrb.mxu0 %v11410_v53  ;;  %12123 = vmatpush.msra.mxu1 %v11438_v23  ;;  %v12266_v53 = vld [vmem:[%s19732_s5 + $0x1b0] sm:$0xff] }
 0xb54   : > { %12169 = vmatpush.msra.mxu3 %v11461_v7 }
 0xb55   : > { %12103 = vmatpush.msrb.mxu0 %v11409_v56  ;;  %12124 = vmatpush.msra.mxu1 %v11437_v40 }
 0xb56   : > { %12170 = vmatpush.msra.mxu3 %v11460_v16 }
 0xb57   : > { %12104 = vmatpush.msrb.mxu0 %v11408_v6  ;;  %12125 = vmatpush.msra.mxu1 %v11436_v55 }
 0xb58   : > { %13703 = vmatmul.msk.f32.vlgmr.msrb.gmra.mxu1 %vm1392_vm4, %v20214_v29  ;;  %12171 = vmatpush.msra.mxu3 %v11459_v36 }
 0xb59   : > { %12190 = vmatpush.msra.mxu0 %v11463_v41  ;;  %12126 = vmatpush.msra.mxu1 %v11435_v35  ;;  %v11840_v4 = vpop.f32.mrf.mxu2  ;;  %v12263_v35 = vld [vmem:[%s19732_s5 + $0x198] sm:$0xff] }
 0xb5a   : > { %12172 = vmatpush.msra.mxu3 %v11458_v2  ;;  %v11866_v45 = vadd.f32 %v11840_v4, %v19339_v5  ;;  %v12222_v5 = vld [vmem:[%s19732_s5 + $0x50] sm:$0xff]  ;;  %v12239_v4 = vld [vmem:[%s19732_s5 + $0xd8] sm:$0xff] }
 0xb5b   : > { %12191 = vmatpush.msra.mxu0 %v11462_v43  ;;  %12127 = vmatpush.msra.mxu1 %v11434_v0  ;;  %v12264_v43 = vld [vmem:[%s19732_s5 + $0x1a0] sm:$0xff]  ;;  %v12242_v0 = vld [vmem:[%s19732_s5 + $0xf0] sm:$0xff] }
 0xb5c   : > { %12173 = vmatpush.msra.mxu3 %v11457_v14 }
 0xb5d   : > { %12192 = vmatpush.msra.mxu0 %v11461_v7  ;;  %12128 = vmatpush.msra.mxu1 %v11433_v39  ;;  %v12243_v7 = vld [vmem:[%s19732_s5 + $0xf8] sm:$0xff]  ;;  %v12241_v39 = vld [vmem:[%s19732_s5 + $0xe8] sm:$0xff] }
 0xb5e   : > { %12174 = vmatpush.msra.mxu3 %v11456_v38 }
 0xb5f   : > { %12193 = vmatpush.msra.mxu0 %v11460_v16  ;;  %12129 = vmatpush.msra.mxu1 %v11432_v18  ;;  %v12240_v18 = vld [vmem:[%s19732_s5 + $0xe0] sm:$0xff] }
 0xb61   : > { %12194 = vmatpush.msra.mxu0 %v11459_v36  ;;  %12305 = vmatpush.msrb.mxu1 %v20196_v49  ;;  %v11933_v42 = vpop.f32.mrf.mxu2  ;;  %v11863_v47 = vpop.f32.mrf.mxu3 }
 0xb62   : > { %v11867_v32 = vadd.f32 %v11863_v47, %v19365_v51  ;;  %v12267_v51 = vld [vmem:[%s19732_s5 + $0x1b8] sm:$0xff] }
 0xb63   : > { %12195 = vmatpush.msra.mxu0 %v11458_v2  ;;  %v12251_v47 = vld [vmem:[%s19732_s5 + $0x138] sm:$0xff] }
 0xb65   : > { %12196 = vmatpush.msra.mxu0 %v11457_v14 }
 0xb67   : > { %12197 = vmatpush.msra.mxu0 %v11456_v38 }
 0xb69   : > { %v12060_v37 = vpop.f32.mrf.mxu2 }
 0xbbd   : > { %v11888_v21 = vpop.f32.mrf.mxu0 }
 0xbbe   : > { %v11914_v60 = vadd.f32 %v11888_v21, %v11866_v45  ;;  %v12238_v45 = vld [vmem:[%s19732_s5 + $0xd0] sm:$0xff]  ;;  %v12237_v21 = vld [vmem:[%s19732_s5 + $0xc8] sm:$0xff] }
 0xbc0   : > { %v11959_v57 = vadd.f32 %v11933_v42, %v11914_v60  ;;  %v12236_v42 = vld [vmem:[%s19732_s5 + $0xc0] sm:$0xff]  ;;  %v12261_v60 = vld [vmem:[%s19732_s5 + $0x188] sm:$0xff] }
 0xbc3   : > { %v11956_v63 = vpop.f32.mrf.mxu3 }
 0xbc5   : > { %v11911_v13 = vpop.f32.mrf.mxu1  ;;  %v11980_v20 = vpop.f32.mrf.mxu0 }
 0xbc6   : > { %v11915_v8 = vadd.f32 %v11911_v13, %v11867_v32  ;;  %13706 = vmatmul.msk.f32.vlgmr.msrb.gmra.mxu3 %vm7578_vm10, %v11980_v20  ;;  %v12250_v32 = vld [vmem:[%s19732_s5 + $0x130] sm:$0xff]  ;;  %v12248_v13 = vld [vmem:[%s19732_s5 + $0x120] sm:$0xff]  ;;  %v12247_v20 = vld [vmem:[%s19732_s5 + $0x118] sm:$0xff] }
 0xbc7   : > { %12390 = vmatpush.msrb.mxu3 %v12219_v28  ;;  %v12249_v28 = vld [vmem:[%s19732_s5 + $0x128] sm:$0xff] }
 0xbc8   : > { %v11960_v41 = vadd.f32 %v11956_v63, %v11915_v8  ;;  %v12246_v8 = vld [vmem:[%s19732_s5 + $0x110] sm:$0xff]  ;;  %v12259_v63 = vld [vmem:[%s19732_s5 + $0x178] sm:$0xff] }
 0xbc9   : > { %12391 = vmatpush.msrb.mxu3 %v12218_v22  ;;  %v12245_v22 = vld [vmem:[%s19732_s5 + $0x108] sm:$0xff] }
 0xbcb   : > { %12392 = vmatpush.msrb.mxu3 %v12217_v19  ;;  %v12244_v19 = vld [vmem:[%s19732_s5 + $0x100] sm:$0xff] }
 0xbcd   : > { %v12000_v46 = vpop.f32.mrf.mxu1  ;;  %v12020_v26 = vpop.f32.mrf.mxu0  ;;  %12393 = vmatpush.msrb.mxu3 %v12216_v3 }
 0xbce   : > { %13707 = vmatmul.msk.f32.vlgmr.msrb.gmra.mxu0 %vm7578_vm10, %v12020_v26  ;;  %13708 = vmatmul.msk.f32.vlgmr.msra.gmra.mxu1 %vm7578_vm10, %v12000_v46  ;;  %v12275_v46 = vld [vmem:[%s19732_s5 + $0x1f8] sm:$0xff] }
 0xbcf   : > { %13710 = vmatmul.msk.f32.vlgmr.msra.gmra.mxu3 %vm7578_vm10, %v12020_v26  ;;  %12413 = vmatpush.msrb.mxu0 %v12267_v51  ;;  %v12274_v26 = vld [vmem:[%s19732_s5 + $0x1f0] sm:$0xff] }
 0xbd0   : > { %12394 = vmatpush.msrb.mxu3 %v12215_v33  ;;  %v12278_v51 = vld [vmem:[%s19732_s5 + $0x210] sm:$0xff] }
 0xbd1   : > { %12414 = vmatpush.msrb.mxu0 %v12266_v53  ;;  %v12255_v53 = vld [vmem:[%s19732_s5 + $0x158] sm:$0xff] }
 0xbd2   : > { %12395 = vmatpush.msrb.mxu3 %v12214_v59 }
 0xbd3   : > { %12415 = vmatpush.msrb.mxu0 %v12265_v50  ;;  %v12276_v50 = vld [vmem:[%s19732_s5 + $0x200] sm:$0xff] }
 0xbd4   : > { %12396 = vmatpush.msrb.mxu3 %v12213_v44  ;;  %v12235_v44 = vld [vmem:[%s19732_s5 + $0xb8] sm:$0xff] }
 0xbd5   : > { %v12040_v58 = vpop.f32.mrf.mxu1  ;;  %12416 = vmatpush.msrb.mxu0 %v12264_v43 }
 0xbd6   : > { %13709 = vmatmul.msk.f32.vlgmr.msrb.gmra.mxu2 %vm7578_vm10, %v12040_v58  ;;  %13711 = vmatmul.msk.f32.vlgmr.msra.gmra.mxu0 %vm7578_vm10, %v12060_v37  ;;  %v12273_v37 = vld [vmem:[%s19732_s5 + $0x1e8] sm:$0xff] }
 0xbd7   : > { %13712 = vmatmul.msk.f32.vlgmr.msrb.gmra.mxu1 %vm12284_vm12, %v20051_v31  ;;  %12397 = vmatpush.msrb.mxu3 %v12212_v30  ;;  %v12234_v30 = vld [vmem:[%s19732_s5 + $0xb0] sm:$0xff] }
 0xbd8   : > { %12417 = vmatpush.msrb.mxu0 %v12263_v35 }
 0xbd9   : > { %12499 = vmatpush.msra.mxu3 %v12227_v54  ;;  %v12233_v54 = vld [vmem:[%s19732_s5 + $0xa8] sm:$0xff] }
 0xbdb   : > { %12500 = vmatpush.msra.mxu3 %v12226_v52  ;;  %v12283_v52 = vld [vmem:[%s19732_s5 + $0x238] sm:$0xff] }
 0xbdd   : > { %12501 = vmatpush.msra.mxu3 %v12225_v27  ;;  %v12269_v27 = vld [vmem:[%s19732_s5 + $0x1c8] sm:$0xff] }
 0xbdf   : > { %12502 = vmatpush.msra.mxu3 %v12224_v25  ;;  %v12268_v25 = vld [vmem:[%s19732_s5 + $0x1c0] sm:$0xff] }
 0xbe1   : > { %12503 = vmatpush.msra.mxu3 %v12223_v34  ;;  %v12232_v34 = vld [vmem:[%s19732_s5 + $0xa0] sm:$0xff] }
 0xbe3   : > { %12504 = vmatpush.msra.mxu3 %v12222_v5  ;;  %v12282_v5 = vld [vmem:[%s19732_s5 + $0x230] sm:$0xff] }
 0xbe5   : > { %12505 = vmatpush.msra.mxu3 %v12221_v24  ;;  %v12231_v24 = vld [vmem:[%s19732_s5 + $0x98] sm:$0xff] }
 0xbe7   : > { %12506 = vmatpush.msra.mxu3 %v12220_v10  ;;  %v12281_v10 = vld [vmem:[%s19732_s5 + $0x228] sm:$0xff] }
 0xc49   : > { %v12083_v9 = vpop.f32.mrf.mxu3 }
 0xc4a   : > { %v12109_v15 = vadd.f32 %v12083_v9, %v11959_v57  ;;  %v12260_v57 = vld [vmem:[%s19732_s5 + $0x180] sm:$0xff]  ;;  %v12230_v9 = vld [vmem:[%s19732_s5 + $0x90] sm:$0xff] }
 0xc4b   : > { %v12131_v62 = vpop.f32.mrf.mxu1  ;;  %v12106_v17 = vpop.f32.mrf.mxu0 }
 0xc4c   : > { %v12157_v61 = vadd.f32 %v12131_v62, %v12109_v15  ;;  %v12110_v40 = vadd.f32 %v12106_v17, %v11960_v41  ;;  %v12258_v62 = vld [vmem:[%s19732_s5 + $0x170] sm:$0xff]  ;;  %v12280_v15 = vld [vmem:[%s19732_s5 + $0x220] sm:$0xff]  ;;  %v12229_v17 = vld [vmem:[%s19732_s5 + $0x88] sm:$0xff] }
 0xc4d   : > { %v12253_v41 = vld [vmem:[%s19732_s5 + $0x148] sm:$0xff] }
 0xc52   : > { %v12176_v1 = vpop.f32.mrf.mxu3 }
 0xc53   : > { %v12202_v12 = vadd.f32 %v12176_v1, %v12157_v61  ;;  %v12199_v16 = vpop.f32.mrf.mxu0  ;;  %v12257_v61 = vld [vmem:[%s19732_s5 + $0x168] sm:$0xff]  ;;  %v12228_v1 = vld [vmem:[%s19732_s5 + $0x80] sm:$0xff] }
 0xc54   : > { %v12307_v56 = vpop.f32.mrf.mxu1 }
 0xc55   : > { %v12208_v6 = vadd.f32 %v13849_v11, %v12202_v12  ;;  %13718 = vmatmul.msk.f32.vlgmr.msrb.gmra.mxu3 %vm7578_vm10, %v12307_v56  ;;  %v12256_v12 = vld [vmem:[%s19732_s5 + $0x160] sm:$0xff]  ;;  %v12277_v56 = vld [vmem:[%s19732_s5 + $0x208] sm:$0xff] }
 0xc57   : > { %v19499_v23 = vmax.f32 %v12208_v6, 0.0  ;;  %v12254_v6 = vld [vmem:[%s19732_s5 + $0x150] sm:$0xff] }
 0xc59   : > { %13713 = vmatpush.msk.msra.mxu2 %vm12287_vm13, %v19499_v23  ;;  %v12154_v55 = vpop.f32.mrf.mxu2 }
 0xc5a   : > { %v12158_v36 = vadd.f32 %v12154_v55, %v12110_v40  ;;  %13714 = vmatmul.msk.f32.vlgmr.msra.gmra.mxu2 %vm12284_vm12, %v20051_v31 }
 0xc5b   : > { %12367 = vmatpush.msrb.mxu2 %v12243_v7 }
 0xc5c   : > { %v12203_v2 = vadd.f32 %v12199_v16, %v12158_v36 }
 0xc5d   : > { %12368 = vmatpush.msrb.mxu2 %v12242_v0 }
 0xc5e   : > { %v12209_v14 = vadd.f32 %v13849_v11, %v12203_v2  ;;  %v12279_v11 = vld [vmem:[%s19732_s5 + $0x218] sm:$0xff] }
 0xc5f   : > { %12369 = vmatpush.msrb.mxu2 %v12241_v39 }
 0xc60   : > { %v12211_v38 = vmax.f32 %v12209_v14, 0.0 }
 0xc61   : > { %12370 = vmatpush.msrb.mxu2 %v12240_v18 }
 0xc62   : > { %13715 = vmatpush.msk.msra.mxu1 %vm12287_vm13, %v12211_v38  ;;  %13731 = vmatpush.msk.msrb.mxu3 %vm12287_vm13, %v12211_v38 }
 0xc63   : > { %12371 = vmatpush.msrb.mxu2 %v12239_v4  ;;  %13716 = vmatmul.msk.f32.vlgmr.msra.gmra.mxu1 %vm12284_vm12, %v20051_v31  ;;  %v12262_v31 = vld [vmem:[%s19732_s5 + $0x190] sm:$0xff] }
 0xc64   : > { %12443 = vmatpush.msrb.mxu1 %v20196_v49  ;;  %12418 = vmatpush.msrb.mxu0 %v12262_v31 }
 0xc65   : > { %12372 = vmatpush.msrb.mxu2 %v12238_v45 }
 0xc66   : > { %13721 = vmatpush.msk.msra.mxu1 %vm12287_vm13, %v19499_v23  ;;  %12419 = vmatpush.msrb.mxu0 %v12261_v60 }
 0xc67   : > { %12373 = vmatpush.msrb.mxu2 %v12237_v21 }
 0xc68   : > { %12420 = vmatpush.msrb.mxu0 %v12260_v57 }
 0xc69   : > { %12374 = vmatpush.msrb.mxu2 %v12236_v42 }
 0xc6a   : > { %12523 = vmatpush.msra.mxu0 %v12251_v47  ;;  %v12694_v47 = vld [vmem:[#allocation11] sm:$0x1] }
 0xc6b   : > { %13723 = vmatpush.msk.msra.mxu2 %vm12287_vm13, %v12211_v38  ;;  %13720 = vmatmul.msk.f32.vlgmr.msrb.gmra.mxu1 %vm12284_vm12, %v20231_v48 }
 0xc6c   : > { %12524 = vmatpush.msra.mxu0 %v12250_v32  ;;  %12547 = vmatpush.msrb.mxu1 %v12275_v46 }
 0xc6e   : > { %12525 = vmatpush.msra.mxu0 %v12249_v28  ;;  %12548 = vmatpush.msrb.mxu1 %v12274_v26 }
 0xc70   : > { %12526 = vmatpush.msra.mxu0 %v12248_v13  ;;  %12549 = vmatpush.msrb.mxu1 %v12273_v37 }
 0xc72   : > { %12527 = vmatpush.msra.mxu0 %v12247_v20 }
 0xc73   : > { %13722 = vmatmul.msk.f32.vlgmr.msra.gmra.mxu1 %vm12284_vm12, %v20231_v48 }
 0xc74   : > { %12528 = vmatpush.msra.mxu0 %v12246_v8 }
 0xc76   : > { %12529 = vmatpush.msra.mxu0 %v12245_v22 }
 0xc78   : > { %12530 = vmatpush.msra.mxu0 %v12244_v19 }
 0xcd8   : > { %v12399_v40 = vpop.f32.mrf.mxu3 }
 0xcdd   : > { %v12330_v58 = vpop.f32.mrf.mxu2 }
 0xcde   : > { %13717 = vmatmul.msk.f32.vlgmr.msrb.gmra.mxu2 %vm7578_vm10, %v12330_v58 }
 0xcdf   : > { %12577 = vmatpush.msrb.mxu2 %v20196_v49  ;;  %v12272_v49 = vld [vmem:[%s19732_s5 + $0x1e0] sm:$0xff] }
 0xce0   : > { %v12353_v3 = vpop.f32.mrf.mxu1  ;;  %12550 = vmatpush.msrb.mxu1 %v12272_v49 }
 0xce1   : > { %13719 = vmatmul.msk.f32.vlgmr.msrb.gmra.mxu0 %vm7578_vm10, %v12353_v3 }
 0xce2   : > { %12633 = vmatpush.msrb.mxu0 %v12235_v44 }
 0xce4   : > { %12634 = vmatpush.msrb.mxu0 %v12234_v30 }
 0xce6   : > { %13724 = vmatmul.msk.f32.vlgmr.msra.gmra.mxu2 %vm12284_vm12, %v20231_v48  ;;  %v12271_v48 = vld [vmem:[%s19732_s5 + $0x1d8] sm:$0xff]  ;;  %12635 = vmatpush.msrb.mxu0 %v12233_v54 }
 0xce7   : > { %13729 = vmatpush.msk.msra.mxu2 %vm12287_vm13, %v19499_v23  ;;  %12551 = vmatpush.msrb.mxu1 %v12271_v48  ;;  %v12252_v23 = vld [vmem:[%s19732_s5 + $0x140] sm:$0xff] }
 0xce8   : > { %v12445_v33 = vpop.f32.mrf.mxu1  ;;  %12636 = vmatpush.msrb.mxu0 %v12232_v34 }
 0xce9   : > { %13725 = vmatmul.msk.f32.vlgmr.msra.gmra.mxu3 %vm7578_vm10, %v12445_v33 }
 0xcea   : > { %12637 = vmatpush.msrb.mxu0 %v12231_v24 }
 0xcec   : > { %12638 = vmatpush.msrb.mxu0 %v12230_v9 }
 0xcee   : > { %13728 = vmatmul.msk.f32.vlgmr.msrb.gmra.mxu2 %vm12284_vm12, %v20214_v29  ;;  %12639 = vmatpush.msrb.mxu0 %v12229_v17 }
 0xcef   : > { %12681 = vmatpush.msrb.mxu2 %v12283_v52 }
 0xcf0   : > { %v12465_v59 = vpop.f32.mrf.mxu1  ;;  %12640 = vmatpush.msrb.mxu0 %v12228_v1 }
 0xcf1   : > { %13726 = vmatmul.msk.f32.vlgmr.msra.gmra.mxu0 %vm7578_vm10, %v12465_v59  ;;  %13732 = vmatmul.msk.f32.vlgmr.msrb.gmra.mxu3 %vm12284_vm12, %v20214_v29 }
 0xcf2   : > { %12682 = vmatpush.msrb.mxu2 %v12282_v5 }
 0xcf4   : > { %12683 = vmatpush.msrb.mxu2 %v12281_v10 }
 0xcf6   : > { %13730 = vmatmul.msk.f32.vlgmr.msra.gmra.mxu2 %vm12284_vm12, %v20214_v29  ;;  %v12270_v29 = vld [vmem:[%s19732_s5 + $0x1d0] sm:$0xff] }
 0xcf7   : > { %12552 = vmatpush.msrb.mxu1 %v12270_v29  ;;  %12684 = vmatpush.msrb.mxu2 %v12280_v15 }
 0xcf9   : > { %12553 = vmatpush.msrb.mxu1 %v12269_v27  ;;  %12685 = vmatpush.msrb.mxu2 %v12279_v11 }
 0xcfb   : > { %12554 = vmatpush.msrb.mxu1 %v12268_v25  ;;  %12686 = vmatpush.msrb.mxu2 %v12278_v51 }
 0xcfd   : > { %12657 = vmatpush.msra.mxu1 %v12259_v63  ;;  %12687 = vmatpush.msrb.mxu2 %v12277_v56 }
 0xcff   : > { %12658 = vmatpush.msra.mxu1 %v12258_v62  ;;  %12688 = vmatpush.msrb.mxu2 %v12276_v50 }
 0xd01   : > { %12659 = vmatpush.msra.mxu1 %v12257_v61 }
 0xd03   : > { %12660 = vmatpush.msra.mxu1 %v12256_v12 }
 0xd05   : > { %12661 = vmatpush.msra.mxu1 %v12255_v53 }
 0xd07   : > { %12662 = vmatpush.msra.mxu1 %v12254_v6 }
 0xd09   : > { %12663 = vmatpush.msra.mxu1 %v12253_v41 }
 0xd0b   : > { %12664 = vmatpush.msra.mxu1 %v12252_v23 }
 0xd5e   : > { %v12422_v16 = vpop.f32.mrf.mxu0 }
 0xd61   : > { %v12376_v43 = vpop.f32.mrf.mxu2 }
 0xd62   : > { %v12400_v7 = vadd.f32 %v12399_v40, %v12376_v43 }
 0xd64   : > { %v12425_v35 = vadd.f32 %v12422_v16, %v12400_v7 }
 0xd69   : > { %v12485_v55 = vpop.f32.mrf.mxu2 }
 0xd6a   : > { %13727 = vmatmul.msk.f32.vlgmr.msrb.gmra.mxu1 %vm7578_vm10, %v12485_v55 }
 0xd6c   : > { %v12508_v36 = vpop.f32.mrf.mxu3 }
 0xd6d   : > { %v12511_v0 = vadd.f32 %v12508_v36, %v12425_v35 }
 0xd6e   : > { %v12532_v18 = vpop.f32.mrf.mxu0 }
 0xd6f   : > { %v12535_v4 = vadd.f32 %v12532_v18, %v12511_v0 }
 0xd71   : > { %v12579_v2 = vpop.f32.mrf.mxu2 }
 0xd72   : > { %13733 = vmatmul.msk.f32.vlgmr.msrb.gmra.mxu0 %vm7578_vm10, %v12579_v2 }
 0xd74   : > { %v12619_v39 = vpop.f32.mrf.mxu3 }
 0xd75   : > { %13735 = vmatmul.msk.f32.vlgmr.msrb.gmra.mxu2 %vm7578_vm10, %v12619_v39 }
 0xd79   : > { %v12599_v14 = vpop.f32.mrf.mxu2 }
 0xd7a   : > { %13734 = vmatmul.msk.f32.vlgmr.msra.gmra.mxu1 %vm7578_vm10, %v12599_v14 }
 0xde7   : > { %v12556_v38 = vpop.f32.mrf.mxu1 }
 0xde8   : > { %v12559_v21 = vadd.f32 %v12556_v38, %v12535_v4 }
 0xdef   : > { %v12642_v45 = vpop.f32.mrf.mxu0 }
 0xdf0   : > { %v12645_v42 = vadd.f32 %v12642_v45, %v12559_v21 }
 0xdf7   : > { %v12666_v31 = vpop.f32.mrf.mxu1 }
 0xdf8   : > { %v12669_v60 = vadd.f32 %v12666_v31, %v12645_v42  ;;  %v12690_v57 = vpop.f32.mrf.mxu2 }
 0xdfa   : > { %v12693_v32 = vadd.f32 %v12690_v57, %v12669_v60 }
 0xdfc   : > { %v12695_v28 = vadd.f32 %v12694_v47, %v12693_v32 }
 0xdfe   : > { %v12696_v13 = vmax.f32 %v12695_v28, 0.0 }
 0xe00   : > { %12698 = vst.msk [vmem:[%s468_s13] sm:$0x1] %vm12697_vm14, %v12696_v13 }
 0xe01   : > { %14255 = shalt.err (!%p14252_p8)
}
 0xe02   : > { %13767 = dma.vmem_to_hbm [thread:$0]  (%p14415_p5), %s12711_s15, 16, %s12713_s12, %s12700_s24  }
 0xe03 PF: > { %p13804_p9 = scmp.ge.s32.totalorder %s14306_s20, 2  ;;  %s12724_s23 = sand.u32 1, %s14294_s17  }
 0xe04   : > { %s12725_s29 = scalar_lea.sflag [#allocation4], %s12724_s23 }
 0xe05   : > { %p13789_p10 = pnand %p13804_p9, %p14419_p6 }
 0xe07   : > { %p13790_p11 = pneg %p13789_p10 }
 0xe09   : > { %14289 = dma.done.wait (%p13790_p11), %s12725_s29, 16  }
 0xe0a   : > { %14291 = vsyncadd (%p13790_p11), %s12725_s29, 4294967280  ;;  %s20233_s20 = sld [smem:[#allocation20_spill]]  ;;  %s20236_s17 = smov %s14298_s18 }
 0xe0b   : > { %s20234_s25 = sld [smem:[#allocation19_spill]] }
 0xe0c   : > { %s20235_s19 = sld [smem:[#allocation21_spill]] }
 0xe10   : > { %p25_p12 = scmp.ge.s32.totalorder %s20233_s20, 4  }
 0xe11   : > { %s20237_s18 = smov %s20234_s25 }
 0xe12   :  { %27 = sbr.rel (!%p25_p12) target bundleno = 11 (0xb), region = 124 }
 0xe17   :  { %12730 = vsyncpa [#allocation3], 1 }
 0xe18   :  { %12732 = vsyncpa [#allocation3 + $0x1], 1 }
 0xe19   :  { %12733 = vsyncpa [#allocation6], 1 }
 0xe1a   :  { %12734 = vsyncpa [#allocation9], 1 }
 0xe1b   :  { %12735 = vsyncpa [#allocation12], 1 }
 0xe1c   :  { %12736 = vsyncpa [#allocation4], 1 }
 0xe1d   :  { %12738 = vsyncpa [#allocation4 + $0x1], 1 }

</bundles_post_ra>
